<compile_context>
chip_gen: v7x
topology: tpu7x:2x2x1
jax: 0.10.0
libtpu: 0.0.40
codegen_flags: <defaults>
</compile_context>

<pallas_src>
import jax
import jax.numpy as jnp
from jax.experimental import pallas as pl
from jax.experimental.pallas import tpu as pltpu

BN_EPS = 1e-5
LANE = 128      # pad every channel dim to a multiple of the TPU lane width (lane-dense stores)
TILE_M = 256    # rows of M = N*H*W per grid step for the 1x1-conv kernels
                # (demo uses 256 so the grid/accumulation path is exercised; use 512-2048 in prod)


def _round_up(x, m):
    return ((x + m - 1) // m) * m


def _cparams(sem):
    return pltpu.CompilerParams(
        dimension_semantics=sem,
        vmem_limit_bytes=32 * 1024 * 1024,   # tiles here need ~1 MiB; fits all generations
    )


# ----------------------------- Pallas kernels ------------------------------ #

def _mm_stats_kernel(x_ref, w_ref, sum_ref, ssq_ref):
    # BN pass 1 for a 1x1 conv: accumulate per-channel sum / sumsq of (x @ w) over the M grid.
    @pl.when(pl.program_id(0) == 0)
    def _():
        sum_ref[...] = jnp.zeros_like(sum_ref)
        ssq_ref[...] = jnp.zeros_like(ssq_ref)

    y = jnp.dot(x_ref[...], w_ref[...], preferred_element_type=jnp.float32)
    sum_ref[...] += jnp.sum(y, axis=0, keepdims=True)
    ssq_ref[...] += jnp.sum(y * y, axis=0, keepdims=True)


def _mm_affine_relu_kernel(x_ref, w_ref, scale_ref, shift_ref, o_ref):
    # BN pass 2 for a 1x1 conv: y = relu((x @ w) * scale + shift), tiled over M.
    y = jnp.dot(x_ref[...], w_ref[...], preferred_element_type=jnp.float32)
    o_ref[...] = jnp.maximum(y * scale_ref[...] + shift_ref[...], 0.0).astype(o_ref.dtype)


def _mm_affine_add_relu_kernel(x_ref, w_ref, scale_ref, shift_ref, res_ref, o_ref):
    # conv3 + bn3 + residual add + relu, tiled over M.
    y = jnp.dot(x_ref[...], w_ref[...], preferred_element_type=jnp.float32)
    y = y * scale_ref[...] + shift_ref[...] + res_ref[...].astype(jnp.float32)
    o_ref[...] = jnp.maximum(y, 0.0).astype(o_ref.dtype)


def _conv3x3_acc(y1p_ref, w2_ref):
    # 3x3 conv on one replication-padded image as 9 shifted MXU matmuls with an f32
    # accumulator kept in VMEM/vregs — no im2col materialized in HBM.
    # (W should be a multiple of 8 for clean sublane layouts; not required for correctness.)
    _, Hp, Wp, C = y1p_ref.shape
    H, W = Hp - 2, Wp - 2
    Cout = w2_ref.shape[2]
    acc = jnp.zeros((H * W, Cout), jnp.float32)
    for k in range(9):                      # static unroll over the 9 taps
        dy, dx = k // 3, k % 3
        win = y1p_ref[0, dy:dy + H, dx:dx + W, :].reshape(H * W, C)
        acc = acc + jnp.dot(win, w2_ref[k], preferred_element_type=jnp.float32)
    return acc


def _conv3x3_stats_kernel(y1p_ref, w2_ref, sum_ref, ssq_ref):
    # BN pass 1 for the 3x3 conv (grid over batch images).
    @pl.when(pl.program_id(0) == 0)
    def _():
        sum_ref[...] = jnp.zeros_like(sum_ref)
        ssq_ref[...] = jnp.zeros_like(ssq_ref)

    z = _conv3x3_acc(y1p_ref, w2_ref)
    sum_ref[...] += jnp.sum(z, axis=0, keepdims=True)
    ssq_ref[...] += jnp.sum(z * z, axis=0, keepdims=True)


def _conv3x3_bn_relu_mm_stats_kernel(y1p_ref, w2_ref, sc2_ref, sh2_ref, w3_ref,
                                     y2_ref, sum3_ref, ssq3_ref):
    # conv2 BN pass 2 (normalize + relu -> y2, bf16) fused with conv3's BN pass 1:
    # z3 = y2 @ w3 is computed while y2 is still in VMEM, so bn3 stats need no extra HBM read.
    @pl.when(pl.program_id(0) == 0)
    def _():
        sum3_ref[...] = jnp.zeros_like(sum3_ref)
        ssq3_ref[...] = jnp.zeros_like(ssq3_ref)

    _, Hp, Wp, _ = y1p_ref.shape
    H, W = Hp - 2, Wp - 2
    z2 = _conv3x3_acc(y1p_ref, w2_ref)                                   # (H*W, Cmid) f32
    y2 = jnp.maximum(z2 * sc2_ref[...] + sh2_ref[...], 0.0).astype(jnp.bfloat16)
    y2_ref[...] = y2.reshape(1, H, W, y2.shape[-1])
    z3 = jnp.dot(y2, w3_ref[...], preferred_element_type=jnp.float32)    # (H*W, Co) f32
    sum3_ref[...] += jnp.sum(z3, axis=0, keepdims=True)
    ssq3_ref[...] += jnp.sum(z3 * z3, axis=0, keepdims=True)


# ----------------------------- pallas_call wrappers ------------------------ #

def _mm_stats(x, w):
    Mp, K = x.shape
    C = w.shape[1]
    return pl.pallas_call(
        _mm_stats_kernel,
        grid=(Mp // TILE_M,),
        in_specs=[pl.BlockSpec((TILE_M, K), lambda i: (i, 0)),
                  pl.BlockSpec((K, C), lambda i: (0, 0))],
        out_specs=[pl.BlockSpec((1, C), lambda i: (0, 0)),
                   pl.BlockSpec((1, C), lambda i: (0, 0))],
        out_shape=[jax.ShapeDtypeStruct((1, C), jnp.float32),
                   jax.ShapeDtypeStruct((1, C), jnp.float32)],
        compiler_params=_cparams(("arbitrary",)),       # accumulator output -> arbitrary
    )(x, w)


def _mm_affine_relu(x, w, scale, shift, out_dtype):
    Mp, K = x.shape
    C = w.shape[1]
    return pl.pallas_call(
        _mm_affine_relu_kernel,
        grid=(Mp // TILE_M,),
        in_specs=[pl.BlockSpec((TILE_M, K), lambda i: (i, 0)),
                  pl.BlockSpec((K, C), lambda i: (0, 0)),
                  pl.BlockSpec((1, C), lambda i: (0, 0)),
                  pl.BlockSpec((1, C), lambda i: (0, 0))],
        out_specs=pl.BlockSpec((TILE_M, C), lambda i: (i, 0)),
        out_shape=jax.ShapeDtypeStruct((Mp, C), out_dtype),
        compiler_params=_cparams(("parallel",)),        # independent tiles -> megacore-friendly
    )(x, w, scale, shift)


def _mm_affine_add_relu(x, w, scale, shift, res, out_dtype):
    Mp, K = x.shape
    C = w.shape[1]
    return pl.pallas_call(
        _mm_affine_add_relu_kernel,
        grid=(Mp // TILE_M,),
        in_specs=[pl.BlockSpec((TILE_M, K), lambda i: (i, 0)),
                  pl.BlockSpec((K, C), lambda i: (0, 0)),
                  pl.BlockSpec((1, C), lambda i: (0, 0)),
                  pl.BlockSpec((1, C), lambda i: (0, 0)),
                  pl.BlockSpec((TILE_M, C), lambda i: (i, 0))],
        out_specs=pl.BlockSpec((TILE_M, C), lambda i: (i, 0)),
        out_shape=jax.ShapeDtypeStruct((Mp, C), out_dtype),
        compiler_params=_cparams(("parallel",)),
    )(x, w, scale, shift, res)


def _conv3x3_stats(y1p, w2):
    N, Hp, Wp, C = y1p.shape
    Cout = w2.shape[2]
    return pl.pallas_call(
        _conv3x3_stats_kernel,
        grid=(N,),
        in_specs=[pl.BlockSpec((1, Hp, Wp, C), lambda n: (n, 0, 0, 0)),
                  pl.BlockSpec((9, C, Cout), lambda n: (0, 0, 0))],
        out_specs=[pl.BlockSpec((1, Cout), lambda n: (0, 0)),
                   pl.BlockSpec((1, Cout), lambda n: (0, 0))],
        out_shape=[jax.ShapeDtypeStruct((1, Cout), jnp.float32),
                   jax.ShapeDtypeStruct((1, Cout), jnp.float32)],
        compiler_params=_cparams(("arbitrary",)),
    )(y1p, w2)


def _conv3x3_bn_relu_mm_stats(y1p, w2, scale2, shift2, w3):
    N, Hp, Wp, C = y1p.shape
    H, W = Hp - 2, Wp - 2
    Cmid = w2.shape[2]
    Co = w3.shape[1]
    return pl.pallas_call(
        _conv3x3_bn_relu_mm_stats_kernel,
        grid=(N,),
        in_specs=[pl.BlockSpec((1, Hp, Wp, C), lambda n: (n, 0, 0, 0)),
                  pl.BlockSpec((9, C, Cmid), lambda n: (0, 0, 0)),
                  pl.BlockSpec((1, Cmid), lambda n: (0, 0)),
                  pl.BlockSpec((1, Cmid), lambda n: (0, 0)),
                  pl.BlockSpec((Cmid, Co), lambda n: (0, 0))],
        out_specs=[pl.BlockSpec((1, H, W, Cmid), lambda n: (n, 0, 0, 0)),
                   pl.BlockSpec((1, Co), lambda n: (0, 0)),
                   pl.BlockSpec((1, Co), lambda n: (0, 0))],
        out_shape=[jax.ShapeDtypeStruct((N, H, W, Cmid), jnp.bfloat16),
                   jax.ShapeDtypeStruct((1, Co), jnp.float32),
                   jax.ShapeDtypeStruct((1, Co), jnp.float32)],
        compiler_params=_cparams(("arbitrary",)),
    )(y1p, w2, scale2, shift2, w3)


# ------------------------------- glue (JAX) -------------------------------- #

def _pad_2d(a, rows, cols):
    return jnp.pad(a, ((0, rows - a.shape[0]), (0, cols - a.shape[1])))


def _affine_from_stats(s, ssq, gamma, beta, count):
    # Tiny (1, C) math: fold training-mode BN (batch mean, biased var) + affine into scale/shift.
    mean = s / count
    var = jnp.maximum(ssq / count - mean * mean, 0.0)
    scale = gamma.reshape(1, -1) * jax.lax.rsqrt(var + BN_EPS)
    shift = beta.reshape(1, -1) - mean * scale
    return scale, shift


def init_bottleneck_params(key, inplanes, planes, base_width=64, groups=1):
    width = int(planes * (base_width / 64.0)) * groups
    out_ch = planes * 4  # Bottleneck.expansion == 4
    ks = jax.random.split(key, 9)
    return {
        # PyTorch conv weight layouts: (out, in, kh, kw)
        "w1": 0.1 * jax.random.normal(ks[0], (width, inplanes, 1, 1), jnp.float32),
        "w2": 0.1 * jax.random.normal(ks[1], (width, width, 3, 3), jnp.float32),
        "w3": 0.1 * jax.random.normal(ks[2], (out_ch, width, 1, 1), jnp.float32),
        "g1": 1.0 + 0.1 * jax.random.normal(ks[3], (width,), jnp.float32),
        "b1": 0.1 * jax.random.normal(ks[4], (width,), jnp.float32),
        "g2": 1.0 + 0.1 * jax.random.normal(ks[5], (width,), jnp.float32),
        "b2": 0.1 * jax.random.normal(ks[6], (width,), jnp.float32),
        "g3": 1.0 + 0.1 * jax.random.normal(ks[7], (out_ch,), jnp.float32),
        "b3": 0.1 * jax.random.normal(ks[8], (out_ch,), jnp.float32),
    }


@jax.jit
def bottleneck_forward(x_nchw, p):
    # x_nchw: (N, Cin, H, W) f32 — same layout as the PyTorch module input.
    N, Cin, H, W = x_nchw.shape
    width = p["w1"].shape[0]
    out_ch = p["w3"].shape[0]
    assert Cin == out_ch, "identity residual path requires inplanes == planes*4 (downsample=None)"

    Cin_p = _round_up(Cin, LANE)
    Cw_p = _round_up(width, LANE)
    Co_p = _round_up(out_ch, LANE)
    M = N * H * W
    M_pad = _round_up(M, TILE_M)

    # Layout / packing glue: NCHW -> NHWC, zero-pad channels to lane-dense 128 multiples,
    # zero-pad rows to the M tile (zero rows contribute exactly 0 to the BN sums),
    # cast matmul operands to bf16.
    x_nhwc = jnp.transpose(x_nchw, (0, 2, 3, 1))
    x_flat = _pad_2d(x_nhwc.reshape(M, Cin), M_pad, Cin_p)                 # f32 (residual)
    x_bf = x_flat.astype(jnp.bfloat16)

    w1 = _pad_2d(p["w1"][:, :, 0, 0].T, Cin_p, Cw_p).astype(jnp.bfloat16)  # (Cin_p, Cw_p)
    w2 = jnp.transpose(p["w2"], (2, 3, 1, 0)).reshape(9, width, width)     # tap-major
    w2 = jnp.pad(w2, ((0, 0), (0, Cw_p - width), (0, Cw_p - width))).astype(jnp.bfloat16)
    w3 = _pad_2d(p["w3"][:, :, 0, 0].T, Cw_p, Co_p).astype(jnp.bfloat16)   # (Cw_p, Co_p)
    g1 = jnp.pad(p["g1"], (0, Cw_p - width));  b1 = jnp.pad(p["b1"], (0, Cw_p - width))
    g2 = jnp.pad(p["g2"], (0, Cw_p - width));  b2 = jnp.pad(p["b2"], (0, Cw_p - width))
    g3 = jnp.pad(p["g3"], (0, Co_p - out_ch)); b3 = jnp.pad(p["b3"], (0, Co_p - out_ch))

    # ---- conv1 (1x1) + bn1 + relu : two tiled passes over M ----
    s1, q1 = _mm_stats(x_bf, w1)
    sc1, sh1 = _affine_from_stats(s1, q1, g1, b1, M)
    y1 = _mm_affine_relu(x_bf, w1, sc1, sh1, jnp.bfloat16)                 # (M_pad, Cw_p) bf16
    y1 = y1[:M].reshape(N, H, W, Cw_p)

    # newPad2d(1) == width-1 replication ("edge") padding.
    # TODO(synk): fold the replication pad into a halo-load index_map / manual DMA instead of
    # materializing the padded copy in HBM.
    y1p = jnp.pad(y1, ((0, 0), (1, 1), (1, 1), (0, 0)), mode="edge")

    # ---- conv2 (3x3, in-kernel taps, no im2col) + bn2 + relu, fused with conv3 stats ----
    s2, q2 = _conv3x3_stats(y1p, w2)
    sc2, sh2 = _affine_from_stats(s2, q2, g2, b2, M)
    y2, s3, q3 = _conv3x3_bn_relu_mm_stats(y1p, w2, sc2, sh2, w3)          # y2: (N,H,W,Cw_p) bf16
    sc3, sh3 = _affine_from_stats(s3, q3, g3, b3, M)

    # ---- conv3 (1x1) + bn3 + residual add + relu : tiled over M ----
    y2_flat = _pad_2d(y2.reshape(M, Cw_p), M_pad, Cw_p)
    out = _mm_affine_add_relu(y2_flat, w3, sc3, sh3, x_flat, jnp.float32)  # (M_pad, Co_p) f32
    out = out[:M, :out_ch].reshape(N, H, W, out_ch)
    return jnp.transpose(out, (0, 3, 1, 2))                                # back to NCHW
    # TODO(synk): BatchNorm running-stat updates (training-mode side effect) are not modeled;
    # they do not affect the forward output.


# --------------------------- pure-JAX reference ----------------------------- #

def bottleneck_reference(x_nchw, p):
    # Reference of the module forward (training-mode BN). Matmul operands are rounded to
    # bf16 to mirror the kernel's MXU precision; all stats / normalization in f32.
    N, Cin, H, W = x_nchw.shape
    width = p["w1"].shape[0]
    out_ch = p["w3"].shape[0]
    x = jnp.transpose(x_nchw, (0, 2, 3, 1)).reshape(-1, Cin)

    def bn(z, g, b):
        mu = jnp.mean(z, axis=0, keepdims=True)
        var = jnp.mean(jnp.square(z - mu), axis=0, keepdims=True)
        scale = g.reshape(1, -1) * jax.lax.rsqrt(var + BN_EPS)
        return z * scale + (b.reshape(1, -1) - mu * scale)

    w1 = p["w1"][:, :, 0, 0].T.astype(jnp.bfloat16)
    z1 = jnp.dot(x.astype(jnp.bfloat16), w1, preferred_element_type=jnp.float32)
    y1 = jnp.maximum(bn(z1, p["g1"], p["b1"]), 0.0).astype(jnp.bfloat16)
    y1p = jnp.pad(y1.reshape(N, H, W, width), ((0, 0), (1, 1), (1, 1), (0, 0)), mode="edge")

    w2 = jnp.transpose(p["w2"], (2, 3, 1, 0)).reshape(9, width, width).astype(jnp.bfloat16)
    z2 = jnp.zeros((N * H * W, width), jnp.float32)
    for k in range(9):
        dy, dx = k // 3, k % 3
        win = y1p[:, dy:dy + H, dx:dx + W, :].reshape(-1, width)
        z2 = z2 + jnp.dot(win, w2[k], preferred_element_type=jnp.float32)
    y2 = jnp.maximum(bn(z2, p["g2"], p["b2"]), 0.0).astype(jnp.bfloat16)

    w3 = p["w3"][:, :, 0, 0].T.astype(jnp.bfloat16)
    z3 = jnp.dot(y2, w3, preferred_element_type=jnp.float32)
    y3 = jnp.maximum(bn(z3, p["g3"], p["b3"]) + x, 0.0)
    return jnp.transpose(y3.reshape(N, H, W, out_ch), (0, 3, 1, 2))


# ---------------------------------- main ------------------------------------ #

if __name__ == "__main__":
    key = jax.random.PRNGKey(0)
    kx, kp = jax.random.split(key)

    N, planes = 2, 4
    inplanes = planes * 4          # == expansion*planes so the identity residual add is valid
    H = W = 16                     # multiple of 8 -> clean sublane layouts in the 3x3 kernel

    x = jax.random.normal(kx, (N, inplanes, H, W), jnp.float32)
    params = init_bottleneck_params(kp, inplanes, planes)

    out = jax.block_until_ready(bottleneck_forward(x, params))
    ref = jax.block_until_ready(bottleneck_reference(x, params))

    assert out.shape == (N, planes * 4, H, W), out.shape
    max_err = float(jnp.max(jnp.abs(out - ref)))
    assert max_err < 2e-3, max_err
    print("KERNEL_OK")
</pallas_src>

<mosaic_0001>
module attributes {stable_mosaic.version = 11 : i64} {
  func.func @_mm_stats_kernel(%arg0: i32, %arg1: memref<256x128xbf16, #tpu.memory_space<vmem>>, %arg2: memref<128x128xbf16, #tpu.memory_space<vmem>>, %arg3: memref<1x128xf32, #tpu.memory_space<vmem>>, %arg4: memref<1x128xf32, #tpu.memory_space<vmem>>) attributes {dimension_semantics = [#tpu.dimension_semantics<arbitrary>], iteration_bounds = array<i64: 2>, scalar_prefetch = 0 : i64, scratch_operands = 0 : i64, tpu.core_type = #tpu.core_type<tc>, window_params = [{transform_indices = @transform_0, window_bounds = array<i64: 256, 128>}, {pipeline_mode = #tpu.pipeline_mode<synchronous>, transform_indices = @transform_1, window_bounds = array<i64: 128, 128>}, {pipeline_mode = #tpu.pipeline_mode<synchronous>, transform_indices = @transform_2, window_bounds = array<i64: 1, 128>}, {pipeline_mode = #tpu.pipeline_mode<synchronous>, transform_indices = @transform_3, window_bounds = array<i64: 1, 128>}]} {
    %c0_i32 = arith.constant 0 : i32
    %0 = arith.cmpi eq, %arg0, %c0_i32 : i32
    %1 = arith.extui %0 : i1 to i32
    %c0_i32_0 = arith.constant 0 : i32
    %2 = arith.cmpi ne, %1, %c0_i32_0 : i32
    scf.if %2 {
      %cst_14 = arith.constant 0.000000e+00 : f32
      %17 = vector.broadcast %cst_14 : f32 to vector<1x128xf32>
      %c0_15 = arith.constant 0 : index
      %c0_16 = arith.constant 0 : index
      %18 = vector.load %arg3[%c0_15, %c0_16] : memref<1x128xf32, #tpu.memory_space<vmem>>, vector<1x128xf32>
      tpu.vector_store %arg3[%c0_15, %c0_16], %17 {strides = array<i32>} : memref<1x128xf32, #tpu.memory_space<vmem>>, vector<1x128xf32>,
      %cst_17 = arith.constant 0.000000e+00 : f32
      %19 = vector.broadcast %cst_17 : f32 to vector<1x128xf32>
      %c0_18 = arith.constant 0 : index
      %c0_19 = arith.constant 0 : index
      %20 = vector.load %arg4[%c0_18, %c0_19] : memref<1x128xf32, #tpu.memory_space<vmem>>, vector<1x128xf32>
      tpu.vector_store %arg4[%c0_18, %c0_19], %19 {strides = array<i32>} : memref<1x128xf32, #tpu.memory_space<vmem>>, vector<1x128xf32>,
    } else {
    }
    %c0 = arith.constant 0 : index
    %c0_1 = arith.constant 0 : index
    %3 = vector.load %arg1[%c0, %c0_1] : memref<256x128xbf16, #tpu.memory_space<vmem>>, vector<256x128xbf16>
    %c0_2 = arith.constant 0 : index
    %c0_3 = arith.constant 0 : index
    %4 = vector.load %arg2[%c0_2, %c0_3] : memref<128x128xbf16, #tpu.memory_space<vmem>>, vector<128x128xbf16>
    %cst = arith.constant dense<0.000000e+00> : vector<256x128xf32>
    %5 = tpu.matmul %3, %4, %cst {dimension_numbers = #tpu.dot_dimension_numbers<[1], [0], [0], [1], [0, 0, 1, 1], [], []>} : vector<256x128xbf16>, vector<128x128xbf16>, vector<256x128xf32> -> vector<256x128xf32>
    %c0_4 = arith.constant 0 : index
    %c0_5 = arith.constant 0 : index
    %6 = vector.load %arg3[%c0_4, %c0_5] : memref<1x128xf32, #tpu.memory_space<vmem>>, vector<1x128xf32>
    %cst_6 = arith.constant dense<0.000000e+00> : vector<128xf32>
    %7 = vector.multi_reduction <add>, %5, %cst_6 [0] : vector<256x128xf32> to vector<128xf32>
    %8 = vector.shape_cast %7 : vector<128xf32> to vector<1x128xf32>
    %9 = arith.addf %6, %8 : vector<1x128xf32>
    %c0_7 = arith.constant 0 : index
    %c0_8 = arith.constant 0 : index
    %10 = vector.load %arg3[%c0_7, %c0_8] : memref<1x128xf32, #tpu.memory_space<vmem>>, vector<1x128xf32>
    tpu.vector_store %arg3[%c0_7, %c0_8], %9 {strides = array<i32>} : memref<1x128xf32, #tpu.memory_space<vmem>>, vector<1x128xf32>,
    %c0_9 = arith.constant 0 : index
    %c0_10 = arith.constant 0 : index
    %11 = vector.load %arg4[%c0_9, %c0_10] : memref<1x128xf32, #tpu.memory_space<vmem>>, vector<1x128xf32>
    %12 = arith.mulf %5, %5 : vector<256x128xf32>
    %cst_11 = arith.constant dense<0.000000e+00> : vector<128xf32>
    %13 = vector.multi_reduction <add>, %12, %cst_11 [0] : vector<256x128xf32> to vector<128xf32>
    %14 = vector.shape_cast %13 : vector<128xf32> to vector<1x128xf32>
    %15 = arith.addf %11, %14 : vector<1x128xf32>
    %c0_12 = arith.constant 0 : index
    %c0_13 = arith.constant 0 : index
    %16 = vector.load %arg4[%c0_12, %c0_13] : memref<1x128xf32, #tpu.memory_space<vmem>>, vector<1x128xf32>
    tpu.vector_store %arg4[%c0_12, %c0_13], %15 {strides = array<i32>} : memref<1x128xf32, #tpu.memory_space<vmem>>, vector<1x128xf32>,
    return
  }
  func.func @transform_0(%arg0: i32) -> (i32, i32) {
    %c0_i32 = arith.constant 0 : i32
    %c0_i32_0 = arith.constant 0 : i32
    return %arg0, %c0_i32 : i32, i32
  }
  func.func @transform_1(%arg0: i32) -> (i32, i32) {
    %c0_i32 = arith.constant 0 : i32
    %c0_i32_0 = arith.constant 0 : i32
    %c0_i32_1 = arith.constant 0 : i32
    return %c0_i32, %c0_i32_0 : i32, i32
  }
  func.func @transform_2(%arg0: i32) -> (i32, i32) {
    %c0_i32 = arith.constant 0 : i32
    %c0_i32_0 = arith.constant 0 : i32
    %c0_i32_1 = arith.constant 0 : i32
    return %c0_i32, %c0_i32_0 : i32, i32
  }
  func.func @transform_3(%arg0: i32) -> (i32, i32) {
    %c0_i32 = arith.constant 0 : i32
    %c0_i32_0 = arith.constant 0 : i32
    %c0_i32_1 = arith.constant 0 : i32
    return %c0_i32, %c0_i32_0 : i32, i32
  }
}

module attributes {stable_mosaic.version = 11 : i64} {
  func.func @_mm_affine_relu_kernel(%arg0: i32, %arg1: memref<256x128xbf16, #tpu.memory_space<vmem>>, %arg2: memref<128x128xbf16, #tpu.memory_space<vmem>>, %arg3: memref<1x128xf32, #tpu.memory_space<vmem>>, %arg4: memref<1x128xf32, #tpu.memory_space<vmem>>, %arg5: memref<256x128xbf16, #tpu.memory_space<vmem>>) attributes {dimension_semantics = [#tpu.dimension_semantics<parallel>], iteration_bounds = array<i64: 2>, scalar_prefetch = 0 : i64, scratch_operands = 0 : i64, tpu.core_type = #tpu.core_type<tc>, window_params = [{transform_indices = @transform_0, window_bounds = array<i64: 256, 128>}, {pipeline_mode = #tpu.pipeline_mode<synchronous>, transform_indices = @transform_1, window_bounds = array<i64: 128, 128>}, {pipeline_mode = #tpu.pipeline_mode<synchronous>, transform_indices = @transform_2, window_bounds = array<i64: 1, 128>}, {pipeline_mode = #tpu.pipeline_mode<synchronous>, transform_indices = @transform_3, window_bounds = array<i64: 1, 128>}, {transform_indices = @transform_4, window_bounds = array<i64: 256, 128>}]} {
    %c0 = arith.constant 0 : index
    %c0_0 = arith.constant 0 : index
    %0 = vector.load %arg1[%c0, %c0_0] : memref<256x128xbf16, #tpu.memory_space<vmem>>, vector<256x128xbf16>
    %c0_1 = arith.constant 0 : index
    %c0_2 = arith.constant 0 : index
    %1 = vector.load %arg2[%c0_1, %c0_2] : memref<128x128xbf16, #tpu.memory_space<vmem>>, vector<128x128xbf16>
    %cst = arith.constant dense<0.000000e+00> : vector<256x128xf32>
    %2 = tpu.matmul %0, %1, %cst {dimension_numbers = #tpu.dot_dimension_numbers<[1], [0], [0], [1], [0, 0, 1, 1], [], []>} : vector<256x128xbf16>, vector<128x128xbf16>, vector<256x128xf32> -> vector<256x128xf32>
    %c0_3 = arith.constant 0 : index
    %c0_4 = arith.constant 0 : index
    %3 = vector.load %arg3[%c0_3, %c0_4] : memref<1x128xf32, #tpu.memory_space<vmem>>, vector<1x128xf32>
    %4 = vector.broadcast %3 : vector<1x128xf32> to vector<256x128xf32>
    %5 = arith.mulf %2, %4 : vector<256x128xf32>
    %c0_5 = arith.constant 0 : index
    %c0_6 = arith.constant 0 : index
    %6 = vector.load %arg4[%c0_5, %c0_6] : memref<1x128xf32, #tpu.memory_space<vmem>>, vector<1x128xf32>
    %7 = vector.broadcast %6 : vector<1x128xf32> to vector<256x128xf32>
    %8 = arith.addf %5, %7 : vector<256x128xf32>
    %cst_7 = arith.constant 0.000000e+00 : f32
    %9 = vector.broadcast %cst_7 : f32 to vector<256x128xf32>
    %10 = arith.maximumf %8, %9 : vector<256x128xf32>
    %11 = arith.truncf %10 : vector<256x128xf32> to vector<256x128xbf16>
    %c0_8 = arith.constant 0 : index
    %c0_9 = arith.constant 0 : index
    %12 = vector.load %arg5[%c0_8, %c0_9] : memref<256x128xbf16, #tpu.memory_space<vmem>>, vector<256x128xbf16>
    tpu.vector_store %arg5[%c0_8, %c0_9], %11 {strides = array<i32>} : memref<256x128xbf16, #tpu.memory_space<vmem>>, vector<256x128xbf16>,
    return
  }
  func.func @transform_0(%arg0: i32) -> (i32, i32) {
    %c0_i32 = arith.constant 0 : i32
    %c0_i32_0 = arith.constant 0 : i32
    return %arg0, %c0_i32 : i32, i32
  }
  func.func @transform_1(%arg0: i32) -> (i32, i32) {
    %c0_i32 = arith.constant 0 : i32
    %c0_i32_0 = arith.constant 0 : i32
    %c0_i32_1 = arith.constant 0 : i32
    return %c0_i32, %c0_i32_0 : i32, i32
  }
  func.func @transform_2(%arg0: i32) -> (i32, i32) {
    %c0_i32 = arith.constant 0 : i32
    %c0_i32_0 = arith.constant 0 : i32
    %c0_i32_1 = arith.constant 0 : i32
    return %c0_i32, %c0_i32_0 : i32, i32
  }
  func.func @transform_3(%arg0: i32) -> (i32, i32) {
    %c0_i32 = arith.constant 0 : i32
    %c0_i32_0 = arith.constant 0 : i32
    %c0_i32_1 = arith.constant 0 : i32
    return %c0_i32, %c0_i32_0 : i32, i32
  }
  func.func @transform_4(%arg0: i32) -> (i32, i32) {
    %c0_i32 = arith.constant 0 : i32
    %c0_i32_0 = arith.constant 0 : i32
    return %arg0, %c0_i32 : i32, i32
  }
}

module attributes {stable_mosaic.version = 11 : i64} {
  func.func @_conv3x3_stats_kernel(%arg0: i32, %arg1: memref<1x18x18x128xbf16, #tpu.memory_space<vmem>>, %arg2: memref<9x128x128xbf16, #tpu.memory_space<vmem>>, %arg3: memref<1x128xf32, #tpu.memory_space<vmem>>, %arg4: memref<1x128xf32, #tpu.memory_space<vmem>>) attributes {dimension_semantics = [#tpu.dimension_semantics<arbitrary>], iteration_bounds = array<i64: 2>, scalar_prefetch = 0 : i64, scratch_operands = 0 : i64, tpu.core_type = #tpu.core_type<tc>, window_params = [{transform_indices = @transform_0, window_bounds = array<i64: 1, 18, 18, 128>}, {pipeline_mode = #tpu.pipeline_mode<synchronous>, transform_indices = @transform_1, window_bounds = array<i64: 9, 128, 128>}, {pipeline_mode = #tpu.pipeline_mode<synchronous>, transform_indices = @transform_2, window_bounds = array<i64: 1, 128>}, {pipeline_mode = #tpu.pipeline_mode<synchronous>, transform_indices = @transform_3, window_bounds = array<i64: 1, 128>}]} {
    %c0_i32 = arith.constant 0 : i32
    %0 = arith.cmpi eq, %arg0, %c0_i32 : i32
    %1 = arith.extui %0 : i1 to i32
    %c0_i32_0 = arith.constant 0 : i32
    %2 = arith.cmpi ne, %1, %c0_i32_0 : i32
    scf.if %2 {
      %cst_74 = arith.constant 0.000000e+00 : f32
      %78 = vector.broadcast %cst_74 : f32 to vector<1x128xf32>
      %c0_75 = arith.constant 0 : index
      %c0_76 = arith.constant 0 : index
      %79 = vector.load %arg3[%c0_75, %c0_76] : memref<1x128xf32, #tpu.memory_space<vmem>>, vector<1x128xf32>
      tpu.vector_store %arg3[%c0_75, %c0_76], %78 {strides = array<i32>} : memref<1x128xf32, #tpu.memory_space<vmem>>, vector<1x128xf32>,
      %cst_77 = arith.constant 0.000000e+00 : f32
      %80 = vector.broadcast %cst_77 : f32 to vector<1x128xf32>
      %c0_78 = arith.constant 0 : index
      %c0_79 = arith.constant 0 : index
      %81 = vector.load %arg4[%c0_78, %c0_79] : memref<1x128xf32, #tpu.memory_space<vmem>>, vector<1x128xf32>
      tpu.vector_store %arg4[%c0_78, %c0_79], %80 {strides = array<i32>} : memref<1x128xf32, #tpu.memory_space<vmem>>, vector<1x128xf32>,
    } else {
    }
    %cst = arith.constant 0.000000e+00 : f32
    %3 = vector.broadcast %cst : f32 to vector<256x128xf32>
    %c0 = arith.constant 0 : index
    %c0_1 = arith.constant 0 : index
    %c0_2 = arith.constant 0 : index
    %c0_3 = arith.constant 0 : index
    %4 = vector.load %arg1[%c0, %c0_1, %c0_2, %c0_3] : memref<1x18x18x128xbf16, #tpu.memory_space<vmem>>, vector<1x16x16x128xbf16>
    %5 = vector.shape_cast %4 : vector<1x16x16x128xbf16> to vector<16x16x128xbf16>
    %6 = vector.shape_cast %5 : vector<16x16x128xbf16> to vector<256x128xbf16>
    %c0_4 = arith.constant 0 : index
    %c0_5 = arith.constant 0 : index
    %c0_6 = arith.constant 0 : index
    %7 = vector.load %arg2[%c0_4, %c0_5, %c0_6] : memref<9x128x128xbf16, #tpu.memory_space<vmem>>, vector<1x128x128xbf16>
    %8 = vector.shape_cast %7 : vector<1x128x128xbf16> to vector<128x128xbf16>
    %cst_7 = arith.constant dense<0.000000e+00> : vector<256x128xf32>
    %9 = tpu.matmul %6, %8, %cst_7 {dimension_numbers = #tpu.dot_dimension_numbers<[1], [0], [0], [1], [0, 0, 1, 1], [], []>} : vector<256x128xbf16>, vector<128x128xbf16>, vector<256x128xf32> -> vector<256x128xf32>
    %10 = arith.addf %3, %9 : vector<256x128xf32>
    %c0_8 = arith.constant 0 : index
    %c0_9 = arith.constant 0 : index
    %c1 = arith.constant 1 : index
    %c0_10 = arith.constant 0 : index
    %11 = vector.load %arg1[%c0_8, %c0_9, %c1, %c0_10] : memref<1x18x18x128xbf16, #tpu.memory_space<vmem>>, vector<1x16x16x128xbf16>
    %12 = vector.shape_cast %11 : vector<1x16x16x128xbf16> to vector<16x16x128xbf16>
    %13 = vector.shape_cast %12 : vector<16x16x128xbf16> to vector<256x128xbf16>
    %c1_11 = arith.constant 1 : index
    %c0_12 = arith.constant 0 : index
    %c0_13 = arith.constant 0 : index
    %14 = vector.load %arg2[%c1_11, %c0_12, %c0_13] : memref<9x128x128xbf16, #tpu.memory_space<vmem>>, vector<1x128x128xbf16>
    %15 = vector.shape_cast %14 : vector<1x128x128xbf16> to vector<128x128xbf16>
    %cst_14 = arith.constant dense<0.000000e+00> : vector<256x128xf32>
    %16 = tpu.matmul %13, %15, %cst_14 {dimension_numbers = #tpu.dot_dimension_numbers<[1], [0], [0], [1], [0, 0, 1, 1], [], []>} : vector<256x128xbf16>, vector<128x128xbf16>, vector<256x128xf32> -> vector<256x128xf32>
    %17 = arith.addf %10, %16 : vector<256x128xf32>
    %c0_15 = arith.constant 0 : index
    %c0_16 = arith.constant 0 : index
    %c2 = arith.constant 2 : index
    %c0_17 = arith.constant 0 : index
    %18 = vector.load %arg1[%c0_15, %c0_16, %c2, %c0_17] : memref<1x18x18x128xbf16, #tpu.memory_space<vmem>>, vector<1x16x16x128xbf16>
    %19 = vector.shape_cast %18 : vector<1x16x16x128xbf16> to vector<16x16x128xbf16>
    %20 = vector.shape_cast %19 : vector<16x16x128xbf16> to vector<256x128xbf16>
    %c2_18 = arith.constant 2 : index
    %c0_19 = arith.constant 0 : index
    %c0_20 = arith.constant 0 : index
    %21 = vector.load %arg2[%c2_18, %c0_19, %c0_20] : memref<9x128x128xbf16, #tpu.memory_space<vmem>>, vector<1x128x128xbf16>
    %22 = vector.shape_cast %21 : vector<1x128x128xbf16> to vector<128x128xbf16>
    %cst_21 = arith.constant dense<0.000000e+00> : vector<256x128xf32>
    %23 = tpu.matmul %20, %22, %cst_21 {dimension_numbers = #tpu.dot_dimension_numbers<[1], [0], [0], [1], [0, 0, 1, 1], [], []>} : vector<256x128xbf16>, vector<128x128xbf16>, vector<256x128xf32> -> vector<256x128xf32>
    %24 = arith.addf %17, %23 : vector<256x128xf32>
    %c0_22 = arith.constant 0 : index
    %c1_23 = arith.constant 1 : index
    %c0_24 = arith.constant 0 : index
    %c0_25 = arith.constant 0 : index
    %25 = vector.load %arg1[%c0_22, %c1_23, %c0_24, %c0_25] : memref<1x18x18x128xbf16, #tpu.memory_space<vmem>>, vector<1x16x16x128xbf16>
    %26 = vector.shape_cast %25 : vector<1x16x16x128xbf16> to vector<16x16x128xbf16>
    %27 = vector.shape_cast %26 : vector<16x16x128xbf16> to vector<256x128xbf16>
    %c3 = arith.constant 3 : index
    %c0_26 = arith.constant 0 : index
    %c0_27 = arith.constant 0 : index
    %28 = vector.load %arg2[%c3, %c0_26, %c0_27] : memref<9x128x128xbf16, #tpu.memory_space<vmem>>, vector<1x128x128xbf16>
    %29 = vector.shape_cast %28 : vector<1x128x128xbf16> to vector<128x128xbf16>
    %cst_28 = arith.constant dense<0.000000e+00> : vector<256x128xf32>
    %30 = tpu.matmul %27, %29, %cst_28 {dimension_numbers = #tpu.dot_dimension_numbers<[1], [0], [0], [1], [0, 0, 1, 1], [], []>} : vector<256x128xbf16>, vector<128x128xbf16>, vector<256x128xf32> -> vector<256x128xf32>
    %31 = arith.addf %24, %30 : vector<256x128xf32>
    %c0_29 = arith.constant 0 : index
    %c1_30 = arith.constant 1 : index
    %c1_31 = arith.constant 1 : index
    %c0_32 = arith.constant 0 : index
    %32 = vector.load %arg1[%c0_29, %c1_30, %c1_31, %c0_32] : memref<1x18x18x128xbf16, #tpu.memory_space<vmem>>, vector<1x16x16x128xbf16>
    %33 = vector.shape_cast %32 : vector<1x16x16x128xbf16> to vector<16x16x128xbf16>
    %34 = vector.shape_cast %33 : vector<16x16x128xbf16> to vector<256x128xbf16>
    %c4 = arith.constant 4 : index
    %c0_33 = arith.constant 0 : index
    %c0_34 = arith.constant 0 : index
    %35 = vector.load %arg2[%c4, %c0_33, %c0_34] : memref<9x128x128xbf16, #tpu.memory_space<vmem>>, vector<1x128x128xbf16>
    %36 = vector.shape_cast %35 : vector<1x128x128xbf16> to vector<128x128xbf16>
    %cst_35 = arith.constant dense<0.000000e+00> : vector<256x128xf32>
    %37 = tpu.matmul %34, %36, %cst_35 {dimension_numbers = #tpu.dot_dimension_numbers<[1], [0], [0], [1], [0, 0, 1, 1], [], []>} : vector<256x128xbf16>, vector<128x128xbf16>, vector<256x128xf32> -> vector<256x128xf32>
    %38 = arith.addf %31, %37 : vector<256x128xf32>
    %c0_36 = arith.constant 0 : index
    %c1_37 = arith.constant 1 : index
    %c2_38 = arith.constant 2 : index
    %c0_39 = arith.constant 0 : index
    %39 = vector.load %arg1[%c0_36, %c1_37, %c2_38, %c0_39] : memref<1x18x18x128xbf16, #tpu.memory_space<vmem>>, vector<1x16x16x128xbf16>
    %40 = vector.shape_cast %39 : vector<1x16x16x128xbf16> to vector<16x16x128xbf16>
    %41 = vector.shape_cast %40 : vector<16x16x128xbf16> to vector<256x128xbf16>
    %c5 = arith.constant 5 : index
    %c0_40 = arith.constant 0 : index
    %c0_41 = arith.constant 0 : index
    %42 = vector.load %arg2[%c5, %c0_40, %c0_41] : memref<9x128x128xbf16, #tpu.memory_space<vmem>>, vector<1x128x128xbf16>
    %43 = vector.shape_cast %42 : vector<1x128x128xbf16> to vector<128x128xbf16>
    %cst_42 = arith.constant dense<0.000000e+00> : vector<256x128xf32>
    %44 = tpu.matmul %41, %43, %cst_42 {dimension_numbers = #tpu.dot_dimension_numbers<[1], [0], [0], [1], [0, 0, 1, 1], [], []>} : vector<256x128xbf16>, vector<128x128xbf16>, vector<256x128xf32> -> vector<256x128xf32>
    %45 = arith.addf %38, %44 : vector<256x128xf32>
    %c0_43 = arith.constant 0 : index
    %c2_44 = arith.constant 2 : index
    %c0_45 = arith.constant 0 : index
    %c0_46 = arith.constant 0 : index
    %46 = vector.load %arg1[%c0_43, %c2_44, %c0_45, %c0_46] : memref<1x18x18x128xbf16, #tpu.memory_space<vmem>>, vector<1x16x16x128xbf16>
    %47 = vector.shape_cast %46 : vector<1x16x16x128xbf16> to vector<16x16x128xbf16>
    %48 = vector.shape_cast %47 : vector<16x16x128xbf16> to vector<256x128xbf16>
    %c6 = arith.constant 6 : index
    %c0_47 = arith.constant 0 : index
    %c0_48 = arith.constant 0 : index
    %49 = vector.load %arg2[%c6, %c0_47, %c0_48] : memref<9x128x128xbf16, #tpu.memory_space<vmem>>, vector<1x128x128xbf16>
    %50 = vector.shape_cast %49 : vector<1x128x128xbf16> to vector<128x128xbf16>
    %cst_49 = arith.constant dense<0.000000e+00> : vector<256x128xf32>
    %51 = tpu.matmul %48, %50, %cst_49 {dimension_numbers = #tpu.dot_dimension_numbers<[1], [0], [0], [1], [0, 0, 1, 1], [], []>} : vector<256x128xbf16>, vector<128x128xbf16>, vector<256x128xf32> -> vector<256x128xf32>
    %52 = arith.addf %45, %51 : vector<256x128xf32>
    %c0_50 = arith.constant 0 : index
    %c2_51 = arith.constant 2 : index
    %c1_52 = arith.constant 1 : index
    %c0_53 = arith.constant 0 : index
    %53 = vector.load %arg1[%c0_50, %c2_51, %c1_52, %c0_53] : memref<1x18x18x128xbf16, #tpu.memory_space<vmem>>, vector<1x16x16x128xbf16>
    %54 = vector.shape_cast %53 : vector<1x16x16x128xbf16> to vector<16x16x128xbf16>
    %55 = vector.shape_cast %54 : vector<16x16x128xbf16> to vector<256x128xbf16>
    %c7 = arith.constant 7 : index
    %c0_54 = arith.constant 0 : index
    %c0_55 = arith.constant 0 : index
    %56 = vector.load %arg2[%c7, %c0_54, %c0_55] : memref<9x128x128xbf16, #tpu.memory_space<vmem>>, vector<1x128x128xbf16>
    %57 = vector.shape_cast %56 : vector<1x128x128xbf16> to vector<128x128xbf16>
    %cst_56 = arith.constant dense<0.000000e+00> : vector<256x128xf32>
    %58 = tpu.matmul %55, %57, %cst_56 {dimension_numbers = #tpu.dot_dimension_numbers<[1], [0], [0], [1], [0, 0, 1, 1], [], []>} : vector<256x128xbf16>, vector<128x128xbf16>, vector<256x128xf32> -> vector<256x128xf32>
    %59 = arith.addf %52, %58 : vector<256x128xf32>
    %c0_57 = arith.constant 0 : index
    %c2_58 = arith.constant 2 : index
    %c2_59 = arith.constant 2 : index
    %c0_60 = arith.constant 0 : index
    %60 = vector.load %arg1[%c0_57, %c2_58, %c2_59, %c0_60] : memref<1x18x18x128xbf16, #tpu.memory_space<vmem>>, vector<1x16x16x128xbf16>
    %61 = vector.shape_cast %60 : vector<1x16x16x128xbf16> to vector<16x16x128xbf16>
    %62 = vector.shape_cast %61 : vector<16x16x128xbf16> to vector<256x128xbf16>
    %c8 = arith.constant 8 : index
    %c0_61 = arith.constant 0 : index
    %c0_62 = arith.constant 0 : index
    %63 = vector.load %arg2[%c8, %c0_61, %c0_62] : memref<9x128x128xbf16, #tpu.memory_space<vmem>>, vector<1x128x128xbf16>
    %64 = vector.shape_cast %63 : vector<1x128x128xbf16> to vector<128x128xbf16>
    %cst_63 = arith.constant dense<0.000000e+00> : vector<256x128xf32>
    %65 = tpu.matmul %62, %64, %cst_63 {dimension_numbers = #tpu.dot_dimension_numbers<[1], [0], [0], [1], [0, 0, 1, 1], [], []>} : vector<256x128xbf16>, vector<128x128xbf16>, vector<256x128xf32> -> vector<256x128xf32>
    %66 = arith.addf %59, %65 : vector<256x128xf32>
    %c0_64 = arith.constant 0 : index
    %c0_65 = arith.constant 0 : index
    %67 = vector.load %arg3[%c0_64, %c0_65] : memref<1x128xf32, #tpu.memory_space<vmem>>, vector<1x128xf32>
    %cst_66 = arith.constant dense<0.000000e+00> : vector<128xf32>
    %68 = vector.multi_reduction <add>, %66, %cst_66 [0] : vector<256x128xf32> to vector<128xf32>
    %69 = vector.shape_cast %68 : vector<128xf32> to vector<1x128xf32>
    %70 = arith.addf %67, %69 : vector<1x128xf32>
    %c0_67 = arith.constant 0 : index
    %c0_68 = arith.constant 0 : index
    %71 = vector.load %arg3[%c0_67, %c0_68] : memref<1x128xf32, #tpu.memory_space<vmem>>, vector<1x128xf32>
    tpu.vector_store %arg3[%c0_67, %c0_68], %70 {strides = array<i32>} : memref<1x128xf32, #tpu.memory_space<vmem>>, vector<1x128xf32>,
    %c0_69 = arith.constant 0 : index
    %c0_70 = arith.constant 0 : index
    %72 = vector.load %arg4[%c0_69, %c0_70] : memref<1x128xf32, #tpu.memory_space<vmem>>, vector<1x128xf32>
    %73 = arith.mulf %66, %66 : vector<256x128xf32>
    %cst_71 = arith.constant dense<0.000000e+00> : vector<128xf32>
    %74 = vector.multi_reduction <add>, %73, %cst_71 [0] : vector<256x128xf32> to vector<128xf32>
    %75 = vector.shape_cast %74 : vector<128xf32> to vector<1x128xf32>
    %76 = arith.addf %72, %75 : vector<1x128xf32>
    %c0_72 = arith.constant 0 : index
    %c0_73 = arith.constant 0 : index
    %77 = vector.load %arg4[%c0_72, %c0_73] : memref<1x128xf32, #tpu.memory_space<vmem>>, vector<1x128xf32>
    tpu.vector_store %arg4[%c0_72, %c0_73], %76 {strides = array<i32>} : memref<1x128xf32, #tpu.memory_space<vmem>>, vector<1x128xf32>,
    return
  }
  func.func @transform_0(%arg0: i32) -> (i32, i32, i32, i32) {
    %c0_i32 = arith.constant 0 : i32
    %c0_i32_0 = arith.constant 0 : i32
    %c0_i32_1 = arith.constant 0 : i32
    %c0_i32_2 = arith.constant 0 : i32
    return %arg0, %c0_i32, %c0_i32_0, %c0_i32_1 : i32, i32, i32, i32
  }
  func.func @transform_1(%arg0: i32) -> (i32, i32, i32) {
    %c0_i32 = arith.constant 0 : i32
    %c0_i32_0 = arith.constant 0 : i32
    %c0_i32_1 = arith.constant 0 : i32
    %c0_i32_2 = arith.constant 0 : i32
    return %c0_i32, %c0_i32_0, %c0_i32_1 : i32, i32, i32
  }
  func.func @transform_2(%arg0: i32) -> (i32, i32) {
    %c0_i32 = arith.constant 0 : i32
    %c0_i32_0 = arith.constant 0 : i32
    %c0_i32_1 = arith.constant 0 : i32
    return %c0_i32, %c0_i32_0 : i32, i32
  }
  func.func @transform_3(%arg0: i32) -> (i32, i32) {
    %c0_i32 = arith.constant 0 : i32
    %c0_i32_0 = arith.constant 0 : i32
    %c0_i32_1 = arith.constant 0 : i32
    return %c0_i32, %c0_i32_0 : i32, i32
  }
}

module attributes {stable_mosaic.version = 11 : i64} {
  func.func @_mm_affine_add_relu_kernel(%arg0: i32, %arg1: memref<256x128xbf16, #tpu.memory_space<vmem>>, %arg2: memref<128x128xbf16, #tpu.memory_space<vmem>>, %arg3: memref<1x128xf32, #tpu.memory_space<vmem>>, %arg4: memref<1x128xf32, #tpu.memory_space<vmem>>, %arg5: memref<256x128xf32, #tpu.memory_space<vmem>>, %arg6: memref<256x128xf32, #tpu.memory_space<vmem>>) attributes {dimension_semantics = [#tpu.dimension_semantics<parallel>], iteration_bounds = array<i64: 2>, scalar_prefetch = 0 : i64, scratch_operands = 0 : i64, tpu.core_type = #tpu.core_type<tc>, window_params = [{transform_indices = @transform_0, window_bounds = array<i64: 256, 128>}, {pipeline_mode = #tpu.pipeline_mode<synchronous>, transform_indices = @transform_1, window_bounds = array<i64: 128, 128>}, {pipeline_mode = #tpu.pipeline_mode<synchronous>, transform_indices = @transform_2, window_bounds = array<i64: 1, 128>}, {pipeline_mode = #tpu.pipeline_mode<synchronous>, transform_indices = @transform_3, window_bounds = array<i64: 1, 128>}, {transform_indices = @transform_4, window_bounds = array<i64: 256, 128>}, {transform_indices = @transform_5, window_bounds = array<i64: 256, 128>}]} {
    %c0 = arith.constant 0 : index
    %c0_0 = arith.constant 0 : index
    %0 = vector.load %arg1[%c0, %c0_0] : memref<256x128xbf16, #tpu.memory_space<vmem>>, vector<256x128xbf16>
    %c0_1 = arith.constant 0 : index
    %c0_2 = arith.constant 0 : index
    %1 = vector.load %arg2[%c0_1, %c0_2] : memref<128x128xbf16, #tpu.memory_space<vmem>>, vector<128x128xbf16>
    %cst = arith.constant dense<0.000000e+00> : vector<256x128xf32>
    %2 = tpu.matmul %0, %1, %cst {dimension_numbers = #tpu.dot_dimension_numbers<[1], [0], [0], [1], [0, 0, 1, 1], [], []>} : vector<256x128xbf16>, vector<128x128xbf16>, vector<256x128xf32> -> vector<256x128xf32>
    %c0_3 = arith.constant 0 : index
    %c0_4 = arith.constant 0 : index
    %3 = vector.load %arg3[%c0_3, %c0_4] : memref<1x128xf32, #tpu.memory_space<vmem>>, vector<1x128xf32>
    %4 = vector.broadcast %3 : vector<1x128xf32> to vector<256x128xf32>
    %5 = arith.mulf %2, %4 : vector<256x128xf32>
    %c0_5 = arith.constant 0 : index
    %c0_6 = arith.constant 0 : index
    %6 = vector.load %arg4[%c0_5, %c0_6] : memref<1x128xf32, #tpu.memory_space<vmem>>, vector<1x128xf32>
    %7 = vector.broadcast %6 : vector<1x128xf32> to vector<256x128xf32>
    %8 = arith.addf %5, %7 : vector<256x128xf32>
    %c0_7 = arith.constant 0 : index
    %c0_8 = arith.constant 0 : index
    %9 = vector.load %arg5[%c0_7, %c0_8] : memref<256x128xf32, #tpu.memory_space<vmem>>, vector<256x128xf32>
    %10 = arith.addf %8, %9 : vector<256x128xf32>
    %cst_9 = arith.constant 0.000000e+00 : f32
    %11 = vector.broadcast %cst_9 : f32 to vector<256x128xf32>
    %12 = arith.maximumf %10, %11 : vector<256x128xf32>
    %c0_10 = arith.constant 0 : index
    %c0_11 = arith.constant 0 : index
    %13 = vector.load %arg6[%c0_10, %c0_11] : memref<256x128xf32, #tpu.memory_space<vmem>>, vector<256x128xf32>
    tpu.vector_store %arg6[%c0_10, %c0_11], %12 {strides = array<i32>} : memref<256x128xf32, #tpu.memory_space<vmem>>, vector<256x128xf32>,
    return
  }
  func.func @transform_0(%arg0: i32) -> (i32, i32) {
    %c0_i32 = arith.constant 0 : i32
    %c0_i32_0 = arith.constant 0 : i32
    return %arg0, %c0_i32 : i32, i32
  }
  func.func @transform_1(%arg0: i32) -> (i32, i32) {
    %c0_i32 = arith.constant 0 : i32
    %c0_i32_0 = arith.constant 0 : i32
    %c0_i32_1 = arith.constant 0 : i32
    return %c0_i32, %c0_i32_0 : i32, i32
  }
  func.func @transform_2(%arg0: i32) -> (i32, i32) {
    %c0_i32 = arith.constant 0 : i32
    %c0_i32_0 = arith.constant 0 : i32
    %c0_i32_1 = arith.constant 0 : i32
    return %c0_i32, %c0_i32_0 : i32, i32
  }
  func.func @transform_3(%arg0: i32) -> (i32, i32) {
    %c0_i32 = arith.constant 0 : i32
    %c0_i32_0 = arith.constant 0 : i32
    %c0_i32_1 = arith.constant 0 : i32
    return %c0_i32, %c0_i32_0 : i32, i32
  }
  func.func @transform_4(%arg0: i32) -> (i32, i32) {
    %c0_i32 = arith.constant 0 : i32
    %c0_i32_0 = arith.constant 0 : i32
    return %arg0, %c0_i32 : i32, i32
  }
  func.func @transform_5(%arg0: i32) -> (i32, i32) {
    %c0_i32 = arith.constant 0 : i32
    %c0_i32_0 = arith.constant 0 : i32
    return %arg0, %c0_i32 : i32, i32
  }
}

module attributes {stable_mosaic.version = 11 : i64} {
  func.func @_conv3x3_bn_relu_mm_stats_kernel(%arg0: i32, %arg1: memref<1x18x18x128xbf16, #tpu.memory_space<vmem>>, %arg2: memref<9x128x128xbf16, #tpu.memory_space<vmem>>, %arg3: memref<1x128xf32, #tpu.memory_space<vmem>>, %arg4: memref<1x128xf32, #tpu.memory_space<vmem>>, %arg5: memref<128x128xbf16, #tpu.memory_space<vmem>>, %arg6: memref<1x16x16x128xbf16, #tpu.memory_space<vmem>>, %arg7: memref<1x128xf32, #tpu.memory_space<vmem>>, %arg8: memref<1x128xf32, #tpu.memory_space<vmem>>) attributes {dimension_semantics = [#tpu.dimension_semantics<arbitrary>], iteration_bounds = array<i64: 2>, scalar_prefetch = 0 : i64, scratch_operands = 0 : i64, tpu.core_type = #tpu.core_type<tc>, window_params = [{transform_indices = @transform_0, window_bounds = array<i64: 1, 18, 18, 128>}, {pipeline_mode = #tpu.pipeline_mode<synchronous>, transform_indices = @transform_1, window_bounds = array<i64: 9, 128, 128>}, {pipeline_mode = #tpu.pipeline_mode<synchronous>, transform_indices = @transform_2, window_bounds = array<i64: 1, 128>}, {pipeline_mode = #tpu.pipeline_mode<synchronous>, transform_indices = @transform_3, window_bounds = array<i64: 1, 128>}, {pipeline_mode = #tpu.pipeline_mode<synchronous>, transform_indices = @transform_4, window_bounds = array<i64: 128, 128>}, {transform_indices = @transform_5, window_bounds = array<i64: 1, 16, 16, 128>}, {pipeline_mode = #tpu.pipeline_mode<synchronous>, transform_indices = @transform_6, window_bounds = array<i64: 1, 128>}, {pipeline_mode = #tpu.pipeline_mode<synchronous>, transform_indices = @transform_7, window_bounds = array<i64: 1, 128>}]} {
    %c0_i32 = arith.constant 0 : i32
    %0 = arith.cmpi eq, %arg0, %c0_i32 : i32
    %1 = arith.extui %0 : i1 to i32
    %c0_i32_0 = arith.constant 0 : i32
    %2 = arith.cmpi ne, %1, %c0_i32_0 : i32
    scf.if %2 {
      %cst_86 = arith.constant 0.000000e+00 : f32
      %91 = vector.broadcast %cst_86 : f32 to vector<1x128xf32>
      %c0_87 = arith.constant 0 : index
      %c0_88 = arith.constant 0 : index
      %92 = vector.load %arg7[%c0_87, %c0_88] : memref<1x128xf32, #tpu.memory_space<vmem>>, vector<1x128xf32>
      tpu.vector_store %arg7[%c0_87, %c0_88], %91 {strides = array<i32>} : memref<1x128xf32, #tpu.memory_space<vmem>>, vector<1x128xf32>,
      %cst_89 = arith.constant 0.000000e+00 : f32
      %93 = vector.broadcast %cst_89 : f32 to vector<1x128xf32>
      %c0_90 = arith.constant 0 : index
      %c0_91 = arith.constant 0 : index
      %94 = vector.load %arg8[%c0_90, %c0_91] : memref<1x128xf32, #tpu.memory_space<vmem>>, vector<1x128xf32>
      tpu.vector_store %arg8[%c0_90, %c0_91], %93 {strides = array<i32>} : memref<1x128xf32, #tpu.memory_space<vmem>>, vector<1x128xf32>,
    } else {
    }
    %cst = arith.constant 0.000000e+00 : f32
    %3 = vector.broadcast %cst : f32 to vector<256x128xf32>
    %c0 = arith.constant 0 : index
    %c0_1 = arith.constant 0 : index
    %c0_2 = arith.constant 0 : index
    %c0_3 = arith.constant 0 : index
    %4 = vector.load %arg1[%c0, %c0_1, %c0_2, %c0_3] : memref<1x18x18x128xbf16, #tpu.memory_space<vmem>>, vector<1x16x16x128xbf16>
    %5 = vector.shape_cast %4 : vector<1x16x16x128xbf16> to vector<16x16x128xbf16>
    %6 = vector.shape_cast %5 : vector<16x16x128xbf16> to vector<256x128xbf16>
    %c0_4 = arith.constant 0 : index
    %c0_5 = arith.constant 0 : index
    %c0_6 = arith.constant 0 : index
    %7 = vector.load %arg2[%c0_4, %c0_5, %c0_6] : memref<9x128x128xbf16, #tpu.memory_space<vmem>>, vector<1x128x128xbf16>
    %8 = vector.shape_cast %7 : vector<1x128x128xbf16> to vector<128x128xbf16>
    %cst_7 = arith.constant dense<0.000000e+00> : vector<256x128xf32>
    %9 = tpu.matmul %6, %8, %cst_7 {dimension_numbers = #tpu.dot_dimension_numbers<[1], [0], [0], [1], [0, 0, 1, 1], [], []>} : vector<256x128xbf16>, vector<128x128xbf16>, vector<256x128xf32> -> vector<256x128xf32>
    %10 = arith.addf %3, %9 : vector<256x128xf32>
    %c0_8 = arith.constant 0 : index
    %c0_9 = arith.constant 0 : index
    %c1 = arith.constant 1 : index
    %c0_10 = arith.constant 0 : index
    %11 = vector.load %arg1[%c0_8, %c0_9, %c1, %c0_10] : memref<1x18x18x128xbf16, #tpu.memory_space<vmem>>, vector<1x16x16x128xbf16>
    %12 = vector.shape_cast %11 : vector<1x16x16x128xbf16> to vector<16x16x128xbf16>
    %13 = vector.shape_cast %12 : vector<16x16x128xbf16> to vector<256x128xbf16>
    %c1_11 = arith.constant 1 : index
    %c0_12 = arith.constant 0 : index
    %c0_13 = arith.constant 0 : index
    %14 = vector.load %arg2[%c1_11, %c0_12, %c0_13] : memref<9x128x128xbf16, #tpu.memory_space<vmem>>, vector<1x128x128xbf16>
    %15 = vector.shape_cast %14 : vector<1x128x128xbf16> to vector<128x128xbf16>
    %cst_14 = arith.constant dense<0.000000e+00> : vector<256x128xf32>
    %16 = tpu.matmul %13, %15, %cst_14 {dimension_numbers = #tpu.dot_dimension_numbers<[1], [0], [0], [1], [0, 0, 1, 1], [], []>} : vector<256x128xbf16>, vector<128x128xbf16>, vector<256x128xf32> -> vector<256x128xf32>
    %17 = arith.addf %10, %16 : vector<256x128xf32>
    %c0_15 = arith.constant 0 : index
    %c0_16 = arith.constant 0 : index
    %c2 = arith.constant 2 : index
    %c0_17 = arith.constant 0 : index
    %18 = vector.load %arg1[%c0_15, %c0_16, %c2, %c0_17] : memref<1x18x18x128xbf16, #tpu.memory_space<vmem>>, vector<1x16x16x128xbf16>
    %19 = vector.shape_cast %18 : vector<1x16x16x128xbf16> to vector<16x16x128xbf16>
    %20 = vector.shape_cast %19 : vector<16x16x128xbf16> to vector<256x128xbf16>
    %c2_18 = arith.constant 2 : index
    %c0_19 = arith.constant 0 : index
    %c0_20 = arith.constant 0 : index
    %21 = vector.load %arg2[%c2_18, %c0_19, %c0_20] : memref<9x128x128xbf16, #tpu.memory_space<vmem>>, vector<1x128x128xbf16>
    %22 = vector.shape_cast %21 : vector<1x128x128xbf16> to vector<128x128xbf16>
    %cst_21 = arith.constant dense<0.000000e+00> : vector<256x128xf32>
    %23 = tpu.matmul %20, %22, %cst_21 {dimension_numbers = #tpu.dot_dimension_numbers<[1], [0], [0], [1], [0, 0, 1, 1], [], []>} : vector<256x128xbf16>, vector<128x128xbf16>, vector<256x128xf32> -> vector<256x128xf32>
    %24 = arith.addf %17, %23 : vector<256x128xf32>
    %c0_22 = arith.constant 0 : index
    %c1_23 = arith.constant 1 : index
    %c0_24 = arith.constant 0 : index
    %c0_25 = arith.constant 0 : index
    %25 = vector.load %arg1[%c0_22, %c1_23, %c0_24, %c0_25] : memref<1x18x18x128xbf16, #tpu.memory_space<vmem>>, vector<1x16x16x128xbf16>
    %26 = vector.shape_cast %25 : vector<1x16x16x128xbf16> to vector<16x16x128xbf16>
    %27 = vector.shape_cast %26 : vector<16x16x128xbf16> to vector<256x128xbf16>
    %c3 = arith.constant 3 : index
    %c0_26 = arith.constant 0 : index
    %c0_27 = arith.constant 0 : index
    %28 = vector.load %arg2[%c3, %c0_26, %c0_27] : memref<9x128x128xbf16, #tpu.memory_space<vmem>>, vector<1x128x128xbf16>
    %29 = vector.shape_cast %28 : vector<1x128x128xbf16> to vector<128x128xbf16>
    %cst_28 = arith.constant dense<0.000000e+00> : vector<256x128xf32>
    %30 = tpu.matmul %27, %29, %cst_28 {dimension_numbers = #tpu.dot_dimension_numbers<[1], [0], [0], [1], [0, 0, 1, 1], [], []>} : vector<256x128xbf16>, vector<128x128xbf16>, vector<256x128xf32> -> vector<256x128xf32>
    %31 = arith.addf %24, %30 : vector<256x128xf32>
    %c0_29 = arith.constant 0 : index
    %c1_30 = arith.constant 1 : index
    %c1_31 = arith.constant 1 : index
    %c0_32 = arith.constant 0 : index
    %32 = vector.load %arg1[%c0_29, %c1_30, %c1_31, %c0_32] : memref<1x18x18x128xbf16, #tpu.memory_space<vmem>>, vector<1x16x16x128xbf16>
    %33 = vector.shape_cast %32 : vector<1x16x16x128xbf16> to vector<16x16x128xbf16>
    %34 = vector.shape_cast %33 : vector<16x16x128xbf16> to vector<256x128xbf16>
    %c4 = arith.constant 4 : index
    %c0_33 = arith.constant 0 : index
    %c0_34 = arith.constant 0 : index
    %35 = vector.load %arg2[%c4, %c0_33, %c0_34] : memref<9x128x128xbf16, #tpu.memory_space<vmem>>, vector<1x128x128xbf16>
    %36 = vector.shape_cast %35 : vector<1x128x128xbf16> to vector<128x128xbf16>
    %cst_35 = arith.constant dense<0.000000e+00> : vector<256x128xf32>
    %37 = tpu.matmul %34, %36, %cst_35 {dimension_numbers = #tpu.dot_dimension_numbers<[1], [0], [0], [1], [0, 0, 1, 1], [], []>} : vector<256x128xbf16>, vector<128x128xbf16>, vector<256x128xf32> -> vector<256x128xf32>
    %38 = arith.addf %31, %37 : vector<256x128xf32>
    %c0_36 = arith.constant 0 : index
    %c1_37 = arith.constant 1 : index
    %c2_38 = arith.constant 2 : index
    %c0_39 = arith.constant 0 : index
    %39 = vector.load %arg1[%c0_36, %c1_37, %c2_38, %c0_39] : memref<1x18x18x128xbf16, #tpu.memory_space<vmem>>, vector<1x16x16x128xbf16>
    %40 = vector.shape_cast %39 : vector<1x16x16x128xbf16> to vector<16x16x128xbf16>
    %41 = vector.shape_cast %40 : vector<16x16x128xbf16> to vector<256x128xbf16>
    %c5 = arith.constant 5 : index
    %c0_40 = arith.constant 0 : index
    %c0_41 = arith.constant 0 : index
    %42 = vector.load %arg2[%c5, %c0_40, %c0_41] : memref<9x128x128xbf16, #tpu.memory_space<vmem>>, vector<1x128x128xbf16>
    %43 = vector.shape_cast %42 : vector<1x128x128xbf16> to vector<128x128xbf16>
    %cst_42 = arith.constant dense<0.000000e+00> : vector<256x128xf32>
    %44 = tpu.matmul %41, %43, %cst_42 {dimension_numbers = #tpu.dot_dimension_numbers<[1], [0], [0], [1], [0, 0, 1, 1], [], []>} : vector<256x128xbf16>, vector<128x128xbf16>, vector<256x128xf32> -> vector<256x128xf32>
    %45 = arith.addf %38, %44 : vector<256x128xf32>
    %c0_43 = arith.constant 0 : index
    %c2_44 = arith.constant 2 : index
    %c0_45 = arith.constant 0 : index
    %c0_46 = arith.constant 0 : index
    %46 = vector.load %arg1[%c0_43, %c2_44, %c0_45, %c0_46] : memref<1x18x18x128xbf16, #tpu.memory_space<vmem>>, vector<1x16x16x128xbf16>
    %47 = vector.shape_cast %46 : vector<1x16x16x128xbf16> to vector<16x16x128xbf16>
    %48 = vector.shape_cast %47 : vector<16x16x128xbf16> to vector<256x128xbf16>
    %c6 = arith.constant 6 : index
    %c0_47 = arith.constant 0 : index
    %c0_48 = arith.constant 0 : index
    %49 = vector.load %arg2[%c6, %c0_47, %c0_48] : memref<9x128x128xbf16, #tpu.memory_space<vmem>>, vector<1x128x128xbf16>
    %50 = vector.shape_cast %49 : vector<1x128x128xbf16> to vector<128x128xbf16>
    %cst_49 = arith.constant dense<0.000000e+00> : vector<256x128xf32>
    %51 = tpu.matmul %48, %50, %cst_49 {dimension_numbers = #tpu.dot_dimension_numbers<[1], [0], [0], [1], [0, 0, 1, 1], [], []>} : vector<256x128xbf16>, vector<128x128xbf16>, vector<256x128xf32> -> vector<256x128xf32>
    %52 = arith.addf %45, %51 : vector<256x128xf32>
    %c0_50 = arith.constant 0 : index
    %c2_51 = arith.constant 2 : index
    %c1_52 = arith.constant 1 : index
    %c0_53 = arith.constant 0 : index
    %53 = vector.load %arg1[%c0_50, %c2_51, %c1_52, %c0_53] : memref<1x18x18x128xbf16, #tpu.memory_space<vmem>>, vector<1x16x16x128xbf16>
    %54 = vector.shape_cast %53 : vector<1x16x16x128xbf16> to vector<16x16x128xbf16>
    %55 = vector.shape_cast %54 : vector<16x16x128xbf16> to vector<256x128xbf16>
    %c7 = arith.constant 7 : index
    %c0_54 = arith.constant 0 : index
    %c0_55 = arith.constant 0 : index
    %56 = vector.load %arg2[%c7, %c0_54, %c0_55] : memref<9x128x128xbf16, #tpu.memory_space<vmem>>, vector<1x128x128xbf16>
    %57 = vector.shape_cast %56 : vector<1x128x128xbf16> to vector<128x128xbf16>
    %cst_56 = arith.constant dense<0.000000e+00> : vector<256x128xf32>
    %58 = tpu.matmul %55, %57, %cst_56 {dimension_numbers = #tpu.dot_dimension_numbers<[1], [0], [0], [1], [0, 0, 1, 1], [], []>} : vector<256x128xbf16>, vector<128x128xbf16>, vector<256x128xf32> -> vector<256x128xf32>
    %59 = arith.addf %52, %58 : vector<256x128xf32>
    %c0_57 = arith.constant 0 : index
    %c2_58 = arith.constant 2 : index
    %c2_59 = arith.constant 2 : index
    %c0_60 = arith.constant 0 : index
    %60 = vector.load %arg1[%c0_57, %c2_58, %c2_59, %c0_60] : memref<1x18x18x128xbf16, #tpu.memory_space<vmem>>, vector<1x16x16x128xbf16>
    %61 = vector.shape_cast %60 : vector<1x16x16x128xbf16> to vector<16x16x128xbf16>
    %62 = vector.shape_cast %61 : vector<16x16x128xbf16> to vector<256x128xbf16>
    %c8 = arith.constant 8 : index
    %c0_61 = arith.constant 0 : index
    %c0_62 = arith.constant 0 : index
    %63 = vector.load %arg2[%c8, %c0_61, %c0_62] : memref<9x128x128xbf16, #tpu.memory_space<vmem>>, vector<1x128x128xbf16>
    %64 = vector.shape_cast %63 : vector<1x128x128xbf16> to vector<128x128xbf16>
    %cst_63 = arith.constant dense<0.000000e+00> : vector<256x128xf32>
    %65 = tpu.matmul %62, %64, %cst_63 {dimension_numbers = #tpu.dot_dimension_numbers<[1], [0], [0], [1], [0, 0, 1, 1], [], []>} : vector<256x128xbf16>, vector<128x128xbf16>, vector<256x128xf32> -> vector<256x128xf32>
    %66 = arith.addf %59, %65 : vector<256x128xf32>
    %c0_64 = arith.constant 0 : index
    %c0_65 = arith.constant 0 : index
    %67 = vector.load %arg3[%c0_64, %c0_65] : memref<1x128xf32, #tpu.memory_space<vmem>>, vector<1x128xf32>
    %68 = vector.broadcast %67 : vector<1x128xf32> to vector<256x128xf32>
    %69 = arith.mulf %66, %68 : vector<256x128xf32>
    %c0_66 = arith.constant 0 : index
    %c0_67 = arith.constant 0 : index
    %70 = vector.load %arg4[%c0_66, %c0_67] : memref<1x128xf32, #tpu.memory_space<vmem>>, vector<1x128xf32>
    %71 = vector.broadcast %70 : vector<1x128xf32> to vector<256x128xf32>
    %72 = arith.addf %69, %71 : vector<256x128xf32>
    %cst_68 = arith.constant 0.000000e+00 : f32
    %73 = vector.broadcast %cst_68 : f32 to vector<256x128xf32>
    %74 = arith.maximumf %72, %73 : vector<256x128xf32>
    %75 = arith.truncf %74 : vector<256x128xf32> to vector<256x128xbf16>
    %76 = vector.shape_cast %75 : vector<256x128xbf16> to vector<1x16x16x128xbf16>
    %c0_69 = arith.constant 0 : index
    %c0_70 = arith.constant 0 : index
    %c0_71 = arith.constant 0 : index
    %c0_72 = arith.constant 0 : index
    %77 = vector.load %arg6[%c0_69, %c0_70, %c0_71, %c0_72] : memref<1x16x16x128xbf16, #tpu.memory_space<vmem>>, vector<1x16x16x128xbf16>
    tpu.vector_store %arg6[%c0_69, %c0_70, %c0_71, %c0_72], %76 {strides = array<i32>} : memref<1x16x16x128xbf16, #tpu.memory_space<vmem>>, vector<1x16x16x128xbf16>,
    %c0_73 = arith.constant 0 : index
    %c0_74 = arith.constant 0 : index
    %78 = vector.load %arg5[%c0_73, %c0_74] : memref<128x128xbf16, #tpu.memory_space<vmem>>, vector<128x128xbf16>
    %cst_75 = arith.constant dense<0.000000e+00> : vector<256x128xf32>
    %79 = tpu.matmul %75, %78, %cst_75 {dimension_numbers = #tpu.dot_dimension_numbers<[1], [0], [0], [1], [0, 0, 1, 1], [], []>} : vector<256x128xbf16>, vector<128x128xbf16>, vector<256x128xf32> -> vector<256x128xf32>
    %c0_76 = arith.constant 0 : index
    %c0_77 = arith.constant 0 : index
    %80 = vector.load %arg7[%c0_76, %c0_77] : memref<1x128xf32, #tpu.memory_space<vmem>>, vector<1x128xf32>
    %cst_78 = arith.constant dense<0.000000e+00> : vector<128xf32>
    %81 = vector.multi_reduction <add>, %79, %cst_78 [0] : vector<256x128xf32> to vector<128xf32>
    %82 = vector.shape_cast %81 : vector<128xf32> to vector<1x128xf32>
    %83 = arith.addf %80, %82 : vector<1x128xf32>
    %c0_79 = arith.constant 0 : index
    %c0_80 = arith.constant 0 : index
    %84 = vector.load %arg7[%c0_79, %c0_80] : memref<1x128xf32, #tpu.memory_space<vmem>>, vector<1x128xf32>
    tpu.vector_store %arg7[%c0_79, %c0_80], %83 {strides = array<i32>} : memref<1x128xf32, #tpu.memory_space<vmem>>, vector<1x128xf32>,
    %c0_81 = arith.constant 0 : index
    %c0_82 = arith.constant 0 : index
    %85 = vector.load %arg8[%c0_81, %c0_82] : memref<1x128xf32, #tpu.memory_space<vmem>>, vector<1x128xf32>
    %86 = arith.mulf %79, %79 : vector<256x128xf32>
    %cst_83 = arith.constant dense<0.000000e+00> : vector<128xf32>
    %87 = vector.multi_reduction <add>, %86, %cst_83 [0] : vector<256x128xf32> to vector<128xf32>
    %88 = vector.shape_cast %87 : vector<128xf32> to vector<1x128xf32>
    %89 = arith.addf %85, %88 : vector<1x128xf32>
    %c0_84 = arith.constant 0 : index
    %c0_85 = arith.constant 0 : index
    %90 = vector.load %arg8[%c0_84, %c0_85] : memref<1x128xf32, #tpu.memory_space<vmem>>, vector<1x128xf32>
    tpu.vector_store %arg8[%c0_84, %c0_85], %89 {strides = array<i32>} : memref<1x128xf32, #tpu.memory_space<vmem>>, vector<1x128xf32>,
    return
  }
  func.func @transform_0(%arg0: i32) -> (i32, i32, i32, i32) {
    %c0_i32 = arith.constant 0 : i32
    %c0_i32_0 = arith.constant 0 : i32
    %c0_i32_1 = arith.constant 0 : i32
    %c0_i32_2 = arith.constant 0 : i32
    return %arg0, %c0_i32, %c0_i32_0, %c0_i32_1 : i32, i32, i32, i32
  }
  func.func @transform_1(%arg0: i32) -> (i32, i32, i32) {
    %c0_i32 = arith.constant 0 : i32
    %c0_i32_0 = arith.constant 0 : i32
    %c0_i32_1 = arith.constant 0 : i32
    %c0_i32_2 = arith.constant 0 : i32
    return %c0_i32, %c0_i32_0, %c0_i32_1 : i32, i32, i32
  }
  func.func @transform_2(%arg0: i32) -> (i32, i32) {
    %c0_i32 = arith.constant 0 : i32
    %c0_i32_0 = arith.constant 0 : i32
    %c0_i32_1 = arith.constant 0 : i32
    return %c0_i32, %c0_i32_0 : i32, i32
  }
  func.func @transform_3(%arg0: i32) -> (i32, i32) {
    %c0_i32 = arith.constant 0 : i32
    %c0_i32_0 = arith.constant 0 : i32
    %c0_i32_1 = arith.constant 0 : i32
    return %c0_i32, %c0_i32_0 : i32, i32
  }
  func.func @transform_4(%arg0: i32) -> (i32, i32) {
    %c0_i32 = arith.constant 0 : i32
    %c0_i32_0 = arith.constant 0 : i32
    %c0_i32_1 = arith.constant 0 : i32
    return %c0_i32, %c0_i32_0 : i32, i32
  }
  func.func @transform_5(%arg0: i32) -> (i32, i32, i32, i32) {
    %c0_i32 = arith.constant 0 : i32
    %c0_i32_0 = arith.constant 0 : i32
    %c0_i32_1 = arith.constant 0 : i32
    %c0_i32_2 = arith.constant 0 : i32
    return %arg0, %c0_i32, %c0_i32_0, %c0_i32_1 : i32, i32, i32, i32
  }
  func.func @transform_6(%arg0: i32) -> (i32, i32) {
    %c0_i32 = arith.constant 0 : i32
    %c0_i32_0 = arith.constant 0 : i32
    %c0_i32_1 = arith.constant 0 : i32
    return %c0_i32, %c0_i32_0 : i32, i32
  }
  func.func @transform_7(%arg0: i32) -> (i32, i32) {
    %c0_i32 = arith.constant 0 : i32
    %c0_i32_0 = arith.constant 0 : i32
    %c0_i32_1 = arith.constant 0 : i32
    return %c0_i32, %c0_i32_0 : i32, i32
  }
}

</mosaic_0001>

<bundles_post_ra>
// kernel: bottleneck_forward.5
= control target key start
LH: loop header
LB: loop body
LE: loop exit
PB: predicated region body
PF: predicated region fallthrough
CT: control target
= control target key end

     0   :  { %s845_s12 = smov 0   ;;  %s969_s0 = inlined_call_operand.vmem [shape: bf16[512,128], index: 0, kind: input, shape index: {}]   ;;  %s970_s1 = inlined_call_operand.vmem [shape: bf16[128,128], index: 1, kind: input, shape index: {}]   ;;  %s971_s2 = inlined_call_operand.vmem [shape: f32[1,128], index: 2, kind: output, shape index: {0}]   ;;  %s972_s3 = inlined_call_operand.vmem [shape: f32[1,128], index: 3, kind: output, shape index: {1}]  }
   0x1 LB: > { %s662_s13 = sadd.s32 4294967295, %s822_s12   ;;  %p665_p0 = scmp.ge.s32.totalorder %s822_s12, 1  ;;  %s822_s12 = sphi %s845_s12, %s14_s12  }
   0x2   : > { %p131_p1 = scmp.lt.s32.totalorder %s822_s12, 3 }
   0x4   : > { %p132_p2 = pnand %p665_p0, %p131_p1 }
   0x5   : > { %s666_s14 = sshll.u32 (!%p132_p2), %s662_s13, 5  ;;  %p668_p4 = scmp.ne.s32.totalorder (!%p132_p2), %s662_s13, 0 }
   0x6   : > { %135 = sbr.rel (%p132_p2) target bundleno = 347 (0x15b), region = 28  ;;  %p151_p3 = scmp.lt.s32.totalorder (!%p132_p2), %s666_s14, 63 }
   0xd   : > { %s974_s14 = smov (!%p151_p3, %s666_s14), 63  ;;  %160 = sbr.rel (%p668_p4) target bundleno = 20 (0x14), region = 32 }
   0xe   : > { %s667_s15 = sshll.u32 %s974_s14, 2  ;;  %v824_v0 = vmov (!%p668_p4), 0.0  }
   0xf   : > { %s856_s18 = scalar_lea.vmem %s969_s0, %s667_s15  ;;  %161 = vst [vmem:[%s971_s2] sm:$0x1] (!%p668_p4), %v824_v0  ;;  %162 = vst [vmem:[%s972_s3] sm:$0x1] (!%p668_p4), %v824_v0 }
  0x14 PF: > { %v792_v1 = vld [vmem:[%s970_s1] sm:$0xff]   ;;  %v793_v2 = vld [vmem:[%s970_s1 + $0x8] sm:$0xff]   ;;  %v794_v3 = vld [vmem:[%s970_s1 + $0x10] sm:$0xff]  }
  0x15   : > { %719 = vmatprep.subr.bf16.mxu0 %v792_v1  ;;  %767 = vmatprep.subr.bf16.mxu1 %v792_v1  ;;  %v795_v4 = vld [vmem:[%s970_s1 + $0x18] sm:$0xff]   ;;  %v800_v5 = vld [vmem:[%s856_s18] sm:$0xff]   ;;  %v797_v7 = vld [vmem:[%s970_s1 + $0x28] sm:$0xff]  }
  0x16   : > { %720 = vmatpush3.bf16.msra.mxu0 %v792_v1  ;;  %775 = vmatpush3.bf16.msra.mxu1 %v792_v1  ;;  %v796_v6 = vld [vmem:[%s970_s1 + $0x20] sm:$0xff]   ;;  %v798_v9 = vld [vmem:[%s970_s1 + $0x30] sm:$0xff]   ;;  %v799_v10 = vld [vmem:[%s970_s1 + $0x38] sm:$0xff]  }
  0x17   : > { %721 = vmatprep.subr.bf16.mxu0 %v793_v2  ;;  %768 = vmatprep.subr.bf16.mxu1 %v793_v2  ;;  %v808_v8 = vld [vmem:[%s856_s18 + $0x40] sm:$0xff]   ;;  %v801_v11 = vld [vmem:[%s856_s18 + $0x8] sm:$0xff]   ;;  %v802_v13 = vld [vmem:[%s856_s18 + $0x10] sm:$0xff]  }
  0x18   : > { %735 = vmatprep.mubr.bf16.mxu0 %v800_v5  ;;  %751 = vmatprep.mubr.bf16.mxu1 %v808_v8  ;;  %v809_v12 = vld [vmem:[%s856_s18 + $0x48] sm:$0xff]   ;;  %v810_v14 = vld [vmem:[%s856_s18 + $0x50] sm:$0xff]   ;;  %v803_v15 = vld [vmem:[%s856_s18 + $0x18] sm:$0xff]  }
  0x19   : > { %v811_v16 = vld [vmem:[%s856_s18 + $0x58] sm:$0xff]   ;;  %v804_v17 = vld [vmem:[%s856_s18 + $0x20] sm:$0xff]   ;;  %v805_v19 = vld [vmem:[%s856_s18 + $0x28] sm:$0xff]  }
  0x1a   : > { %722 = vmatpush3.bf16.msra.mxu0 %v793_v2  ;;  %776 = vmatpush3.bf16.msra.mxu1 %v793_v2  ;;  %v812_v18 = vld [vmem:[%s856_s18 + $0x60] sm:$0xff]   ;;  %v813_v20 = vld [vmem:[%s856_s18 + $0x68] sm:$0xff]   ;;  %v806_v21 = vld [vmem:[%s856_s18 + $0x30] sm:$0xff]  }
  0x1b   : > { %723 = vmatprep.subr.bf16.mxu0 %v794_v3  ;;  %769 = vmatprep.subr.bf16.mxu1 %v794_v3  ;;  %v814_v22 = vld [vmem:[%s856_s18 + $0x70] sm:$0xff]   ;;  %v807_v23 = vld [vmem:[%s856_s18 + $0x38] sm:$0xff]  }
  0x1c   : > { %v815_v24 = vld [vmem:[%s856_s18 + $0x78] sm:$0xff]  }
  0x1e   : > { %724 = vmatpush3.bf16.msra.mxu0 %v794_v3  ;;  %777 = vmatpush3.bf16.msra.mxu1 %v794_v3 }
  0x1f   : > { %725 = vmatprep.subr.bf16.mxu0 %v795_v4  ;;  %770 = vmatprep.subr.bf16.mxu1 %v795_v4 }
  0x22   : > { %726 = vmatpush3.bf16.msra.mxu0 %v795_v4  ;;  %778 = vmatpush3.bf16.msra.mxu1 %v795_v4 }
  0x23   : > { %727 = vmatprep.subr.bf16.mxu0 %v796_v6  ;;  %771 = vmatprep.subr.bf16.mxu1 %v796_v6 }
  0x26   : > { %728 = vmatpush3.bf16.msra.mxu0 %v796_v6  ;;  %779 = vmatpush3.bf16.msra.mxu1 %v796_v6 }
  0x27   : > { %729 = vmatprep.subr.bf16.mxu0 %v797_v7  ;;  %772 = vmatprep.subr.bf16.mxu1 %v797_v7 }
  0x2a   : > { %730 = vmatpush3.bf16.msra.mxu0 %v797_v7  ;;  %780 = vmatpush3.bf16.msra.mxu1 %v797_v7 }
  0x2b   : > { %731 = vmatprep.subr.bf16.mxu0 %v798_v9  ;;  %773 = vmatprep.subr.bf16.mxu1 %v798_v9 }
  0x2e   : > { %732 = vmatpush3.bf16.msra.mxu0 %v798_v9  ;;  %781 = vmatpush3.bf16.msra.mxu1 %v798_v9 }
  0x2f   : > { %733 = vmatprep.subr.bf16.mxu0 %v799_v10  ;;  %774 = vmatprep.subr.bf16.mxu1 %v799_v10 }
  0x32   : > { %734 = vmatpush3.bf16.msra.mxu0 %v799_v10  ;;  %782 = vmatpush3.bf16.msra.mxu1 %v799_v10 }
  0x35   : > { %736 = vmatmul.mubr.bf16.vlgmr.msra.gmra.mrb[0].mxu0 %v801_v11  ;;  %752 = vmatmul.mubr.bf16.vlgmr.msra.gmra.mrb[0].mxu1 %v809_v12 }
  0x36   : > { %739 = vmatprep.mubr.bf16.mxu0 %v802_v13  ;;  %755 = vmatprep.mubr.bf16.mxu1 %v810_v14 }
  0x3d   : > { %740 = vmatmul.mubr.bf16.gmra.mrb[4].mxu0 %v803_v15  ;;  %756 = vmatmul.mubr.bf16.gmra.mrb[4].mxu1 %v811_v16 }
  0x3e   : > { %743 = vmatprep.mubr.bf16.mxu0 %v804_v17  ;;  %759 = vmatprep.mubr.bf16.mxu1 %v812_v18 }
  0x45   : > { %744 = vmatmul.mubr.bf16.gmra.mrb[8].mxu0 %v805_v19  ;;  %760 = vmatmul.mubr.bf16.gmra.mrb[8].mxu1 %v813_v20 }
  0x46   : > { %747 = vmatprep.mubr.bf16.mxu0 %v806_v21  ;;  %763 = vmatprep.mubr.bf16.mxu1 %v814_v22 }
  0x4d   : > { %748 = vmatmul.mubr.bf16.gmra.mrb[12].mxu0 %v807_v23  ;;  %764 = vmatmul.mubr.bf16.gmra.mrb[12].mxu1 %v815_v24 }
 0x108   : > { %v737_v25 = vpop.f32.mrb[0].mxu0  ;;  %v904_v26 = vpop.f32.mrb[0].mxu1 }
 0x109   : > { %v389_v27 = vpop.f32.mrb[1].mxu0  ;;  %v906_v28 = vpop.f32.mrb[1].mxu1  ;;  %v559_v36 = vmul.f32 %v737_v25, %v737_v25 }
 0x10a   : > { %v738_v29 = vpop.f32.mrb[2].mxu0  ;;  %v908_v30 = vpop.f32.mrb[2].mxu1  ;;  %v557_v33 = vmul.f32 %v389_v27, %v389_v27 }
 0x10b   : > { %v392_v31 = vpop.f32.mrb[3].mxu0  ;;  %v910_v32 = vpop.f32.mrb[3].mxu1  ;;  %v560_v39 = vmul.f32 %v738_v29, %v738_v29 }
 0x10c   : > { %v517_v34 = vadd.f32 %v392_v31, %v389_v27  ;;  %v558_v35 = vmul.f32 %v392_v31, %v392_v31 }
 0x10e   : > { %v518_v37 = vadd.f32 %v737_v25, %v517_v34  ;;  %v589_v38 = vadd.f32 %v558_v35, %v557_v33 }
 0x110   : > { %v590_v40 = vadd.f32 %v589_v38, %v559_v36  ;;  %v741_v41 = vpop.f32.mrb[4].mxu0  ;;  %v519_v42 = vadd.f32 %v738_v29, %v518_v37  ;;  %v912_v43 = vpop.f32.mrb[4].mxu1 }
 0x111   : > { %v405_v44 = vpop.f32.mrb[5].mxu0  ;;  %v914_v45 = vpop.f32.mrb[5].mxu1  ;;  %v563_v56 = vmul.f32 %v741_v41, %v741_v41 }
 0x112   : > { %v520_v46 = vadd.f32 %v519_v42, %v405_v44  ;;  %v561_v47 = vmul.f32 %v405_v44, %v405_v44  ;;  %v591_v48 = vadd.f32 %v590_v40, %v560_v39  ;;  %v742_v49 = vpop.f32.mrb[6].mxu0  ;;  %v916_v50 = vpop.f32.mrb[6].mxu1  ;;  %v573_v42 = vmul.f32 %v906_v28, %v906_v28 }
 0x113   : > { %v408_v51 = vpop.f32.mrb[7].mxu0  ;;  %v918_v52 = vpop.f32.mrb[7].mxu1  ;;  %v564_v59 = vmul.f32 %v742_v49, %v742_v49 }
 0x114   : > { %v592_v53 = vadd.f32 %v591_v48, %v561_v47  ;;  %v521_v54 = vadd.f32 %v520_v46, %v408_v51  ;;  %v562_v55 = vmul.f32 %v408_v51, %v408_v51  ;;  %v575_v51 = vmul.f32 %v904_v26, %v904_v26 }
 0x116   : > { %v522_v57 = vadd.f32 %v741_v41, %v521_v54  ;;  %v593_v58 = vadd.f32 %v592_v53, %v562_v55  ;;  %v576_v55 = vmul.f32 %v908_v30, %v908_v30 }
 0x118   : > { %v594_v60 = vadd.f32 %v593_v58, %v563_v56  ;;  %v745_v61 = vpop.f32.mrb[8].mxu0  ;;  %v523_v62 = vadd.f32 %v742_v49, %v522_v57  ;;  %v920_v63 = vpop.f32.mrb[8].mxu1  ;;  %v574_v49 = vmul.f32 %v910_v32, %v910_v32 }
 0x119   : > { %v421_v0 = vpop.f32.mrb[9].mxu0  ;;  %v485_v1 = vpop.f32.mrb[9].mxu1  ;;  %v567_v12 = vmul.f32 %v745_v61, %v745_v61 }
 0x11a   : > { %v524_v2 = vadd.f32 %v523_v62, %v421_v0  ;;  %v565_v3 = vmul.f32 %v421_v0, %v421_v0  ;;  %v595_v4 = vadd.f32 %v594_v60, %v564_v59  ;;  %v746_v5 = vpop.f32.mrb[10].mxu0  ;;  %v922_v6 = vpop.f32.mrb[10].mxu1 }
 0x11b   : > { %v424_v7 = vpop.f32.mrb[11].mxu0  ;;  %v488_v8 = vpop.f32.mrb[11].mxu1  ;;  %v568_v15 = vmul.f32 %v746_v5, %v746_v5 }
 0x11c   : > { %v596_v9 = vadd.f32 %v595_v4, %v565_v3  ;;  %v525_v10 = vadd.f32 %v524_v2, %v424_v7  ;;  %v566_v11 = vmul.f32 %v424_v7, %v424_v7 }
 0x11e   : > { %v526_v13 = vadd.f32 %v745_v61, %v525_v10  ;;  %v597_v14 = vadd.f32 %v596_v9, %v566_v11  ;;  %v578_v61 = vmul.f32 %v918_v52, %v918_v52  ;;  %v582_v10 = vmul.f32 %v488_v8, %v488_v8 }
 0x120   : > { %v598_v16 = vadd.f32 %v597_v14, %v567_v12  ;;  %v749_v17 = vpop.f32.mrb[12].mxu0  ;;  %v527_v18 = vadd.f32 %v746_v5, %v526_v13  ;;  %v765_v19 = vpop.f32.mrb[12].mxu1 }
 0x121   : > { %v437_v20 = vpop.f32.mrb[13].mxu0  ;;  %v501_v21 = vpop.f32.mrb[13].mxu1  ;;  %v571_v36 = vmul.f32 %v749_v17, %v749_v17 }
 0x122   : > { %v528_v22 = vadd.f32 %v527_v18, %v437_v20  ;;  %v569_v23 = vmul.f32 %v437_v20, %v437_v20  ;;  %v599_v24 = vadd.f32 %v598_v16, %v568_v15  ;;  %v750_v25 = vpop.f32.mrb[14].mxu0  ;;  %v766_v27 = vpop.f32.mrb[14].mxu1  ;;  %v585_v15 = vmul.f32 %v501_v21, %v501_v21 }
 0x123   : > { %v440_v29 = vpop.f32.mrb[15].mxu0  ;;  %v504_v31 = vpop.f32.mrb[15].mxu1  ;;  %v572_v39 = vmul.f32 %v750_v25, %v750_v25  ;;  %v587_v20 = vmul.f32 %v765_v19, %v765_v19 }
 0x124   : > { %v600_v33 = vadd.f32 %v599_v24, %v569_v23  ;;  %v529_v34 = vadd.f32 %v528_v22, %v440_v29  ;;  %v570_v35 = vmul.f32 %v440_v29, %v440_v29  ;;  %v586_v18 = vmul.f32 %v504_v31, %v504_v31 }
 0x125   : > { %v588_v23 = vmul.f32 %v766_v27, %v766_v27 }
 0x126   : > { %v530_v37 = vadd.f32 %v749_v17, %v529_v34  ;;  %v601_v38 = vadd.f32 %v600_v33, %v570_v35 }
 0x128   : > { %v602_v40 = vadd.f32 %v601_v38, %v571_v36  ;;  %v531_v41 = vadd.f32 %v750_v25, %v530_v37 }
 0x12a   : > { %v532_v44 = vadd.f32 %v531_v41, %v906_v28  ;;  %v603_v46 = vadd.f32 %v602_v40, %v572_v39  ;;  %v577_v28 = vmul.f32 %v914_v45, %v914_v45 }
 0x12c   : > { %v604_v47 = vadd.f32 %v603_v46, %v573_v42  ;;  %v533_v48 = vadd.f32 %v532_v44, %v910_v32 }
 0x12e   : > { %v534_v53 = vadd.f32 %v904_v26, %v533_v48  ;;  %v605_v54 = vadd.f32 %v604_v47, %v574_v49  ;;  %v579_v26 = vmul.f32 %v912_v43, %v912_v43 }
 0x130   : > { %v606_v56 = vadd.f32 %v605_v54, %v575_v51  ;;  %v535_v57 = vadd.f32 %v908_v30, %v534_v53  ;;  %v580_v30 = vmul.f32 %v916_v50, %v916_v50 }
 0x132   : > { %v536_v58 = vadd.f32 %v535_v57, %v914_v45  ;;  %v607_v59 = vadd.f32 %v606_v56, %v576_v55  ;;  %v581_v45 = vmul.f32 %v485_v1, %v485_v1 }
 0x134   : > { %v608_v60 = vadd.f32 %v607_v59, %v577_v28  ;;  %v537_v32 = vadd.f32 %v536_v58, %v918_v52  ;;  %v583_v52 = vmul.f32 %v920_v63, %v920_v63 }
 0x136   : > { %v538_v62 = vadd.f32 %v912_v43, %v537_v32  ;;  %v609_v0 = vadd.f32 %v608_v60, %v578_v61  ;;  %v584_v43 = vmul.f32 %v922_v6, %v922_v6 }
 0x138   : > { %v610_v2 = vadd.f32 %v609_v0, %v579_v26  ;;  %v539_v3 = vadd.f32 %v916_v50, %v538_v62 }
 0x13a   : > { %v540_v4 = vadd.f32 %v539_v3, %v485_v1  ;;  %v611_v5 = vadd.f32 %v610_v2, %v580_v30 }
 0x13c   : > { %v612_v7 = vadd.f32 %v611_v5, %v581_v45  ;;  %v541_v9 = vadd.f32 %v540_v4, %v488_v8 }
 0x13e   : > { %v542_v11 = vadd.f32 %v920_v63, %v541_v9  ;;  %v613_v12 = vadd.f32 %v612_v7, %v582_v10 }
 0x140   : > { %v614_v13 = vadd.f32 %v613_v12, %v583_v52  ;;  %v543_v14 = vadd.f32 %v922_v6, %v542_v11 }
 0x142   : > { %v544_v50 = vadd.f32 %v543_v14, %v501_v21  ;;  %v615_v16 = vadd.f32 %v614_v13, %v584_v43 }
 0x144   : > { %v616_v1 = vadd.f32 %v615_v16, %v585_v15  ;;  %v545_v17 = vadd.f32 %v544_v50, %v504_v31  ;;  %v516_v31 = vld [vmem:[%s971_s2] sm:$0x1] }
 0x146   : > { %v546_v8 = vadd.f32 %v765_v19, %v545_v17  ;;  %v617_v22 = vadd.f32 %v616_v1, %v586_v18 }
 0x148   : > { %v547_v24 = vadd.f32 %v766_v27, %v546_v8  ;;  %v618_v25 = vadd.f32 %v617_v22, %v587_v20  ;;  %v556_v27 = vld [vmem:[%s972_s3] sm:$0x1] }
 0x14a   : > { %v548_v63 = vrot.slane %v547_v24, 4  ;;  %v619_v29 = vadd.f32 %v618_v25, %v588_v23 }
 0x14c   : > { %v549_v33 = vadd.f32 %v548_v63, %v547_v24  ;;  %v620_v34 = vrot.slane %v619_v29, 4 }
 0x14e   : > { %v550_v35 = vrot.slane %v549_v33, 2  ;;  %v621_v36 = vadd.f32 %v620_v34, %v619_v29 }
 0x150   : > { %v551_v37 = vadd.f32 %v550_v35, %v549_v33  ;;  %v622_v6 = vrot.slane %v621_v36, 2 }
 0x152   : > { %v552_v38 = vrot.slane %v551_v37, 1  ;;  %v623_v21 = vadd.f32 %v622_v6, %v621_v36 }
 0x154   : > { %v553_v39 = vadd.f32 %v552_v38, %v551_v37  ;;  %v624_v19 = vrot.slane %v623_v21, 1 }
 0x156   : > { %v554_v40 = vadd.f32 %v553_v39, %v516_v31  ;;  %v625_v41 = vadd.f32 %v624_v19, %v623_v21 }
 0x158   : > { %555 = vst [vmem:[%s971_s2] sm:$0x1] %v554_v40  ;;  %v626_v42 = vadd.f32 %v625_v41, %v556_v27 }
 0x15a   : > { %627 = vst [vmem:[%s972_s3] sm:$0x1] %v626_v42 }
 0x15b PF: > { %s14_s12 = sadd.s32 1, %s822_s12  }
 0x15c   : > { %p11_p5 = scmp.ge.s32.totalorder %s14_s12, 4  }
 0x15e   :  { %13 = sbr.rel (!%p11_p5) target bundleno = 1 (0x1), region = 66 }

// kernel: bottleneck_forward.6
= control target key start
LH: loop header
LB: loop body
LE: loop exit
PB: predicated region body
PF: predicated region fallthrough
CT: control target
= control target key end

     0   :  { %s1230_s15 = smov 0   ;;  %s1388_s0 = inlined_call_operand.vmem [shape: bf16[512,128], index: 0, kind: input, shape index: {}]   ;;  %s1389_s1 = inlined_call_operand.vmem [shape: bf16[128,128], index: 1, kind: input, shape index: {}]   ;;  %s1390_s2 = inlined_call_operand.vmem [shape: f32[1,128], index: 2, kind: input, shape index: {}]   ;;  %s1391_s3 = inlined_call_operand.vmem [shape: f32[1,128], index: 3, kind: input, shape index: {}]   ;;  %s1392_s4 = inlined_call_operand.vmem [shape: bf16[512,128], index: 4, kind: output, shape index: {}]  }
   0x1 LB: > { %s881_s16 = sadd.s32 4294967295, %s1203_s15   ;;  %p885_p0 = scmp.ge.s32.totalorder %s1203_s15, 1  ;;  %s1203_s15 = sphi %s1230_s15, %s14_s15  }
   0x2   : > { %p163_p1 = scmp.lt.s32.totalorder %s1203_s15, 3 }
   0x4   : > { %p164_p2 = pnand %p885_p0, %p163_p1 }
   0x5   : > { %v1173_v0 = vld [vmem:[%s1389_s1] sm:$0xff] (!%p164_p2)   ;;  %s886_s19 = sshll.u32 (!%p164_p2), %s881_s16, 5  ;;  %v1174_v1 = vld [vmem:[%s1389_s1 + $0x8] sm:$0xff] (!%p164_p2)   ;;  %v1175_v2 = vld [vmem:[%s1389_s1 + $0x10] sm:$0xff] (!%p164_p2)  }
   0x6   : > { %167 = sbr.rel (%p164_p2) target bundleno = 287 (0x11f), region = 36  ;;  %p190_p3 = scmp.lt.s32.totalorder (!%p164_p2), %s886_s19, 63  ;;  %1101 = vmatprep.subr.bf16.mxu0 (!%p164_p2), %v1173_v0  ;;  %1149 = vmatprep.subr.bf16.mxu1 (!%p164_p2), %v1173_v0  ;;  %v1176_v3 = vld [vmem:[%s1389_s1 + $0x18] sm:$0xff] (!%p164_p2)   ;;  %v1177_v6 = vld [vmem:[%s1389_s1 + $0x20] sm:$0xff] (!%p164_p2)   ;;  %v1178_v7 = vld [vmem:[%s1389_s1 + $0x28] sm:$0xff] (!%p164_p2)  }
   0x7   : > { %1102 = vmatpush3.bf16.msra.mxu0 (!%p164_p2), %v1173_v0  ;;  %1157 = vmatpush3.bf16.msra.mxu1 (!%p164_p2), %v1173_v0  ;;  %v1179_v8 = vld [vmem:[%s1389_s1 + $0x30] sm:$0xff] (!%p164_p2)   ;;  %v1180_v9 = vld [vmem:[%s1389_s1 + $0x38] sm:$0xff] (!%p164_p2)   ;;  %v1291_v24 = vld [vmem:[%s1390_s2] ss:$0 sm:$0xff] (!%p164_p2) }
   0x8   : > { %1103 = vmatprep.subr.bf16.mxu0 (!%p164_p2), %v1174_v1  ;;  %1150 = vmatprep.subr.bf16.mxu1 (!%p164_p2), %v1174_v1  ;;  %v1296_v26 = vld [vmem:[%s1391_s3] ss:$0 sm:$0xff] (!%p164_p2) }
   0xb   : > { %1104 = vmatpush3.bf16.msra.mxu0 (!%p164_p2), %v1174_v1  ;;  %1158 = vmatpush3.bf16.msra.mxu1 (!%p164_p2), %v1174_v1 }
   0xc   : > { %1105 = vmatprep.subr.bf16.mxu0 (!%p164_p2), %v1175_v2  ;;  %1151 = vmatprep.subr.bf16.mxu1 (!%p164_p2), %v1175_v2 }
   0xd   : > { %s1394_s19 = smov (!%p190_p3, %s886_s19), 63 }
   0xe   : > { %s887_s24 = sshll.u32 %s1394_s19, 2 }
   0xf   : > { %s1255_s27 = scalar_lea.vmem %s1388_s0, %s887_s24  ;;  %1106 = vmatpush3.bf16.msra.mxu0 %v1175_v2  ;;  %1159 = vmatpush3.bf16.msra.mxu1 %v1175_v2  ;;  %s1319_s20 = scalar_lea.vmem %s1392_s4, %s887_s24 }
  0x10   : > { %v1181_v4 = vld [vmem:[%s1255_s27] sm:$0xff]   ;;  %1107 = vmatprep.subr.bf16.mxu0 %v1176_v3  ;;  %1152 = vmatprep.subr.bf16.mxu1 %v1176_v3  ;;  %v1183_v10 = vld [vmem:[%s1255_s27 + $0x8] sm:$0xff]   ;;  %v1185_v12 = vld [vmem:[%s1255_s27 + $0x10] sm:$0xff]  }
  0x11   : > { %v1182_v5 = vld [vmem:[%s1255_s27 + $0x40] sm:$0xff]   ;;  %1117 = vmatprep.mubr.bf16.mxu0 %v1181_v4  ;;  %v1184_v11 = vld [vmem:[%s1255_s27 + $0x48] sm:$0xff]   ;;  %v1186_v13 = vld [vmem:[%s1255_s27 + $0x50] sm:$0xff]  }
  0x12   : > { %1133 = vmatprep.mubr.bf16.mxu1 %v1182_v5  ;;  %v1187_v14 = vld [vmem:[%s1255_s27 + $0x18] sm:$0xff]   ;;  %v1189_v16 = vld [vmem:[%s1255_s27 + $0x20] sm:$0xff]   ;;  %v1191_v18 = vld [vmem:[%s1255_s27 + $0x28] sm:$0xff]  }
  0x13   : > { %1108 = vmatpush3.bf16.msra.mxu0 %v1176_v3  ;;  %1160 = vmatpush3.bf16.msra.mxu1 %v1176_v3  ;;  %v1188_v15 = vld [vmem:[%s1255_s27 + $0x58] sm:$0xff]   ;;  %v1190_v17 = vld [vmem:[%s1255_s27 + $0x60] sm:$0xff]   ;;  %v1192_v19 = vld [vmem:[%s1255_s27 + $0x68] sm:$0xff]  }
  0x14   : > { %1109 = vmatprep.subr.bf16.mxu0 %v1177_v6  ;;  %1153 = vmatprep.subr.bf16.mxu1 %v1177_v6  ;;  %v1193_v20 = vld [vmem:[%s1255_s27 + $0x30] sm:$0xff]   ;;  %v1195_v22 = vld [vmem:[%s1255_s27 + $0x38] sm:$0xff]  }
  0x15   : > { %v1194_v21 = vld [vmem:[%s1255_s27 + $0x70] sm:$0xff]   ;;  %v1196_v23 = vld [vmem:[%s1255_s27 + $0x78] sm:$0xff]  }
  0x17   : > { %1110 = vmatpush3.bf16.msra.mxu0 %v1177_v6  ;;  %1161 = vmatpush3.bf16.msra.mxu1 %v1177_v6 }
  0x18   : > { %1111 = vmatprep.subr.bf16.mxu0 %v1178_v7  ;;  %1154 = vmatprep.subr.bf16.mxu1 %v1178_v7 }
  0x1b   : > { %1112 = vmatpush3.bf16.msra.mxu0 %v1178_v7  ;;  %1162 = vmatpush3.bf16.msra.mxu1 %v1178_v7 }
  0x1c   : > { %1113 = vmatprep.subr.bf16.mxu0 %v1179_v8  ;;  %1155 = vmatprep.subr.bf16.mxu1 %v1179_v8 }
  0x1f   : > { %1114 = vmatpush3.bf16.msra.mxu0 %v1179_v8  ;;  %1163 = vmatpush3.bf16.msra.mxu1 %v1179_v8 }
  0x20   : > { %1115 = vmatprep.subr.bf16.mxu0 %v1180_v9  ;;  %1156 = vmatprep.subr.bf16.mxu1 %v1180_v9 }
  0x23   : > { %1116 = vmatpush3.bf16.msra.mxu0 %v1180_v9  ;;  %1164 = vmatpush3.bf16.msra.mxu1 %v1180_v9 }
  0x26   : > { %1118 = vmatmul.mubr.bf16.vlgmr.msra.gmra.mrb[0].mxu0 %v1183_v10  ;;  %1134 = vmatmul.mubr.bf16.vlgmr.msra.gmra.mrb[0].mxu1 %v1184_v11 }
  0x27   : > { %1121 = vmatprep.mubr.bf16.mxu0 %v1185_v12  ;;  %1137 = vmatprep.mubr.bf16.mxu1 %v1186_v13 }
  0x2e   : > { %1122 = vmatmul.mubr.bf16.gmra.mrb[4].mxu0 %v1187_v14  ;;  %1138 = vmatmul.mubr.bf16.gmra.mrb[4].mxu1 %v1188_v15 }
  0x2f   : > { %1125 = vmatprep.mubr.bf16.mxu0 %v1189_v16  ;;  %1141 = vmatprep.mubr.bf16.mxu1 %v1190_v17 }
  0x36   : > { %1126 = vmatmul.mubr.bf16.gmra.mrb[8].mxu0 %v1191_v18  ;;  %1142 = vmatmul.mubr.bf16.gmra.mrb[8].mxu1 %v1192_v19 }
  0x37   : > { %1129 = vmatprep.mubr.bf16.mxu0 %v1193_v20  ;;  %1145 = vmatprep.mubr.bf16.mxu1 %v1194_v21 }
  0x3e   : > { %1130 = vmatmul.mubr.bf16.gmra.mrb[12].mxu0 %v1195_v22  ;;  %1146 = vmatmul.mubr.bf16.gmra.mrb[12].mxu1 %v1196_v23 }
  0xf9   : > { %v1119_v25 = vpop.f32.mrb[0].mxu0  ;;  %v1135_v27 = vpop.f32.mrb[0].mxu1 }
  0xfa   : > { %v564_v28 = vmul.f32 %v1119_v25, %v1291_v24  ;;  %v580_v29 = vmul.f32 %v1135_v27, %v1291_v24  ;;  %v428_v30 = vpop.f32.mrb[1].mxu0  ;;  %v492_v31 = vpop.f32.mrb[1].mxu1 }
  0xfb   : > { %v562_v32 = vmul.f32 %v1291_v24, %v428_v30  ;;  %v578_v33 = vmul.f32 %v1291_v24, %v492_v31  ;;  %v1120_v34 = vpop.f32.mrb[2].mxu0  ;;  %v1136_v35 = vpop.f32.mrb[2].mxu1 }
  0xfc   : > { %v603_v36 = vadd.f32 %v1296_v26, %v564_v28  ;;  %v619_v37 = vadd.f32 %v1296_v26, %v580_v29  ;;  %v565_v38 = vmul.f32 %v1120_v34, %v1291_v24  ;;  %v581_v39 = vmul.f32 %v1136_v35, %v1291_v24  ;;  %v431_v40 = vpop.f32.mrb[3].mxu0  ;;  %v495_v41 = vpop.f32.mrb[3].mxu1 }
  0xfd   : > { %v601_v42 = vadd.f32 %v1296_v26, %v562_v32  ;;  %v617_v43 = vadd.f32 %v1296_v26, %v578_v33  ;;  %v563_v44 = vmul.f32 %v1291_v24, %v431_v40  ;;  %v579_v45 = vmul.f32 %v1291_v24, %v495_v41 }
  0xfe   : > { %v604_v46 = vadd.f32 %v1296_v26, %v565_v38  ;;  %v620_v47 = vadd.f32 %v1296_v26, %v581_v39  ;;  %v635_v50 = vmax.f32 %v603_v36, 0.0  ;;  %v651_v51 = vmax.f32 %v619_v37, 0.0 }
  0xff   : > { %v602_v48 = vadd.f32 %v1296_v26, %v563_v44  ;;  %v618_v49 = vadd.f32 %v1296_v26, %v579_v45  ;;  %v633_v54 = vmax.f32 %v601_v42, 0.0  ;;  %v649_v55 = vmax.f32 %v617_v43, 0.0 }
 0x100   : > { %v636_v52 = vmax.f32 %v604_v46, 0.0  ;;  %v652_v53 = vmax.f32 %v620_v47, 0.0 }
 0x101   : > { %v634_v56 = vmax.f32 %v602_v48, 0.0  ;;  %v650_v57 = vmax.f32 %v618_v49, 0.0  ;;  %v1123_v58 = vpop.f32.mrb[4].mxu0  ;;  %v1139_v59 = vpop.f32.mrb[4].mxu1 }
 0x102   : > { %v990_v60 = vpack.c.bf16 %v636_v52, %v635_v50  ;;  %v1030_v61 = vpack.c.bf16 %v652_v53, %v651_v51  ;;  %v568_v62 = vmul.f32 %v1123_v58, %v1291_v24  ;;  %v584_v63 = vmul.f32 %v1139_v59, %v1291_v24  ;;  %v444_v0 = vpop.f32.mrb[5].mxu0  ;;  %v508_v1 = vpop.f32.mrb[5].mxu1 }
 0x103   : > { %v985_v2 = vpack.c.bf16 %v634_v56, %v633_v54  ;;  %v1025_v3 = vpack.c.bf16 %v650_v57, %v649_v55  ;;  %v566_v4 = vmul.f32 %v1291_v24, %v444_v0  ;;  %v582_v5 = vmul.f32 %v1291_v24, %v508_v1  ;;  %v1124_v6 = vpop.f32.mrb[6].mxu0  ;;  %v1140_v7 = vpop.f32.mrb[6].mxu1 }
 0x104   : > { %1062 = vst [vmem:[%s1319_s20 + $0x8] sm:$0xff] %v990_v60   ;;  %1070 = vst [vmem:[%s1319_s20 + $0x48] sm:$0xff] %v1030_v61   ;;  %v607_v8 = vadd.f32 %v1296_v26, %v568_v62  ;;  %v623_v9 = vadd.f32 %v1296_v26, %v584_v63  ;;  %v569_v10 = vmul.f32 %v1124_v6, %v1291_v24  ;;  %v447_v12 = vpop.f32.mrb[7].mxu0  ;;  %v511_v13 = vpop.f32.mrb[7].mxu1 }
 0x105   : > { %v585_v11 = vmul.f32 %v1140_v7, %v1291_v24  ;;  %986 = vst [vmem:[%s1319_s20] sm:$0xff] %v985_v2   ;;  %1069 = vst [vmem:[%s1319_s20 + $0x40] sm:$0xff] %v1025_v3   ;;  %v605_v14 = vadd.f32 %v1296_v26, %v566_v4  ;;  %v621_v15 = vadd.f32 %v1296_v26, %v582_v5 }
 0x106   : > { %v567_v16 = vmul.f32 %v1291_v24, %v447_v12  ;;  %v583_v17 = vmul.f32 %v1291_v24, %v511_v13  ;;  %v608_v18 = vadd.f32 %v1296_v26, %v569_v10  ;;  %v639_v22 = vmax.f32 %v607_v8, 0.0 }
 0x107   : > { %v624_v19 = vadd.f32 %v1296_v26, %v585_v11  ;;  %v655_v23 = vmax.f32 %v623_v9, 0.0  ;;  %v637_v28 = vmax.f32 %v605_v14, 0.0  ;;  %v653_v29 = vmax.f32 %v621_v15, 0.0 }
 0x108   : > { %v606_v20 = vadd.f32 %v1296_v26, %v567_v16  ;;  %v622_v21 = vadd.f32 %v1296_v26, %v583_v17  ;;  %v640_v25 = vmax.f32 %v608_v18, 0.0 }
 0x109   : > { %v656_v27 = vmax.f32 %v624_v19, 0.0  ;;  %v1127_v32 = vpop.f32.mrb[8].mxu0  ;;  %v1143_v33 = vpop.f32.mrb[8].mxu1 }
 0x10a   : > { %v638_v30 = vmax.f32 %v606_v20, 0.0  ;;  %v654_v31 = vmax.f32 %v622_v21, 0.0  ;;  %v1000_v34 = vpack.c.bf16 %v640_v25, %v639_v22  ;;  %v572_v36 = vmul.f32 %v1127_v32, %v1291_v24  ;;  %v460_v38 = vpop.f32.mrb[9].mxu0  ;;  %v524_v39 = vpop.f32.mrb[9].mxu1 }
 0x10b   : > { %v1040_v35 = vpack.c.bf16 %v656_v27, %v655_v23  ;;  %v588_v37 = vmul.f32 %v1143_v33, %v1291_v24  ;;  %v570_v42 = vmul.f32 %v1291_v24, %v460_v38  ;;  %v586_v43 = vmul.f32 %v1291_v24, %v524_v39  ;;  %v1128_v44 = vpop.f32.mrb[10].mxu0  ;;  %v1144_v45 = vpop.f32.mrb[10].mxu1 }
 0x10c   : > { %v995_v40 = vpack.c.bf16 %v638_v30, %v637_v28  ;;  %v1035_v41 = vpack.c.bf16 %v654_v31, %v653_v29  ;;  %1064 = vst [vmem:[%s1319_s20 + $0x18] sm:$0xff] %v1000_v34   ;;  %v611_v46 = vadd.f32 %v1296_v26, %v572_v36  ;;  %v573_v48 = vmul.f32 %v1128_v44, %v1291_v24  ;;  %v463_v50 = vpop.f32.mrb[11].mxu0  ;;  %v527_v51 = vpop.f32.mrb[11].mxu1 }
 0x10d   : > { %1072 = vst [vmem:[%s1319_s20 + $0x58] sm:$0xff] %v1040_v35   ;;  %v627_v47 = vadd.f32 %v1296_v26, %v588_v37  ;;  %v589_v49 = vmul.f32 %v1144_v45, %v1291_v24  ;;  %v609_v52 = vadd.f32 %v1296_v26, %v570_v42  ;;  %v625_v53 = vadd.f32 %v1296_v26, %v586_v43 }
 0x10e   : > { %1063 = vst [vmem:[%s1319_s20 + $0x10] sm:$0xff] %v995_v40   ;;  %1071 = vst [vmem:[%s1319_s20 + $0x50] sm:$0xff] %v1035_v41   ;;  %v571_v54 = vmul.f32 %v1291_v24, %v463_v50  ;;  %v587_v55 = vmul.f32 %v1291_v24, %v527_v51  ;;  %v612_v56 = vadd.f32 %v1296_v26, %v573_v48  ;;  %v643_v60 = vmax.f32 %v611_v46, 0.0 }
 0x10f   : > { %v628_v57 = vadd.f32 %v1296_v26, %v589_v49  ;;  %v659_v61 = vmax.f32 %v627_v47, 0.0  ;;  %v641_v0 = vmax.f32 %v609_v52, 0.0  ;;  %v657_v1 = vmax.f32 %v625_v53, 0.0 }
 0x110   : > { %v610_v58 = vadd.f32 %v1296_v26, %v571_v54  ;;  %v626_v59 = vadd.f32 %v1296_v26, %v587_v55  ;;  %v644_v62 = vmax.f32 %v612_v56, 0.0 }
 0x111   : > { %v660_v63 = vmax.f32 %v628_v57, 0.0  ;;  %v1131_v4 = vpop.f32.mrb[12].mxu0  ;;  %v1147_v5 = vpop.f32.mrb[12].mxu1 }
 0x112   : > { %v642_v2 = vmax.f32 %v610_v58, 0.0  ;;  %v658_v3 = vmax.f32 %v626_v59, 0.0  ;;  %v1010_v6 = vpack.c.bf16 %v644_v62, %v643_v60  ;;  %v576_v8 = vmul.f32 %v1131_v4, %v1291_v24  ;;  %v476_v10 = vpop.f32.mrb[13].mxu0  ;;  %v540_v11 = vpop.f32.mrb[13].mxu1 }
 0x113   : > { %v1050_v7 = vpack.c.bf16 %v660_v63, %v659_v61  ;;  %v592_v9 = vmul.f32 %v1147_v5, %v1291_v24  ;;  %v574_v14 = vmul.f32 %v1291_v24, %v476_v10  ;;  %v590_v15 = vmul.f32 %v1291_v24, %v540_v11  ;;  %v1132_v16 = vpop.f32.mrb[14].mxu0  ;;  %v1148_v17 = vpop.f32.mrb[14].mxu1 }
 0x114   : > { %v1005_v12 = vpack.c.bf16 %v642_v2, %v641_v0  ;;  %v1045_v13 = vpack.c.bf16 %v658_v3, %v657_v1  ;;  %1066 = vst [vmem:[%s1319_s20 + $0x28] sm:$0xff] %v1010_v6   ;;  %v615_v18 = vadd.f32 %v1296_v26, %v576_v8  ;;  %v577_v20 = vmul.f32 %v1132_v16, %v1291_v24  ;;  %v479_v22 = vpop.f32.mrb[15].mxu0  ;;  %v543_v23 = vpop.f32.mrb[15].mxu1 }
 0x115   : > { %1074 = vst [vmem:[%s1319_s20 + $0x68] sm:$0xff] %v1050_v7   ;;  %v631_v19 = vadd.f32 %v1296_v26, %v592_v9  ;;  %v593_v21 = vmul.f32 %v1148_v17, %v1291_v24  ;;  %v613_v25 = vadd.f32 %v1296_v26, %v574_v14  ;;  %v629_v27 = vadd.f32 %v1296_v26, %v590_v15 }
 0x116   : > { %1065 = vst [vmem:[%s1319_s20 + $0x20] sm:$0xff] %v1005_v12   ;;  %1073 = vst [vmem:[%s1319_s20 + $0x60] sm:$0xff] %v1045_v13   ;;  %v575_v28 = vmul.f32 %v1291_v24, %v479_v22  ;;  %v591_v29 = vmul.f32 %v1291_v24, %v543_v23  ;;  %v616_v30 = vadd.f32 %v1296_v26, %v577_v20  ;;  %v647_v34 = vmax.f32 %v615_v18, 0.0 }
 0x117   : > { %v632_v31 = vadd.f32 %v1296_v26, %v593_v21  ;;  %v663_v35 = vmax.f32 %v631_v19, 0.0  ;;  %v645_v38 = vmax.f32 %v613_v25, 0.0  ;;  %v661_v39 = vmax.f32 %v629_v27, 0.0 }
 0x118   : > { %v614_v32 = vadd.f32 %v1296_v26, %v575_v28  ;;  %v630_v33 = vadd.f32 %v1296_v26, %v591_v29  ;;  %v648_v36 = vmax.f32 %v616_v30, 0.0 }
 0x119   : > { %v664_v37 = vmax.f32 %v632_v31, 0.0 }
 0x11a   : > { %v646_v40 = vmax.f32 %v614_v32, 0.0  ;;  %v662_v24 = vmax.f32 %v630_v33, 0.0  ;;  %v1020_v41 = vpack.c.bf16 %v648_v36, %v647_v34 }
 0x11b   : > { %v1060_v42 = vpack.c.bf16 %v664_v37, %v663_v35 }
 0x11c   : > { %v1015_v43 = vpack.c.bf16 %v646_v40, %v645_v38  ;;  %v1055_v44 = vpack.c.bf16 %v662_v24, %v661_v39  ;;  %1068 = vst [vmem:[%s1319_s20 + $0x38] sm:$0xff] %v1020_v41  }
 0x11d   : > { %1076 = vst [vmem:[%s1319_s20 + $0x78] sm:$0xff] %v1060_v42  }
 0x11e   : > { %1067 = vst [vmem:[%s1319_s20 + $0x30] sm:$0xff] %v1015_v43   ;;  %1075 = vst [vmem:[%s1319_s20 + $0x70] sm:$0xff] %v1055_v44  }
 0x11f PF: > { %s14_s15 = sadd.s32 1, %s1203_s15  }
 0x120   : > { %p11_p4 = scmp.ge.s32.totalorder %s14_s15, 4  }
 0x122   :  { %13 = sbr.rel (!%p11_p4) target bundleno = 1 (0x1), region = 66 }

// kernel: bottleneck_forward.9
= control target key start
LH: loop header
LB: loop body
LE: loop exit
PB: predicated region body
PF: predicated region fallthrough
CT: control target
= control target key end

     0   :  { %s1075_s18 = smov 0   ;;  %s1287_s0 = inlined_call_operand.vmem [shape: bf16[512,128], index: 0, kind: input, shape index: {}]   ;;  %s1288_s1 = inlined_call_operand.vmem [shape: bf16[128,128], index: 1, kind: input, shape index: {}]   ;;  %s1289_s2 = inlined_call_operand.vmem [shape: f32[1,128], index: 2, kind: input, shape index: {}]   ;;  %s1290_s3 = inlined_call_operand.vmem [shape: f32[1,128], index: 3, kind: input, shape index: {}]   ;;  %s1291_s4 = inlined_call_operand.vmem [shape: f32[512,128], index: 4, kind: input, shape index: {}]   ;;  %s1292_s5 = inlined_call_operand.vmem [shape: f32[512,128], index: 5, kind: output, shape index: {}]  }
   0x1 LB: > { %s878_s19 = sadd.s32 4294967295, %s1043_s18   ;;  %p882_p0 = scmp.ge.s32.totalorder %s1043_s18, 1  ;;  %s1043_s18 = sphi %s1075_s18, %s15_s18  }
   0x2   : > { %p199_p1 = scmp.lt.s32.totalorder %s1043_s18, 3 }
   0x4   : > { %p200_p2 = pnand %p882_p0, %p199_p1 }
   0x5   : > { %v1013_v0 = vld [vmem:[%s1288_s1] sm:$0xff] (!%p200_p2)   ;;  %s883_s22 = sshll.u32 (!%p200_p2), %s878_s19, 5  ;;  %v1014_v1 = vld [vmem:[%s1288_s1 + $0x8] sm:$0xff] (!%p200_p2)   ;;  %v1015_v2 = vld [vmem:[%s1288_s1 + $0x10] sm:$0xff] (!%p200_p2)  }
   0x6   : > { %203 = sbr.rel (%p200_p2) target bundleno = 288 (0x120), region = 40  ;;  %p233_p3 = scmp.lt.s32.totalorder (!%p200_p2), %s883_s22, 63  ;;  %941 = vmatprep.subr.bf16.mxu0 (!%p200_p2), %v1013_v0  ;;  %989 = vmatprep.subr.bf16.mxu1 (!%p200_p2), %v1013_v0  ;;  %v1016_v3 = vld [vmem:[%s1288_s1 + $0x18] sm:$0xff] (!%p200_p2)   ;;  %v1017_v6 = vld [vmem:[%s1288_s1 + $0x20] sm:$0xff] (!%p200_p2)   ;;  %v1018_v7 = vld [vmem:[%s1288_s1 + $0x28] sm:$0xff] (!%p200_p2)  }
   0x7   : > { %942 = vmatpush3.bf16.msra.mxu0 (!%p200_p2), %v1013_v0  ;;  %997 = vmatpush3.bf16.msra.mxu1 (!%p200_p2), %v1013_v0  ;;  %v1019_v8 = vld [vmem:[%s1288_s1 + $0x30] sm:$0xff] (!%p200_p2)   ;;  %v1020_v9 = vld [vmem:[%s1288_s1 + $0x38] sm:$0xff] (!%p200_p2)   ;;  %v1135_v24 = vld [vmem:[%s1289_s2] ss:$0 sm:$0xff] (!%p200_p2) }
   0x8   : > { %943 = vmatprep.subr.bf16.mxu0 (!%p200_p2), %v1014_v1  ;;  %990 = vmatprep.subr.bf16.mxu1 (!%p200_p2), %v1014_v1  ;;  %v1147_v26 = vld [vmem:[%s1290_s3] ss:$0 sm:$0xff] (!%p200_p2) }
   0xb   : > { %944 = vmatpush3.bf16.msra.mxu0 (!%p200_p2), %v1014_v1  ;;  %998 = vmatpush3.bf16.msra.mxu1 (!%p200_p2), %v1014_v1 }
   0xc   : > { %945 = vmatprep.subr.bf16.mxu0 (!%p200_p2), %v1015_v2  ;;  %991 = vmatprep.subr.bf16.mxu1 (!%p200_p2), %v1015_v2 }
   0xd   : > { %s1294_s22 = smov (!%p233_p3, %s883_s22), 63 }
   0xe   : > { %s884_s27 = sshll.u32 %s1294_s22, 2  ;;  %s886_s16 = sshll.u32 %s1294_s22, 3 }
   0xf   : > { %s1098_s30 = scalar_lea.vmem %s1287_s0, %s884_s27  ;;  %946 = vmatpush3.bf16.msra.mxu0 %v1015_v2  ;;  %999 = vmatpush3.bf16.msra.mxu1 %v1015_v2  ;;  %s1142_s23 = scalar_lea.vmem %s1291_s4, %s886_s16 }
  0x10   : > { %v1021_v4 = vld [vmem:[%s1098_s30] sm:$0xff]   ;;  %947 = vmatprep.subr.bf16.mxu0 %v1016_v3  ;;  %992 = vmatprep.subr.bf16.mxu1 %v1016_v3  ;;  %v1023_v10 = vld [vmem:[%s1098_s30 + $0x8] sm:$0xff]   ;;  %v1025_v12 = vld [vmem:[%s1098_s30 + $0x10] sm:$0xff]   ;;  %s1176_s28 = scalar_lea.vmem %s1292_s5, %s886_s16 }
  0x11   : > { %v1022_v5 = vld [vmem:[%s1098_s30 + $0x40] sm:$0xff]   ;;  %957 = vmatprep.mubr.bf16.mxu0 %v1021_v4  ;;  %v1024_v11 = vld [vmem:[%s1098_s30 + $0x48] sm:$0xff]   ;;  %v1026_v13 = vld [vmem:[%s1098_s30 + $0x50] sm:$0xff]  }
  0x12   : > { %973 = vmatprep.mubr.bf16.mxu1 %v1022_v5  ;;  %v1027_v14 = vld [vmem:[%s1098_s30 + $0x18] sm:$0xff]   ;;  %v1029_v16 = vld [vmem:[%s1098_s30 + $0x20] sm:$0xff]   ;;  %v1031_v18 = vld [vmem:[%s1098_s30 + $0x28] sm:$0xff]  }
  0x13   : > { %948 = vmatpush3.bf16.msra.mxu0 %v1016_v3  ;;  %1000 = vmatpush3.bf16.msra.mxu1 %v1016_v3  ;;  %v1028_v15 = vld [vmem:[%s1098_s30 + $0x58] sm:$0xff]   ;;  %v1030_v17 = vld [vmem:[%s1098_s30 + $0x60] sm:$0xff]   ;;  %v1032_v19 = vld [vmem:[%s1098_s30 + $0x68] sm:$0xff]  }
  0x14   : > { %949 = vmatprep.subr.bf16.mxu0 %v1017_v6  ;;  %993 = vmatprep.subr.bf16.mxu1 %v1017_v6  ;;  %v1033_v20 = vld [vmem:[%s1098_s30 + $0x30] sm:$0xff]   ;;  %v1035_v22 = vld [vmem:[%s1098_s30 + $0x38] sm:$0xff]   ;;  %v682_v40 = vld [vmem:[%s1142_s23] sm:$0xff] }
  0x15   : > { %v1034_v21 = vld [vmem:[%s1098_s30 + $0x70] sm:$0xff]   ;;  %v1036_v23 = vld [vmem:[%s1098_s30 + $0x78] sm:$0xff]   ;;  %v698_v41 = vld [vmem:[%s1142_s23 + $0x80] sm:$0xff] }
  0x16   : > { %v684_v32 = vld [vmem:[%s1142_s23 + $0x10] sm:$0xff]  ;;  %v685_v48 = vld [vmem:[%s1142_s23 + $0x18] sm:$0xff]  ;;  %v683_v56 = vld [vmem:[%s1142_s23 + $0x8] sm:$0xff] }
  0x17   : > { %950 = vmatpush3.bf16.msra.mxu0 %v1017_v6  ;;  %1001 = vmatpush3.bf16.msra.mxu1 %v1017_v6  ;;  %v700_v33 = vld [vmem:[%s1142_s23 + $0x90] sm:$0xff]  ;;  %v701_v49 = vld [vmem:[%s1142_s23 + $0x98] sm:$0xff]  ;;  %v699_v57 = vld [vmem:[%s1142_s23 + $0x88] sm:$0xff] }
  0x18   : > { %951 = vmatprep.subr.bf16.mxu0 %v1018_v7  ;;  %994 = vmatprep.subr.bf16.mxu1 %v1018_v7 }
  0x1b   : > { %952 = vmatpush3.bf16.msra.mxu0 %v1018_v7  ;;  %1002 = vmatpush3.bf16.msra.mxu1 %v1018_v7 }
  0x1c   : > { %953 = vmatprep.subr.bf16.mxu0 %v1019_v8  ;;  %995 = vmatprep.subr.bf16.mxu1 %v1019_v8 }
  0x1f   : > { %954 = vmatpush3.bf16.msra.mxu0 %v1019_v8  ;;  %1003 = vmatpush3.bf16.msra.mxu1 %v1019_v8 }
  0x20   : > { %955 = vmatprep.subr.bf16.mxu0 %v1020_v9  ;;  %996 = vmatprep.subr.bf16.mxu1 %v1020_v9 }
  0x23   : > { %956 = vmatpush3.bf16.msra.mxu0 %v1020_v9  ;;  %1004 = vmatpush3.bf16.msra.mxu1 %v1020_v9 }
  0x26   : > { %958 = vmatmul.mubr.bf16.vlgmr.msra.gmra.mrb[0].mxu0 %v1023_v10  ;;  %974 = vmatmul.mubr.bf16.vlgmr.msra.gmra.mrb[0].mxu1 %v1024_v11 }
  0x27   : > { %961 = vmatprep.mubr.bf16.mxu0 %v1025_v12  ;;  %977 = vmatprep.mubr.bf16.mxu1 %v1026_v13 }
  0x2e   : > { %962 = vmatmul.mubr.bf16.gmra.mrb[4].mxu0 %v1027_v14  ;;  %978 = vmatmul.mubr.bf16.gmra.mrb[4].mxu1 %v1028_v15 }
  0x2f   : > { %965 = vmatprep.mubr.bf16.mxu0 %v1029_v16  ;;  %981 = vmatprep.mubr.bf16.mxu1 %v1030_v17  ;;  %v688_v16 = vld [vmem:[%s1142_s23 + $0x30] sm:$0xff] }
  0x30   : > { %v704_v17 = vld [vmem:[%s1142_s23 + $0xb0] sm:$0xff] }
  0x36   : > { %966 = vmatmul.mubr.bf16.gmra.mrb[8].mxu0 %v1031_v18  ;;  %982 = vmatmul.mubr.bf16.gmra.mrb[8].mxu1 %v1032_v19 }
  0x37   : > { %969 = vmatprep.mubr.bf16.mxu0 %v1033_v20  ;;  %985 = vmatprep.mubr.bf16.mxu1 %v1034_v21 }
  0x3e   : > { %970 = vmatmul.mubr.bf16.gmra.mrb[12].mxu0 %v1035_v22  ;;  %986 = vmatmul.mubr.bf16.gmra.mrb[12].mxu1 %v1036_v23 }
  0xf9   : > { %v959_v25 = vpop.f32.mrb[0].mxu0  ;;  %v975_v27 = vpop.f32.mrb[0].mxu1 }
  0xfa   : > { %v613_v28 = vmul.f32 %v959_v25, %v1135_v24  ;;  %v629_v29 = vmul.f32 %v975_v27, %v1135_v24  ;;  %v477_v30 = vpop.f32.mrb[1].mxu0  ;;  %v541_v31 = vpop.f32.mrb[1].mxu1  ;;  %v686_v25 = vld [vmem:[%s1142_s23 + $0x20] sm:$0xff] }
  0xfb   : > { %v611_v34 = vmul.f32 %v1135_v24, %v477_v30  ;;  %v627_v35 = vmul.f32 %v1135_v24, %v541_v31  ;;  %v960_v36 = vpop.f32.mrb[2].mxu0  ;;  %v976_v37 = vpop.f32.mrb[2].mxu1  ;;  %v702_v27 = vld [vmem:[%s1142_s23 + $0xa0] sm:$0xff] }
  0xfc   : > { %v652_v38 = vadd.f32 %v1147_v26, %v613_v28  ;;  %v668_v39 = vadd.f32 %v1147_v26, %v629_v29  ;;  %v614_v42 = vmul.f32 %v960_v36, %v1135_v24  ;;  %v630_v43 = vmul.f32 %v976_v37, %v1135_v24  ;;  %v480_v44 = vpop.f32.mrb[3].mxu0  ;;  %v544_v45 = vpop.f32.mrb[3].mxu1 }
  0xfd   : > { %v650_v46 = vadd.f32 %v1147_v26, %v611_v34  ;;  %v666_v47 = vadd.f32 %v1147_v26, %v627_v35  ;;  %v612_v50 = vmul.f32 %v1135_v24, %v480_v44  ;;  %v628_v51 = vmul.f32 %v1135_v24, %v544_v45  ;;  %v689_v34 = vld [vmem:[%s1142_s23 + $0x38] sm:$0xff] }
  0xfe   : > { %v716_v52 = vadd.f32 %v684_v32, %v652_v38  ;;  %v732_v53 = vadd.f32 %v700_v33, %v668_v39  ;;  %v653_v54 = vadd.f32 %v1147_v26, %v614_v42  ;;  %v669_v55 = vadd.f32 %v1147_v26, %v630_v43  ;;  %v705_v35 = vld [vmem:[%s1142_s23 + $0xb8] sm:$0xff]  ;;  %v687_v42 = vld [vmem:[%s1142_s23 + $0x28] sm:$0xff] }
  0xff   : > { %v714_v58 = vadd.f32 %v682_v40, %v650_v46  ;;  %v730_v59 = vadd.f32 %v698_v41, %v666_v47  ;;  %v651_v60 = vadd.f32 %v1147_v26, %v612_v50  ;;  %v667_v61 = vadd.f32 %v1147_v26, %v628_v51  ;;  %v703_v43 = vld [vmem:[%s1142_s23 + $0xa8] sm:$0xff] }
 0x100   : > { %v748_v62 = vmax.f32 %v716_v52, 0.0  ;;  %v764_v63 = vmax.f32 %v732_v53, 0.0  ;;  %v717_v0 = vadd.f32 %v685_v48, %v653_v54  ;;  %v733_v1 = vadd.f32 %v701_v49, %v669_v55 }
 0x101   : > { %v746_v2 = vmax.f32 %v714_v58, 0.0  ;;  %v762_v3 = vmax.f32 %v730_v59, 0.0  ;;  %v715_v4 = vadd.f32 %v683_v56, %v651_v60  ;;  %v731_v5 = vadd.f32 %v699_v57, %v667_v61  ;;  %v963_v6 = vpop.f32.mrb[4].mxu0  ;;  %v979_v7 = vpop.f32.mrb[4].mxu1 }
 0x102   : > { %780 = vst [vmem:[%s1176_s28 + $0x10] sm:$0xff] %v748_v62  ;;  %796 = vst [vmem:[%s1176_s28 + $0x90] sm:$0xff] %v764_v63  ;;  %v749_v8 = vmax.f32 %v717_v0, 0.0  ;;  %v765_v9 = vmax.f32 %v733_v1, 0.0  ;;  %v617_v10 = vmul.f32 %v963_v6, %v1135_v24  ;;  %v633_v11 = vmul.f32 %v979_v7, %v1135_v24  ;;  %v493_v12 = vpop.f32.mrb[5].mxu0  ;;  %v557_v13 = vpop.f32.mrb[5].mxu1 }
 0x103   : > { %778 = vst [vmem:[%s1176_s28] sm:$0xff] %v746_v2  ;;  %794 = vst [vmem:[%s1176_s28 + $0x80] sm:$0xff] %v762_v3  ;;  %v747_v14 = vmax.f32 %v715_v4, 0.0  ;;  %v763_v15 = vmax.f32 %v731_v5, 0.0  ;;  %v615_v18 = vmul.f32 %v1135_v24, %v493_v12  ;;  %v631_v19 = vmul.f32 %v1135_v24, %v557_v13  ;;  %v964_v20 = vpop.f32.mrb[6].mxu0  ;;  %v980_v21 = vpop.f32.mrb[6].mxu1  ;;  %v692_v2 = vld [vmem:[%s1142_s23 + $0x50] sm:$0xff] }
 0x104   : > { %781 = vst [vmem:[%s1176_s28 + $0x18] sm:$0xff] %v749_v8  ;;  %797 = vst [vmem:[%s1176_s28 + $0x98] sm:$0xff] %v765_v9  ;;  %v656_v22 = vadd.f32 %v1147_v26, %v617_v10  ;;  %v672_v23 = vadd.f32 %v1147_v26, %v633_v11  ;;  %v618_v28 = vmul.f32 %v964_v20, %v1135_v24  ;;  %v496_v30 = vpop.f32.mrb[7].mxu0  ;;  %v560_v31 = vpop.f32.mrb[7].mxu1  ;;  %v708_v3 = vld [vmem:[%s1142_s23 + $0xd0] sm:$0xff]  ;;  %v690_v10 = vld [vmem:[%s1142_s23 + $0x40] sm:$0xff] }
 0x105   : > { %v634_v29 = vmul.f32 %v980_v21, %v1135_v24  ;;  %779 = vst [vmem:[%s1176_s28 + $0x8] sm:$0xff] %v747_v14  ;;  %795 = vst [vmem:[%s1176_s28 + $0x88] sm:$0xff] %v763_v15  ;;  %v654_v32 = vadd.f32 %v1147_v26, %v615_v18  ;;  %v670_v33 = vadd.f32 %v1147_v26, %v631_v19  ;;  %v706_v11 = vld [vmem:[%s1142_s23 + $0xc0] sm:$0xff]  ;;  %v693_v18 = vld [vmem:[%s1142_s23 + $0x58] sm:$0xff] }
 0x106   : > { %v616_v36 = vmul.f32 %v1135_v24, %v496_v30  ;;  %v632_v37 = vmul.f32 %v1135_v24, %v560_v31  ;;  %v720_v38 = vadd.f32 %v688_v16, %v656_v22  ;;  %v736_v39 = vadd.f32 %v704_v17, %v672_v23  ;;  %v709_v19 = vld [vmem:[%s1142_s23 + $0xd8] sm:$0xff] }
 0x107   : > { %v657_v40 = vadd.f32 %v1147_v26, %v618_v28  ;;  %v673_v41 = vadd.f32 %v1147_v26, %v634_v29  ;;  %v718_v44 = vadd.f32 %v686_v25, %v654_v32  ;;  %v734_v45 = vadd.f32 %v702_v27, %v670_v33  ;;  %v691_v28 = vld [vmem:[%s1142_s23 + $0x48] sm:$0xff] }
 0x108   : > { %v655_v46 = vadd.f32 %v1147_v26, %v616_v36  ;;  %v671_v47 = vadd.f32 %v1147_v26, %v632_v37  ;;  %v752_v48 = vmax.f32 %v720_v38, 0.0  ;;  %v768_v49 = vmax.f32 %v736_v39, 0.0  ;;  %v707_v29 = vld [vmem:[%s1142_s23 + $0xc8] sm:$0xff] }
 0x109   : > { %v721_v50 = vadd.f32 %v689_v34, %v657_v40  ;;  %v737_v51 = vadd.f32 %v705_v35, %v673_v41  ;;  %v750_v52 = vmax.f32 %v718_v44, 0.0  ;;  %v766_v53 = vmax.f32 %v734_v45, 0.0  ;;  %v967_v56 = vpop.f32.mrb[8].mxu0  ;;  %v983_v57 = vpop.f32.mrb[8].mxu1 }
 0x10a   : > { %v719_v54 = vadd.f32 %v687_v42, %v655_v46  ;;  %v735_v55 = vadd.f32 %v703_v43, %v671_v47  ;;  %784 = vst [vmem:[%s1176_s28 + $0x30] sm:$0xff] %v752_v48  ;;  %800 = vst [vmem:[%s1176_s28 + $0xb0] sm:$0xff] %v768_v49  ;;  %v621_v60 = vmul.f32 %v967_v56, %v1135_v24  ;;  %v509_v62 = vpop.f32.mrb[9].mxu0  ;;  %v573_v63 = vpop.f32.mrb[9].mxu1 }
 0x10b   : > { %v753_v58 = vmax.f32 %v721_v50, 0.0  ;;  %v769_v59 = vmax.f32 %v737_v51, 0.0  ;;  %v637_v61 = vmul.f32 %v983_v57, %v1135_v24  ;;  %782 = vst [vmem:[%s1176_s28 + $0x20] sm:$0xff] %v750_v52  ;;  %798 = vst [vmem:[%s1176_s28 + $0xa0] sm:$0xff] %v766_v53  ;;  %v619_v4 = vmul.f32 %v1135_v24, %v509_v62  ;;  %v968_v6 = vpop.f32.mrb[10].mxu0  ;;  %v984_v7 = vpop.f32.mrb[10].mxu1 }
 0x10c   : > { %v751_v0 = vmax.f32 %v719_v54, 0.0  ;;  %v767_v1 = vmax.f32 %v735_v55, 0.0  ;;  %v635_v5 = vmul.f32 %v1135_v24, %v573_v63  ;;  %v660_v8 = vadd.f32 %v1147_v26, %v621_v60  ;;  %v512_v14 = vpop.f32.mrb[11].mxu0  ;;  %v576_v15 = vpop.f32.mrb[11].mxu1  ;;  %v696_v52 = vld [vmem:[%s1142_s23 + $0x70] sm:$0xff]  ;;  %v694_v60 = vld [vmem:[%s1142_s23 + $0x60] sm:$0xff] }
 0x10d   : > { %785 = vst [vmem:[%s1176_s28 + $0x38] sm:$0xff] %v753_v58  ;;  %801 = vst [vmem:[%s1176_s28 + $0xb8] sm:$0xff] %v769_v59  ;;  %v676_v9 = vadd.f32 %v1147_v26, %v637_v61  ;;  %v622_v12 = vmul.f32 %v968_v6, %v1135_v24  ;;  %v638_v13 = vmul.f32 %v984_v7, %v1135_v24  ;;  %v712_v53 = vld [vmem:[%s1142_s23 + $0xf0] sm:$0xff]  ;;  %v710_v61 = vld [vmem:[%s1142_s23 + $0xe0] sm:$0xff] }
 0x10e   : > { %783 = vst [vmem:[%s1176_s28 + $0x28] sm:$0xff] %v751_v0  ;;  %799 = vst [vmem:[%s1176_s28 + $0xa8] sm:$0xff] %v767_v1  ;;  %v658_v16 = vadd.f32 %v1147_v26, %v619_v4  ;;  %v674_v17 = vadd.f32 %v1147_v26, %v635_v5  ;;  %v620_v20 = vmul.f32 %v1135_v24, %v512_v14  ;;  %v697_v4 = vld [vmem:[%s1142_s23 + $0x78] sm:$0xff] }
 0x10f   : > { %v636_v21 = vmul.f32 %v1135_v24, %v576_v15  ;;  %v724_v22 = vadd.f32 %v692_v2, %v660_v8  ;;  %v740_v23 = vadd.f32 %v708_v3, %v676_v9  ;;  %v661_v25 = vadd.f32 %v1147_v26, %v622_v12  ;;  %v713_v5 = vld [vmem:[%s1142_s23 + $0xf8] sm:$0xff]  ;;  %v695_v12 = vld [vmem:[%s1142_s23 + $0x68] sm:$0xff] }
 0x110   : > { %v677_v27 = vadd.f32 %v1147_v26, %v638_v13  ;;  %v722_v30 = vadd.f32 %v690_v10, %v658_v16  ;;  %v738_v31 = vadd.f32 %v706_v11, %v674_v17  ;;  %v659_v32 = vadd.f32 %v1147_v26, %v620_v20  ;;  %v711_v13 = vld [vmem:[%s1142_s23 + $0xe8] sm:$0xff] }
 0x111   : > { %v675_v33 = vadd.f32 %v1147_v26, %v636_v21  ;;  %v756_v34 = vmax.f32 %v724_v22, 0.0  ;;  %v772_v35 = vmax.f32 %v740_v23, 0.0  ;;  %v725_v36 = vadd.f32 %v693_v18, %v661_v25  ;;  %v971_v42 = vpop.f32.mrb[12].mxu0  ;;  %v987_v43 = vpop.f32.mrb[12].mxu1 }
 0x112   : > { %v741_v37 = vadd.f32 %v709_v19, %v677_v27  ;;  %v754_v38 = vmax.f32 %v722_v30, 0.0  ;;  %v770_v39 = vmax.f32 %v738_v31, 0.0  ;;  %v723_v40 = vadd.f32 %v691_v28, %v659_v32  ;;  %v525_v48 = vpop.f32.mrb[13].mxu0  ;;  %v589_v49 = vpop.f32.mrb[13].mxu1 }
 0x113   : > { %v739_v41 = vadd.f32 %v707_v29, %v675_v33  ;;  %788 = vst [vmem:[%s1176_s28 + $0x50] sm:$0xff] %v756_v34  ;;  %804 = vst [vmem:[%s1176_s28 + $0xd0] sm:$0xff] %v772_v35  ;;  %v757_v44 = vmax.f32 %v725_v36, 0.0  ;;  %v625_v46 = vmul.f32 %v971_v42, %v1135_v24  ;;  %v641_v47 = vmul.f32 %v987_v43, %v1135_v24  ;;  %v972_v56 = vpop.f32.mrb[14].mxu0  ;;  %v988_v57 = vpop.f32.mrb[14].mxu1 }
 0x114   : > { %v773_v45 = vmax.f32 %v741_v37, 0.0  ;;  %786 = vst [vmem:[%s1176_s28 + $0x40] sm:$0xff] %v754_v38  ;;  %802 = vst [vmem:[%s1176_s28 + $0xc0] sm:$0xff] %v770_v39  ;;  %v755_v50 = vmax.f32 %v723_v40, 0.0  ;;  %v623_v54 = vmul.f32 %v1135_v24, %v525_v48  ;;  %v639_v55 = vmul.f32 %v1135_v24, %v589_v49  ;;  %v528_v0 = vpop.f32.mrb[15].mxu0  ;;  %v592_v1 = vpop.f32.mrb[15].mxu1 }
 0x115   : > { %v771_v51 = vmax.f32 %v739_v41, 0.0  ;;  %789 = vst [vmem:[%s1176_s28 + $0x58] sm:$0xff] %v757_v44  ;;  %v664_v58 = vadd.f32 %v1147_v26, %v625_v46  ;;  %v680_v59 = vadd.f32 %v1147_v26, %v641_v47  ;;  %v626_v62 = vmul.f32 %v972_v56, %v1135_v24 }
 0x116   : > { %805 = vst [vmem:[%s1176_s28 + $0xd8] sm:$0xff] %v773_v45  ;;  %v642_v63 = vmul.f32 %v988_v57, %v1135_v24  ;;  %787 = vst [vmem:[%s1176_s28 + $0x48] sm:$0xff] %v755_v50  ;;  %v662_v2 = vadd.f32 %v1147_v26, %v623_v54  ;;  %v678_v3 = vadd.f32 %v1147_v26, %v639_v55 }
 0x117   : > { %803 = vst [vmem:[%s1176_s28 + $0xc8] sm:$0xff] %v771_v51  ;;  %v624_v6 = vmul.f32 %v1135_v24, %v528_v0  ;;  %v640_v7 = vmul.f32 %v1135_v24, %v592_v1  ;;  %v728_v8 = vadd.f32 %v696_v52, %v664_v58  ;;  %v744_v9 = vadd.f32 %v712_v53, %v680_v59 }
 0x118   : > { %v665_v10 = vadd.f32 %v1147_v26, %v626_v62  ;;  %v681_v11 = vadd.f32 %v1147_v26, %v642_v63  ;;  %v726_v14 = vadd.f32 %v694_v60, %v662_v2  ;;  %v742_v15 = vadd.f32 %v710_v61, %v678_v3 }
 0x119   : > { %v663_v16 = vadd.f32 %v1147_v26, %v624_v6  ;;  %v679_v17 = vadd.f32 %v1147_v26, %v640_v7  ;;  %v760_v18 = vmax.f32 %v728_v8, 0.0  ;;  %v776_v24 = vmax.f32 %v744_v9, 0.0 }
 0x11a   : > { %v729_v19 = vadd.f32 %v697_v4, %v665_v10  ;;  %v745_v20 = vadd.f32 %v713_v5, %v681_v11  ;;  %v758_v21 = vmax.f32 %v726_v14, 0.0  ;;  %v774_v22 = vmax.f32 %v742_v15, 0.0 }
 0x11b   : > { %v727_v23 = vadd.f32 %v695_v12, %v663_v16  ;;  %v743_v25 = vadd.f32 %v711_v13, %v679_v17  ;;  %792 = vst [vmem:[%s1176_s28 + $0x70] sm:$0xff] %v760_v18  ;;  %808 = vst [vmem:[%s1176_s28 + $0xf0] sm:$0xff] %v776_v24 }
 0x11c   : > { %v761_v27 = vmax.f32 %v729_v19, 0.0  ;;  %v777_v28 = vmax.f32 %v745_v20, 0.0  ;;  %790 = vst [vmem:[%s1176_s28 + $0x60] sm:$0xff] %v758_v21  ;;  %806 = vst [vmem:[%s1176_s28 + $0xe0] sm:$0xff] %v774_v22 }
 0x11d   : > { %v759_v29 = vmax.f32 %v727_v23, 0.0  ;;  %v775_v26 = vmax.f32 %v743_v25, 0.0 }
 0x11e   : > { %793 = vst [vmem:[%s1176_s28 + $0x78] sm:$0xff] %v761_v27  ;;  %809 = vst [vmem:[%s1176_s28 + $0xf8] sm:$0xff] %v777_v28 }
 0x11f   : > { %791 = vst [vmem:[%s1176_s28 + $0x68] sm:$0xff] %v759_v29  ;;  %807 = vst [vmem:[%s1176_s28 + $0xe8] sm:$0xff] %v775_v26 }
 0x120 PF: > { %s15_s18 = sadd.s32 1, %s1043_s18  }
 0x121   : > { %p12_p4 = scmp.ge.s32.totalorder %s15_s18, 4  }
 0x123   :  { %14 = sbr.rel (!%p12_p4) target bundleno = 1 (0x1), region = 73 }

// kernel: bottleneck_forward.7
= control target key start
LH: loop header
LB: loop body
LE: loop exit
PB: predicated region body
PF: predicated region fallthrough
CT: control target
= control target key end

     0   :  { %s6857_s12 = smov 0   ;;  %s8653_s0 = inlined_call_operand.vmem [shape: bf16[2,18,18,128], index: 0, kind: input, shape index: {}]   ;;  %s8654_s1 = inlined_call_operand.vmem [shape: bf16[9,128,128], index: 1, kind: input, shape index: {}]   ;;  %s8655_s2 = inlined_call_operand.vmem [shape: f32[1,128], index: 2, kind: output, shape index: {0}]   ;;  %s8656_s3 = inlined_call_operand.vmem [shape: f32[1,128], index: 3, kind: output, shape index: {1}]  }
   0x1 LB: > { %s5116_s13 = sadd.s32 4294967295, %s6834_s12   ;;  %p5119_p0 = scmp.ge.s32.totalorder %s6834_s12, 1  ;;  %s6834_s12 = sphi %s6857_s12, %s14_s12  }
   0x2   : > { %p130_p1 = scmp.lt.s32.totalorder %s6834_s12, 3 }
   0x4   : > { %p131_p2 = pnand %p5119_p0, %p130_p1 }
   0x6   : > { %134 = sbr.rel (%p131_p2) target bundleno = 614 (0x266), region = 28 }
   0xd   : > { %p149_p3 = scmp.lt.s32.totalorder %s5116_s13, 1  ;;  %p5121_p4 = scmp.ne.s32.totalorder %s5116_s13, 0 }
   0xe   : > { %v6836_v0 = vmov (!%p5121_p4), 0.0  }
   0xf   : > { %s150_s14 = scalar_select %p149_p3, %s5116_s13, 1 }
  0x10   : > { %158 = sbr.rel (%p5121_p4) target bundleno = 23 (0x17), region = 32  ;;  %159 = vst [vmem:[%s8655_s2] sm:$0x1] (!%p5121_p4), %v6836_v0  ;;  %160 = vst [vmem:[%s8656_s3] sm:$0x1] (!%p5121_p4), %v6836_v0 }
  0x11   : > { %s6628_s15 = smul.u32 216, %s150_s14 }
  0x13   : > { %s6868_s18 = scalar_lea.vmem %s8653_s0, %s6628_s15 }
  0x17 PF: > { %v6638_v1 = vld [vmem:[%s8654_s1 + $0x40] sm:$0xff]   ;;  %v6640_v3 = vld [vmem:[%s8654_s1 + $0x48] sm:$0xff]   ;;  %v6642_v5 = vld [vmem:[%s8654_s1 + $0x50] sm:$0xff]   ;;  %vm225_vm0 = vsmask.f32 3328  ;;  %vm1255_vm3 = vcmask 1042432  }
  0x18   : > { %v6639_v2 = vld [vmem:[%s8654_s1 + $0x100] sm:$0xff]   ;;  %5924 = vmatprep.subr.bf16.mxu1 %v6638_v1  ;;  %v6641_v4 = vld [vmem:[%s8654_s1 + $0x108] sm:$0xff]   ;;  %v6643_v6 = vld [vmem:[%s8654_s1 + $0x110] sm:$0xff]   ;;  %vm226_vm1 = vsmask.f32 7440  ;;  %vm1256_vm4 = vcmask 1046532  }
  0x19   : > { %6116 = vmatprep.subr.bf16.mxu0 %v6639_v2  ;;  %5925 = vmatpush3.bf16.msra.mxu1 %v6638_v1  ;;  %v6644_v7 = vld [vmem:[%s8654_s1 + $0x58] sm:$0xff]   ;;  %v6646_v9 = vld [vmem:[%s8654_s1 + $0x60] sm:$0xff]   ;;  %v6648_v11 = vld [vmem:[%s8654_s1 + $0x68] sm:$0xff]  }
  0x1a   : > { %6117 = vmatpush3.bf16.msra.mxu0 %v6639_v2  ;;  %5926 = vmatprep.subr.bf16.mxu1 %v6640_v3  ;;  %v6645_v8 = vld [vmem:[%s8654_s1 + $0x118] sm:$0xff]   ;;  %v6647_v10 = vld [vmem:[%s8654_s1 + $0x120] sm:$0xff]   ;;  %v6649_v12 = vld [vmem:[%s8654_s1 + $0x128] sm:$0xff]  }
  0x1b   : > { %6118 = vmatprep.subr.bf16.mxu0 %v6641_v4  ;;  %v161_v13 = vld [vmem:[%s6868_s18] sm:$0xf]  ;;  %v162_v14 = vld [vmem:[%s6868_s18 + $0x4] sm:$0xf]  ;;  %v209_v15 = vld [vmem:[%s6868_s18 + $0x8] sm:$0x1] }
  0x1c   : > { %v229_v16 = vshrl.u32 %v161_v13, 16  ;;  %v232_v17 = vshll.u32 %v161_v13, 16  ;;  %v238_v18 = vshll.u32 %v162_v14, 16  ;;  %v242_v19 = vshrl.u32 %v162_v14, 16  ;;  %v5314_v21 = vld [vmem:[%s6868_s18 + $0xc] sm:$0xf]  ;;  %vm6936_vm2 = vmor %vm225_vm0, %vm226_vm1 }
  0x1d   : > { %5927 = vmatpush3.bf16.msra.mxu1 %v6640_v3  ;;  %v248_v20 = vshll.u32 %v209_v15, 16  ;;  %v6917_v24 = vld [vmem:[%s6868_s18 + $0x10] sm:$0xf]  ;;  %v6920_v25 = vld [vmem:[%s6868_s18 + $0x14] sm:$0x1]  ;;  %v2128_v30 = vshrl.u32 %v5314_v21, 16  ;;  %vm7182_vm5 = vmor %vm1255_vm3, %vm1256_vm4 }
  0x1e   : > { %6119 = vmatpush3.bf16.msra.mxu0 %v6641_v4  ;;  %5928 = vmatprep.subr.bf16.mxu1 %v6642_v5  ;;  %v231_v22 = vrot.slane %v229_v16, 4  ;;  %v234_v23 = vrot.slane %v232_v17, 5  ;;  %v6650_v26 = vld [vmem:[%s8654_s1 + $0x70] sm:$0xff]   ;;  %v240_v27 = vrot.slane %v238_v18, 5  ;;  %v244_v28 = vrot.slane %v242_v19, 4  ;;  %v6652_v37 = vld [vmem:[%s8654_s1 + $0x78] sm:$0xff]  }
  0x1f   : > { %6120 = vmatprep.subr.bf16.mxu0 %v6643_v6  ;;  %v250_v29 = vrot.slane %v248_v20, 5  ;;  %v6651_v31 = vld [vmem:[%s8654_s1 + $0x130] sm:$0xff]   ;;  %v2131_v33 = vshll.u32 %v5314_v21, 16  ;;  %v2137_v34 = vshll.u32 %v6917_v24, 16  ;;  %v2141_v35 = vshrl.u32 %v6917_v24, 16  ;;  %v6653_v52 = vld [vmem:[%s8654_s1 + $0x138] sm:$0xff]  }
  0x20   : > { %v235_v32 = vor.u32 %v234_v23, %v231_v22  ;;  %v163_v36 = vld [vmem:[%s6868_s18 + $0xc] sm:$0xf]  ;;  %v245_v39 = vor.u32 %v244_v28, %v240_v27  ;;  %v2130_v40 = vrot.slane %v2128_v30, 4  ;;  %v2147_v41 = vshll.u32 %v6920_v25, 16  ;;  %v164_v43 = vld [vmem:[%s6868_s18 + $0x10] sm:$0xf] }
  0x21   : > { %5929 = vmatpush3.bf16.msra.mxu1 %v6642_v5  ;;  %v2902_v42 = vrot.slane %v6920_v25, 5  ;;  %v2133_v45 = vrot.slane %v2131_v33, 5  ;;  %v2139_v46 = vrot.slane %v2137_v34, 5  ;;  %v2143_v47 = vrot.slane %v2141_v35, 4  ;;  %v210_v56 = vld [vmem:[%s6868_s18 + $0x14] sm:$0x1] }
  0x22   : > { %6121 = vmatpush3.bf16.msra.mxu0 %v6643_v6  ;;  %5930 = vmatprep.subr.bf16.mxu1 %v6644_v7  ;;  %v236_v44 = vrot.slane %v235_v32, 4  ;;  %v246_v48 = vrot.slane %v245_v39, 4  ;;  %v2149_v49 = vrot.slane %v2147_v41, 5  ;;  %v253_v50 = vshrl.u32 %v163_v36, 16  ;;  %v5317_v58 = vld [vmem:[%s6868_s18 + $0x18] sm:$0xf] }
  0x23   : > { %6122 = vmatprep.subr.bf16.mxu0 %v6645_v8  ;;  %v256_v51 = vshll.u32 %v163_v36, 16  ;;  %v2134_v54 = vor.u32 %v2133_v45, %v2130_v40  ;;  %v2144_v55 = vor.u32 %v2143_v47, %v2139_v46  ;;  %v262_v57 = vshll.u32 %v164_v43, 16  ;;  %v6953_v63 = vld [vmem:[%s6868_s18 + $0x1c] sm:$0xf]  ;;  %v6654_v4 = vld [vmem:[%s8654_s1] sm:$0xff]   ;;  %v6657_v47 = vld [vmem:[%s8654_s1 + $0x8] sm:$0xff]  }
  0x24   : > { %v241_v53 = vsel %vm6936_vm2, %v236_v44, %v240_v27  ;;  %v251_v59 = vsel %vm6936_vm2, %v246_v48, %v250_v29  ;;  %v255_v60 = vrot.slane %v253_v50, 4  ;;  %v266_v62 = vshrl.u32 %v164_v43, 16  ;;  %v6961_v5 = vld [vmem:[%s8654_s1 + $0x140] sm:$0xff]   ;;  %v165_v22 = vld [vmem:[%s6868_s18 + $0x18] sm:$0xf] }
  0x25   : > { %5931 = vmatpush3.bf16.msra.mxu1 %v6644_v7  ;;  %v258_v61 = vrot.slane %v256_v51, 5  ;;  %v5138_v0 = vcombine.low %v241_v53, %v251_v59  ;;  %v2135_v1 = vrot.slane %v2134_v54, 4  ;;  %v2145_v2 = vrot.slane %v2144_v55, 4  ;;  %v166_v29 = vld [vmem:[%s6868_s18 + $0x1c] sm:$0xf] }
  0x26   : > { %6123 = vmatpush3.bf16.msra.mxu0 %v6645_v8  ;;  %5932 = vmatprep.subr.bf16.mxu1 %v6646_v9  ;;  %v264_v3 = vrot.slane %v262_v57, 5  ;;  %v268_v7 = vrot.slane %v266_v62, 4  ;;  %v272_v8 = vshll.u32 %v210_v56, 16  ;;  %v2155_v13 = vshll.u32 %v5317_v58, 16  ;;  %v211_v34 = vld [vmem:[%s6868_s18 + $0x20] sm:$0x1] }
  0x27   : > { %6124 = vmatprep.subr.bf16.mxu0 %v6647_v10  ;;  %v259_v6 = vor.u32 %v258_v61, %v255_v60  ;;  %5940 = vmatprep.mubr.bf16.mxu1 %v5138_v0  ;;  %v2161_v20 = vshll.u32 %v6953_v63, 16  ;;  %v2165_v21 = vshrl.u32 %v6953_v63, 16  ;;  %v2906_v28 = vrot.slane %v6953_v63, 5  ;;  %v5320_v40 = vld [vmem:[%s6868_s18 + $0x24] sm:$0xf]  ;;  %v6656_v0 = vld [vmem:[%s8654_s1 + $0x148] sm:$0xff]  }
  0x28   : > { %v269_v16 = vor.u32 %v268_v7, %v264_v3  ;;  %v274_v17 = vrot.slane %v272_v8, 5  ;;  %v2157_v19 = vrot.slane %v2155_v13, 5  ;;  %v277_v39 = vshrl.u32 %v165_v22, 16  ;;  %v167_v53 = vld [vmem:[%s6868_s18 + $0x24] sm:$0xf] }
  0x29   : > { %5933 = vmatpush3.bf16.msra.mxu1 %v6646_v9  ;;  %v6964_v9 = vld [vmem:[%s6868_s18 + $0x20] sm:$0x1]  ;;  %v260_v15 = vrot.slane %v259_v6, 4  ;;  %v2167_v32 = vrot.slane %v2165_v21, 4  ;;  %v280_v45 = vshll.u32 %v165_v22, 16  ;;  %v290_v50 = vshrl.u32 %v166_v29, 16 }
  0x2a   : > { %6125 = vmatpush3.bf16.msra.mxu0 %v6647_v10  ;;  %5934 = vmatprep.subr.bf16.mxu1 %v6648_v11  ;;  %v2140_v10 = vsel %vm6936_vm2, %v2135_v1, %v2139_v46  ;;  %v2171_v27 = vshll.u32 %v6964_v9, 16  ;;  %v2909_v33 = vrot.slane %v6964_v9, 5  ;;  %v6989_v46 = vld [vmem:[%s6868_s18 + $0x28] sm:$0xf]  ;;  %v279_v48 = vrot.slane %v277_v39, 4 }
  0x2b   : > { %6126 = vmatprep.subr.bf16.mxu0 %v6649_v12  ;;  %v265_v23 = vsel %vm6936_vm2, %v260_v15, %v264_v3  ;;  %v296_v51 = vshll.u32 %v211_v34, 16  ;;  %v282_v56 = vrot.slane %v280_v45, 5  ;;  %v2176_v57 = vshrl.u32 %v5320_v40, 16  ;;  %v168_v6 = vld [vmem:[%s6868_s18 + $0x28] sm:$0xf] }
  0x2c   : > { %v2173_v36 = vrot.slane %v2171_v27, 5  ;;  %v292_v59 = vrot.slane %v290_v50, 4  ;;  %v2179_v61 = vshll.u32 %v5320_v40, 16  ;;  %v2185_v3 = vshll.u32 %v6989_v46, 16  ;;  %v7020_v34 = vld [vmem:[%s6868_s18 + $0x34] sm:$0xf] }
  0x2d   : > { %5935 = vmatpush3.bf16.msra.mxu1 %v6648_v11  ;;  %v2150_v11 = vsel %vm6936_vm2, %v2145_v2, %v2149_v49  ;;  %v286_v49 = vshll.u32 %v166_v29, 16  ;;  %v298_v60 = vrot.slane %v296_v51, 5  ;;  %v283_v1 = vor.u32 %v282_v56, %v279_v48 }
  0x2e   : > { %6127 = vmatpush3.bf16.msra.mxu0 %v6649_v12  ;;  %5936 = vmatprep.subr.bf16.mxu1 %v6650_v26  ;;  %v2152_v12 = vshrl.u32 %v5317_v58, 16  ;;  %v5378_v14 = vcombine.low %v2140_v10, %v2150_v11  ;;  %v2178_v2 = vrot.slane %v2176_v57, 4  ;;  %v2181_v10 = vrot.slane %v2179_v61, 5  ;;  %v6666_v61 = vld [vmem:[%s8654_s1 + $0x20] sm:$0xff]  }
  0x2f   : > { %6128 = vmatprep.subr.bf16.mxu0 %v6651_v31  ;;  %v288_v58 = vrot.slane %v286_v49, 5  ;;  %v2189_v11 = vshrl.u32 %v6989_v46, 16  ;;  %v284_v13 = vrot.slane %v283_v1, 4  ;;  %v304_v21 = vshll.u32 %v167_v53, 16  ;;  %v6659_v49 = vld [vmem:[%s8654_s1 + $0x158] sm:$0xff]  }
  0x30   : > { %v2154_v18 = vrot.slane %v2152_v12, 4  ;;  %6132 = vmatprep.mubr.bf16.mxu0 %v5378_v14  ;;  %v212_v12 = vld [vmem:[%s6868_s18 + $0x2c] sm:$0x1]  ;;  %v2187_v14 = vrot.slane %v2185_v3, 5  ;;  %v310_v27 = vshll.u32 %v168_v6, 16  ;;  %v314_v40 = vshrl.u32 %v168_v6, 16 }
  0x31   : > { %5937 = vmatpush3.bf16.msra.mxu1 %v6650_v26  ;;  %v270_v26 = vrot.slane %v269_v16, 4  ;;  %v293_v8 = vor.u32 %v292_v59, %v288_v58  ;;  %v301_v16 = vshrl.u32 %v167_v53, 16  ;;  %v289_v22 = vsel %vm6936_vm2, %v284_v13, %v288_v58  ;;  %v213_v3 = vld [vmem:[%s6868_s18 + $0x38] sm:$0x1] }
  0x32   : > { %6129 = vmatpush3.bf16.msra.mxu0 %v6651_v31  ;;  %5938 = vmatprep.subr.bf16.mxu1 %v6652_v37  ;;  %v2158_v30 = vor.u32 %v2157_v19, %v2154_v18  ;;  %v2163_v31 = vrot.slane %v2161_v20, 5  ;;  %v2182_v19 = vor.u32 %v2181_v10, %v2178_v2  ;;  %v2191_v20 = vrot.slane %v2189_v11, 4  ;;  %v5326_v10 = vld [vmem:[%s6868_s18 + $0x3c] sm:$0xf] }
  0x33   : > { %6130 = vmatprep.subr.bf16.mxu0 %v6653_v52  ;;  %v275_v35 = vsel %vm6936_vm2, %v270_v26, %v274_v17  ;;  %v5323_v17 = vld [vmem:[%s6868_s18 + $0x30] sm:$0xf]  ;;  %v294_v18 = vrot.slane %v293_v8, 4  ;;  %v303_v26 = vrot.slane %v301_v16, 4  ;;  %v312_v39 = vrot.slane %v310_v27, 5 }
  0x34   : > { %v5139_v41 = vcombine.low %v265_v23, %v275_v35  ;;  %v2159_v43 = vrot.slane %v2158_v30, 4  ;;  %v2168_v44 = vor.u32 %v2167_v32, %v2163_v31  ;;  %v2183_v30 = vrot.slane %v2182_v19, 4  ;;  %v6663_v35 = vld [vmem:[%s8654_s1 + $0x18] sm:$0xff]  }
  0x35   : > { %5939 = vmatpush3.bf16.msra.mxu1 %v6652_v37  ;;  %v6985_v37 = vrot.slane %v2906_v28, 4  ;;  %v299_v29 = vsel %vm6936_vm2, %v294_v18, %v298_v60  ;;  %v306_v32 = vrot.slane %v304_v21, 5  ;;  %v2200_v48 = vshrl.u32 %v5323_v17, 16  ;;  %v170_v60 = vld [vmem:[%s6868_s18 + $0x34] sm:$0xf]  ;;  %v6661_v21 = vld [vmem:[%s8654_s1 + $0x160] sm:$0xff]  }
  0x36   : > { %6131 = vmatpush3.bf16.msra.mxu0 %v6653_v52  ;;  %5972 = vmatprep.subr.bf16.mxu1 %v6654_v4  ;;  %v6995_v52 = vld [vmem:[%s6868_s18 + $0x2c] sm:$0x1]  ;;  %v2164_v54 = vsel %vm6936_vm2, %v2159_v43, %v2163_v31  ;;  %v2169_v55 = vrot.slane %v2168_v44, 4  ;;  %v2192_v31 = vor.u32 %v2191_v20, %v2187_v14  ;;  %v2188_v43 = vsel %vm6936_vm2, %v2183_v30, %v2187_v14  ;;  %v7054_v20 = vld [vmem:[%s6868_s18 + $0x40] sm:$0xf] }
  0x37   : > { %6164 = vmatprep.subr.bf16.mxu0 %v6961_v5  ;;  %v2195_v15 = vshll.u32 %v6995_v52, 16  ;;  %v307_v45 = vor.u32 %v306_v32, %v303_v26  ;;  %v316_v50 = vrot.slane %v314_v40, 4  ;;  %v2203_v53 = vshll.u32 %v5323_v17, 16 }
  0x38   : > { %5941 = vmatmul.mubr.bf16.vlgmr.msra.gmra.mrb[0].mxu1 %v5139_v41  ;;  %v2174_v62 = vsel %vm6936_vm2, %v2169_v55, %v2173_v36  ;;  %v5140_v36 = vcombine.low %v289_v22, %v299_v29  ;;  %v320_v41 = vshll.u32 %v212_v12, 16  ;;  %v2193_v44 = vrot.slane %v2192_v31, 4  ;;  %v169_v55 = vld [vmem:[%s6868_s18 + $0x30] sm:$0xf]  ;;  %v7062_v29 = vld [vmem:[%s6868_s18 + $0x44] sm:$0x1] }
  0x39   : > { %5973 = vmatpush3.bf16.msra.mxu1 %v6654_v4  ;;  %v6660_v4 = vld [vmem:[%s8654_s1 + $0x10] sm:$0xff]   ;;  %v5379_v7 = vcombine.low %v2164_v54, %v2174_v62  ;;  %v2197_v23 = vrot.slane %v2195_v15, 5  ;;  %v2209_v54 = vshll.u32 %v7020_v34, 16  ;;  %v308_v57 = vrot.slane %v307_v45, 4  ;;  %v6668_v15 = vld [vmem:[%s8654_s1 + $0x28] sm:$0xff]  }
  0x3a   : > { %5974 = vmatprep.subr.bf16.mxu1 %v6657_v47  ;;  %5944 = vmatprep.mubr.bf16.mxu1 %v5140_v36  ;;  %v322_v51 = vrot.slane %v320_v41, 5  ;;  %v2202_v58 = vrot.slane %v2200_v48, 4  ;;  %v2213_v59 = vshrl.u32 %v7020_v34, 16  ;;  %v2205_v1 = vrot.slane %v2203_v53, 5  ;;  %v6670_v36 = vld [vmem:[%s8654_s1 + $0x30] sm:$0xff]  }
  0x3b   : > { %6133 = vmatmul.mubr.bf16.vlgmr.msra.gmra.mrb[0].mxu0 %v5379_v7  ;;  %v2198_v56 = vsel %vm6936_vm2, %v2193_v44, %v2197_v23  ;;  %v2211_v2 = vrot.slane %v2209_v54, 5  ;;  %v313_v6 = vsel %vm6936_vm2, %v308_v57, %v312_v39  ;;  %v325_v8 = vshrl.u32 %v169_v55, 16 }
  0x3c   : > { %6165 = vmatpush3.bf16.msra.mxu0 %v6961_v5  ;;  %v6658_v5 = vld [vmem:[%s8654_s1 + $0x150] sm:$0xff]   ;;  %v5380_v62 = vcombine.low %v2188_v43, %v2198_v56  ;;  %v2206_v12 = vor.u32 %v2205_v1, %v2202_v58  ;;  %v328_v13 = vshll.u32 %v169_v55, 16  ;;  %v334_v14 = vshll.u32 %v170_v60, 16  ;;  %v172_v56 = vld [vmem:[%s6868_s18 + $0x40] sm:$0xf] }
  0x3d   : > { %5975 = vmatpush3.bf16.msra.mxu1 %v6657_v47  ;;  %6166 = vmatprep.subr.bf16.mxu0 %v6656_v0  ;;  %v7031_v47 = vld [vmem:[%s6868_s18 + $0x38] sm:$0x1]  ;;  %v327_v18 = vrot.slane %v325_v8, 4  ;;  %v338_v19 = vshrl.u32 %v170_v60, 16  ;;  %v2224_v41 = vshrl.u32 %v5326_v10, 16  ;;  %v2227_v43 = vshll.u32 %v5326_v10, 16 }
  0x3e   : > { %5976 = vmatprep.subr.bf16.mxu1 %v6660_v4  ;;  %v2219_v7 = vshll.u32 %v7031_v47, 16  ;;  %6136 = vmatprep.mubr.bf16.mxu0 %v5380_v62  ;;  %v2207_v23 = vrot.slane %v2206_v12, 4  ;;  %v330_v26 = vrot.slane %v328_v13, 5  ;;  %v336_v27 = vrot.slane %v334_v14, 5  ;;  %v5329_v10 = vld [vmem:[%s6868_s18 + $0x48] sm:$0xf] }
  0x3f   : > { %v340_v32 = vrot.slane %v338_v19, 4  ;;  %v2226_v54 = vrot.slane %v2224_v41, 4  ;;  %v2229_v55 = vrot.slane %v2227_v43, 5  ;;  %v2243_v60 = vshll.u32 %v7062_v29, 16 }
  0x40   : > { %6167 = vmatpush3.bf16.msra.mxu0 %v6656_v0  ;;  %v317_v0 = vor.u32 %v316_v50, %v312_v39  ;;  %v2221_v17 = vrot.slane %v2219_v7, 5  ;;  %v2212_v39 = vsel %vm6936_vm2, %v2207_v23, %v2211_v2  ;;  %v331_v40 = vor.u32 %v330_v26, %v327_v18  ;;  %v7095_v23 = vld [vmem:[%s6868_s18 + $0x50] sm:$0x1] }
  0x41   : > { %5977 = vmatpush3.bf16.msra.mxu1 %v6660_v4  ;;  %6168 = vmatprep.subr.bf16.mxu0 %v6658_v5  ;;  %v2215_v4 = vrot.slane %v2213_v59, 4  ;;  %v341_v45 = vor.u32 %v340_v32, %v336_v27  ;;  %v2233_v50 = vshll.u32 %v7054_v20, 16  ;;  %v2237_v59 = vshrl.u32 %v7054_v20, 16  ;;  %v6665_v32 = vld [vmem:[%s8654_s1 + $0x178] sm:$0xff]  }
  0x42   : > { %5978 = vmatprep.subr.bf16.mxu1 %v6663_v35  ;;  %v318_v11 = vrot.slane %v317_v0, 4  ;;  %v332_v53 = vrot.slane %v331_v40, 4  ;;  %v2230_v62 = vor.u32 %v2229_v55, %v2226_v54  ;;  %v214_v0 = vld [vmem:[%s6868_s18 + $0x44] sm:$0x1]  ;;  %v2245_v7 = vrot.slane %v2243_v60, 5 }
  0x43   : > { %v2216_v16 = vor.u32 %v2215_v4, %v2211_v2  ;;  %v342_v57 = vrot.slane %v341_v45, 4  ;;  %v2235_v58 = vrot.slane %v2233_v50, 5  ;;  %v2239_v4 = vrot.slane %v2237_v59, 4  ;;  %v174_v54 = vld [vmem:[%s6868_s18 + $0x4c] sm:$0xf] }
  0x44   : > { %6169 = vmatpush3.bf16.msra.mxu0 %v6658_v5  ;;  %v323_v22 = vsel %vm6936_vm2, %v318_v11, %v322_v51  ;;  %v344_v5 = vshll.u32 %v213_v3, 16  ;;  %v6672_v3 = vld [vmem:[%s8654_s1 + $0x38] sm:$0xff]   ;;  %v358_v8 = vshll.u32 %v172_v56, 16  ;;  %v2231_v12 = vrot.slane %v2230_v62, 4  ;;  %v215_v55 = vld [vmem:[%s6868_s18 + $0x50] sm:$0x1] }
  0x45   : > { %5979 = vmatpush3.bf16.msra.mxu1 %v6663_v35  ;;  %6170 = vmatprep.subr.bf16.mxu0 %v6659_v49  ;;  %v5141_v30 = vcombine.low %v313_v6, %v323_v22  ;;  %v2217_v31 = vrot.slane %v2216_v16, 4  ;;  %v171_v35 = vld [vmem:[%s6868_s18 + $0x3c] sm:$0xf]  ;;  %v6664_v16 = vld [vmem:[%s8654_s1 + $0x170] sm:$0xff]   ;;  %v362_v19 = vshrl.u32 %v172_v56, 16  ;;  %v368_v22 = vshll.u32 %v214_v0, 16 }
  0x46   : > { %5980 = vmatprep.subr.bf16.mxu1 %v6666_v61  ;;  %v346_v48 = vrot.slane %v344_v5, 5  ;;  %v349_v1 = vshrl.u32 %v171_v35, 16  ;;  %v352_v2 = vshll.u32 %v171_v35, 16  ;;  %v360_v18 = vrot.slane %v358_v8, 5  ;;  %v7106_v5 = vld [vmem:[%s8654_s1 + $0x80] sm:$0xff]  }
  0x47   : > { %5945 = vmatmul.mubr.bf16.gmra.mrb[4].mxu1 %v5141_v30  ;;  %v2222_v44 = vsel %vm6936_vm2, %v2217_v31, %v2221_v17  ;;  %v2240_v17 = vor.u32 %v2239_v4, %v2235_v58  ;;  %v2251_v30 = vshll.u32 %v5329_v10, 16  ;;  %v173_v31 = vld [vmem:[%s6868_s18 + $0x48] sm:$0xf]  ;;  %v5332_v59 = vld [vmem:[%s6868_s18 + $0x54] sm:$0xf]  ;;  %v386_v4 = vshrl.u32 %v174_v54, 16 }
  0x48   : > { %6171 = vmatpush3.bf16.msra.mxu0 %v6659_v49  ;;  %v5381_v51 = vcombine.low %v2212_v39, %v2222_v44  ;;  %v6662_v49 = vld [vmem:[%s8654_s1 + $0x168] sm:$0xff]   ;;  %v347_v6 = vsel %vm6936_vm2, %v342_v57, %v346_v48  ;;  %v351_v13 = vrot.slane %v349_v1, 4  ;;  %v354_v14 = vrot.slane %v352_v2, 5  ;;  %v7120_v1 = vld [vmem:[%s6868_s18 + $0x58] sm:$0xf] }
  0x49   : > { %5981 = vmatpush3.bf16.msra.mxu1 %v6666_v61  ;;  %6172 = vmatprep.subr.bf16.mxu0 %v6661_v21  ;;  %v337_v61 = vsel %vm6936_vm2, %v332_v53, %v336_v27  ;;  %v2248_v27 = vshrl.u32 %v5329_v10, 16  ;;  %v2241_v35 = vrot.slane %v2240_v17, 4  ;;  %v370_v39 = vrot.slane %v368_v22, 5 }
  0x4a   : > { %5982 = vmatprep.subr.bf16.mxu1 %v6668_v15  ;;  %6137 = vmatmul.mubr.bf16.gmra.mrb[4].mxu0 %v5381_v51  ;;  %v5142_v11 = vcombine.low %v337_v61, %v347_v6  ;;  %v355_v26 = vor.u32 %v354_v14, %v351_v13  ;;  %v2253_v44 = vrot.slane %v2251_v30, 5  ;;  %v2267_v53 = vshll.u32 %v7095_v23, 16 }
  0x4b   : > { %v2250_v43 = vrot.slane %v2248_v27, 4  ;;  %v2246_v48 = vsel %vm6936_vm2, %v2241_v35, %v2245_v7  ;;  %v373_v62 = vshrl.u32 %v173_v31, 16  ;;  %v376_v0 = vshll.u32 %v173_v31, 16  ;;  %v7125_v7 = vld [vmem:[%s8654_s1 + $0x180] sm:$0xff]  }
  0x4c   : > { %6173 = vmatpush3.bf16.msra.mxu0 %v6661_v21  ;;  %5948 = vmatprep.mubr.bf16.mxu1 %v5142_v11  ;;  %v2236_v21 = vsel %vm6936_vm2, %v2231_v12, %v2235_v58  ;;  %v356_v41 = vrot.slane %v355_v26, 4  ;;  %v2269_v61 = vrot.slane %v2267_v53, 5  ;;  %v392_v12 = vshll.u32 %v215_v55, 16  ;;  %v5335_v53 = vld [vmem:[%s6868_s18 + $0x60] sm:$0xf] }
  0x4d   : > { %5983 = vmatpush3.bf16.msra.mxu1 %v6668_v15  ;;  %v7089_v15 = vld [vmem:[%s6868_s18 + $0x4c] sm:$0xf]  ;;  %6174 = vmatprep.subr.bf16.mxu0 %v6662_v49  ;;  %v5382_v56 = vcombine.low %v2236_v21, %v2246_v48  ;;  %v2254_v57 = vor.u32 %v2253_v44, %v2250_v43  ;;  %v375_v10 = vrot.slane %v373_v62, 4  ;;  %v378_v11 = vrot.slane %v376_v0, 5  ;;  %v7132_v21 = vld [vmem:[%s6868_s18 + $0x5c] sm:$0x1] }
  0x4e   : > { %5984 = vmatprep.subr.bf16.mxu1 %v6670_v36  ;;  %v2257_v40 = vshll.u32 %v7089_v15, 16  ;;  %v2261_v45 = vshrl.u32 %v7089_v15, 16  ;;  %v394_v22 = vrot.slane %v392_v12, 5  ;;  %v2272_v26 = vshrl.u32 %v5332_v59, 16  ;;  %v176_v44 = vld [vmem:[%s6868_s18 + $0x58] sm:$0xf] }
  0x4f   : > { %6140 = vmatprep.mubr.bf16.mxu0 %v5382_v56  ;;  %v2255_v2 = vrot.slane %v2254_v57, 4  ;;  %v2275_v30 = vshll.u32 %v5332_v59, 16  ;;  %v2281_v31 = vshll.u32 %v7120_v1, 16  ;;  %v2285_v35 = vshrl.u32 %v7120_v1, 16 }
  0x50   : > { %6175 = vmatpush3.bf16.msra.mxu0 %v6662_v49  ;;  %v2259_v51 = vrot.slane %v2257_v40, 5  ;;  %v361_v49 = vsel %vm6936_vm2, %v356_v41, %v360_v18  ;;  %v2263_v58 = vrot.slane %v2261_v45, 4  ;;  %v2274_v43 = vrot.slane %v2272_v26, 4  ;;  %v7160_v26 = vld [vmem:[%s6868_s18 + $0x60] sm:$0xf] }
  0x51   : > { %5985 = vmatpush3.bf16.msra.mxu1 %v6670_v36  ;;  %v364_v36 = vrot.slane %v362_v19, 4  ;;  %6176 = vmatprep.subr.bf16.mxu0 %v6664_v16  ;;  %v388_v19 = vrot.slane %v386_v4, 4  ;;  %v2283_v45 = vrot.slane %v2281_v31, 5  ;;  %v2287_v48 = vrot.slane %v2285_v35, 4 }
  0x52   : > { %5986 = vmatprep.subr.bf16.mxu1 %v6672_v3  ;;  %v2264_v6 = vor.u32 %v2263_v58, %v2259_v51  ;;  %v2260_v14 = vsel %vm6936_vm2, %v2255_v2, %v2259_v51  ;;  %v216_v51 = vld [vmem:[%s6868_s18 + $0x5c] sm:$0x1] }
  0x53   : > { %v365_v50 = vor.u32 %v364_v36, %v360_v18  ;;  %v379_v18 = vor.u32 %v378_v11, %v375_v10  ;;  %v175_v36 = vld [vmem:[%s6868_s18 + $0x54] sm:$0xf]  ;;  %v2288_v58 = vor.u32 %v2287_v48, %v2283_v45 }
  0x54   : > { %6177 = vmatpush3.bf16.msra.mxu0 %v6664_v16  ;;  %v2265_v16 = vrot.slane %v2264_v6, 4  ;;  %v397_v56 = vshrl.u32 %v175_v36, 16  ;;  %v410_v6 = vshrl.u32 %v176_v44, 16 }
  0x55   : > { %5987 = vmatpush3.bf16.msra.mxu1 %v6672_v3  ;;  %v366_v60 = vrot.slane %v365_v50, 4  ;;  %v382_v3 = vshll.u32 %v174_v54, 16  ;;  %6178 = vmatprep.subr.bf16.mxu0 %v6665_v32  ;;  %v380_v40 = vrot.slane %v379_v18, 4  ;;  %v2291_v50 = vshll.u32 %v7132_v21, 16  ;;  %v7156_v18 = vld [vmem:[%s6868_s18 + $0x68] sm:$0x1] }
  0x56   : > { %6020 = vmatprep.subr.bf16.mxu1 %v7106_v5  ;;  %v2270_v27 = vsel %vm6936_vm2, %v2265_v16, %v2269_v61  ;;  %v7147_v61 = vld [vmem:[%s6868_s18 + $0x64] sm:$0xf]  ;;  %v399_v0 = vrot.slane %v397_v56, 4  ;;  %v412_v12 = vrot.slane %v410_v6, 4  ;;  %v2315_v48 = vshll.u32 %v7156_v18, 16 }
  0x57   : > { %v371_v8 = vsel %vm6936_vm2, %v366_v60, %v370_v39  ;;  %v384_v17 = vrot.slane %v382_v3, 5  ;;  %v5383_v39 = vcombine.low %v2260_v14, %v2270_v27  ;;  %v2293_v59 = vrot.slane %v2291_v50, 5  ;;  %v7178_v6 = vld [vmem:[%s6868_s18 + $0x6c] sm:$0xf] }
  0x58   : > { %v5143_v13 = vcombine.low %v361_v49, %v371_v8  ;;  %6179 = vmatpush3.bf16.msra.mxu0 %v6665_v32  ;;  %v2277_v32 = vrot.slane %v2275_v30, 5  ;;  %v400_v49 = vshll.u32 %v175_v36, 16  ;;  %v406_v60 = vshll.u32 %v176_v44, 16  ;;  %v7163_v36 = vld [vmem:[%s6868_s18 + $0x64] sm:$0xf] }
  0x59   : > { %6212 = vmatprep.subr.bf16.mxu0 %v7125_v7  ;;  %v389_v41 = vor.u32 %v388_v19, %v384_v17  ;;  %6141 = vmatmul.mubr.bf16.gmra.mrb[8].mxu0 %v5383_v39  ;;  %v385_v54 = vsel %vm6936_vm2, %v380_v40, %v384_v17  ;;  %v2289_v8 = vrot.slane %v2288_v58, 4  ;;  %v2296_v14 = vshrl.u32 %v5335_v53, 16  ;;  %v217_v44 = vld [vmem:[%s6868_s18 + $0x68] sm:$0x1] }
  0x5a   : > { %5949 = vmatmul.mubr.bf16.gmra.mrb[8].mxu1 %v5143_v13  ;;  %v2278_v57 = vor.u32 %v2277_v32, %v2274_v43  ;;  %v402_v2 = vrot.slane %v400_v49, 5  ;;  %v408_v10 = vrot.slane %v406_v60, 5  ;;  %v416_v13 = vshll.u32 %v216_v51, 16  ;;  %v5402_v51 = vld [vmem:[%s6868_s18 + $0xc] sm:$0xe] }
  0x5b   : > { %v390_v55 = vrot.slane %v389_v41, 4  ;;  %v2294_v17 = vsel %vm6936_vm2, %v2289_v8, %v2293_v59  ;;  %v2299_v19 = vshll.u32 %v5335_v53, 16  ;;  %v2298_v39 = vrot.slane %v2296_v14, 4 }
  0x5c   : > { %v2279_v4 = vrot.slane %v2278_v57, 4  ;;  %v403_v11 = vor.u32 %v402_v2, %v399_v0  ;;  %v413_v31 = vor.u32 %v412_v12, %v408_v10  ;;  %v418_v35 = vrot.slane %v416_v13, 5 }
  0x5d   : > { %v395_v62 = vsel %vm6936_vm2, %v390_v55, %v394_v22  ;;  %v2305_v22 = vshll.u32 %v7147_v61, 16  ;;  %v2301_v40 = vrot.slane %v2299_v19, 5  ;;  %v2309_v43 = vshrl.u32 %v7147_v61, 16 }
  0x5e   : > { %v5144_v3 = vcombine.low %v385_v54, %v395_v62  ;;  %v2284_v16 = vsel %vm6936_vm2, %v2279_v4, %v2283_v45  ;;  %v404_v30 = vrot.slane %v403_v11, 4  ;;  %v414_v45 = vrot.slane %v413_v31, 4 }
  0x5f   : > { %v5384_v27 = vcombine.low %v2284_v16, %v2294_v17  ;;  %v2307_v41 = vrot.slane %v2305_v22, 5  ;;  %v421_v50 = vshrl.u32 %v7160_v26, 16  ;;  %v2302_v53 = vor.u32 %v2301_v40, %v2298_v39  ;;  %v7190_v22 = vld [vmem:[%s6868_s18 + $0x70] sm:$0xf] }
  0x60   : > { %5952 = vmatprep.mubr.bf16.mxu1 %v5144_v3  ;;  %v409_v32 = vsel %vm6936_vm2, %v404_v30, %v408_v10  ;;  %v2311_v54 = vrot.slane %v2309_v43, 4  ;;  %v424_v55 = vshll.u32 %v7160_v26, 16  ;;  %v430_v56 = vshll.u32 %v7163_v36, 16  ;;  %v6756_v10 = vld [vmem:[%s6868_s18 + $0xb4] sm:$0xff]  }
  0x61   : > { %6144 = vmatprep.mubr.bf16.mxu0 %v5384_v27  ;;  %v419_v49 = vsel %vm6936_vm2, %v414_v45, %v418_v35  ;;  %v2317_v57 = vrot.slane %v2315_v48, 5  ;;  %v423_v58 = vrot.slane %v421_v50, 4  ;;  %v434_v59 = vshrl.u32 %v7163_v36, 16  ;;  %v7201_v48 = vld [vmem:[%s6868_s18 + $0x78] sm:$0xf] }
  0x62   : > { %v5145_v60 = vcombine.low %v409_v32, %v419_v49  ;;  %v2303_v62 = vrot.slane %v2302_v53, 4  ;;  %v2312_v0 = vor.u32 %v2311_v54, %v2307_v41  ;;  %v426_v2 = vrot.slane %v424_v55, 5  ;;  %v7212_v55 = vld [vmem:[%s6868_s18 + $0x7c] sm:$0xf] }
  0x63   : > { %v432_v3 = vrot.slane %v430_v56, 5  ;;  %v436_v4 = vrot.slane %v434_v59, 4  ;;  %v440_v8 = vshll.u32 %v217_v44, 16  ;;  %v5418_v11 = vrot.slane %v5402_v51, 9  ;;  %v219_v59 = vld [vmem:[%s6868_s18 + $0x80] sm:$0x1] }
  0x64   : > { %5953 = vmatmul.mubr.bf16.gmra.mrb[12].mxu1 %v5145_v60  ;;  %v2308_v12 = vsel %vm6936_vm2, %v2303_v62, %v2307_v41  ;;  %v2313_v13 = vrot.slane %v2312_v0, 4  ;;  %v427_v14 = vor.u32 %v426_v2, %v423_v58  ;;  %v2899_v16 = vrot.slane %v6917_v24, 5  ;;  %v218_v41 = vld [vmem:[%s6868_s18 + $0x74] sm:$0x1]  ;;  %v5403_v24 = vld [vmem:[%s6868_s18 + $0x18] sm:$0xe] }
  0x65   : > { %v437_v17 = vor.u32 %v436_v4, %v432_v3  ;;  %v442_v19 = vrot.slane %v440_v8, 5  ;;  %v445_v27 = vshrl.u32 %v7178_v6, 16  ;;  %v448_v30 = vshll.u32 %v7178_v6, 16 }
  0x66   : > { %v2318_v31 = vsel %vm6936_vm2, %v2313_v13, %v2317_v57  ;;  %v428_v35 = vrot.slane %v427_v14, 4  ;;  %v2900_v39 = vsel %vm7182_vm5, %v5418_v11, %v2899_v16  ;;  %v2901_v40 = vrot.slane %v2899_v16, 4  ;;  %v5404_v14 = vld [vmem:[%s6868_s18 + $0x24] sm:$0xe] }
  0x67   : > { %v5385_v43 = vcombine.low %v2308_v12, %v2318_v31  ;;  %v438_v44 = vrot.slane %v437_v17, 4  ;;  %v447_v32 = vrot.slane %v445_v27, 4  ;;  %v450_v45 = vrot.slane %v448_v30, 5  ;;  %v7234_v17 = vld [vmem:[%s6868_s18 + $0x84] sm:$0xf]  ;;  %v6669_v30 = vld [vmem:[%s8654_s1 + $0x188] sm:$0xff]  }
  0x68   : > { %v433_v50 = vsel %vm6936_vm2, %v428_v35, %v432_v3  ;;  %v2903_v51 = vsel %vm7182_vm5, %v2901_v40, %v2902_v42  ;;  %v454_v53 = vshll.u32 %v7190_v22, 16  ;;  %v458_v54 = vshrl.u32 %v7190_v22, 16 }
  0x69   : > { %6145 = vmatmul.mubr.bf16.gmra.mrb[12].mxu0 %v5385_v43  ;;  %v443_v56 = vsel %vm6936_vm2, %v438_v44, %v442_v19  ;;  %v5450_v49 = vcombine.low %v2900_v39, %v2903_v51  ;;  %v451_v57 = vor.u32 %v450_v45, %v447_v32  ;;  %v464_v58 = vshll.u32 %v218_v41, 16  ;;  %v7242_v41 = vld [vmem:[%s6868_s18 + $0x88] sm:$0xf]  ;;  %v220_v32 = vld [vmem:[%s6868_s18 + $0x8c] sm:$0x1] }
  0x6a   : > { %v5146_v60 = vcombine.low %v433_v50, %v443_v56  ;;  %v456_v25 = vrot.slane %v454_v53, 5  ;;  %v460_v62 = vrot.slane %v458_v54, 4  ;;  %v5419_v0 = vrot.slane %v5403_v24, 9 }
  0x6b   : > { %6180 = vmatprep.mubr.bf16.mxu0 %v5450_v49  ;;  %v452_v42 = vrot.slane %v451_v57, 4  ;;  %v466_v2 = vrot.slane %v464_v58, 5  ;;  %v2910_v3 = vsel %vm7182_vm5, %v6985_v37, %v2909_v33  ;;  %v469_v4 = vshrl.u32 %v7201_v48, 16 }
  0x6c   : > { %5956 = vmatprep.mubr.bf16.mxu1 %v5146_v60  ;;  %v461_v8 = vor.u32 %v460_v62, %v456_v25  ;;  %v2907_v11 = vsel %vm7182_vm5, %v5419_v0, %v2906_v28  ;;  %v472_v12 = vshll.u32 %v7201_v48, 16  ;;  %v478_v13 = vshll.u32 %v7212_v55, 16 }
  0x6d   : > { %v457_v9 = vsel %vm6936_vm2, %v452_v42, %v456_v25  ;;  %v5451_v16 = vcombine.low %v2907_v11, %v2910_v3  ;;  %v471_v33 = vrot.slane %v469_v4, 4  ;;  %v482_v37 = vshrl.u32 %v7212_v55, 16  ;;  %v7263_v3 = vld [vmem:[%s6868_s18 + $0x90] sm:$0xf]  ;;  %v7266_v4 = vld [vmem:[%s6868_s18 + $0x94] sm:$0xf] }
  0x6e   : > { %v462_v63 = vrot.slane %v461_v8, 4  ;;  %v474_v19 = vrot.slane %v472_v12, 5  ;;  %v480_v27 = vrot.slane %v478_v13, 5  ;;  %v488_v28 = vshll.u32 %v219_v59, 16 }
  0x6f   : > { %v484_v31 = vrot.slane %v482_v37, 4  ;;  %v5420_v35 = vrot.slane %v5404_v14, 9  ;;  %v2913_v39 = vrot.slane %v6989_v46, 5  ;;  %v2916_v40 = vrot.slane %v6995_v52, 5  ;;  %v5405_v46 = vld [vmem:[%s6868_s18 + $0x30] sm:$0xe] }
  0x70   : > { %v467_v24 = vsel %vm6936_vm2, %v462_v63, %v466_v2  ;;  %v475_v43 = vor.u32 %v474_v19, %v471_v33  ;;  %v490_v44 = vrot.slane %v488_v28, 5  ;;  %v493_v45 = vshrl.u32 %v7234_v17, 16  ;;  %v221_v63 = vld [vmem:[%s6868_s18 + $0x98] sm:$0x1] }
  0x71   : > { %v5147_v50 = vcombine.low %v457_v9, %v467_v24  ;;  %6181 = vmatmul.mubr.bf16.vlgmr.msra.gmra.mrb[0].mxu0 %v5451_v16  ;;  %v485_v51 = vor.u32 %v484_v31, %v480_v27  ;;  %v2914_v53 = vsel %vm7182_vm5, %v5420_v35, %v2913_v39  ;;  %v2915_v54 = vrot.slane %v2913_v39, 4  ;;  %v6673_v31 = vld [vmem:[%s8654_s1 + $0x198] sm:$0xff]  }
  0x72   : > { %6213 = vmatpush3.bf16.msra.mxu0 %v7125_v7  ;;  %v476_v52 = vrot.slane %v475_v43, 4  ;;  %v495_v56 = vrot.slane %v493_v45, 4  ;;  %v496_v49 = vshll.u32 %v7234_v17, 16  ;;  %v502_v57 = vshll.u32 %v7242_v41, 16  ;;  %v6671_v7 = vld [vmem:[%s8654_s1 + $0x190] sm:$0xff]  }
  0x73   : > { %5957 = vmatmul.mubr.bf16.gmra.mrb[16].mxu1 %v5147_v50  ;;  %v486_v58 = vrot.slane %v485_v51, 4  ;;  %v2917_v59 = vsel %vm7182_vm5, %v2915_v54, %v2916_v40  ;;  %v506_v60 = vshrl.u32 %v7242_v41, 16  ;;  %v512_v25 = vshll.u32 %v220_v32, 16  ;;  %6214 = vmatprep.subr.bf16.mxu0 %v6669_v30  ;;  %v5406_v39 = vld [vmem:[%s6868_s18 + $0x3c] sm:$0xe] }
  0x74   : > { %v481_v62 = vsel %vm6936_vm2, %v476_v52, %v480_v27  ;;  %v5452_v0 = vcombine.low %v2914_v53, %v2917_v59  ;;  %v498_v42 = vrot.slane %v496_v49, 5  ;;  %v504_v2 = vrot.slane %v502_v57, 5  ;;  %v7284_v32 = vld [vmem:[%s6868_s18 + $0x9c] sm:$0xf]  ;;  %v7293_v49 = vld [vmem:[%s6868_s18 + $0xa0] sm:$0xf] }
  0x75   : > { %v491_v8 = vsel %vm6936_vm2, %v486_v58, %v490_v44  ;;  %v508_v11 = vrot.slane %v506_v60, 4  ;;  %v514_v12 = vrot.slane %v512_v25, 5  ;;  %v5421_v13 = vrot.slane %v5405_v46, 9  ;;  %v6677_v57 = vld [vmem:[%s8654_s1 + $0x1a0] sm:$0xff]  }
  0x76   : > { %v5148_v14 = vcombine.low %v481_v62, %v491_v8  ;;  %6184 = vmatprep.mubr.bf16.mxu0 %v5452_v0  ;;  %v499_v9 = vor.u32 %v498_v42, %v495_v56  ;;  %v2920_v16 = vrot.slane %v7020_v34, 5  ;;  %v2923_v33 = vrot.slane %v7031_v47, 5  ;;  %6215 = vmatpush3.bf16.msra.mxu0 %v6669_v30  ;;  %v222_v62 = vld [vmem:[%s6868_s18 + $0xa4] sm:$0x1] }
  0x77   : > { %v509_v37 = vor.u32 %v508_v11, %v504_v2  ;;  %v517_v19 = vshrl.u32 %v7263_v3, 16  ;;  %v520_v27 = vshll.u32 %v7263_v3, 16  ;;  %v526_v28 = vshll.u32 %v7266_v4, 16  ;;  %6216 = vmatprep.subr.bf16.mxu0 %v6671_v7 }
  0x78   : > { %5960 = vmatprep.mubr.bf16.mxu1 %v5148_v14  ;;  %v500_v35 = vrot.slane %v499_v9, 4  ;;  %v2921_v34 = vsel %vm7182_vm5, %v5421_v13, %v2920_v16  ;;  %v2922_v47 = vrot.slane %v2920_v16, 4  ;;  %v530_v30 = vshrl.u32 %v7266_v4, 16  ;;  %v5407_v16 = vld [vmem:[%s6868_s18 + $0x48] sm:$0xe] }
  0x79   : > { %v510_v40 = vrot.slane %v509_v37, 4  ;;  %v519_v24 = vrot.slane %v517_v19, 4  ;;  %v522_v43 = vrot.slane %v520_v27, 5  ;;  %v528_v44 = vrot.slane %v526_v28, 5  ;;  %v7318_v28 = vld [vmem:[%s6868_s18 + $0xa8] sm:$0xf] }
  0x7a   : > { %v505_v45 = vsel %vm6936_vm2, %v500_v35, %v504_v2  ;;  %v2924_v50 = vsel %vm7182_vm5, %v2922_v47, %v2923_v33  ;;  %v532_v51 = vrot.slane %v530_v30, 4  ;;  %v536_v53 = vshll.u32 %v221_v63, 16  ;;  %6217 = vmatpush3.bf16.msra.mxu0 %v6671_v7  ;;  %v6681_v33 = vld [vmem:[%s8654_s1 + $0x1a8] sm:$0xff]  }
  0x7b   : > { %v515_v54 = vsel %vm6936_vm2, %v510_v40, %v514_v12  ;;  %v5453_v46 = vcombine.low %v2921_v34, %v2924_v50  ;;  %v523_v52 = vor.u32 %v522_v43, %v519_v24  ;;  %v5422_v56 = vrot.slane %v5406_v39, 9  ;;  %6218 = vmatprep.subr.bf16.mxu0 %v6673_v31  ;;  %v7321_v30 = vld [vmem:[%s6868_s18 + $0xac] sm:$0xf] }
  0x7c   : > { %v5149_v58 = vcombine.low %v505_v45, %v515_v54  ;;  %v533_v59 = vor.u32 %v532_v51, %v528_v44  ;;  %v538_v60 = vrot.slane %v536_v53, 5  ;;  %v2927_v25 = vrot.slane %v7054_v20, 5  ;;  %v5408_v54 = vld [vmem:[%s6868_s18 + $0x54] sm:$0xe] }
  0x7d   : > { %6185 = vmatmul.mubr.bf16.gmra.mrb[4].mxu0 %v5453_v46  ;;  %v524_v7 = vrot.slane %v523_v52, 4  ;;  %v2930_v0 = vrot.slane %v7062_v29, 5  ;;  %v541_v42 = vshrl.u32 %v7284_v32, 16  ;;  %v544_v2 = vshll.u32 %v7284_v32, 16  ;;  %v6685_v46 = vld [vmem:[%s8654_s1 + $0x1b0] sm:$0xff]  }
  0x7e   : > { %5961 = vmatmul.mubr.bf16.gmra.mrb[20].mxu1 %v5149_v58  ;;  %v534_v8 = vrot.slane %v533_v59, 4  ;;  %v2928_v11 = vsel %vm7182_vm5, %v5422_v56, %v2927_v25  ;;  %v2929_v12 = vrot.slane %v2927_v25, 4  ;;  %v550_v13 = vshll.u32 %v7293_v49, 16  ;;  %6219 = vmatpush3.bf16.msra.mxu0 %v6673_v31 }
  0x7f   : > { %v529_v20 = vsel %vm6936_vm2, %v524_v7, %v528_v44  ;;  %v543_v14 = vrot.slane %v541_v42, 4  ;;  %v546_v29 = vrot.slane %v544_v2, 5  ;;  %v554_v9 = vshrl.u32 %v7293_v49, 16  ;;  %6220 = vmatprep.subr.bf16.mxu0 %v6677_v57  ;;  %v223_v44 = vld [vmem:[%s6868_s18 + $0xb0] sm:$0x1] }
  0x80   : > { %v539_v37 = vsel %vm6936_vm2, %v534_v8, %v538_v60  ;;  %v2931_v63 = vsel %vm7182_vm5, %v2929_v12, %v2930_v0  ;;  %v552_v19 = vrot.slane %v550_v13, 5  ;;  %v560_v27 = vshll.u32 %v222_v62, 16  ;;  %v7341_v42 = vld [vmem:[%s6868_s18 + $0xb4] sm:$0xf]  ;;  %v7346_v13 = vld [vmem:[%s6868_s18 + $0xb8] sm:$0xf] }
  0x81   : > { %v5150_v31 = vcombine.low %v529_v20, %v539_v37  ;;  %v5454_v35 = vcombine.low %v2928_v11, %v2931_v63  ;;  %v547_v34 = vor.u32 %v546_v29, %v543_v14  ;;  %v556_v47 = vrot.slane %v554_v9, 4  ;;  %v224_v20 = vld [vmem:[%s6868_s18 + $0xbc] sm:$0x1] }
  0x82   : > { %v562_v39 = vrot.slane %v560_v27, 5  ;;  %v5423_v40 = vrot.slane %v5407_v16, 9  ;;  %v2934_v24 = vrot.slane %v7089_v15, 5  ;;  %v2937_v43 = vrot.slane %v7095_v23, 5  ;;  %6221 = vmatpush3.bf16.msra.mxu0 %v6677_v57  ;;  %v6689_v14 = vld [vmem:[%s8654_s1 + $0x1b8] sm:$0xff]  }
  0x83   : > { %5964 = vmatprep.mubr.bf16.mxu1 %v5150_v31  ;;  %6188 = vmatprep.mubr.bf16.mxu0 %v5454_v35  ;;  %v548_v45 = vrot.slane %v547_v34, 4  ;;  %v557_v50 = vor.u32 %v556_v47, %v552_v19  ;;  %v565_v51 = vshrl.u32 %v7318_v28, 16  ;;  %v568_v53 = vshll.u32 %v7318_v28, 16  ;;  %v5409_v31 = vld [vmem:[%s6868_s18 + $0x60] sm:$0xe] }
  0x84   : > { %v2935_v15 = vsel %vm7182_vm5, %v5423_v40, %v2934_v24  ;;  %v2936_v23 = vrot.slane %v2934_v24, 4  ;;  %v574_v52 = vshll.u32 %v7321_v30, 16  ;;  %v578_v56 = vshrl.u32 %v7321_v30, 16  ;;  %6222 = vmatprep.subr.bf16.mxu0 %v6681_v33  ;;  %v5339_v40 = vld [vmem:[%s6868_s18 + $0x70] sm:$0xf] }
  0x85   : > { %v553_v57 = vsel %vm6936_vm2, %v548_v45, %v552_v19  ;;  %v558_v58 = vrot.slane %v557_v50, 4  ;;  %v567_v59 = vrot.slane %v565_v51, 4  ;;  %v570_v60 = vrot.slane %v568_v53, 5  ;;  %v7368_v45 = vld [vmem:[%s8654_s1 + $0x1c0] sm:$0xff]  }
  0x86   : > { %v2938_v25 = vsel %vm7182_vm5, %v2936_v23, %v2937_v43  ;;  %v576_v62 = vrot.slane %v574_v52, 5  ;;  %v580_v7 = vrot.slane %v578_v56, 4  ;;  %v584_v0 = vshll.u32 %v223_v44, 16  ;;  %6223 = vmatpush3.bf16.msra.mxu0 %v6681_v33  ;;  %v5410_v44 = vld [vmem:[%s6868_s18 + $0x6c] sm:$0xe] }
  0x87   : > { %v563_v2 = vsel %vm6936_vm2, %v558_v58, %v562_v39  ;;  %v5455_v8 = vcombine.low %v2935_v15, %v2938_v25  ;;  %v571_v11 = vor.u32 %v570_v60, %v567_v59  ;;  %v5424_v12 = vrot.slane %v5408_v54, 9  ;;  %6224 = vmatprep.subr.bf16.mxu0 %v6685_v46  ;;  %v5340_v56 = vld [vmem:[%s6868_s18 + $0x74] sm:$0x1]  ;;  %v5411_v25 = vld [vmem:[%s6868_s18 + $0x78] sm:$0xe] }
  0x88   : > { %v5151_v29 = vcombine.low %v553_v57, %v563_v2  ;;  %v581_v9 = vor.u32 %v580_v7, %v576_v62  ;;  %v586_v16 = vrot.slane %v584_v0, 5  ;;  %v2941_v33 = vrot.slane %v7120_v1, 5 }
  0x89   : > { %6189 = vmatmul.mubr.bf16.gmra.mrb[8].mxu0 %v5455_v8  ;;  %v572_v37 = vrot.slane %v571_v11, 4  ;;  %v2944_v63 = vrot.slane %v7132_v21, 5  ;;  %v589_v19 = vshrl.u32 %v7341_v42, 16  ;;  %v592_v27 = vshll.u32 %v7341_v42, 16 }
  0x8a   : > { %5965 = vmatmul.mubr.bf16.gmra.mrb[24].mxu1 %v5151_v29  ;;  %v582_v35 = vrot.slane %v581_v9, 4  ;;  %v2942_v34 = vsel %vm7182_vm5, %v5424_v12, %v2941_v33  ;;  %v2943_v47 = vrot.slane %v2941_v33, 4  ;;  %v598_v39 = vshll.u32 %v7346_v13, 16  ;;  %6225 = vmatpush3.bf16.msra.mxu0 %v6685_v46  ;;  %v7381_v12 = vld [vmem:[%s6868_s18 + $0x7c] sm:$0xf] }
  0x8b   : > { %v577_v1 = vsel %vm6936_vm2, %v572_v37, %v576_v62  ;;  %v591_v21 = vrot.slane %v589_v19, 4  ;;  %v594_v24 = vrot.slane %v592_v27, 5  ;;  %v602_v43 = vshrl.u32 %v7346_v13, 16  ;;  %6226 = vmatprep.subr.bf16.mxu0 %v6689_v14  ;;  %v6758_v37 = vld [vmem:[%s6868_s18] sm:$0xf] }
  0x8c   : > { %v587_v50 = vsel %vm6936_vm2, %v582_v35, %v586_v16  ;;  %v2945_v51 = vsel %vm7182_vm5, %v2943_v47, %v2944_v63  ;;  %v600_v53 = vrot.slane %v598_v39, 5  ;;  %v608_v54 = vshll.u32 %v224_v20, 16  ;;  %v5345_v16 = vld [vmem:[%s6868_s18 + $0x88] sm:$0xf]  ;;  %v7396_v63 = vld [vmem:[%s6868_s18 + $0x4] sm:$0xf] }
  0x8d   : > { %v5152_v46 = vcombine.low %v577_v1, %v587_v50  ;;  %v5456_v15 = vcombine.low %v2942_v34, %v2945_v51  ;;  %v595_v23 = vor.u32 %v594_v24, %v591_v21  ;;  %v604_v52 = vrot.slane %v602_v43, 4  ;;  %v5346_v27 = vld [vmem:[%s6868_s18 + $0x8c] sm:$0x1]  ;;  %v5349_v24 = vld [vmem:[%s6868_s18 + $0x98] sm:$0x1] }
  0x8e   : > { %v610_v57 = vrot.slane %v608_v54, 5  ;;  %v5425_v58 = vrot.slane %v5409_v31, 9  ;;  %v2948_v59 = vrot.slane %v7147_v61, 5  ;;  %v2951_v60 = vrot.slane %v7156_v18, 5  ;;  %6227 = vmatpush3.bf16.msra.mxu0 %v6689_v14  ;;  %v7384_v18 = vld [vmem:[%s6868_s18 + $0x80] sm:$0x1] }
  0x8f   : > { %5968 = vmatprep.mubr.bf16.mxu1 %v5152_v46  ;;  %6192 = vmatprep.mubr.bf16.mxu0 %v5456_v15  ;;  %v596_v62 = vrot.slane %v595_v23, 4  ;;  %v605_v7 = vor.u32 %v604_v52, %v600_v53  ;;  %v5426_v0 = vrot.slane %v5410_v44, 9  ;;  %v2955_v2 = vrot.slane %v5339_v40, 5  ;;  %v5412_v31 = vld [vmem:[%s6868_s18 + $0x84] sm:$0xe] }
  0x90   : > { %v2949_v8 = vsel %vm7182_vm5, %v5425_v58, %v2948_v59  ;;  %v2950_v11 = vrot.slane %v2948_v59, 4  ;;  %v2958_v61 = vrot.slane %v5340_v56, 5  ;;  %6260 = vmatprep.subr.bf16.mxu0 %v7368_v45  ;;  %v5162_v19 = vcombine.low %v6758_v37, %v7396_v63  ;;  %v5348_v40 = vld [vmem:[%s6868_s18 + $0x94] sm:$0xf]  ;;  %v5413_v43 = vld [vmem:[%s6868_s18 + $0x90] sm:$0xe] }
  0x91   : > { %v601_v20 = vsel %vm6936_vm2, %v596_v62, %v600_v53  ;;  %v606_v14 = vrot.slane %v605_v7, 4  ;;  %v2956_v29 = vsel %vm7182_vm5, %v5426_v0, %v2955_v2  ;;  %v2957_v9 = vrot.slane %v2955_v2, 4  ;;  %v5414_v51 = vld [vmem:[%s6868_s18 + $0x9c] sm:$0xe]  ;;  %v5351_v15 = vld [vmem:[%s6868_s18 + $0xa0] sm:$0xf] }
  0x92   : > { %v2952_v33 = vsel %vm7182_vm5, %v2950_v11, %v2951_v60  ;;  %v5427_v39 = vrot.slane %v5411_v25, 9  ;;  %v2962_v44 = vrot.slane %v7381_v12, 5  ;;  %v2965_v50 = vrot.slane %v7384_v18, 5  ;;  %v5352_v23 = vld [vmem:[%s6868_s18 + $0xa4] sm:$0x1] }
  0x93   : > { %v611_v35 = vsel %vm6936_vm2, %v606_v14, %v610_v57  ;;  %v5457_v34 = vcombine.low %v2949_v8, %v2952_v33  ;;  %v2959_v47 = vsel %vm7182_vm5, %v2957_v9, %v2958_v61  ;;  %v5428_v53 = vrot.slane %v5412_v31, 9  ;;  %v5354_v60 = vld [vmem:[%s6868_s18 + $0xac] sm:$0xf]  ;;  %v7420_v62 = vld [vmem:[%s6868_s18 + $0x10] sm:$0xf] }
  0x94   : > { %v5153_v1 = vcombine.low %v601_v20, %v611_v35  ;;  %v5458_v21 = vcombine.low %v2956_v29, %v2959_v47  ;;  %v2969_v54 = vrot.slane %v5345_v16, 5  ;;  %v2972_v46 = vrot.slane %v5346_v27, 5  ;;  %v6760_v25 = vld [vmem:[%s6868_s18 + $0xc] sm:$0xf]  ;;  %v6762_v9 = vld [vmem:[%s6868_s18 + $0x18] sm:$0xf] }
  0x95   : > { %6193 = vmatmul.mubr.bf16.gmra.mrb[12].mxu0 %v5457_v34  ;;  %v2963_v52 = vsel %vm7182_vm5, %v5427_v39, %v2962_v44  ;;  %v2964_v56 = vrot.slane %v2962_v44, 4  ;;  %v2976_v59 = vrot.slane %v5348_v40, 5  ;;  %v5163_v7 = vcombine.low %v6760_v25, %v7420_v62  ;;  %v6680_v20 = vld [vmem:[%s8654_s1 + $0x88] sm:$0xff]   ;;  %v7432_v16 = vld [vmem:[%s6868_s18 + $0x1c] sm:$0xf] }
  0x96   : > { %5969 = vmatmul.mubr.bf16.gmra.mrb[28].mxu1 %v5153_v1  ;;  %6196 = vmatprep.mubr.bf16.mxu0 %v5458_v21  ;;  %v2970_v57 = vsel %vm7182_vm5, %v5428_v53, %v2969_v54  ;;  %v2971_v58 = vrot.slane %v2969_v54, 4  ;;  %v5429_v2 = vrot.slane %v5413_v43, 9  ;;  %v2979_v8 = vrot.slane %v5349_v24, 5  ;;  %v5355_v31 = vld [vmem:[%s6868_s18 + $0xb0] sm:$0x1] }
  0x97   : > { %5988 = vmatprep.mubr.bf16.mxu1 %v5162_v19  ;;  %v2966_v0 = vsel %vm7182_vm5, %v2964_v56, %v2965_v50  ;;  %v2978_v14 = vrot.slane %v2976_v59, 4  ;;  %v5430_v29 = vrot.slane %v5414_v51, 9  ;;  %v5164_v33 = vcombine.low %v6762_v9, %v7432_v16  ;;  %v5415_v35 = vld [vmem:[%s6868_s18 + $0xa8] sm:$0xe]  ;;  %v5357_v34 = vld [vmem:[%s6868_s18 + $0xb8] sm:$0xf] }
  0x98   : > { %v5459_v11 = vcombine.low %v2963_v52, %v2966_v0  ;;  %v2973_v61 = vsel %vm7182_vm5, %v2971_v58, %v2972_v46  ;;  %v2983_v19 = vrot.slane %v5351_v15, 5  ;;  %v2986_v27 = vrot.slane %v5352_v23, 5  ;;  %v5358_v21 = vld [vmem:[%s6868_s18 + $0xbc] sm:$0x1]  ;;  %v5416_v24 = vld [vmem:[%s6868_s18 + $0xb4] sm:$0xe] }
  0x99   : > { %v5460_v37 = vcombine.low %v2970_v57, %v2973_v61  ;;  %v2990_v39 = vrot.slane %v5354_v60, 5  ;;  %v2977_v40 = vsel %vm7182_vm5, %v5429_v2, %v2976_v59  ;;  %v2980_v1 = vsel %vm7182_vm5, %v2978_v14, %v2979_v8  ;;  %v6684_v51 = vld [vmem:[%s8654_s1 + $0x90] sm:$0xff]   ;;  %v5360_v54 = vld [vmem:[%s6868_s18 + $0xc4] sm:$0xf]  ;;  %v7455_v52 = vld [vmem:[%s6868_s18 + $0x28] sm:$0xf] }
  0x9a   : > { %v2985_v47 = vrot.slane %v2983_v19, 4  ;;  %v2984_v43 = vsel %vm7182_vm5, %v5430_v29, %v2983_v19  ;;  %v2997_v50 = vrot.slane %v5357_v34, 5  ;;  %v5431_v53 = vrot.slane %v5415_v35, 9  ;;  %v6764_v23 = vld [vmem:[%s6868_s18 + $0x24] sm:$0xf]  ;;  %v6688_v2 = vld [vmem:[%s8654_s1 + $0x98] sm:$0xff]  }
  0x9b   : > { %v5461_v46 = vcombine.low %v2977_v40, %v2980_v1  ;;  %v2992_v15 = vrot.slane %v2990_v39, 4  ;;  %v5165_v56 = vcombine.low %v6764_v23, %v7455_v52  ;;  %v6766_v58 = vld [vmem:[%s6868_s18 + $0x30] sm:$0xf]  ;;  %v7460_v59 = vld [vmem:[%s6868_s18 + $0x34] sm:$0xf]  ;;  %v5432_v25 = vrot.slane %v5416_v24, 9 }
  0x9c   : > { %v2987_v44 = vsel %vm7182_vm5, %v2985_v47, %v2986_v27  ;;  %v5166_v60 = vcombine.low %v6766_v58, %v7460_v59  ;;  %v3000_v0 = vrot.slane %v5358_v21, 5  ;;  %v5417_v8 = vld [vmem:[%s6868_s18 + $0xc0] sm:$0xe]  ;;  %v2991_v61 = vsel %vm7182_vm5, %v5431_v53, %v2990_v39  ;;  %v5361_v9 = vld [vmem:[%s6868_s18 + $0xc8] sm:$0x1]  ;;  %v6691_v23 = vld [vmem:[%s6868_s18 + $0x18] sm:$0xff]  }
  0x9d   : > { %6197 = vmatmul.mubr.bf16.gmra.mrb[16].mxu0 %v5459_v11  ;;  %v5462_v57 = vcombine.low %v2984_v43, %v2987_v44  ;;  %v3004_v11 = vrot.slane %v5360_v54, 5  ;;  %v2998_v14 = vsel %vm7182_vm5, %v5432_v25, %v2997_v50  ;;  %v5433_v19 = vrot.slane %v5417_v8, 9  ;;  %v6768_v27 = vld [vmem:[%s6868_s18 + $0x3c] sm:$0xf]  ;;  %v6770_v40 = vld [vmem:[%s6868_s18 + $0x48] sm:$0xf] }
  0x9e   : > { %5989 = vmatmul.mubr.bf16.vlgmr.msra.gmra.mrb[0].mxu1 %v5163_v7  ;;  %6200 = vmatprep.mubr.bf16.mxu0 %v5460_v37  ;;  %v2999_v7 = vrot.slane %v2997_v50, 4  ;;  %v3007_v39 = vrot.slane %v5361_v9, 5  ;;  %v7486_v1 = vld [vmem:[%s6868_s18 + $0x4c] sm:$0xf]  ;;  %v6705_v50 = vld [vmem:[%s8654_s1 + $0xb0] sm:$0xff]   ;;  %v2357_v53 = vshrl.u32 %v7381_v12, 16 }
  0x9f   : > { %6021 = vmatpush3.bf16.msra.mxu1 %v7106_v5  ;;  %5992 = vmatprep.mubr.bf16.mxu1 %v5164_v33  ;;  %v2993_v5 = vrot.slane %v5355_v31, 5  ;;  %v6693_v33 = vld [vmem:[%s8654_s1 + $0xa0] sm:$0xff]   ;;  %v3006_v47 = vrot.slane %v3004_v11, 4  ;;  %v5168_v21 = vcombine.low %v6770_v40, %v7486_v1  ;;  %v6699_v24 = vld [vmem:[%s8654_s1 + $0xa8] sm:$0xff]   ;;  %v3005_v43 = vsel %vm7182_vm5, %v5433_v19, %v3004_v11  ;;  %v6697_v19 = vld [vmem:[%s6868_s18 + $0x30] sm:$0xff]  }
  0xa0   : > { %6022 = vmatprep.subr.bf16.mxu1 %v6680_v20  ;;  %v3001_v29 = vsel %vm7182_vm5, %v2999_v7, %v3000_v0  ;;  %v7481_v31 = vld [vmem:[%s6868_s18 + $0x40] sm:$0xf]  ;;  %v7514_v58 = vrot.slane %v2357_v53, 4  ;;  %v6694_v7 = vld [vmem:[%s6868_s18 + $0x24] sm:$0xff]   ;;  %v1267_v8 = vrot.slane %v7420_v62, 5  ;;  %v2363_v9 = vshll.u32 %v7384_v18, 16 }
  0xa1   : > { %v5167_v35 = vcombine.low %v6768_v27, %v7481_v31  ;;  %v5464_v34 = vcombine.low %v2998_v14, %v3001_v29  ;;  %v3008_v44 = vsel %vm7182_vm5, %v3006_v47, %v3007_v39  ;;  %v1207_v0 = vld [vmem:[%s6868_s18] sm:$0xe]  ;;  %v1208_v11 = vld [vmem:[%s6868_s18 + $0xc] sm:$0xe]  ;;  %v1274_v14 = vrot.slane %v7432_v16, 5 }
  0xa2   : > { %v5465_v54 = vcombine.low %v3005_v43, %v3008_v44  ;;  %v1210_v62 = vld [vmem:[%s6868_s18 + $0x24] sm:$0xe]  ;;  %v5173_v16 = vcombine.low %v7234_v17, %v7242_v41  ;;  %v5174_v27 = vcombine.low %v7263_v3, %v7266_v4  ;;  %v5186_v18 = vrot.slane %v1207_v0, 9  ;;  %v6776_v39 = vld [vmem:[%s6868_s18 + $0x20] sm:$0x1]  ;;  %v6706_v3 = vld [vmem:[%s6868_s18 + $0x54] sm:$0xff]  }
  0xa3   : > { %6023 = vmatpush3.bf16.msra.mxu1 %v6680_v20  ;;  %v2994_v20 = vsel %vm7182_vm5, %v2992_v15, %v2993_v5  ;;  %v7503_v15 = vld [vmem:[%s6868_s18 + $0x58] sm:$0xf]  ;;  %v1276_v47 = vrot.slane %v1274_v14, 4  ;;  %v1277_v40 = vrot.slane %v6776_v39, 5  ;;  %v6777_v44 = vld [vmem:[%s6868_s18 + $0x2c] sm:$0x1] }
  0xa4   : > { %6024 = vmatprep.subr.bf16.mxu1 %v6684_v51  ;;  %v5463_v37 = vcombine.low %v2991_v61, %v2994_v20  ;;  %v7529_v61 = vld [vmem:[%s8654_s1 + $0xc0] sm:$0xff]   ;;  %v1209_v20 = vld [vmem:[%s6868_s18 + $0x18] sm:$0xe]  ;;  %v6780_v39 = vld [vmem:[%s6868_s18 + $0x50] sm:$0x1]  ;;  %v1309_v17 = vrot.slane %v7503_v15, 5 }
  0xa5   : > { %6201 = vmatmul.mubr.bf16.gmra.mrb[20].mxu0 %v5461_v46  ;;  %v6772_v46 = vld [vmem:[%s6868_s18 + $0x54] sm:$0xf]  ;;  %v7652_v41 = vld [vmem:[%s6868_s18 + $0x64] sm:$0xf] }
  0xa6   : > { %5993 = vmatmul.mubr.bf16.gmra.mrb[4].mxu1 %v5165_v56  ;;  %6204 = vmatprep.mubr.bf16.mxu0 %v5462_v57  ;;  %v5169_v5 = vcombine.low %v6772_v46, %v7503_v15  ;;  %v5170_v56 = vcombine.low %v7160_v26, %v7163_v36  ;;  %v6711_v57 = vld [vmem:[%s8654_s1 + $0xb8] sm:$0xff]   ;;  %v6775_v26 = vld [vmem:[%s6868_s18 + $0x14] sm:$0x1]  ;;  %v6709_v4 = vld [vmem:[%s6868_s18 + $0x60] sm:$0xff]  }
  0xa7   : > { %5996 = vmatprep.mubr.bf16.mxu1 %v5166_v60  ;;  %6025 = vmatpush3.bf16.msra.mxu1 %v6684_v51  ;;  %v2353_v51 = vshll.u32 %v7381_v12, 16  ;;  %v7517_v60 = vld [vmem:[%s6868_s18 + $0x8] sm:$0x1]  ;;  %v1270_v36 = vrot.slane %v6775_v26, 5 }
  0xa8   : > { %6026 = vmatprep.subr.bf16.mxu1 %v6688_v2  ;;  %v1263_v25 = vrot.slane %v7517_v60, 5 }
  0xa9   : > { %v7512_v12 = vrot.slane %v2353_v51, 5 }
  0xab   : > { %6027 = vmatpush3.bf16.msra.mxu1 %v6688_v2  ;;  %v1260_v2 = vrot.slane %v7396_v63, 5  ;;  %v5171_v63 = vcombine.low %v7178_v6, %v7190_v22  ;;  %v5187_v22 = vrot.slane %v1208_v11, 9  ;;  %v5546_v11 = vld [vmem:[%s6868_s18 + $0x18] sm:$0xf] }
  0xac   : > { %6028 = vmatprep.subr.bf16.mxu1 %v6693_v33 }
  0xad   : > { %6205 = vmatmul.mubr.bf16.gmra.mrb[24].mxu0 %v5463_v37  ;;  %v5172_v37 = vcombine.low %v7201_v48, %v7212_v55  ;;  %v1262_v6 = vrot.slane %v1260_v2, 4  ;;  %v6701_v48 = vld [vmem:[%s8654_s1 + $0x1c8] sm:$0xff]   ;;  %v5188_v55 = vrot.slane %v1209_v20, 9  ;;  %v7572_v60 = vsel %vm7182_vm5, %v5186_v18, %v1260_v2  ;;  %v5547_v20 = vld [vmem:[%s6868_s18 + $0x1c] sm:$0xf] }
  0xae   : > { %5997 = vmatmul.mubr.bf16.gmra.mrb[8].mxu1 %v5167_v35  ;;  %6208 = vmatprep.mubr.bf16.mxu0 %v5464_v34  ;;  %v1288_v35 = vrot.slane %v7460_v59, 5  ;;  %v1269_v34 = vrot.slane %v1267_v8, 4  ;;  %v5189_v59 = vrot.slane %v1210_v62, 9  ;;  %v1302_v2 = vrot.slane %v7486_v1, 5  ;;  %v6703_v1 = vld [vmem:[%s6868_s18 + $0x48] sm:$0xff]  }
  0xaf   : > { %6000 = vmatprep.mubr.bf16.mxu1 %v5168_v21  ;;  %6029 = vmatpush3.bf16.msra.mxu1 %v6693_v33  ;;  %v1281_v33 = vrot.slane %v7455_v52, 5  ;;  %v1211_v52 = vld [vmem:[%s6868_s18 + $0x30] sm:$0xe]  ;;  %v5175_v21 = vcombine.low %v7284_v32, %v7293_v49  ;;  %v7580_v26 = vsel %vm7182_vm5, %v1262_v6, %v1263_v25  ;;  %v7588_v0 = vsel %vm7182_vm5, %v5188_v55, %v1274_v14  ;;  %v1213_v14 = vld [vmem:[%s6868_s18 + $0x48] sm:$0xe] }
  0xb0   : > { %6030 = vmatprep.subr.bf16.mxu1 %v6699_v24  ;;  %v5190_v51 = vrot.slane %v1211_v52, 9  ;;  %v1290_v53 = vrot.slane %v1288_v35, 4  ;;  %v3767_v6 = vshrl.u32 %v5546_v11, 16  ;;  %v3780_v52 = vshrl.u32 %v5547_v20, 16  ;;  %v6712_v49 = vld [vmem:[%s6868_s18 + $0x6c] sm:$0xff]  }
  0xb1   : > { %v1283_v43 = vrot.slane %v1281_v33, 4  ;;  %v7600_v25 = vsel %vm7182_vm5, %v5189_v59, %v1281_v33  ;;  %v6779_v33 = vld [vmem:[%s6868_s18 + $0x44] sm:$0x1]  ;;  %v5192_v55 = vrot.slane %v1213_v14, 9  ;;  %v5550_v14 = vld [vmem:[%s6868_s18 + $0x28] sm:$0xf] }
  0xb2   : > { %v7610_v62 = vsel %vm7182_vm5, %v5190_v51, %v1288_v35  ;;  %v1298_v18 = vrot.slane %v6779_v33, 5  ;;  %v5548_v51 = vld [vmem:[%s6868_s18 + $0x20] sm:$0x1]  ;;  %v1215_v33 = vld [vmem:[%s6868_s18 + $0x60] sm:$0xe] }
  0xb3   : > { %6031 = vmatpush3.bf16.msra.mxu1 %v6699_v24  ;;  %v5176_v24 = vcombine.low %v7318_v28, %v7321_v30 }
  0xb4   : > { %6032 = vmatprep.subr.bf16.mxu1 %v6705_v50 }
  0xb5   : > { %6209 = vmatmul.mubr.bf16.gmra.mrb[28].mxu0 %v5465_v54  ;;  %v6778_v54 = vld [vmem:[%s6868_s18 + $0x38] sm:$0x1] }
  0xb6   : > { %6001 = vmatmul.mubr.bf16.gmra.mrb[12].mxu1 %v5169_v5  ;;  %6228 = vmatprep.mubr.bf16.mxu0 %v6691_v23  ;;  %v1291_v46 = vrot.slane %v6778_v54, 5  ;;  %v1212_v5 = vld [vmem:[%s6868_s18 + $0x3c] sm:$0xe]  ;;  %v1295_v23 = vrot.slane %v7481_v31, 5  ;;  %v7576_v31 = vsel %vm7182_vm5, %v5187_v22, %v1267_v8  ;;  %v3770_v22 = vshll.u32 %v5546_v11, 16  ;;  %v6717_v54 = vld [vmem:[%s8654_s1 + $0x1e0] sm:$0xff]  }
  0xb7   : > { %6004 = vmatprep.mubr.bf16.mxu1 %v5170_v56  ;;  %6033 = vmatpush3.bf16.msra.mxu1 %v6705_v50  ;;  %v1284_v50 = vrot.slane %v6777_v44, 5  ;;  %v7563_v56 = vrot.slane %v2363_v9, 5  ;;  %v6700_v8 = vld [vmem:[%s6868_s18 + $0x3c] sm:$0xff]   ;;  %v7596_v9 = vsel %vm7182_vm5, %v1276_v47, %v1277_v40  ;;  %v1304_v47 = vrot.slane %v1302_v2, 4  ;;  %v5552_v44 = vld [vmem:[%s6868_s18 + $0x30] sm:$0xf] }
  0xb8   : > { %6034 = vmatprep.subr.bf16.mxu1 %v6711_v57  ;;  %v1305_v40 = vrot.slane %v6780_v39, 5  ;;  %v3769_v11 = vrot.slane %v3767_v6, 4 }
  0xb9   : > { %8675 = vst [vmem:[#allocation2_spill] sm:$0xff] %v7563_v56 }
  0xbb   : > { %6035 = vmatpush3.bf16.msra.mxu1 %v6711_v57  ;;  %v6707_v57 = vld [vmem:[%s8654_s1 + $0x1d0] sm:$0xff]  }
  0xbc   : > { %6068 = vmatprep.subr.bf16.mxu1 %v7529_v61 }
  0xbd   : > { %6229 = vmatmul.mubr.bf16.vlgmr.msra.gmra.mrb[0].mxu0 %v6694_v7  ;;  %v7584_v7 = vsel %vm7182_vm5, %v1269_v34, %v1270_v36  ;;  %v7604_v36 = vsel %vm7182_vm5, %v1283_v43, %v1284_v50  ;;  %v3776_v34 = vshll.u32 %v5547_v20, 16  ;;  %v3772_v20 = vrot.slane %v3770_v22, 5  ;;  %v1216_v22 = vld [vmem:[%s6868_s18 + $0x6c] sm:$0xe] }
  0xbe   : > { %6005 = vmatmul.mubr.bf16.gmra.mrb[16].mxu1 %v5171_v63  ;;  %6261 = vmatpush3.bf16.msra.mxu0 %v7368_v45  ;;  %v5191_v63 = vrot.slane %v1212_v5, 9  ;;  %v5195_v59 = vrot.slane %v1216_v22, 9 }
  0xbf   : > { %6008 = vmatprep.mubr.bf16.mxu1 %v5172_v37  ;;  %6232 = vmatprep.mubr.bf16.mxu0 %v6697_v19  ;;  %v7614_v37 = vsel %vm7182_vm5, %v1290_v53, %v1291_v46  ;;  %v1297_v19 = vrot.slane %v1295_v23, 4  ;;  %v5549_v53 = vld [vmem:[%s6868_s18 + $0x24] sm:$0xf]  ;;  %v3804_v46 = vshrl.u32 %v5550_v14, 16 }
  0xc0   : > { %6262 = vmatprep.subr.bf16.mxu0 %v6701_v48  ;;  %v7631_v50 = vsel %vm7182_vm5, %v5191_v63, %v1295_v23  ;;  %v7648_v23 = vld [vmem:[%s6868_s18 + $0x54] sm:$0xe]  ;;  %v3782_v63 = vrot.slane %v3780_v52, 4  ;;  %v3791_v39 = vshrl.u32 %v5549_v53, 16  ;;  %v3794_v29 = vshll.u32 %v5549_v53, 16 }
  0xc1   : > { %v7645_v5 = vsel %vm7182_vm5, %v1297_v19, %v1298_v18  ;;  %v3786_v18 = vshll.u32 %v5548_v51, 16  ;;  %v5193_v6 = vrot.slane %v7648_v23, 9  ;;  %v6721_v51 = vld [vmem:[%s8654_s1 + $0x1e8] sm:$0xff]   ;;  %v1311_v53 = vrot.slane %v1309_v17, 4 }
  0xc2   : > { %6263 = vmatpush3.bf16.msra.mxu0 %v6701_v48  ;;  %v6713_v48 = vld [vmem:[%s8654_s1 + $0x1d8] sm:$0xff]   ;;  %v3773_v23 = vor.u32 %v3772_v20, %v3769_v11  ;;  %v3793_v35 = vrot.slane %v3791_v39, 4  ;;  %v3796_v45 = vrot.slane %v3794_v29, 5  ;;  %v6785_v11 = vld [vmem:[%s6868_s18 + $0x74] sm:$0x1]  ;;  %v3806_v29 = vrot.slane %v3804_v46, 4 }
  0xc3   : > { %6264 = vmatprep.subr.bf16.mxu0 %v6707_v57  ;;  %v7686_v43 = vrot.slane %v3786_v18, 5  ;;  %v1326_v20 = vrot.slane %v6785_v11, 5  ;;  %v3815_v39 = vshrl.u32 %v5552_v44, 16  ;;  %v7711_v28 = vsel %vm7182_vm5, %v5193_v6, %v1309_v17 }
  0xc4   : > { %v3774_v22 = vrot.slane %v3773_v23, 4 }
  0xc5   : > { %6233 = vmatmul.mubr.bf16.gmra.mrb[4].mxu0 %v6700_v8  ;;  %v7658_v8 = vrot.slane %v3776_v34, 5  ;;  %v6783_v34 = vld [vmem:[%s6868_s18 + $0x70] sm:$0xf] }
  0xc6   : > { %6009 = vmatmul.mubr.bf16.gmra.mrb[20].mxu1 %v5173_v16  ;;  %6236 = vmatprep.mubr.bf16.mxu0 %v6703_v1  ;;  %v1316_v16 = vrot.slane %v7652_v41, 5  ;;  %v6782_v1 = vld [vmem:[%s6868_s18 + $0x5c] sm:$0x1]  ;;  %v1323_v52 = vrot.slane %v6783_v34, 5 }
  0xc7   : > { %6012 = vmatprep.mubr.bf16.mxu1 %v5174_v27  ;;  %6265 = vmatpush3.bf16.msra.mxu0 %v6707_v57  ;;  %v1312_v19 = vrot.slane %v6782_v1, 5  ;;  %v7667_v27 = vsel %vm7182_vm5, %v5192_v55, %v1302_v2  ;;  %v7671_v57 = vsel %vm7182_vm5, %v1304_v47, %v1305_v40  ;;  %v6784_v2 = vld [vmem:[%s6868_s18 + $0x68] sm:$0x1]  ;;  %v3800_v1 = vshll.u32 %v5550_v14, 16  ;;  %v6729_v41 = vld [vmem:[%s8654_s1 + $0x1f8] sm:$0xff]  }
  0xc8   : > { %6266 = vmatprep.subr.bf16.mxu0 %v6713_v48  ;;  %v1319_v55 = vrot.slane %v6784_v2, 5  ;;  %v5194_v47 = vrot.slane %v1215_v33, 9  ;;  %v1318_v40 = vrot.slane %v1316_v16, 4  ;;  %v3783_v34 = vor.u32 %v3782_v63, %v7658_v8  ;;  %v5553_v2 = vld [vmem:[%s6868_s18 + $0x34] sm:$0xf] }
  0xc9   : > { %v1325_v33 = vrot.slane %v1323_v52, 4  ;;  %v5551_v63 = vld [vmem:[%s6868_s18 + $0x2c] sm:$0x1]  ;;  %v7698_v18 = vrot.slane %v3800_v1, 5  ;;  %v3824_v14 = vshll.u32 %v5553_v2, 16  ;;  %v3828_v32 = vshrl.u32 %v5553_v2, 16 }
  0xca   : > { %v3784_v11 = vrot.slane %v3783_v34, 4  ;;  %v7715_v30 = vsel %vm7182_vm5, %v1311_v53, %v1312_v19  ;;  %v7722_v46 = vsel %vm7182_vm5, %v5194_v47, %v1316_v16  ;;  %v7726_v15 = vsel %vm7182_vm5, %v1318_v40, %v1319_v55  ;;  %v1217_v19 = vld [vmem:[%s6868_s18 + $0x78] sm:$0xe] }
  0xcb   : > { %6267 = vmatpush3.bf16.msra.mxu0 %v6713_v48  ;;  %v7730_v17 = vsel %vm7182_vm5, %v5195_v59, %v1323_v52  ;;  %v7740_v16 = vsel %vm7182_vm5, %v1325_v33, %v1326_v20  ;;  %v3807_v6 = vor.u32 %v3806_v29, %v7698_v18  ;;  %v3817_v53 = vrot.slane %v3815_v39, 4  ;;  %v5555_v59 = vld [vmem:[%s6868_s18 + $0x3c] sm:$0xf]  ;;  %v5556_v52 = vld [vmem:[%s6868_s18 + $0x40] sm:$0xf] }
  0xcc   : > { %6268 = vmatprep.subr.bf16.mxu0 %v6717_v54  ;;  %v3779_v1 = vsel %vm6936_vm2, %v3774_v22, %v7658_v8  ;;  %v3789_v47 = vsel %vm6936_vm2, %v3784_v11, %v7686_v43  ;;  %v7751_v40 = vrot.slane %v3824_v14, 5  ;;  %v3830_v23 = vrot.slane %v3828_v32, 4  ;;  %v6787_v20 = vld [vmem:[%s6868_s18 + $0x80] sm:$0x1]  ;;  %v7910_v48 = vld [vmem:[%s6868_s18 + $0x68] sm:$0x1] }
  0xcd   : > { %6237 = vmatmul.mubr.bf16.gmra.mrb[8].mxu0 %v6706_v3  ;;  %v3818_v3 = vshll.u32 %v5552_v44, 16  ;;  %v3810_v44 = vshll.u32 %v5551_v63, 16  ;;  %v5196_v33 = vrot.slane %v1217_v19, 9  ;;  %v1218_v63 = vld [vmem:[%s6868_s18 + $0x84] sm:$0xe]  ;;  %v3839_v29 = vshrl.u32 %v5555_v59, 16 }
  0xce   : > { %6013 = vmatmul.mubr.bf16.gmra.mrb[24].mxu1 %v5175_v21  ;;  %6240 = vmatprep.mubr.bf16.mxu0 %v6709_v4  ;;  %v6725_v21 = vld [vmem:[%s8654_s1 + $0x1f0] sm:$0xff]   ;;  %v6786_v4 = vld [vmem:[%s6868_s18 + $0x7c] sm:$0xf]  ;;  %v3842_v8 = vshll.u32 %v5555_v59, 16  ;;  %v3848_v39 = vshll.u32 %v5556_v52, 16  ;;  %v8676_v43 = vcombine.low %v7341_v42, %v7346_v13  ;;  %v7762_v14 = vrot.slane %v3807_v6, 4 }
  0xcf   : > { %6016 = vmatprep.mubr.bf16.mxu1 %v5176_v24  ;;  %6269 = vmatpush3.bf16.msra.mxu0 %v6717_v54  ;;  %v3797_v24 = vor.u32 %v3796_v45, %v3793_v35  ;;  %v6714_v54 = vld [vmem:[%s6868_s18 + $0x78] sm:$0xff]   ;;  %v1330_v45 = vrot.slane %v6786_v4, 5  ;;  %v3820_v55 = vrot.slane %v3818_v3, 5  ;;  %v7755_v2 = vrot.slane %v3810_v44, 5  ;;  %v7767_v22 = vld [vmem:[%s8654_s1 + $0x200] sm:$0xff]   ;;  %8684 = vst [vmem:[#allocation5_spill] sm:$0xff] %v7910_v48 }
  0xd0   : > { %6270 = vmatprep.subr.bf16.mxu0 %v6721_v51  ;;  %v5554_v35 = vld [vmem:[%s6868_s18 + $0x38] sm:$0x1]  ;;  %v3852_v3 = vshrl.u32 %v5556_v52, 16  ;;  %v6716_v44 = vld [vmem:[%s6868_s18 + $0x84] sm:$0xff]   ;;  %v3831_v13 = vor.u32 %v3830_v23, %v7751_v40  ;;  %v3844_v59 = vrot.slane %v3842_v8, 5  ;;  %v7789_v52 = vrot.slane %v3848_v39, 5 }
  0xd1   : > { %v7753_v34 = vrot.slane %v3797_v24, 4  ;;  %v1332_v11 = vrot.slane %v1330_v45, 4  ;;  %v3821_v32 = vor.u32 %v3820_v55, %v3817_v53  ;;  %v8677_v24 = vcombine.low %v7572_v60, %v7580_v26  ;;  %v6788_v19 = vld [vmem:[%s6868_s18 + $0x88] sm:$0xf]  ;;  %v5557_v6 = vld [vmem:[%s6868_s18 + $0x44] sm:$0x1] }
  0xd2   : > { %v1337_v4 = vrot.slane %v6788_v19, 5  ;;  %v7780_v60 = vcombine.low %v3779_v1, %v3789_v47  ;;  %v5558_v53 = vld [vmem:[%s6868_s18 + $0x48] sm:$0xf]  ;;  %v3841_v55 = vrot.slane %v3839_v29, 4  ;;  %v3854_v23 = vrot.slane %v3852_v3, 4 }
  0xd3   : > { %6271 = vmatpush3.bf16.msra.mxu0 %v6721_v51  ;;  %v1333_v51 = vrot.slane %v6787_v20, 5  ;;  %v6718_v20 = vld [vmem:[%s6868_s18 + $0x90] sm:$0xff]   ;;  %v3803_v1 = vsel %vm6936_vm2, %v7753_v34, %v7698_v18  ;;  %v3822_v47 = vrot.slane %v3821_v32, 4  ;;  %v3813_v29 = vsel %vm6936_vm2, %v7762_v14, %v7755_v2  ;;  %v7811_v34 = vld [vmem:[%s6868_s18 + $0x58] sm:$0xf]  ;;  %v6719_v32 = vld [vmem:[%s8654_s1 + $0xc8] sm:$0xff]  }
  0xd4   : > { %6272 = vmatprep.subr.bf16.mxu0 %v6725_v21  ;;  %v3832_v39 = vrot.slane %v3831_v13, 4  ;;  %v1339_v3 = vrot.slane %v1337_v4, 4  ;;  %v5561_v18 = vld [vmem:[%s6868_s18 + $0x54] sm:$0xf]  ;;  %v3858_v2 = vshll.u32 %v5557_v6, 16  ;;  %v3863_v14 = vshrl.u32 %v5558_v53, 16 }
  0xd5   : > { %6241 = vmatmul.mubr.bf16.gmra.mrb[12].mxu0 %v6712_v49  ;;  %v3834_v49 = vshll.u32 %v5554_v35, 16  ;;  %v7807_v8 = vsel %vm7182_vm5, %v1332_v11, %v1333_v51  ;;  %v3866_v51 = vshll.u32 %v5558_v53, 16  ;;  %v3845_v11 = vor.u32 %v3844_v59, %v3841_v55  ;;  %v6720_v55 = vld [vmem:[%s6868_s18 + $0x9c] sm:$0xff]   ;;  %v6794_v42 = vld [vmem:[%s6868_s18 + $0xac] sm:$0xf] }
  0xd6   : > { %6017 = vmatmul.mubr.bf16.gmra.mrb[28].mxu1 %v8676_v43  ;;  %6244 = vmatprep.mubr.bf16.mxu0 %v6714_v54  ;;  %v5197_v54 = vrot.slane %v1218_v63, 9  ;;  %v6789_v43 = vld [vmem:[%s6868_s18 + $0x8c] sm:$0x1]  ;;  %v3896_v6 = vshll.u32 %v7811_v34, 16  ;;  %v8679_v53 = vcombine.low %v7588_v0, %v7596_v9  ;;  %v7847_v0 = vld [vmem:[%s6868_s18 + $0x50] sm:$0x1] }
  0xd7   : > { %6036 = vmatprep.mubr.bf16.mxu1 %v8677_v24  ;;  %6273 = vmatpush3.bf16.msra.mxu0 %v6725_v21  ;;  %v7786_v21 = vsel %vm7182_vm5, %v5196_v33, %v1330_v45  ;;  %v3836_v63 = vrot.slane %v3834_v49, 5  ;;  %v1340_v24 = vrot.slane %v6789_v43, 5  ;;  %v1219_v45 = vld [vmem:[%s6868_s18 + $0x90] sm:$0xe]  ;;  %v7799_v33 = vld [vmem:[%s6868_s18 + $0x4c] sm:$0xf]  ;;  %v3855_v49 = vor.u32 %v3854_v23, %v7789_v52 }
  0xd8   : > { %6274 = vmatprep.subr.bf16.mxu0 %v6729_v41  ;;  %v3872_v13 = vshll.u32 %v7799_v33, 16  ;;  %v3876_v19 = vshrl.u32 %v7799_v33, 16  ;;  %v8678_v43 = vcombine.low %v7576_v31, %v7584_v7  ;;  %v6723_v31 = vld [vmem:[%s8654_s1 + $0xd0] sm:$0xff]   ;;  %v3827_v7 = vsel %vm6936_vm2, %v3822_v47, %v7751_v40  ;;  %v6722_v9 = vld [vmem:[%s6868_s18 + $0xa8] sm:$0xff]   ;;  %v7854_v40 = vld [vmem:[%s6868_s18 + $0x5c] sm:$0x1] }
  0xd9   : > { %v3837_v59 = vsel %vm6936_vm2, %v3832_v39, %v3836_v63  ;;  %v5198_v23 = vrot.slane %v1219_v45, 9  ;;  %v3868_v26 = vrot.slane %v3866_v51, 5  ;;  %8680 = vst [vmem:[#allocation3_spill] sm:$0xff] %v7854_v40  ;;  %v3846_v47 = vrot.slane %v3845_v11, 4 }
  0xda   : > { %v3856_v63 = vrot.slane %v3855_v49, 4  ;;  %v7856_v39 = vrot.slane %v3872_v13, 5  ;;  %v7858_v35 = vrot.slane %v3896_v6, 5  ;;  %v7863_v51 = vcombine.low %v3803_v1, %v3813_v29  ;;  %v5564_v29 = vld [vmem:[%s6868_s18 + $0x60] sm:$0xf] }
  0xdb   : > { %6275 = vmatpush3.bf16.msra.mxu0 %v6729_v41  ;;  %v7819_v41 = vsel %vm7182_vm5, %v5197_v54, %v1337_v4  ;;  %v3887_v54 = vshrl.u32 %v5561_v18, 16  ;;  %v3890_v4 = vshll.u32 %v5561_v18, 16  ;;  %v6790_v18 = vld [vmem:[%s6868_s18 + $0x94] sm:$0xf]  ;;  %v7867_v49 = vcombine.low %v3827_v7, %v3837_v59 }
  0xdc   : > { %6308 = vmatprep.subr.bf16.mxu0 %v7767_v22  ;;  %v3882_v1 = vshll.u32 %v7847_v0, 16  ;;  %v3851_v7 = vsel %vm6936_vm2, %v3846_v47, %v7789_v52  ;;  %v8683_v47 = vcombine.low %v7610_v62, %v7614_v37 }
  0xdd   : > { %6245 = vmatmul.mubr.bf16.gmra.mrb[16].mxu0 %v6716_v44  ;;  %v3900_v44 = vshrl.u32 %v7811_v34, 16  ;;  %v3889_v45 = vrot.slane %v3887_v54, 4  ;;  %v6791_v54 = vld [vmem:[%s6868_s18 + $0x98] sm:$0x1] }
  0xde   : > { %6037 = vmatmul.mubr.bf16.vlgmr.msra.gmra.mrb[0].mxu1 %v8678_v43  ;;  %6248 = vmatprep.mubr.bf16.mxu0 %v6718_v20  ;;  %v7850_v20 = vrot.slane %v3858_v2, 5  ;;  %v1344_v43 = vrot.slane %v6790_v18, 5  ;;  %v6792_v18 = vld [vmem:[%s6868_s18 + $0xa0] sm:$0xf]  ;;  %v3884_v37 = vrot.slane %v3882_v1, 5 }
  0xdf   : > { %6069 = vmatpush3.bf16.msra.mxu1 %v7529_v61  ;;  %6040 = vmatprep.mubr.bf16.mxu1 %v8679_v53  ;;  %v7844_v61 = vsel %vm7182_vm5, %v1339_v3, %v1340_v24  ;;  %v3865_v53 = vrot.slane %v3863_v14, 4  ;;  %v3878_v24 = vrot.slane %v3876_v19, 4  ;;  %v3892_v3 = vrot.slane %v3890_v4, 5  ;;  %v6727_v14 = vld [vmem:[%s8654_s1 + $0xd8] sm:$0xff]  }
  0xe0   : > { %6070 = vmatprep.subr.bf16.mxu1 %v6719_v32  ;;  %v3902_v2 = vrot.slane %v3900_v44, 4  ;;  %v1220_v19 = vld [vmem:[%s6868_s18 + $0x9c] sm:$0xe]  ;;  %v1347_v4 = vrot.slane %v6791_v54, 5  ;;  %v7880_v44 = vld [vmem:[%s6868_s18 + $0x64] sm:$0xf] }
  0xe1   : > { %v3869_v6 = vor.u32 %v3868_v26, %v3865_v53  ;;  %8681 = vst [vmem:[#allocation4_spill] sm:$0xff] %v7880_v44  ;;  %v3879_v59 = vor.u32 %v3878_v24, %v7856_v39  ;;  %v1351_v13 = vrot.slane %v6792_v18, 5  ;;  %v8682_v26 = vcombine.low %v7600_v25, %v7604_v36  ;;  %v6724_v24 = vld [vmem:[%s6868_s18 + $0xb4] sm:$0xff]   ;;  %v6730_v25 = vld [vmem:[%s8654_s1 + $0xe0] sm:$0xff]   ;;  %v5567_v18 = vld [vmem:[%s6868_s18 + $0x6c] sm:$0xf] }
  0xe2   : > { %v1346_v53 = vrot.slane %v1344_v43, 4  ;;  %v3893_v54 = vor.u32 %v3892_v3, %v3889_v45  ;;  %v3903_v52 = vor.u32 %v3902_v2, %v7858_v35  ;;  %v3911_v36 = vshrl.u32 %v5564_v29, 16  ;;  %v6793_v3 = vld [vmem:[%s6868_s18 + $0xa4] sm:$0x1] }
  0xe3   : > { %6071 = vmatpush3.bf16.msra.mxu1 %v6719_v32  ;;  %v7874_v32 = vsel %vm7182_vm5, %v5198_v23, %v1344_v43  ;;  %v3906_v23 = vshll.u32 %v7854_v40, 16  ;;  %v3924_v43 = vshrl.u32 %v7880_v44, 16  ;;  %v3870_v62 = vrot.slane %v3869_v6, 4  ;;  %v8049_v40 = vld [vmem:[%s6868_s18 + $0x98] sm:$0x1] }
  0xe4   : > { %6072 = vmatprep.subr.bf16.mxu1 %v6723_v31  ;;  %v5199_v45 = vrot.slane %v1220_v19, 9  ;;  %v1354_v2 = vrot.slane %v6793_v3, 5  ;;  %v3894_v6 = vrot.slane %v3893_v54, 4  ;;  %v3904_v19 = vrot.slane %v3903_v52, 4  ;;  %8697 = vst [vmem:[#allocation14_spill] sm:$0xff] %v8049_v40 }
  0xe5   : > { %6249 = vmatmul.mubr.bf16.gmra.mrb[20].mxu0 %v6720_v55  ;;  %v3861_v55 = vsel %vm6936_vm2, %v3856_v63, %v7850_v20  ;;  %v3920_v20 = vshll.u32 %v7880_v44, 16  ;;  %v6726_v63 = vld [vmem:[%s6868_s18 + $0xc0] sm:$0xff]   ;;  %v3908_v11 = vrot.slane %v3906_v23, 5  ;;  %v7916_v44 = vsel %vm7182_vm5, %v1346_v53, %v1347_v4 }
  0xe6   : > { %6041 = vmatmul.mubr.bf16.gmra.mrb[4].mxu1 %v8682_v26  ;;  %6252 = vmatprep.mubr.bf16.mxu0 %v6722_v9  ;;  %v3914_v9 = vshll.u32 %v5564_v29, 16  ;;  %v3880_v26 = vrot.slane %v3879_v59, 4  ;;  %v1358_v29 = vrot.slane %v6794_v42, 5  ;;  %v7912_v56 = vcombine.low %v3851_v7, %v3861_v55  ;;  %v6732_v42 = vld [vmem:[%s8654_s1 + $0xe8] sm:$0xff]  }
  0xe7   : > { %6044 = vmatprep.mubr.bf16.mxu1 %v8683_v47  ;;  %6073 = vmatpush3.bf16.msra.mxu1 %v6723_v31  ;;  %v1221_v31 = vld [vmem:[%s6868_s18 + $0xa8] sm:$0xe]  ;;  %v1353_v47 = vrot.slane %v1351_v13, 4  ;;  %v3913_v1 = vrot.slane %v3911_v36, 4  ;;  %v7918_v59 = vrot.slane %v3920_v20, 5  ;;  %v3926_v23 = vrot.slane %v3924_v43, 4 }
  0xe8   : > { %6074 = vmatprep.subr.bf16.mxu1 %v6727_v14  ;;  %v3916_v3 = vrot.slane %v3914_v9, 5  ;;  %v3875_v4 = vsel %vm6936_vm2, %v3870_v62, %v7856_v39  ;;  %v7928_v7 = vsel %vm7182_vm5, %v5199_v45, %v1351_v13  ;;  %v3935_v55 = vshrl.u32 %v5567_v18, 16  ;;  %v6795_v39 = vld [vmem:[%s6868_s18 + $0xb0] sm:$0x1]  ;;  %v1222_v20 = vld [vmem:[%s6868_s18 + $0xb4] sm:$0xe] }
  0xe9   : > { %v3938_v53 = vshll.u32 %v5567_v18, 16  ;;  %v3885_v54 = vsel %vm6936_vm2, %v3880_v26, %v3884_v37  ;;  %v7937_v52 = vsel %vm7182_vm5, %v1353_v47, %v1354_v2  ;;  %v5200_v36 = vrot.slane %v1221_v31, 9  ;;  %v7959_v31 = vld [vmem:[%s6868_s18 + $0x74] sm:$0x1]  ;;  %v6796_v26 = vld [vmem:[%s6868_s18 + $0xb8] sm:$0xf] }
  0xea   : > { %v1361_v9 = vrot.slane %v6795_v39, 5  ;;  %v8686_v13 = vcombine.low %v7631_v50, %v7645_v5  ;;  %v3899_v43 = vsel %vm6936_vm2, %v3894_v6, %v7858_v35  ;;  %v3909_v62 = vsel %vm6936_vm2, %v3904_v19, %v3908_v11  ;;  %v6728_v5 = vld [vmem:[%s6868_s18 + $0xcc] sm:$0xff]   ;;  %8688 = vst [vmem:[#allocation7_spill] sm:$0xff] %v7959_v31  ;;  %v5573_v39 = vld [vmem:[%s6868_s18 + $0x84] sm:$0xf] }
  0xeb   : > { %6075 = vmatpush3.bf16.msra.mxu1 %v6727_v14  ;;  %v7931_v14 = vld [vmem:[%s6868_s18 + $0x70] sm:$0xf]  ;;  %v1360_v37 = vrot.slane %v1358_v29, 4  ;;  %v3930_v45 = vshll.u32 %v7910_v48, 16  ;;  %v8687_v50 = vcombine.low %v7667_v27, %v7671_v57  ;;  %v3927_v2 = vor.u32 %v3926_v23, %v7918_v59  ;;  %v7976_v23 = vld [vmem:[%s6868_s18 + $0x7c] sm:$0xf] }
  0xec   : > { %6076 = vmatprep.subr.bf16.mxu1 %v6730_v25  ;;  %8685 = vst [vmem:[#allocation6_spill] sm:$0xff] %v7931_v14  ;;  %v3944_v35 = vshll.u32 %v7931_v14, 16  ;;  %v3948_v11 = vshrl.u32 %v7931_v14, 16  ;;  %v5201_v18 = vrot.slane %v1222_v20, 9  ;;  %v1365_v47 = vrot.slane %v6796_v26, 5  ;;  %8689 = vst [vmem:[#allocation8_spill] sm:$0xff] %v7976_v23 }
  0xed   : > { %6253 = vmatmul.mubr.bf16.gmra.mrb[24].mxu0 %v6724_v24  ;;  %v6734_v24 = vld [vmem:[%s8654_s1 + $0xf0] sm:$0xff]   ;;  %v3937_v27 = vrot.slane %v3935_v55, 4  ;;  %v3940_v57 = vrot.slane %v3938_v53, 5  ;;  %v7967_v19 = vcombine.low %v3875_v4, %v3885_v54  ;;  %v7979_v20 = vcombine.low %v3899_v43, %v3909_v62  ;;  %v6797_v4 = vld [vmem:[%s6868_s18 + $0xbc] sm:$0x1] }
  0xee   : > { %6045 = vmatmul.mubr.bf16.gmra.mrb[8].mxu1 %v8686_v13  ;;  %6256 = vmatprep.mubr.bf16.mxu0 %v6726_v63  ;;  %v3917_v63 = vor.u32 %v3916_v3, %v3913_v1  ;;  %v7973_v3 = vsel %vm7182_vm5, %v5200_v36, %v1358_v29  ;;  %v7983_v55 = vsel %vm7182_vm5, %v1360_v37, %v1361_v9  ;;  %v7985_v53 = vrot.slane %v3930_v45, 5  ;;  %v6736_v13 = vld [vmem:[%s8654_s1 + $0xf8] sm:$0xff]   ;;  %v7992_v29 = vld [vmem:[%s6868_s18 + $0x88] sm:$0xf] }
  0xef   : > { %6048 = vmatprep.mubr.bf16.mxu1 %v8687_v50  ;;  %6077 = vmatpush3.bf16.msra.mxu1 %v6730_v25  ;;  %v5570_v25 = vld [vmem:[%s6868_s18 + $0x78] sm:$0xf]  ;;  %v1368_v54 = vrot.slane %v6797_v4, 5  ;;  %8690 = vst [vmem:[#allocation9_spill] sm:$0xff] %v7992_v29  ;;  %v7996_v43 = vrot.slane %v3927_v2, 4  ;;  %v7998_v62 = vrot.slane %v3944_v35, 5  ;;  %v8002_v37 = vsel %vm7182_vm5, %v5201_v18, %v1365_v47 }
  0xf0   : > { %6078 = vmatprep.subr.bf16.mxu1 %v6732_v42  ;;  %v7994_v36 = vrot.slane %v3917_v63, 4  ;;  %v3950_v9 = vrot.slane %v3948_v11, 4  ;;  %v1367_v45 = vrot.slane %v1365_v47, 4  ;;  %v3941_v50 = vor.u32 %v3940_v57, %v3937_v27  ;;  %v5576_v4 = vld [vmem:[%s6868_s18 + $0x90] sm:$0xf] }
  0xf1   : > { %v3954_v26 = vshll.u32 %v7959_v31, 16  ;;  %v3962_v1 = vshll.u32 %v5570_v25, 16  ;;  %v3968_v63 = vshll.u32 %v7976_v23, 16  ;;  %v3972_v2 = vshrl.u32 %v7976_v23, 16  ;;  %v8009_v35 = vld [vmem:[%s6868_s18 + $0x94] sm:$0xf] }
  0xf2   : > { %8691 = vst [vmem:[#allocation10_spill] sm:$0xff] %v8009_v35  ;;  %v8692_v11 = vcombine.low %v7711_v28, %v7715_v30  ;;  %v3983_v18 = vshrl.u32 %v5573_v39, 16  ;;  %v3986_v47 = vshll.u32 %v5573_v39, 16  ;;  %v3996_v27 = vshrl.u32 %v7992_v29, 16  ;;  %v5579_v39 = vld [vmem:[%s6868_s18 + $0x9c] sm:$0xf] }
  0xf3   : > { %6079 = vmatpush3.bf16.msra.mxu1 %v6732_v42  ;;  %v3959_v42 = vshrl.u32 %v5570_v25, 16  ;;  %v8693_v57 = vcombine.low %v7722_v46, %v7726_v15  ;;  %v3951_v30 = vor.u32 %v3950_v9, %v7998_v62  ;;  %v4010_v25 = vshll.u32 %v5576_v4, 16  ;;  %v8031_v46 = vld [vmem:[%s6868_s18 + $0x80] sm:$0x1] }
  0xf4   : > { %6080 = vmatprep.subr.bf16.mxu1 %v6734_v24  ;;  %v8028_v6 = vrot.slane %v3954_v26, 5  ;;  %8694 = vst [vmem:[#allocation11_spill] sm:$0xff] %v8031_v46  ;;  %v4016_v15 = vshll.u32 %v8009_v35, 16  ;;  %v3964_v28 = vrot.slane %v3962_v1, 5  ;;  %v3974_v9 = vrot.slane %v3972_v2, 4 }
  0xf5   : > { %6257 = vmatmul.mubr.bf16.gmra.mrb[28].mxu0 %v6728_v5  ;;  %v3992_v5 = vshll.u32 %v7992_v29, 16  ;;  %v8035_v29 = vrot.slane %v3968_v63, 5  ;;  %v8041_v23 = vld [vmem:[%s6868_s18 + $0xa0] sm:$0xf]  ;;  %v3985_v26 = vrot.slane %v3983_v18, 4  ;;  %v3988_v31 = vrot.slane %v3986_v47, 5 }
  0xf6   : > { %6049 = vmatmul.mubr.bf16.gmra.mrb[12].mxu1 %v8692_v11  ;;  %6276 = vmatprep.mubr.bf16.mxu0 %v7780_v60  ;;  %v4007_v60 = vshrl.u32 %v5576_v4, 16  ;;  %v8026_v11 = vrot.slane %v3941_v50, 4  ;;  %v8038_v4 = vld [vmem:[%s6868_s18 + $0x8c] sm:$0x1]  ;;  %8696 = vst [vmem:[#allocation13_spill] sm:$0xff] %v8041_v23  ;;  %v3998_v48 = vrot.slane %v3996_v27, 4  ;;  %v8058_v63 = vsel %vm7182_vm5, %v1367_v45, %v1368_v54 }
  0xf7   : > { %6052 = vmatprep.mubr.bf16.mxu1 %v8693_v57  ;;  %6081 = vmatpush3.bf16.msra.mxu1 %v6734_v24  ;;  %v4020_v24 = vshrl.u32 %v8009_v35, 16  ;;  %v3961_v57 = vrot.slane %v3959_v42, 4  ;;  %8695 = vst [vmem:[#allocation12_spill] sm:$0xff] %v8038_v4  ;;  %v6733_v50 = vld [vmem:[%s8654_s1 + $0x208] sm:$0xff]   ;;  %v8046_v14 = vrot.slane %v3992_v5, 5  ;;  %v4012_v35 = vrot.slane %v4010_v25, 5 }
  0xf8   : > { %6082 = vmatprep.subr.bf16.mxu1 %v6736_v13  ;;  %v5582_v42 = vld [vmem:[%s6868_s18 + $0xa8] sm:$0xf]  ;;  %v4009_v2 = vrot.slane %v4007_v60, 4  ;;  %v8063_v18 = vld [vmem:[%s8654_s1 + $0x100] sm:$0xff]   ;;  %v8066_v47 = vrot.slane %v4016_v15, 5  ;;  %v4031_v27 = vshrl.u32 %v5579_v39, 16  ;;  %v8699_v25 = vcombine.low %v7730_v17, %v7740_v16 }
  0xf9   : > { %8698 = vst [vmem:[#allocation15_spill] sm:$0xff] %v8063_v18  ;;  %v4022_v5 = vrot.slane %v4020_v24, 4  ;;  %v4034_v1 = vshll.u32 %v5579_v39, 16  ;;  %v8069_v54 = vrot.slane %v3951_v30, 4  ;;  %v4040_v45 = vshll.u32 %v8041_v23, 16  ;;  %v6735_v17 = vld [vmem:[%s8654_s1 + $0x210] sm:$0xff]  }
  0xfa   : > { %v4044_v60 = vshrl.u32 %v8041_v23, 16  ;;  %v3965_v15 = vor.u32 %v3964_v28, %v3961_v57  ;;  %v3975_v39 = vor.u32 %v3974_v9, %v8035_v29  ;;  %v3989_v24 = vor.u32 %v3988_v31, %v3985_v26  ;;  %v8081_v30 = vld [vmem:[%s6868_s18 + $0xac] sm:$0xf]  ;;  %v8094_v26 = vld [vmem:[%s6868_s18 + $0xa4] sm:$0x1] }
  0xfb   : > { %6083 = vmatpush3.bf16.msra.mxu1 %v6736_v13  ;;  %v3978_v13 = vshll.u32 %v8031_v46, 16  ;;  %8700 = vst [vmem:[#allocation16_spill] sm:$0xff] %v8081_v30  ;;  %v3999_v16 = vor.u32 %v3998_v48, %v8046_v14  ;;  %v4055_v28 = vshrl.u32 %v5582_v42, 16  ;;  %v4058_v31 = vshll.u32 %v5582_v42, 16 }
  0xfc   : > { %6356 = vmatprep.subr.bf16.mxu1 %v8063_v18  ;;  %v8701_v18 = vcombine.low %v7786_v21, %v7807_v8  ;;  %v4013_v57 = vor.u32 %v4012_v35, %v4009_v2  ;;  %v4023_v9 = vor.u32 %v4022_v5, %v8066_v47  ;;  %v4033_v21 = vrot.slane %v4031_v27, 4 }
  0xfd   : > { %6277 = vmatmul.mubr.bf16.vlgmr.msra.gmra.mrb[0].mxu0 %v7863_v51  ;;  %v4002_v51 = vshll.u32 %v8038_v4, 16  ;;  %v4036_v8 = vrot.slane %v4034_v1, 5  ;;  %v4068_v23 = vshrl.u32 %v8081_v30, 16  ;;  %v3966_v48 = vrot.slane %v3965_v15, 4  ;;  %v6737_v1 = vld [vmem:[%s8654_s1 + $0x218] sm:$0xff]  }
  0xfe   : > { %6053 = vmatmul.mubr.bf16.gmra.mrb[16].mxu1 %v8699_v25  ;;  %6309 = vmatpush3.bf16.msra.mxu0 %v7767_v22  ;;  %v4026_v22 = vshll.u32 %v8049_v40, 16  ;;  %v4064_v25 = vshll.u32 %v8081_v30, 16  ;;  %v3976_v40 = vrot.slane %v3975_v39, 4  ;;  %v3980_v4 = vrot.slane %v3978_v13, 5 }
  0xff   : > { %6056 = vmatprep.mubr.bf16.mxu1 %v8701_v18  ;;  %6280 = vmatprep.mubr.bf16.mxu0 %v7867_v49  ;;  %v8096_v18 = vrot.slane %v4040_v45, 5  ;;  %v4046_v49 = vrot.slane %v4044_v60, 4  ;;  %v4004_v42 = vrot.slane %v4002_v51, 5  ;;  %v3990_v35 = vrot.slane %v3989_v24, 4 }
 0x100   : > { %6310 = vmatprep.subr.bf16.mxu0 %v6733_v50  ;;  %v4000_v2 = vrot.slane %v3999_v16, 4  ;;  %v4057_v5 = vrot.slane %v4055_v28, 4  ;;  %v4060_v46 = vrot.slane %v4058_v31, 5  ;;  %v4014_v27 = vrot.slane %v4013_v57, 4  ;;  %v8162_v28 = vld [vmem:[%s6868_s18 + $0xbc] sm:$0x1] }
 0x101   : > { %v4028_v45 = vrot.slane %v4026_v22, 5  ;;  %v4037_v60 = vor.u32 %v4036_v8, %v4033_v21  ;;  %v4050_v30 = vshll.u32 %v8094_v26, 16  ;;  %v4047_v13 = vor.u32 %v4046_v49, %v8096_v18  ;;  %v8129_v22 = vld [vmem:[%s6868_s18 + $0xb0] sm:$0x1] }
 0x102   : > { %6311 = vmatpush3.bf16.msra.mxu0 %v6733_v50  ;;  %v4024_v50 = vrot.slane %v4023_v9, 4  ;;  %v8106_v15 = vrot.slane %v4064_v25, 5  ;;  %v4070_v39 = vrot.slane %v4068_v23, 4  ;;  %v8702_v24 = vor.u32 %v7514_v58, %v7512_v12 }
 0x103   : > { %6312 = vmatprep.subr.bf16.mxu0 %v6735_v17  ;;  %v8703_v16 = vcombine.low %v7819_v41, %v7844_v61  ;;  %v3957_v23 = vsel %vm6936_vm2, %v8069_v54, %v8028_v6  ;;  %v3971_v58 = vsel %vm6936_vm2, %v3966_v48, %v8035_v29  ;;  %v8704_v41 = vcombine.low %v7874_v32, %v7916_v44  ;;  %v6740_v32 = vld [vmem:[%s8654_s1 + $0x220] sm:$0xff]  }
 0x104   : > { %v8111_v51 = vrot.slane %v8702_v24, 4  ;;  %v3981_v61 = vsel %vm6936_vm2, %v3976_v40, %v3980_v4  ;;  %v4061_v6 = vor.u32 %v4060_v46, %v4057_v5  ;;  %v4005_v29 = vsel %vm6936_vm2, %v4000_v2, %v4004_v42  ;;  %v5638_v42 = vld [vmem:[%s6868_s18 + $0x48] sm:$0xe] }
 0x105   : > { %6281 = vmatmul.mubr.bf16.gmra.mrb[4].mxu0 %v7912_v56  ;;  %v3947_v56 = vsel %vm6936_vm2, %v8026_v11, %v7998_v62  ;;  %v5585_v62 = vld [vmem:[%s6868_s18 + $0xb4] sm:$0xf]  ;;  %v8141_v11 = vld [vmem:[%s6868_s18 + $0xb8] sm:$0xf]  ;;  %v4019_v40 = vsel %vm6936_vm2, %v4014_v27, %v8066_v47  ;;  %v8151_v44 = vrot.slane %v4037_v60, 4  ;;  %v8153_v4 = vrot.slane %v4050_v30, 5 }
 0x106   : > { %6057 = vmatmul.mubr.bf16.gmra.mrb[20].mxu1 %v8703_v16  ;;  %6284 = vmatprep.mubr.bf16.mxu0 %v7967_v19  ;;  %v3995_v19 = vsel %vm6936_vm2, %v3990_v35, %v8046_v14  ;;  %v4029_v14 = vsel %vm6936_vm2, %v4024_v50, %v4028_v45  ;;  %v8157_v46 = vrot.slane %v4047_v13, 4  ;;  %v4071_v54 = vor.u32 %v4070_v39, %v8106_v15  ;;  %v5639_v27 = vld [vmem:[%s6868_s18 + $0x54] sm:$0xe] }
 0x107   : > { %6060 = vmatprep.mubr.bf16.mxu1 %v8704_v41  ;;  %6313 = vmatpush3.bf16.msra.mxu0 %v6735_v17  ;;  %v4074_v17 = vshll.u32 %v8129_v22, 16  ;;  %v8705_v47 = vsel %vm6936_vm2, %v7996_v43, %v7985_v53  ;;  %v8706_v30 = vsel %vm6936_vm2, %v7994_v36, %v7918_v59  ;;  %v4079_v57 = vshrl.u32 %v5585_v62, 16 }
 0x108   : > { %6314 = vmatprep.subr.bf16.mxu0 %v6737_v1  ;;  %v5616_v31 = vcombine.low %v8706_v30, %v8705_v47  ;;  %v4082_v9 = vshll.u32 %v5585_v62, 16  ;;  %v4088_v21 = vshll.u32 %v8141_v11, 16  ;;  %v5232_v8 = vcombine.low %v7973_v3, %v7983_v55  ;;  %v6743_v3 = vld [vmem:[%s8654_s1 + $0x228] sm:$0xff]   ;;  %v5588_v55 = vld [vmem:[%s6868_s18 + $0xc0] sm:$0xf]  ;;  %v8710_v30 = vld [vmem:[#allocation5_spill] sm:$0xff] }
 0x109   : > { %v5233_v49 = vcombine.low %v8002_v37, %v8058_v63  ;;  %v5617_v25 = vcombine.low %v3947_v56, %v3957_v23  ;;  %v8179_v53 = vrot.slane %v4061_v6, 4  ;;  %v5618_v43 = vcombine.low %v3971_v58, %v3981_v61 }
 0x10a   : > { %v8181_v59 = vcombine.low %v3995_v19, %v4005_v29  ;;  %v8183_v36 = vcombine.low %v4019_v40, %v4029_v14  ;;  %v4043_v48 = vsel %vm6936_vm2, %v8151_v44, %v8096_v18  ;;  %v4053_v35 = vsel %vm6936_vm2, %v8157_v46, %v8153_v4  ;;  %v5641_v29 = vld [vmem:[%s6868_s18 + $0x6c] sm:$0xe] }
 0x10b   : > { %6315 = vmatpush3.bf16.msra.mxu0 %v6737_v1  ;;  %v8199_v2 = vrot.slane %v4071_v54, 4  ;;  %v8201_v5 = vrot.slane %v4074_v17, 5  ;;  %v4092_v1 = vshrl.u32 %v8141_v11, 16  ;;  %v8707_v45 = vcombine.low %v7928_v7, %v7937_v52  ;;  %v6746_v7 = vld [vmem:[%s8654_s1 + $0x230] sm:$0xff]   ;;  %v8223_v52 = vld [vmem:[%s6868_s18 + $0xc4] sm:$0xf] }
 0x10c   : > { %6316 = vmatprep.subr.bf16.mxu0 %v6740_v32  ;;  %v8208_v60 = vrot.slane %v4079_v57, 4  ;;  %v8212_v50 = vrot.slane %v4088_v21, 5  ;;  %v4098_v13 = vshll.u32 %v8162_v28, 16  ;;  %v4067_v39 = vsel %vm6936_vm2, %v8179_v53, %v8106_v15  ;;  %v5640_v15 = vld [vmem:[%s6868_s18 + $0x60] sm:$0xe]  ;;  %v8708_v40 = vld [vmem:[#allocation3_spill] sm:$0xff] }
 0x10d   : > { %6285 = vmatmul.mubr.bf16.gmra.mrb[8].mxu0 %v7979_v20  ;;  %v8210_v20 = vrot.slane %v4082_v9, 5  ;;  %v4103_v24 = vshrl.u32 %v5588_v55, 16  ;;  %v5654_v16 = vrot.slane %v5638_v42, 9  ;;  %v4566_v56 = vrot.slane %v7799_v33, 5  ;;  %v6738_v14 = vld [vmem:[%s6868_s18 + $0xc] sm:$0xff]   ;;  %v6749_v57 = vld [vmem:[%s8654_s1 + $0x238] sm:$0xff]  }
 0x10e   : > { %6061 = vmatmul.mubr.bf16.gmra.mrb[24].mxu1 %v8707_v45  ;;  %6288 = vmatprep.mubr.bf16.mxu0 %v5616_v31  ;;  %v4106_v23 = vshll.u32 %v5588_v55, 16  ;;  %v4569_v58 = vrot.slane %v7847_v0, 5  ;;  %v5655_v41 = vrot.slane %v5639_v27, 9  ;;  %v4573_v61 = vrot.slane %v7811_v34, 5  ;;  %v8709_v17 = vld [vmem:[#allocation4_spill] sm:$0xff]  ;;  %v8711_v53 = vld [vmem:[#allocation6_spill] sm:$0xff] }
 0x10f   : > { %6064 = vmatprep.mubr.bf16.mxu1 %v5232_v8  ;;  %6317 = vmatpush3.bf16.msra.mxu0 %v6740_v32  ;;  %v4077_v19 = vsel %vm6936_vm2, %v8199_v2, %v8201_v5  ;;  %v8233_v6 = vrot.slane %v4092_v1, 4  ;;  %v8237_v62 = vsel %vm7182_vm5, %v5654_v16, %v4566_v56  ;;  %v4568_v33 = vrot.slane %v4566_v56, 4  ;;  %v8712_v5 = vld [vmem:[#allocation7_spill] sm:$0xff] }
 0x110   : > { %6318 = vmatprep.subr.bf16.mxu0 %v6743_v3  ;;  %v4112_v32 = vshll.u32 %v8223_v52, 16  ;;  %v8243_v0 = vsel %vm7182_vm5, %v5655_v41, %v4573_v61  ;;  %v4575_v34 = vrot.slane %v4573_v61, 4  ;;  %v4576_v4 = vrot.slane %v8708_v40, 5  ;;  %v8274_v27 = vld [vmem:[%s6868_s18 + $0xc8] sm:$0x1]  ;;  %v6739_v41 = vld [vmem:[%s6868_s18 + $0x18] sm:$0xff]  }
 0x111   : > { %v8249_v46 = vsel %vm7182_vm5, %v4568_v33, %v4569_v58  ;;  %v5656_v54 = vrot.slane %v5640_v15, 9  ;;  %v4580_v47 = vrot.slane %v8709_v17, 5  ;;  %v4583_v31 = vrot.slane %v8710_v30, 5  ;;  %v6741_v40 = vld [vmem:[%s6868_s18 + $0x24] sm:$0xff]  }
 0x112   : > { %v5686_v9 = vcombine.low %v8237_v62, %v8249_v46  ;;  %v8260_v21 = vsel %vm7182_vm5, %v4575_v34, %v4576_v4  ;;  %v5657_v8 = vrot.slane %v5641_v29, 9  ;;  %v4590_v1 = vrot.slane %v8712_v5, 5  ;;  %v8714_v29 = vld [vmem:[#allocation11_spill] sm:$0xff]  ;;  %v5347_v62 = vld [vmem:[%s6868_s18 + $0x90] sm:$0xf] }
 0x113   : > { %6319 = vmatpush3.bf16.msra.mxu0 %v6743_v3  ;;  %v4587_v3 = vrot.slane %v8711_v53, 5  ;;  %v5687_v55 = vcombine.low %v8243_v0, %v8260_v21  ;;  %v8267_v42 = vsel %vm7182_vm5, %v5656_v54, %v4580_v47  ;;  %v4582_v2 = vrot.slane %v4580_v47, 4  ;;  %v8715_v54 = vld [vmem:[#allocation2_spill] sm:$0xff]  ;;  %v6755_v46 = vld [vmem:[%s6868_s18 + $0xa8] sm:$0xff]  }
 0x114   : > { %6320 = vmatprep.subr.bf16.mxu0 %v6746_v7  ;;  %v8276_v45 = vrot.slane %v4103_v24, 4  ;;  %v8289_v37 = vcombine.low %v4043_v48, %v4053_v35  ;;  %v4085_v63 = vor.u32 %v8210_v20, %v8208_v60  ;;  %v5642_v24 = vld [vmem:[%s6868_s18 + $0x78] sm:$0xe]  ;;  %v8301_v58 = vrot.slane %v4098_v13, 5  ;;  %v5591_v13 = vld [vmem:[%s6868_s18 + $0xcc] sm:$0xf] }
 0x115   : > { %6289 = vmatmul.mubr.bf16.gmra.mrb[12].mxu0 %v5617_v25  ;;  %v8278_v25 = vrot.slane %v4106_v23, 5  ;;  %v8282_v16 = vsel %vm7182_vm5, %v5657_v8, %v4587_v3  ;;  %v4589_v56 = vrot.slane %v4587_v3, 4  ;;  %v8299_v23 = vcombine.low %v4067_v39, %v4077_v19  ;;  %v5341_v48 = vld [vmem:[%s6868_s18 + $0x78] sm:$0xf]  ;;  %v8713_v19 = vld [vmem:[#allocation8_spill] sm:$0xff] }
 0x116   : > { %6065 = vmatmul.mubr.bf16.gmra.mrb[28].mxu1 %v5233_v49  ;;  %6292 = vmatprep.mubr.bf16.mxu0 %v5618_v43  ;;  %v4116_v49 = vshrl.u32 %v8223_v52, 16  ;;  %v8296_v43 = vsel %vm7182_vm5, %v4582_v2, %v4583_v31  ;;  %v4095_v35 = vor.u32 %v8233_v6, %v8212_v50  ;;  %v8312_v60 = vrot.slane %v4112_v32, 5  ;;  %v8326_v32 = vld [vmem:[%s6868_s18 + $0xd0] sm:$0xf]  ;;  %v8716_v2 = vld [vmem:[#allocation9_spill] sm:$0xff] }
 0x117   : > { %6084 = vmatprep.mubr.bf16.mxu1 %v6738_v14  ;;  %6321 = vmatpush3.bf16.msra.mxu0 %v6746_v7  ;;  %v5688_v18 = vcombine.low %v8267_v42, %v8296_v43  ;;  %v8307_v44 = vsel %vm7182_vm5, %v4589_v56, %v4590_v1  ;;  %v4122_v20 = vshll.u32 %v8274_v27, 16  ;;  %v5643_v7 = vld [vmem:[%s6868_s18 + $0x84] sm:$0xe]  ;;  %v4109_v61 = vor.u32 %v8278_v25, %v8276_v45  ;;  %v8717_v25 = vld [vmem:[#allocation12_spill] sm:$0xff]  ;;  %v6819_v0 = vld [vmem:[%s6868_s18 + $0x8c] sm:$0x1] }
 0x118   : > { %6322 = vmatprep.subr.bf16.mxu0 %v6749_v57  ;;  %v5689_v39 = vcombine.low %v8282_v16, %v8307_v44  ;;  %v5658_v15 = vrot.slane %v5642_v24, 9  ;;  %v4594_v33 = vrot.slane %v8713_v19, 5  ;;  %v4597_v34 = vrot.slane %v8714_v29, 5 }
 0x119   : > { %v4118_v6 = vrot.slane %v4116_v49, 4  ;;  %v2344_v4 = vshrl.u32 %v5341_v48, 16  ;;  %v2347_v14 = vshll.u32 %v5341_v48, 16  ;;  %v2366_v17 = vsel %vm6936_vm2, %v8111_v51, %v8715_v54 }
 0x11a   : > { %v4127_v47 = vshrl.u32 %v5591_v13, 16  ;;  %v8334_v30 = vsel %vm7182_vm5, %v5658_v15, %v4594_v33  ;;  %v4596_v31 = vrot.slane %v4594_v33, 4  ;;  %v5659_v8 = vrot.slane %v5643_v7, 9  ;;  %v6799_v7 = vld [vmem:[%s8654_s1 + $0x108] sm:$0xff]  }
 0x11b   : > { %6323 = vmatpush3.bf16.msra.mxu0 %v6749_v57  ;;  %v4130_v53 = vshll.u32 %v5591_v13, 16  ;;  %v2346_v3 = vrot.slane %v2344_v4, 4  ;;  %v2349_v57 = vrot.slane %v2347_v14, 5  ;;  %v4601_v5 = vrot.slane %v8716_v2, 5  ;;  %v5644_v13 = vld [vmem:[%s6868_s18 + $0x90] sm:$0xe] }
 0x11c   : > { %v4136_v51 = vshll.u32 %v8326_v32, 16  ;;  %v4140_v1 = vshrl.u32 %v8326_v32, 16  ;;  %v8343_v45 = vsel %vm7182_vm5, %v4596_v31, %v4597_v34  ;;  %v4604_v56 = vrot.slane %v8717_v25, 5  ;;  %v6742_v4 = vld [vmem:[%s6868_s18 + $0x30] sm:$0xff]  }
 0x11d   : > { %6293 = vmatmul.mubr.bf16.gmra.mrb[16].mxu0 %v8181_v59  ;;  %v8718_v59 = vld [vmem:[#allocation15_spill] sm:$0xff]  ;;  %v4119_v49 = vor.u32 %v4118_v6, %v8312_v60  ;;  %v2350_v24 = vor.u32 %v2349_v57, %v2346_v3  ;;  %v4603_v48 = vrot.slane %v4601_v5, 4  ;;  %v4096_v15 = vrot.slane %v4095_v35, 4  ;;  %v8364_v14 = vld [vmem:[%s6868_s18 + $0xd4] sm:$0x1]  ;;  %v8719_v3 = vld [vmem:[#allocation10_spill] sm:$0xff] }
 0x11e   : > { %6085 = vmatmul.mubr.bf16.vlgmr.msra.gmra.mrb[0].mxu1 %v6739_v41  ;;  %6296 = vmatprep.mubr.bf16.mxu0 %v8183_v36  ;;  %v5690_v36 = vcombine.low %v8334_v30, %v8343_v45  ;;  %v4086_v41 = vrot.slane %v4085_v63, 4  ;;  %v4124_v19 = vrot.slane %v4122_v20, 5  ;;  %v8356_v33 = vsel %vm7182_vm5, %v5659_v8, %v4601_v5  ;;  %v6744_v20 = vld [vmem:[%s6868_s18 + $0x3c] sm:$0xff]   ;;  %v6800_v2 = vld [vmem:[%s8654_s1 + $0x110] sm:$0xff]  }
 0x11f   : > { %6364 = vmatpush3.bf16.msra.mxu1 %v8718_v59  ;;  %6088 = vmatprep.mubr.bf16.mxu1 %v6741_v40  ;;  %v4129_v29 = vrot.slane %v4127_v47, 4  ;;  %v4132_v34 = vrot.slane %v4130_v53, 5  ;;  %v2351_v40 = vrot.slane %v2350_v24, 4  ;;  %v8360_v6 = vsel %vm7182_vm5, %v4603_v48, %v4604_v56  ;;  %v6801_v48 = vld [vmem:[%s6868_s18 + $0x1c] sm:$0xf] }
 0x120   : > { %6357 = vmatprep.subr.bf16.mxu1 %v6799_v7  ;;  %v8366_v54 = vrot.slane %v4136_v51, 5  ;;  %v4142_v31 = vrot.slane %v4140_v1, 4  ;;  %v5691_v63 = vcombine.low %v8356_v33, %v8360_v6  ;;  %v5660_v35 = vrot.slane %v5644_v13, 9 }
 0x121   : > { %v4110_v8 = vrot.slane %v4109_v61, 4  ;;  %v4120_v47 = vrot.slane %v4119_v49, 4  ;;  %v2356_v53 = vsel %vm6936_vm2, %v2351_v40, %v7512_v12  ;;  %v4608_v57 = vrot.slane %v8719_v3, 5  ;;  %v8720_v12 = vld [vmem:[#allocation14_spill] sm:$0xff]  ;;  %v6745_v40 = vld [vmem:[%s6868_s18 + $0x48] sm:$0xff]  }
 0x122   : > { %v4091_v5 = vsel %vm6936_vm2, %v4086_v41, %v8212_v50  ;;  %v4101_v61 = vsel %vm6936_vm2, %v4096_v15, %v8301_v58  ;;  %v8384_v51 = vcombine.low %v2356_v53, %v2366_v17  ;;  %v4611_v1 = vrot.slane %v8720_v12, 5  ;;  %v5634_v58 = vld [vmem:[%s6868_s18 + $0x18] sm:$0xe]  ;;  %v5645_v17 = vld [vmem:[%s6868_s18 + $0x9c] sm:$0xe] }
 0x123   : > { %6365 = vmatpush3.bf16.msra.mxu1 %v6799_v7  ;;  %v4133_v25 = vor.u32 %v4132_v34, %v4129_v29  ;;  %v4146_v56 = vshll.u32 %v8364_v14, 16  ;;  %v8391_v59 = vsel %vm7182_vm5, %v5660_v35, %v4608_v57  ;;  %v4610_v49 = vrot.slane %v4608_v57, 4  ;;  %v6802_v41 = vld [vmem:[%s8654_s1 + $0x118] sm:$0xff]   ;;  %v6803_v3 = vld [vmem:[%s6868_s18 + $0x20] sm:$0x1] }
 0x124   : > { %6358 = vmatprep.subr.bf16.mxu1 %v6800_v2  ;;  %v4143_v50 = vor.u32 %v4142_v31, %v8366_v54  ;;  %v4125_v24 = vsel %vm6936_vm2, %v4120_v47, %v4124_v19  ;;  %v4538_v13 = vrot.slane %v6801_v48, 5  ;;  %v5623_v7 = vcombine.low %v4091_v5, %v4101_v61  ;;  %v8721_v35 = vld [vmem:[#allocation13_spill] sm:$0xff]  ;;  %v5646_v12 = vld [vmem:[%s6868_s18 + $0xa8] sm:$0xe] }
 0x125   : > { %6297 = vmatmul.mubr.bf16.gmra.mrb[20].mxu0 %v8289_v37  ;;  %v4115_v37 = vsel %vm6936_vm2, %v4110_v8, %v8312_v60  ;;  %v4134_v15 = vrot.slane %v4133_v25, 4  ;;  %v4148_v29 = vrot.slane %v4146_v56, 5  ;;  %v5650_v19 = vrot.slane %v5634_v58, 9  ;;  %v6747_v47 = vld [vmem:[%s6868_s18 + $0x54] sm:$0xff]   ;;  %v5635_v56 = vld [vmem:[%s6868_s18 + $0x24] sm:$0xe] }
 0x126   : > { %6089 = vmatmul.mubr.bf16.gmra.mrb[4].mxu1 %v6742_v4  ;;  %6300 = vmatprep.mubr.bf16.mxu0 %v8299_v23  ;;  %v8405_v23 = vsel %vm7182_vm5, %v4610_v49, %v4611_v1  ;;  %v5661_v34 = vrot.slane %v5645_v17, 9  ;;  %v5624_v4 = vcombine.low %v4115_v37, %v4125_v24  ;;  %v4144_v31 = vrot.slane %v4143_v50, 4  ;;  %v6805_v49 = vld [vmem:[%s6868_s18 + $0x28] sm:$0xf]  ;;  %v6806_v37 = vld [vmem:[%s6868_s18 + $0x34] sm:$0xf] }
 0x127   : > { %6092 = vmatprep.mubr.bf16.mxu1 %v6744_v20  ;;  %6366 = vmatpush3.bf16.msra.mxu1 %v6800_v2  ;;  %v5692_v60 = vcombine.low %v8391_v59, %v8405_v23  ;;  %v4615_v20 = vrot.slane %v8721_v35, 5  ;;  %v4618_v8 = vrot.slane %v8094_v26, 5  ;;  %v4540_v53 = vrot.slane %v4538_v13, 4  ;;  %v6804_v2 = vld [vmem:[%s8654_s1 + $0x120] sm:$0xff]  }
 0x128   : > { %6359 = vmatprep.subr.bf16.mxu1 %v6802_v41  ;;  %v4541_v57 = vrot.slane %v6803_v3, 5  ;;  %v4539_v26 = vsel %vm7182_vm5, %v5650_v19, %v4538_v13  ;;  %v4139_v1 = vsel %vm6936_vm2, %v4134_v15, %v8366_v54  ;;  %v4149_v25 = vsel %vm6936_vm2, %v4144_v31, %v4148_v29  ;;  %v5636_v13 = vld [vmem:[%s6868_s18 + $0x30] sm:$0xe]  ;;  %v6748_v31 = vld [vmem:[%s6868_s18 + $0x60] sm:$0xff]  }
 0x129   : > { %v8422_v5 = vsel %vm7182_vm5, %v5661_v34, %v4615_v20  ;;  %v4617_v61 = vrot.slane %v4615_v20, 4  ;;  %v4545_v50 = vrot.slane %v6805_v49, 5  ;;  %v4552_v24 = vrot.slane %v6806_v37, 5  ;;  %v6808_v34 = vld [vmem:[%s6868_s18 + $0x2c] sm:$0x1] }
 0x12a   : > { %v4542_v17 = vsel %vm7182_vm5, %v4540_v53, %v4541_v57  ;;  %v5662_v48 = vrot.slane %v5646_v12, 9  ;;  %v5625_v29 = vcombine.low %v4139_v1, %v4149_v25  ;;  %v5651_v19 = vrot.slane %v5635_v56, 9  ;;  %v6750_v53 = vld [vmem:[%s6868_s18 + $0x6c] sm:$0xff]   ;;  %v5647_v12 = vld [vmem:[%s6868_s18 + $0xb4] sm:$0xe] }
 0x12b   : > { %6367 = vmatpush3.bf16.msra.mxu1 %v6802_v41  ;;  %v8436_v58 = vsel %vm7182_vm5, %v4617_v61, %v4618_v8  ;;  %v8722_v41 = vld [vmem:[#allocation16_spill] sm:$0xff]  ;;  %v5682_v35 = vcombine.low %v4539_v26, %v4542_v17  ;;  %v4547_v20 = vrot.slane %v4545_v50, 4  ;;  %v5652_v3 = vrot.slane %v5636_v13, 9  ;;  %v5637_v1 = vld [vmem:[%s6868_s18 + $0x3c] sm:$0xe] }
 0x12c   : > { %6360 = vmatprep.subr.bf16.mxu1 %v6804_v2  ;;  %v5693_v54 = vcombine.low %v8422_v5, %v8436_v58  ;;  %v4622_v15 = vrot.slane %v8722_v41, 5  ;;  %v4554_v57 = vrot.slane %v4552_v24, 4  ;;  %v6810_v25 = vld [vmem:[%s6868_s18 + $0x40] sm:$0xf]  ;;  %v4546_v49 = vsel %vm7182_vm5, %v5651_v19, %v4545_v50  ;;  %v6812_v19 = vld [vmem:[%s6868_s18 + $0x44] sm:$0x1] }
 0x12d   : > { %6301 = vmatmul.mubr.bf16.gmra.mrb[24].mxu0 %v5623_v7  ;;  %v6807_v7 = vld [vmem:[%s8654_s1 + $0x128] sm:$0xff]   ;;  %v4559_v56 = vrot.slane %v6810_v25, 5  ;;  %v4629_v13 = vrot.slane %v8141_v11, 5  ;;  %v4553_v50 = vsel %vm7182_vm5, %v5652_v3, %v4552_v24  ;;  %v6813_v11 = vld [vmem:[%s8654_s1 + $0x138] sm:$0xff]   ;;  %v5648_v24 = vld [vmem:[%s6868_s18 + $0xc0] sm:$0xe] }
 0x12e   : > { %6093 = vmatmul.mubr.bf16.gmra.mrb[8].mxu1 %v6745_v40  ;;  %6304 = vmatprep.mubr.bf16.mxu0 %v5624_v4  ;;  %v4548_v40 = vrot.slane %v6808_v34, 5  ;;  %v4625_v4 = vrot.slane %v8129_v22, 5  ;;  %v8453_v8 = vsel %vm7182_vm5, %v5662_v48, %v4622_v15  ;;  %v6811_v22 = vld [vmem:[%s8654_s1 + $0x130] sm:$0xff]   ;;  %v5663_v48 = vrot.slane %v5647_v12, 9 }
 0x12f   : > { %6096 = vmatprep.mubr.bf16.mxu1 %v6747_v47  ;;  %6368 = vmatpush3.bf16.msra.mxu1 %v6804_v2  ;;  %v4624_v47 = vrot.slane %v4622_v15, 4  ;;  %v6809_v2 = vld [vmem:[%s6868_s18 + $0x38] sm:$0x1]  ;;  %v5653_v15 = vrot.slane %v5637_v1, 9  ;;  %v4562_v34 = vrot.slane %v6812_v19, 5  ;;  %v4636_v12 = vrot.slane %v8223_v52, 5 }
 0x130   : > { %6361 = vmatprep.subr.bf16.mxu1 %v6807_v7  ;;  %v4555_v61 = vrot.slane %v6809_v2, 5  ;;  %v4549_v37 = vsel %vm7182_vm5, %v4547_v20, %v4548_v40  ;;  %v4631_v40 = vrot.slane %v4629_v13, 4  ;;  %v5338_v20 = vld [vmem:[%s6868_s18 + $0x6c] sm:$0xf]  ;;  %v6753_v19 = vld [vmem:[%s6868_s18 + $0x90] sm:$0xff]   ;;  %v2387_v21 = vshll.u32 %v6819_v0, 16 }
 0x131   : > { %v8465_v26 = vsel %vm7182_vm5, %v4624_v47, %v4625_v4  ;;  %v5683_v4 = vcombine.low %v4546_v49, %v4549_v37  ;;  %v4560_v2 = vsel %vm7182_vm5, %v5653_v15, %v4559_v56  ;;  %v2320_v1 = vshrl.u32 %v5338_v20, 16  ;;  %v5649_v52 = vld [vmem:[%s6868_s18 + $0xcc] sm:$0xe] }
 0x132   : > { %v5694_v17 = vcombine.low %v8453_v8, %v8465_v26  ;;  %v4556_v41 = vsel %vm7182_vm5, %v4554_v57, %v4555_v61  ;;  %v5664_v57 = vrot.slane %v5648_v24, 9  ;;  %v2323_v25 = vshll.u32 %v5338_v20, 16 }
 0x133   : > { %6369 = vmatpush3.bf16.msra.mxu1 %v6807_v7  ;;  %v4632_v7 = vrot.slane %v8162_v28, 5  ;;  %v8485_v28 = vsel %vm7182_vm5, %v5663_v48, %v4629_v13  ;;  %v4639_v37 = vrot.slane %v8274_v27, 5  ;;  %v4638_v13 = vrot.slane %v4636_v12, 4 }
 0x134   : > { %6362 = vmatprep.subr.bf16.mxu1 %v6811_v22  ;;  %v2325_v27 = vrot.slane %v2323_v25, 5  ;;  %v4646_v24 = vrot.slane %v8364_v14, 5 }
 0x135   : > { %6305 = vmatmul.mubr.bf16.gmra.mrb[28].mxu0 %v5625_v29  ;;  %v4561_v29 = vrot.slane %v4559_v56, 4  ;;  %v8492_v47 = vsel %vm7182_vm5, %v4631_v40, %v4632_v7  ;;  %v8506_v56 = vsel %vm7182_vm5, %v5664_v57, %v4636_v12  ;;  %v4643_v40 = vrot.slane %v8326_v32, 5  ;;  %v6815_v57 = vld [vmem:[%s6868_s18 + $0x74] sm:$0x1] }
 0x136   : > { %6097 = vmatmul.mubr.bf16.gmra.mrb[12].mxu1 %v6748_v31  ;;  %6324 = vmatprep.mubr.bf16.mxu0 %v5682_v35  ;;  %v6751_v31 = vld [vmem:[%s6868_s18 + $0x78] sm:$0xff]   ;;  %v5684_v35 = vcombine.low %v4553_v50, %v4556_v41  ;;  %v5695_v3 = vcombine.low %v8485_v28, %v8492_v47  ;;  %v8511_v50 = vsel %vm7182_vm5, %v4638_v13, %v4639_v37  ;;  %v2322_v41 = vrot.slane %v2320_v1, 4  ;;  %v6816_v1 = vld [vmem:[%s6868_s18 + $0x88] sm:$0xf] }
 0x137   : > { %6100 = vmatprep.mubr.bf16.mxu1 %v6750_v53  ;;  %6370 = vmatpush3.bf16.msra.mxu1 %v6811_v22  ;;  %v6752_v53 = vld [vmem:[%s6868_s18 + $0x84] sm:$0xff]   ;;  %v4563_v61 = vsel %vm7182_vm5, %v4561_v29, %v4562_v34  ;;  %v6814_v22 = vld [vmem:[%s6868_s18 + $0x70] sm:$0xf]  ;;  %v5696_v29 = vcombine.low %v8506_v56, %v8511_v50  ;;  %v4645_v20 = vrot.slane %v4643_v40, 4  ;;  %v2377_v25 = vshll.u32 %v6816_v1, 16 }
 0x138   : > { %6363 = vmatprep.subr.bf16.mxu1 %v6813_v11  ;;  %v2329_v49 = vshll.u32 %v6814_v22, 16  ;;  %v2333_v48 = vshrl.u32 %v6814_v22, 16  ;;  %v5685_v7 = vcombine.low %v4560_v2, %v4563_v61  ;;  %v2339_v2 = vshll.u32 %v6815_v57, 16 }
 0x139   : > { %v8533_v12 = vsel %vm7182_vm5, %v4645_v20, %v4646_v24  ;;  %v2381_v22 = vshrl.u32 %v6816_v1, 16  ;;  %v6818_v20 = vld [vmem:[%s6868_s18 + $0xa0] sm:$0xf] }
 0x13a   : > { %v8513_v15 = vrot.slane %v2329_v49, 5  ;;  %v2335_v34 = vrot.slane %v2333_v48, 4  ;;  %v2429_v57 = vshrl.u32 %v6818_v20, 16 }
 0x13b   : > { %6371 = vmatpush3.bf16.msra.mxu1 %v6813_v11  ;;  %v5665_v11 = vrot.slane %v5649_v52, 9 }
 0x13c   : > { %v2336_v32 = vor.u32 %v2335_v34, %v8513_v15  ;;  %v2395_v34 = vshll.u32 %v5347_v62, 16 }
 0x13d   : > { %6325 = vmatmul.mubr.bf16.vlgmr.msra.gmra.mrb[0].mxu0 %v5683_v4  ;;  %v6754_v4 = vld [vmem:[%s6868_s18 + $0x9c] sm:$0xff]  }
 0x13e   : > { %6101 = vmatmul.mubr.bf16.gmra.mrb[16].mxu1 %v6751_v31  ;;  %6328 = vmatprep.mubr.bf16.mxu0 %v5684_v35  ;;  %v5344_v31 = vld [vmem:[%s6868_s18 + $0x84] sm:$0xf]  ;;  %v8524_v35 = vsel %vm7182_vm5, %v5665_v11, %v4643_v40  ;;  %v2337_v48 = vrot.slane %v2336_v32, 4  ;;  %v6817_v11 = vld [vmem:[%s6868_s18 + $0x94] sm:$0xf]  ;;  %v2397_v1 = vrot.slane %v2395_v34, 5 }
 0x13f   : > { %6104 = vmatprep.mubr.bf16.mxu1 %v6752_v53  ;;  %v2326_v53 = vor.u32 %v2325_v27, %v2322_v41  ;;  %v2368_v14 = vshrl.u32 %v5344_v31, 16  ;;  %v2371_v61 = vshll.u32 %v5344_v31, 16  ;;  %v5697_v49 = vcombine.low %v8524_v35, %v8533_v12 }
 0x140   : > { %v8542_v41 = vrot.slane %v2377_v25, 5  ;;  %v2383_v27 = vrot.slane %v2381_v22, 4  ;;  %v2401_v40 = vshll.u32 %v6817_v11, 16  ;;  %v2405_v24 = vshrl.u32 %v6817_v11, 16  ;;  %v6821_v11 = vld [vmem:[%s6868_s18 + $0xa4] sm:$0x1] }
 0x141   : > { %v2327_v37 = vrot.slane %v2326_v53, 4  ;;  %v2370_v13 = vrot.slane %v2368_v14, 4  ;;  %v2373_v52 = vrot.slane %v2371_v61, 5  ;;  %v2425_v53 = vshll.u32 %v6818_v20, 16  ;;  %v6822_v20 = vld [vmem:[%s6868_s18 + $0xac] sm:$0xf] }
 0x142   : > { %v2384_v14 = vor.u32 %v2383_v27, %v8542_v41  ;;  %v8559_v42 = vrot.slane %v2401_v40, 5  ;;  %v2407_v43 = vrot.slane %v2405_v24, 4  ;;  %v2431_v22 = vrot.slane %v2429_v57, 4  ;;  %v5356_v24 = vld [vmem:[%s6868_s18 + $0xb4] sm:$0xf] }
 0x143   : > { %v2435_v40 = vshll.u32 %v6821_v11, 16  ;;  %v2453_v16 = vshrl.u32 %v6822_v20, 16  ;;  %v2467_v0 = vshll.u32 %v5356_v24, 16 }
 0x144   : > { %v2408_v27 = vor.u32 %v2407_v43, %v8559_v42 }
 0x145   : > { %6329 = vmatmul.mubr.bf16.gmra.mrb[4].mxu0 %v5685_v7  ;;  %v5350_v7 = vld [vmem:[%s6868_s18 + $0x9c] sm:$0xf] }
 0x146   : > { %6105 = vmatmul.mubr.bf16.gmra.mrb[20].mxu1 %v6753_v19  ;;  %6332 = vmatprep.mubr.bf16.mxu0 %v5686_v9  ;;  %v2341_v9 = vrot.slane %v2339_v2, 5  ;;  %v2392_v19 = vshrl.u32 %v5347_v62, 16  ;;  %v2419_v31 = vshll.u32 %v5350_v7, 16  ;;  %v2332_v2 = vsel %vm6936_vm2, %v2327_v37, %v8513_v15  ;;  %v6757_v62 = vld [vmem:[%s6868_s18 + $0xc0] sm:$0xff]  }
 0x147   : > { %6108 = vmatprep.mubr.bf16.mxu1 %v6754_v4  ;;  %v2416_v4 = vshrl.u32 %v5350_v7, 16  ;;  %v8561_v15 = vrot.slane %v2425_v53, 5  ;;  %v2449_v53 = vshll.u32 %v6822_v20, 16 }
 0x148   : > { %v2342_v32 = vsel %vm6936_vm2, %v2337_v48, %v2341_v9  ;;  %v2394_v61 = vrot.slane %v2392_v19, 4  ;;  %v2421_v25 = vrot.slane %v2419_v31, 5  ;;  %v2389_v9 = vrot.slane %v2387_v21, 5  ;;  %v6823_v21 = vld [vmem:[%s6868_s18 + $0xb8] sm:$0xf] }
 0x149   : > { %v2385_v48 = vrot.slane %v2384_v14, 4  ;;  %v2432_v34 = vor.u32 %v2431_v22, %v8561_v15  ;;  %v2473_v30 = vshll.u32 %v6823_v21, 16  ;;  %v2477_v45 = vshrl.u32 %v6823_v21, 16 }
 0x14b   : > { %v2433_v14 = vrot.slane %v2432_v34, 4 }
 0x14d   : > { %6333 = vmatmul.mubr.bf16.gmra.mrb[8].mxu0 %v5687_v55  ;;  %v2374_v55 = vor.u32 %v2373_v52, %v2370_v13  ;;  %v2398_v13 = vor.u32 %v2397_v1, %v2394_v61  ;;  %v6820_v52 = vld [vmem:[%s6868_s18 + $0x98] sm:$0x1]  ;;  %v2437_v61 = vrot.slane %v2435_v40, 5 }
 0x14e   : > { %6109 = vmatmul.mubr.bf16.gmra.mrb[24].mxu1 %v6755_v46  ;;  %6336 = vmatprep.mubr.bf16.mxu0 %v5688_v18  ;;  %v2418_v18 = vrot.slane %v2416_v4, 4  ;;  %v5386_v46 = vcombine.low %v2332_v2, %v2342_v32  ;;  %v2411_v7 = vshll.u32 %v6820_v52, 16  ;;  %v2464_v32 = vshrl.u32 %v5356_v24, 16 }
 0x14f   : > { %6112 = vmatprep.mubr.bf16.mxu1 %v6756_v10  ;;  %v2375_v37 = vrot.slane %v2374_v55, 4  ;;  %v5353_v10 = vld [vmem:[%s6868_s18 + $0xa8] sm:$0xf]  ;;  %v2399_v57 = vrot.slane %v2398_v13, 4  ;;  %v2438_v33 = vsel %vm6936_vm2, %v2433_v14, %v2437_v61 }
 0x150   : > { %v2422_v19 = vor.u32 %v2421_v25, %v2418_v18  ;;  %v2440_v4 = vshrl.u32 %v5353_v10, 16  ;;  %v2443_v31 = vshll.u32 %v5353_v10, 16  ;;  %v2413_v2 = vrot.slane %v2411_v7, 5 }
 0x151   : > { %v2380_v44 = vsel %vm6936_vm2, %v2375_v37, %v8542_v41  ;;  %v2451_v18 = vrot.slane %v2449_v53, 5  ;;  %v2455_v25 = vrot.slane %v2453_v16, 4  ;;  %v2466_v22 = vrot.slane %v2464_v32, 4  ;;  %v5359_v37 = vld [vmem:[%s6868_s18 + $0xc0] sm:$0xf] }
 0x152   : > { %v2423_v55 = vrot.slane %v2422_v19, 4  ;;  %v2442_v1 = vrot.slane %v2440_v4, 4  ;;  %v2445_v43 = vrot.slane %v2443_v31, 5  ;;  %v2488_v10 = vshrl.u32 %v5359_v37, 16  ;;  %v6825_v19 = vld [vmem:[%s6868_s18 + $0xc4] sm:$0xf] }
 0x153   : > { %v2497_v34 = vshll.u32 %v6825_v19, 16 }
 0x154   : > { %v2428_v52 = vsel %vm6936_vm2, %v2423_v55, %v8561_v15  ;;  %v2446_v6 = vor.u32 %v2445_v43, %v2442_v1  ;;  %v2501_v15 = vshrl.u32 %v6825_v19, 16  ;;  %v2490_v20 = vrot.slane %v2488_v10, 4 }
 0x155   : > { %6337 = vmatmul.mubr.bf16.gmra.mrb[12].mxu0 %v5689_v39  ;;  %v2390_v39 = vsel %vm6936_vm2, %v2385_v48, %v2389_v9  ;;  %v2479_v9 = vrot.slane %v2477_v45, 4  ;;  %v2404_v48 = vsel %vm6936_vm2, %v2399_v57, %v8559_v42  ;;  %v6824_v42 = vld [vmem:[%s6868_s18 + $0xb0] sm:$0x1]  ;;  %v5390_v59 = vcombine.low %v2428_v52, %v2438_v33  ;;  %v6827_v45 = vld [vmem:[%s6868_s18 + $0xc8] sm:$0x1] }
 0x156   : > { %6113 = vmatmul.mubr.bf16.gmra.mrb[28].mxu1 %v6757_v62  ;;  %6340 = vmatprep.mubr.bf16.mxu0 %v5690_v36  ;;  %v2409_v36 = vrot.slane %v2408_v27, 4  ;;  %v5388_v41 = vcombine.low %v2380_v44, %v2390_v39  ;;  %v2469_v62 = vrot.slane %v2467_v0, 5  ;;  %v2459_v7 = vshll.u32 %v6824_v42, 16 }
 0x157   : > { %6148 = vmatprep.mubr.bf16.mxu1 %v5386_v46  ;;  %v2475_v46 = vrot.slane %v2473_v30, 5  ;;  %v2491_v27 = vshll.u32 %v5359_v37, 16  ;;  %v2447_v23 = vrot.slane %v2446_v6, 4  ;;  %v2499_v16 = vrot.slane %v2497_v34, 5 }
 0x158   : > { %v2414_v13 = vsel %vm6936_vm2, %v2409_v36, %v2413_v2  ;;  %v2470_v11 = vor.u32 %v2469_v62, %v2466_v22  ;;  %v2461_v31 = vrot.slane %v2459_v7, 5  ;;  %v2503_v44 = vrot.slane %v2501_v15, 4 }
 0x159   : > { %v2480_v40 = vor.u32 %v2479_v9, %v2475_v46  ;;  %v5389_v4 = vcombine.low %v2404_v48, %v2414_v13  ;;  %v2493_v53 = vrot.slane %v2491_v27, 5  ;;  %v2452_v32 = vsel %vm6936_vm2, %v2447_v23, %v2451_v18 }
 0x15a   : > { %v2471_v39 = vrot.slane %v2470_v11, 4  ;;  %v2504_v30 = vor.u32 %v2503_v44, %v2499_v16  ;;  %v2507_v36 = vshll.u32 %v6827_v45, 16 }
 0x15b   : > { %v2481_v57 = vrot.slane %v2480_v40, 4  ;;  %v2494_v21 = vor.u32 %v2493_v53, %v2490_v20 }
 0x15c   : > { %v2476_v5 = vsel %vm6936_vm2, %v2471_v39, %v2475_v46  ;;  %v2509_v55 = vrot.slane %v2507_v36, 5 }
 0x15d   : > { %6341 = vmatmul.mubr.bf16.gmra.mrb[16].mxu0 %v5691_v63  ;;  %v2456_v63 = vor.u32 %v2455_v25, %v2451_v18  ;;  %v2495_v26 = vrot.slane %v2494_v21, 4 }
 0x15e   : > { %6149 = vmatmul.mubr.bf16.vlgmr.msra.gmra.mrb[16].mxu1 %v8384_v51  ;;  %6344 = vmatprep.mubr.bf16.mxu0 %v5692_v60  ;;  %v6826_v51 = vld [vmem:[%s6868_s18 + $0xbc] sm:$0x1] }
 0x15f   : > { %6152 = vmatprep.mubr.bf16.mxu1 %v5388_v41  ;;  %v2483_v24 = vshll.u32 %v6826_v51, 16  ;;  %v2457_v60 = vrot.slane %v2456_v63, 4  ;;  %v2500_v14 = vsel %vm6936_vm2, %v2495_v26, %v2499_v16 }
 0x161   : > { %v2485_v2 = vrot.slane %v2483_v24, 5  ;;  %v2462_v0 = vsel %vm6936_vm2, %v2457_v60, %v2461_v31 }
 0x163   : > { %v2486_v58 = vsel %vm6936_vm2, %v2481_v57, %v2485_v2 }
 0x164   : > { %v5392_v8 = vcombine.low %v2476_v5, %v2486_v58 }
 0x165   : > { %6345 = vmatmul.mubr.bf16.gmra.mrb[20].mxu0 %v5693_v54  ;;  %v5391_v54 = vcombine.low %v2452_v32, %v2462_v0 }
 0x166   : > { %6153 = vmatmul.mubr.bf16.gmra.mrb[20].mxu1 %v5389_v4  ;;  %6348 = vmatprep.mubr.bf16.mxu0 %v5694_v17  ;;  %v2505_v17 = vrot.slane %v2504_v30, 4 }
 0x167   : > { %6156 = vmatprep.mubr.bf16.mxu1 %v5390_v59 }
 0x168   : > { %v2510_v61 = vsel %vm6936_vm2, %v2505_v17, %v2509_v55 }
 0x169   : > { %v5393_v1 = vcombine.low %v2500_v14, %v2510_v61 }
 0x16d   : > { %6349 = vmatmul.mubr.bf16.gmra.mrb[24].mxu0 %v5695_v3 }
 0x16e   : > { %6157 = vmatmul.mubr.bf16.gmra.mrb[24].mxu1 %v5391_v54  ;;  %6352 = vmatprep.mubr.bf16.mxu0 %v5696_v29 }
 0x16f   : > { %6160 = vmatprep.mubr.bf16.mxu1 %v5392_v8 }
 0x175   : > { %6353 = vmatmul.mubr.bf16.gmra.mrb[28].mxu0 %v5697_v49 }
 0x176   : > { %6161 = vmatmul.mubr.bf16.gmra.mrb[28].mxu1 %v5393_v1 }
 0x1f1   : > { %v6086_v28 = vpop.f32.mrb[0].mxu1 }
 0x1f2   : > { %v1920_v47 = vpop.f32.mrb[1].mxu1 }
 0x1f3   : > { %v6087_v3 = vpop.f32.mrb[2].mxu1 }
 0x1f4   : > { %v1923_v43 = vpop.f32.mrb[3].mxu1 }
 0x1f9   : > { %v6090_v18 = vpop.f32.mrb[4].mxu1 }
 0x1fa   : > { %v1936_v56 = vpop.f32.mrb[5].mxu1 }
 0x1fb   : > { %v6091_v50 = vpop.f32.mrb[6].mxu1 }
 0x1fc   : > { %v1939_v29 = vpop.f32.mrb[7].mxu1 }
 0x201   : > { %v6094_v25 = vpop.f32.mrb[8].mxu1 }
 0x202   : > { %v1952_v41 = vpop.f32.mrb[9].mxu1 }
 0x203   : > { %v6095_v22 = vpop.f32.mrb[10].mxu1 }
 0x204   : > { %v1955_v62 = vpop.f32.mrb[11].mxu1 }
 0x209   : > { %v6098_v38 = vpop.f32.mrb[12].mxu1 }
 0x20a   : > { %v1968_v46 = vpop.f32.mrb[13].mxu1 }
 0x20b   : > { %v8632_v9 = vpop.f32.mrb[14].mxu1 }
 0x20c   : > { %v8634_v37 = vpop.f32.mrb[15].mxu1 }
 0x210   : > { %v6326_v35 = vpop.f32.mrb[0].mxu0 }
 0x211   : > { %v6372_v12 = vadd.f32 %v6326_v35, %v6086_v28  ;;  %v4811_v49 = vpop.f32.mrb[1].mxu0 }
 0x212   : > { %v6373_v48 = vadd.f32 %v4811_v49, %v1920_v47  ;;  %v6327_v13 = vpop.f32.mrb[2].mxu0 }
 0x213   : > { %v6374_v52 = vadd.f32 %v6327_v13, %v6087_v3  ;;  %v4814_v33 = vpop.f32.mrb[3].mxu0  ;;  %v5013_v10 = vmul.f32 %v6372_v12, %v6372_v12 }
 0x214   : > { %v6375_v6 = vadd.f32 %v4814_v33, %v1923_v43  ;;  %v5011_v63 = vmul.f32 %v6373_v48, %v6373_v48 }
 0x215   : > { %v5014_v40 = vmul.f32 %v6374_v52, %v6374_v52 }
 0x216   : > { %v4971_v42 = vadd.f32 %v6375_v6, %v6373_v48  ;;  %v5012_v7 = vmul.f32 %v6375_v6, %v6375_v6 }
 0x218   : > { %v4972_v27 = vadd.f32 %v6372_v12, %v4971_v42  ;;  %v5043_v19 = vadd.f32 %v5012_v7, %v5011_v63  ;;  %v6330_v34 = vpop.f32.mrb[4].mxu0 }
 0x219   : > { %v6376_v15 = vadd.f32 %v6330_v34, %v6090_v18  ;;  %v4827_v11 = vpop.f32.mrb[5].mxu0 }
 0x21a   : > { %v5044_v51 = vadd.f32 %v5043_v19, %v5013_v10  ;;  %v6377_v24 = vadd.f32 %v4827_v11, %v1936_v56  ;;  %v4973_v4 = vadd.f32 %v6374_v52, %v4972_v27  ;;  %v6331_v59 = vpop.f32.mrb[6].mxu0 }
 0x21b   : > { %v6378_v23 = vadd.f32 %v6331_v59, %v6091_v50  ;;  %v4830_v60 = vpop.f32.mrb[7].mxu0  ;;  %v5017_v2 = vmul.f32 %v6376_v15, %v6376_v15 }
 0x21c   : > { %v4974_v31 = vadd.f32 %v6377_v24, %v4973_v4  ;;  %v5015_v20 = vmul.f32 %v6377_v24, %v6377_v24  ;;  %v5045_v53 = vadd.f32 %v5044_v51, %v5014_v40  ;;  %v6379_v16 = vadd.f32 %v4830_v60, %v1939_v29 }
 0x21d   : > { %v5018_v36 = vmul.f32 %v6378_v23, %v6378_v23 }
 0x21e   : > { %v5046_v44 = vadd.f32 %v5045_v53, %v5015_v20  ;;  %v4975_v39 = vadd.f32 %v6379_v16, %v4974_v31  ;;  %v5016_v57 = vmul.f32 %v6379_v16, %v6379_v16 }
 0x220   : > { %v4976_v32 = vadd.f32 %v6376_v15, %v4975_v39  ;;  %v5047_v0 = vadd.f32 %v5046_v44, %v5016_v57  ;;  %v6334_v21 = vpop.f32.mrb[8].mxu0 }
 0x221   : > { %v6380_v30 = vadd.f32 %v6334_v21, %v6094_v25  ;;  %v4843_v45 = vpop.f32.mrb[9].mxu0 }
 0x222   : > { %v5048_v5 = vadd.f32 %v5047_v0, %v5017_v2  ;;  %v6381_v58 = vadd.f32 %v4843_v45, %v1952_v41  ;;  %v4977_v54 = vadd.f32 %v6378_v23, %v4976_v32  ;;  %v6335_v8 = vpop.f32.mrb[10].mxu0 }
 0x223   : > { %v6382_v26 = vadd.f32 %v6335_v8, %v6095_v22  ;;  %v4846_v17 = vpop.f32.mrb[11].mxu0  ;;  %v5021_v43 = vmul.f32 %v6380_v30, %v6380_v30 }
 0x224   : > { %v4978_v55 = vadd.f32 %v6381_v58, %v4977_v54  ;;  %v5019_v14 = vmul.f32 %v6381_v58, %v6381_v58  ;;  %v5049_v61 = vadd.f32 %v5048_v5, %v5018_v36  ;;  %v6383_v1 = vadd.f32 %v4846_v17, %v1955_v62 }
 0x225   : > { %v5022_v35 = vmul.f32 %v6382_v26, %v6382_v26 }
 0x226   : > { %v5050_v28 = vadd.f32 %v5049_v61, %v5019_v14  ;;  %v4979_v47 = vadd.f32 %v6383_v1, %v4978_v55  ;;  %v5020_v3 = vmul.f32 %v6383_v1, %v6383_v1 }
 0x228   : > { %v4980_v18 = vadd.f32 %v6380_v30, %v4979_v47  ;;  %v5051_v56 = vadd.f32 %v5050_v28, %v5020_v3  ;;  %v6338_v50 = vpop.f32.mrb[12].mxu0 }
 0x229   : > { %v6384_v29 = vadd.f32 %v6338_v50, %v6098_v38  ;;  %v4859_v25 = vpop.f32.mrb[13].mxu0 }
 0x22a   : > { %v5052_v12 = vadd.f32 %v5051_v56, %v5021_v43  ;;  %v6385_v41 = vadd.f32 %v4859_v25, %v1968_v46  ;;  %v4981_v49 = vadd.f32 %v6382_v26, %v4980_v18  ;;  %v6339_v48 = vpop.f32.mrb[14].mxu0 }
 0x22b   : > { %v6386_v22 = vadd.f32 %v6339_v48, %v8632_v9  ;;  %v4862_v13 = vpop.f32.mrb[15].mxu0  ;;  %v5025_v10 = vmul.f32 %v6384_v29, %v6384_v29 }
 0x22c   : > { %v4982_v52 = vadd.f32 %v6385_v41, %v4981_v49  ;;  %v5023_v33 = vmul.f32 %v6385_v41, %v6385_v41  ;;  %v5053_v62 = vadd.f32 %v5052_v12, %v5022_v35  ;;  %v6387_v6 = vadd.f32 %v4862_v13, %v8634_v37 }
 0x22d   : > { %v5026_v46 = vmul.f32 %v6386_v22, %v6386_v22 }
 0x22e   : > { %v5054_v63 = vadd.f32 %v5053_v62, %v5023_v33  ;;  %v4983_v42 = vadd.f32 %v6387_v6, %v4982_v52  ;;  %v5024_v7 = vmul.f32 %v6387_v6, %v6387_v6 }
 0x230   : > { %v4984_v27 = vadd.f32 %v6384_v29, %v4983_v42  ;;  %v5055_v38 = vadd.f32 %v5054_v63, %v5024_v7  ;;  %v6342_v19 = vpop.f32.mrb[16].mxu0 }
 0x231   : > { %v6150_v34 = vpop.f32.mrb[16].mxu1  ;;  %v4875_v15 = vpop.f32.mrb[17].mxu0 }
 0x232   : > { %v5056_v11 = vadd.f32 %v5055_v38, %v5025_v10  ;;  %v6388_v40 = vadd.f32 %v6342_v19, %v6150_v34  ;;  %v2738_v51 = vpop.f32.mrb[17].mxu1  ;;  %v4985_v9 = vadd.f32 %v6386_v22, %v4984_v27  ;;  %v6343_v24 = vpop.f32.mrb[18].mxu0 }
 0x233   : > { %v6389_v4 = vadd.f32 %v4875_v15, %v2738_v51  ;;  %v6151_v59 = vpop.f32.mrb[18].mxu1  ;;  %v4878_v23 = vpop.f32.mrb[19].mxu0 }
 0x234   : > { %v5057_v60 = vadd.f32 %v5056_v11, %v5026_v46  ;;  %v6390_v37 = vadd.f32 %v6343_v24, %v6151_v59  ;;  %v2741_v31 = vpop.f32.mrb[19].mxu1  ;;  %v5029_v32 = vmul.f32 %v6388_v40, %v6388_v40 }
 0x235   : > { %v4986_v20 = vadd.f32 %v6389_v4, %v4985_v9  ;;  %v5027_v53 = vmul.f32 %v6389_v4, %v6389_v4  ;;  %v6391_v16 = vadd.f32 %v4878_v23, %v2741_v31 }
 0x236   : > { %v5030_v54 = vmul.f32 %v6390_v37, %v6390_v37 }
 0x237   : > { %v5058_v44 = vadd.f32 %v5057_v60, %v5027_v53  ;;  %v4987_v39 = vadd.f32 %v6391_v16, %v4986_v20  ;;  %v5028_v57 = vmul.f32 %v6391_v16, %v6391_v16 }
 0x238   : > { %v6346_v2 = vpop.f32.mrb[20].mxu0 }
 0x239   : > { %v4988_v0 = vadd.f32 %v6388_v40, %v4987_v39  ;;  %v5059_v21 = vadd.f32 %v5058_v44, %v5028_v57  ;;  %v6154_v30 = vpop.f32.mrb[20].mxu1  ;;  %v4891_v45 = vpop.f32.mrb[21].mxu0 }
 0x23a   : > { %v6392_v36 = vadd.f32 %v6346_v2, %v6154_v30  ;;  %v2754_v5 = vpop.f32.mrb[21].mxu1  ;;  %v6347_v58 = vpop.f32.mrb[22].mxu0 }
 0x23b   : > { %v5060_v8 = vadd.f32 %v5059_v21, %v5029_v32  ;;  %v6393_v26 = vadd.f32 %v4891_v45, %v2754_v5  ;;  %v4989_v17 = vadd.f32 %v6390_v37, %v4988_v0  ;;  %v6155_v55 = vpop.f32.mrb[22].mxu1  ;;  %v4894_v14 = vpop.f32.mrb[23].mxu0 }
 0x23c   : > { %v6394_v61 = vadd.f32 %v6347_v58, %v6155_v55  ;;  %v2757_v1 = vpop.f32.mrb[23].mxu1  ;;  %v5033_v25 = vmul.f32 %v6392_v36, %v6392_v36 }
 0x23d   : > { %v4990_v28 = vadd.f32 %v6393_v26, %v4989_v17  ;;  %v5031_v47 = vmul.f32 %v6393_v26, %v6393_v26  ;;  %v5061_v3 = vadd.f32 %v5060_v8, %v5030_v54  ;;  %v6395_v43 = vadd.f32 %v4894_v14, %v2757_v1 }
 0x23e   : > { %v5034_v52 = vmul.f32 %v6394_v61, %v6394_v61 }
 0x23f   : > { %v5062_v18 = vadd.f32 %v5061_v3, %v5031_v47  ;;  %v4991_v56 = vadd.f32 %v6395_v43, %v4990_v28  ;;  %v5032_v50 = vmul.f32 %v6395_v43, %v6395_v43 }
 0x240   : > { %v6350_v29 = vpop.f32.mrb[24].mxu0 }
 0x241   : > { %v4992_v35 = vadd.f32 %v6392_v36, %v4991_v56  ;;  %v5063_v12 = vadd.f32 %v5062_v18, %v5032_v50  ;;  %v6158_v41 = vpop.f32.mrb[24].mxu1  ;;  %v4907_v49 = vpop.f32.mrb[25].mxu0 }
 0x242   : > { %v6396_v48 = vadd.f32 %v6350_v29, %v6158_v41  ;;  %v2770_v22 = vpop.f32.mrb[25].mxu1  ;;  %v6351_v13 = vpop.f32.mrb[26].mxu0  ;;  %v4970_v29 = vld [vmem:[%s8655_s2] sm:$0x1] }
 0x243   : > { %v5064_v33 = vadd.f32 %v5063_v12, %v5033_v25  ;;  %v6397_v62 = vadd.f32 %v4907_v49, %v2770_v22  ;;  %v4993_v6 = vadd.f32 %v6394_v61, %v4992_v35  ;;  %v6159_v63 = vpop.f32.mrb[26].mxu1  ;;  %v4910_v42 = vpop.f32.mrb[27].mxu0  ;;  %v5010_v12 = vld [vmem:[%s8656_s3] sm:$0x1] }
 0x244   : > { %v6398_v7 = vadd.f32 %v6351_v13, %v6159_v63  ;;  %v2773_v10 = vpop.f32.mrb[27].mxu1  ;;  %v5037_v51 = vmul.f32 %v6396_v48, %v6396_v48 }
 0x245   : > { %v4994_v27 = vadd.f32 %v6397_v62, %v4993_v6  ;;  %v5035_v38 = vmul.f32 %v6397_v62, %v6397_v62  ;;  %v5065_v19 = vadd.f32 %v5064_v33, %v5034_v52  ;;  %v6399_v34 = vadd.f32 %v4910_v42, %v2773_v10 }
 0x246   : > { %v5038_v31 = vmul.f32 %v6398_v7, %v6398_v7 }
 0x247   : > { %v5066_v15 = vadd.f32 %v5065_v19, %v5035_v38  ;;  %v4995_v46 = vadd.f32 %v6399_v34, %v4994_v27  ;;  %v5036_v11 = vmul.f32 %v6399_v34, %v6399_v34 }
 0x248   : > { %v6354_v40 = vpop.f32.mrb[28].mxu0 }
 0x249   : > { %v4996_v9 = vadd.f32 %v6396_v48, %v4995_v46  ;;  %v5067_v24 = vadd.f32 %v5066_v15, %v5036_v11  ;;  %v6162_v4 = vpop.f32.mrb[28].mxu1  ;;  %v4923_v59 = vpop.f32.mrb[29].mxu0 }
 0x24a   : > { %v6400_v23 = vadd.f32 %v6354_v40, %v6162_v4  ;;  %v2786_v60 = vpop.f32.mrb[29].mxu1  ;;  %v6355_v37 = vpop.f32.mrb[30].mxu0 }
 0x24b   : > { %v5068_v20 = vadd.f32 %v5067_v24, %v5037_v51  ;;  %v6401_v53 = vadd.f32 %v4923_v59, %v2786_v60  ;;  %v4997_v16 = vadd.f32 %v6398_v7, %v4996_v9  ;;  %v6163_v44 = vpop.f32.mrb[30].mxu1  ;;  %v4926_v39 = vpop.f32.mrb[31].mxu0 }
 0x24c   : > { %v6402_v57 = vadd.f32 %v6355_v37, %v6163_v44  ;;  %v2789_v2 = vpop.f32.mrb[31].mxu1  ;;  %v5041_v58 = vmul.f32 %v6400_v23, %v6400_v23 }
 0x24d   : > { %v4998_v32 = vadd.f32 %v6401_v53, %v4997_v16  ;;  %v5039_v0 = vmul.f32 %v6401_v53, %v6401_v53  ;;  %v5069_v21 = vadd.f32 %v5068_v20, %v5038_v31  ;;  %v6403_v30 = vadd.f32 %v4926_v39, %v2789_v2 }
 0x24e   : > { %v5042_v26 = vmul.f32 %v6402_v57, %v6402_v57 }
 0x24f   : > { %v5070_v45 = vadd.f32 %v5069_v21, %v5039_v0  ;;  %v4999_v36 = vadd.f32 %v6403_v30, %v4998_v32  ;;  %v5040_v5 = vmul.f32 %v6403_v30, %v6403_v30 }
 0x251   : > { %v5000_v54 = vadd.f32 %v6400_v23, %v4999_v36  ;;  %v5071_v8 = vadd.f32 %v5070_v45, %v5040_v5 }
 0x253   : > { %v5001_v17 = vadd.f32 %v6402_v57, %v5000_v54  ;;  %v5072_v55 = vadd.f32 %v5071_v8, %v5041_v58 }
 0x255   : > { %v5002_v14 = vrot.slane %v5001_v17, 4  ;;  %v5073_v61 = vadd.f32 %v5072_v55, %v5042_v26 }
 0x257   : > { %v5003_v1 = vadd.f32 %v5002_v14, %v5001_v17  ;;  %v5074_v28 = vrot.slane %v5073_v61, 4 }
 0x259   : > { %v5004_v47 = vrot.slane %v5003_v1, 2  ;;  %v5075_v3 = vadd.f32 %v5074_v28, %v5073_v61 }
 0x25b   : > { %v5005_v43 = vadd.f32 %v5004_v47, %v5003_v1  ;;  %v5076_v18 = vrot.slane %v5075_v3, 2 }
 0x25d   : > { %v5006_v56 = vrot.slane %v5005_v43, 1  ;;  %v5077_v50 = vadd.f32 %v5076_v18, %v5075_v3 }
 0x25f   : > { %v5007_v25 = vadd.f32 %v5006_v56, %v5005_v43  ;;  %v5078_v35 = vrot.slane %v5077_v50, 1 }
 0x261   : > { %v5008_v41 = vadd.f32 %v5007_v25, %v4970_v29  ;;  %v5079_v49 = vadd.f32 %v5078_v35, %v5077_v50 }
 0x263   : > { %5009 = vst [vmem:[%s8655_s2] sm:$0x1] %v5008_v41  ;;  %v5080_v48 = vadd.f32 %v5079_v49, %v5010_v12 }
 0x265   : > { %5081 = vst [vmem:[%s8656_s3] sm:$0x1] %v5080_v48 }
 0x266 PF: > { %s14_s12 = sadd.s32 1, %s6834_s12  }
 0x267   : > { %p11_p5 = scmp.ge.s32.totalorder %s14_s12, 4  }
 0x269   :  { %13 = sbr.rel (!%p11_p5) target bundleno = 1 (0x1), region = 76 }

// kernel: bottleneck_forward.8
= control target key start
LH: loop header
LB: loop body
LE: loop exit
PB: predicated region body
PF: predicated region fallthrough
CT: control target
= control target key end

     0   :  { %s7759_s24 = smov 0   ;;  %s9742_s0 = inlined_call_operand.vmem [shape: bf16[2,18,18,128], index: 0, kind: input, shape index: {}]   ;;  %s9743_s1 = inlined_call_operand.vmem [shape: bf16[9,128,128], index: 1, kind: input, shape index: {}]   ;;  %s9744_s2 = inlined_call_operand.vmem [shape: f32[1,128], index: 2, kind: input, shape index: {}]   ;;  %s9745_s3 = inlined_call_operand.vmem [shape: f32[1,128], index: 3, kind: input, shape index: {}]   ;;  %s9746_s4 = inlined_call_operand.vmem [shape: bf16[128,128], index: 4, kind: input, shape index: {}]   ;;  %s9747_s5 = inlined_call_operand.vmem [shape: bf16[2,16,16,128], index: 5, kind: output, shape index: {0}]   ;;  %s9748_s6 = inlined_call_operand.vmem [shape: f32[1,128], index: 6, kind: output, shape index: {1}]   ;;  %s9749_s7 = inlined_call_operand.vmem [shape: f32[1,128], index: 7, kind: output, shape index: {2}]  }
   0x1 LB: > { %s5764_s25 = sadd.s32 4294967295, %s7716_s24   ;;  %p5768_p0 = scmp.ge.s32.totalorder %s7716_s24, 1  ;;  %s7716_s24 = sphi %s7759_s24, %s18_s24  }
   0x2   : > { %p232_p1 = scmp.lt.s32.totalorder %s7716_s24, 3 }
   0x4   : > { %p233_p2 = pnand %p5768_p0, %p232_p1 }
   0x6   : > { %236 = sbr.rel (%p233_p2) target bundleno = 892 (0x37c), region = 40 }
   0xd   : > { %p264_p3 = scmp.lt.s32.totalorder %s5764_s25, 1  ;;  %p5772_p4 = scmp.ne.s32.totalorder %s5764_s25, 0 }
   0xe   : > { %v7718_v0 = vmov (!%p5772_p4), 0.0  }
   0xf   : > { %s265_s26 = scalar_select %p264_p3, %s5764_s25, 1 }
  0x10   : > { %278 = sbr.rel (%p5772_p4) target bundleno = 23 (0x17), region = 44  ;;  %279 = vst [vmem:[%s9748_s6] sm:$0x1] (!%p5772_p4), %v7718_v0  ;;  %280 = vst [vmem:[%s9749_s7] sm:$0x1] (!%p5772_p4), %v7718_v0 }
  0x11   : > { %s7505_s27 = smul.u32 216, %s265_s26  ;;  %s6401_s28 = sshll.u32 %s265_s26, 7 }
  0x12   : > { %s7770_s8 = scalar_lea.vmem %s9747_s5, %s6401_s28 }
  0x13   : > { %s7775_s11 = scalar_lea.vmem %s9742_s0, %s7505_s27 }
  0x17 PF: > { %v7515_v1 = vld [vmem:[%s9743_s1 + $0x40] sm:$0xff]   ;;  %v7517_v3 = vld [vmem:[%s9743_s1 + $0x48] sm:$0xff]   ;;  %v7519_v5 = vld [vmem:[%s9743_s1 + $0x50] sm:$0xff]   ;;  %vm345_vm0 = vsmask.f32 3328  ;;  %vm1375_vm3 = vcmask 1042432  }
  0x18   : > { %v7516_v2 = vld [vmem:[%s9743_s1 + $0x100] sm:$0xff]   ;;  %6769 = vmatprep.subr.bf16.mxu1 %v7515_v1  ;;  %v7518_v4 = vld [vmem:[%s9743_s1 + $0x108] sm:$0xff]   ;;  %v7520_v6 = vld [vmem:[%s9743_s1 + $0x110] sm:$0xff]   ;;  %vm346_vm1 = vsmask.f32 7440  ;;  %vm1376_vm4 = vcmask 1046532  }
  0x19   : > { %6961 = vmatprep.subr.bf16.mxu0 %v7516_v2  ;;  %6770 = vmatpush3.bf16.msra.mxu1 %v7515_v1  ;;  %v7521_v7 = vld [vmem:[%s9743_s1 + $0x58] sm:$0xff]   ;;  %v7523_v9 = vld [vmem:[%s9743_s1 + $0x60] sm:$0xff]   ;;  %v7525_v11 = vld [vmem:[%s9743_s1 + $0x68] sm:$0xff]  }
  0x1a   : > { %6962 = vmatpush3.bf16.msra.mxu0 %v7516_v2  ;;  %6771 = vmatprep.subr.bf16.mxu1 %v7517_v3  ;;  %v7522_v8 = vld [vmem:[%s9743_s1 + $0x118] sm:$0xff]   ;;  %v7524_v10 = vld [vmem:[%s9743_s1 + $0x120] sm:$0xff]   ;;  %v7526_v12 = vld [vmem:[%s9743_s1 + $0x128] sm:$0xff]  }
  0x1b   : > { %6963 = vmatprep.subr.bf16.mxu0 %v7518_v4  ;;  %v281_v13 = vld [vmem:[%s7775_s11] sm:$0xf]  ;;  %v282_v14 = vld [vmem:[%s7775_s11 + $0x4] sm:$0xf]  ;;  %v329_v15 = vld [vmem:[%s7775_s11 + $0x8] sm:$0x1] }
  0x1c   : > { %v349_v16 = vshrl.u32 %v281_v13, 16  ;;  %v352_v17 = vshll.u32 %v281_v13, 16  ;;  %v358_v18 = vshll.u32 %v282_v14, 16  ;;  %v362_v19 = vshrl.u32 %v282_v14, 16  ;;  %v5965_v21 = vld [vmem:[%s7775_s11 + $0xc] sm:$0xf]  ;;  %vm7836_vm2 = vmor %vm345_vm0, %vm346_vm1 }
  0x1d   : > { %6772 = vmatpush3.bf16.msra.mxu1 %v7517_v3  ;;  %v368_v20 = vshll.u32 %v329_v15, 16  ;;  %v5966_v24 = vld [vmem:[%s7775_s11 + $0x10] sm:$0xf]  ;;  %v7825_v25 = vld [vmem:[%s7775_s11 + $0x14] sm:$0x1]  ;;  %v2248_v29 = vshrl.u32 %v5965_v21, 16  ;;  %vm8214_vm5 = vmor %vm1375_vm3, %vm1376_vm4 }
  0x1e   : > { %6964 = vmatpush3.bf16.msra.mxu0 %v7518_v4  ;;  %6773 = vmatprep.subr.bf16.mxu1 %v7519_v5  ;;  %v351_v22 = vrot.slane %v349_v16, 4  ;;  %v354_v23 = vrot.slane %v352_v17, 5  ;;  %v7527_v26 = vld [vmem:[%s9743_s1 + $0x70] sm:$0xff]   ;;  %v360_v27 = vrot.slane %v358_v18, 5  ;;  %v364_v28 = vrot.slane %v362_v19, 4  ;;  %v7529_v42 = vld [vmem:[%s9743_s1 + $0x78] sm:$0xff]  }
  0x1f   : > { %6965 = vmatprep.subr.bf16.mxu0 %v7520_v6  ;;  %v7528_v30 = vld [vmem:[%s9743_s1 + $0x130] sm:$0xff]   ;;  %v2251_v32 = vshll.u32 %v5965_v21, 16  ;;  %v2257_v33 = vshll.u32 %v5966_v24, 16  ;;  %v2261_v34 = vshrl.u32 %v5966_v24, 16  ;;  %v283_v35 = vld [vmem:[%s7775_s11 + $0xc] sm:$0xf] }
  0x20   : > { %v355_v31 = vor.u32 %v354_v23, %v351_v22  ;;  %v365_v37 = vor.u32 %v364_v28, %v360_v27  ;;  %v370_v38 = vrot.slane %v368_v20, 5  ;;  %v2250_v39 = vrot.slane %v2248_v29, 4  ;;  %v284_v41 = vld [vmem:[%s7775_s11 + $0x10] sm:$0xf]  ;;  %v330_v49 = vld [vmem:[%s7775_s11 + $0x14] sm:$0x1] }
  0x21   : > { %6774 = vmatpush3.bf16.msra.mxu1 %v7519_v5  ;;  %v2267_v40 = vshll.u32 %v7825_v25, 16  ;;  %v2253_v44 = vrot.slane %v2251_v32, 5  ;;  %v2259_v45 = vrot.slane %v2257_v33, 5  ;;  %v2263_v46 = vrot.slane %v2261_v34, 4  ;;  %v7530_v52 = vld [vmem:[%s9743_s1 + $0x138] sm:$0xff]   ;;  %v7535_v13 = vld [vmem:[%s9743_s1] sm:$0xff]  }
  0x22   : > { %6966 = vmatpush3.bf16.msra.mxu0 %v7520_v6  ;;  %6775 = vmatprep.subr.bf16.mxu1 %v7521_v7  ;;  %v356_v43 = vrot.slane %v355_v31, 4  ;;  %v366_v47 = vrot.slane %v365_v37, 4  ;;  %v373_v50 = vshrl.u32 %v283_v35, 16  ;;  %v376_v51 = vshll.u32 %v283_v35, 16  ;;  %v5968_v57 = vld [vmem:[%s7775_s11 + $0x18] sm:$0xf] }
  0x23   : > { %6967 = vmatprep.subr.bf16.mxu0 %v7522_v8  ;;  %v2269_v48 = vrot.slane %v2267_v40, 5  ;;  %v2254_v54 = vor.u32 %v2253_v44, %v2250_v39  ;;  %v2264_v55 = vor.u32 %v2263_v46, %v2259_v45  ;;  %v382_v56 = vshll.u32 %v284_v41, 16  ;;  %v7856_v6 = vld [vmem:[%s7775_s11 + $0x1c] sm:$0xf]  ;;  %v285_v22 = vld [vmem:[%s7775_s11 + $0x18] sm:$0xf] }
  0x24   : > { %v361_v53 = vsel %vm7836_vm2, %v356_v43, %v360_v27  ;;  %v371_v58 = vsel %vm7836_vm2, %v366_v47, %v370_v38  ;;  %v375_v59 = vrot.slane %v373_v50, 4  ;;  %v378_v60 = vrot.slane %v376_v51, 5  ;;  %v286_v28 = vld [vmem:[%s7775_s11 + $0x1c] sm:$0xf]  ;;  %v331_v33 = vld [vmem:[%s7775_s11 + $0x20] sm:$0x1] }
  0x25   : > { %6776 = vmatpush3.bf16.msra.mxu1 %v7521_v7  ;;  %v386_v61 = vshrl.u32 %v284_v41, 16  ;;  %v5789_v62 = vcombine.low %v361_v53, %v371_v58  ;;  %v2255_v63 = vrot.slane %v2254_v54, 4  ;;  %v2265_v0 = vrot.slane %v2264_v55, 4  ;;  %v5971_v39 = vld [vmem:[%s7775_s11 + $0x24] sm:$0xf] }
  0x26   : > { %6968 = vmatpush3.bf16.msra.mxu0 %v7522_v8  ;;  %6777 = vmatprep.subr.bf16.mxu1 %v7523_v9  ;;  %v384_v1 = vrot.slane %v382_v56, 5  ;;  %v3022_v2 = vrot.slane %v7825_v25, 5  ;;  %v379_v3 = vor.u32 %v378_v60, %v375_v59  ;;  %v392_v5 = vshll.u32 %v330_v49, 16  ;;  %v5972_v44 = vld [vmem:[%s7775_s11 + $0x28] sm:$0xf] }
  0x27   : > { %6969 = vmatprep.subr.bf16.mxu0 %v7524_v10  ;;  %v388_v4 = vrot.slane %v386_v61, 4  ;;  %6785 = vmatprep.mubr.bf16.mxu1 %v5789_v62  ;;  %v2260_v7 = vsel %vm7836_vm2, %v2255_v63, %v2259_v45  ;;  %v2270_v8 = vsel %vm7836_vm2, %v2265_v0, %v2269_v48  ;;  %v2281_v20 = vshll.u32 %v7856_v6, 16  ;;  %v7537_v45 = vld [vmem:[%s9743_s1 + $0x8] sm:$0xff]   ;;  %v287_v59 = vld [vmem:[%s7775_s11 + $0x24] sm:$0xf]  ;;  %v7538_v0 = vld [vmem:[%s9743_s1 + $0x10] sm:$0xff]  }
  0x28   : > { %v6029_v14 = vcombine.low %v2260_v7, %v2270_v8  ;;  %v380_v15 = vrot.slane %v379_v3, 4  ;;  %v394_v17 = vrot.slane %v392_v5, 5  ;;  %v2285_v21 = vshrl.u32 %v7856_v6, 16  ;;  %v5973_v50 = vld [vmem:[%s7775_s11 + $0x2c] sm:$0x1] }
  0x29   : > { %6778 = vmatpush3.bf16.msra.mxu1 %v7523_v9  ;;  %v7863_v9 = vld [vmem:[%s7775_s11 + $0x20] sm:$0x1]  ;;  %v389_v16 = vor.u32 %v388_v4, %v384_v1  ;;  %v3026_v27 = vrot.slane %v7856_v6, 5  ;;  %v397_v38 = vshrl.u32 %v285_v22, 16  ;;  %v400_v43 = vshll.u32 %v285_v22, 16  ;;  %v7532_v8 = vld [vmem:[%s9743_s1 + $0x148] sm:$0xff]  }
  0x2a   : > { %6970 = vmatpush3.bf16.msra.mxu0 %v7524_v10  ;;  %6779 = vmatprep.subr.bf16.mxu1 %v7525_v11  ;;  %v2272_v10 = vshrl.u32 %v5968_v57, 16  ;;  %v385_v23 = vsel %vm7836_vm2, %v380_v15, %v384_v1  ;;  %v2287_v31 = vrot.slane %v2285_v21, 4  ;;  %v3029_v32 = vrot.slane %v7863_v9, 5  ;;  %v288_v7 = vld [vmem:[%s7775_s11 + $0x28] sm:$0xf] }
  0x2b   : > { %6971 = vmatprep.subr.bf16.mxu0 %v7526_v12  ;;  %6977 = vmatprep.mubr.bf16.mxu0 %v6029_v14  ;;  %v390_v24 = vrot.slane %v389_v16, 4  ;;  %v7888_v37 = vrot.slane %v3026_v27, 4  ;;  %v399_v46 = vrot.slane %v397_v38, 4  ;;  %v406_v47 = vshll.u32 %v286_v28, 16 }
  0x2c   : > { %v2274_v18 = vrot.slane %v2272_v10, 4  ;;  %v410_v48 = vshrl.u32 %v286_v28, 16  ;;  %v416_v49 = vshll.u32 %v331_v33, 16  ;;  %v402_v53 = vrot.slane %v400_v43, 5  ;;  %v7540_v33 = vld [vmem:[%s9743_s1 + $0x18] sm:$0xff]  }
  0x2d   : > { %6780 = vmatpush3.bf16.msra.mxu1 %v7525_v11  ;;  %v2275_v11 = vshll.u32 %v5968_v57, 16  ;;  %v395_v34 = vsel %vm7836_vm2, %v390_v24, %v394_v17  ;;  %v2296_v54 = vshrl.u32 %v5971_v39, 16  ;;  %v408_v55 = vrot.slane %v406_v47, 5  ;;  %v5974_v24 = vld [vmem:[%s7775_s11 + $0x30] sm:$0xf] }
  0x2e   : > { %6972 = vmatpush3.bf16.msra.mxu0 %v7526_v12  ;;  %6781 = vmatprep.subr.bf16.mxu1 %v7527_v26  ;;  %v7868_v12 = vld [vmem:[%s9743_s1 + $0x140] sm:$0xff]   ;;  %v5790_v40 = vcombine.low %v385_v23, %v395_v34  ;;  %v412_v56 = vrot.slane %v410_v48, 4  ;;  %v418_v57 = vrot.slane %v416_v49, 5  ;;  %v2299_v58 = vshll.u32 %v5971_v39, 16 }
  0x2f   : > { %6973 = vmatprep.subr.bf16.mxu0 %v7528_v30  ;;  %v2277_v19 = vrot.slane %v2275_v11, 5  ;;  %v403_v61 = vor.u32 %v402_v53, %v399_v46  ;;  %v2298_v62 = vrot.slane %v2296_v54, 4  ;;  %v2305_v63 = vshll.u32 %v5972_v44, 16  ;;  %v7534_v46 = vld [vmem:[%s9743_s1 + $0x158] sm:$0xff]  }
  0x30   : > { %v413_v3 = vor.u32 %v412_v56, %v408_v55  ;;  %v2301_v4 = vrot.slane %v2299_v58, 5  ;;  %v2309_v5 = vshrl.u32 %v5972_v44, 16  ;;  %v421_v14 = vshrl.u32 %v287_v59, 16  ;;  %v7541_v56 = vld [vmem:[%s9743_s1 + $0x20] sm:$0xff]  }
  0x31   : > { %6782 = vmatpush3.bf16.msra.mxu1 %v7527_v26  ;;  %v2291_v26 = vshll.u32 %v7863_v9, 16  ;;  %v2278_v29 = vor.u32 %v2277_v19, %v2274_v18  ;;  %v404_v10 = vrot.slane %v403_v61, 4  ;;  %v2307_v11 = vrot.slane %v2305_v63, 5  ;;  %v332_v18 = vld [vmem:[%s7775_s11 + $0x2c] sm:$0x1] }
  0x32   : > { %6974 = vmatpush3.bf16.msra.mxu0 %v7528_v30  ;;  %6783 = vmatprep.subr.bf16.mxu1 %v7529_v42  ;;  %v2283_v30 = vrot.slane %v2281_v20, 5  ;;  %v414_v15 = vrot.slane %v413_v3, 4  ;;  %v2302_v16 = vor.u32 %v2301_v4, %v2298_v62  ;;  %v2311_v17 = vrot.slane %v2309_v5, 4  ;;  %v333_v4 = vld [vmem:[%s7775_s11 + $0x38] sm:$0x1] }
  0x33   : > { %6975 = vmatprep.subr.bf16.mxu0 %v7530_v52  ;;  %v2293_v35 = vrot.slane %v2291_v26, 5  ;;  %v2279_v41 = vrot.slane %v2278_v29, 4  ;;  %v424_v19 = vshll.u32 %v287_v59, 16  ;;  %v409_v20 = vsel %vm7836_vm2, %v404_v10, %v408_v55  ;;  %v290_v55 = vld [vmem:[%s7775_s11 + $0x34] sm:$0xf] }
  0x34   : > { %v423_v22 = vrot.slane %v421_v14, 4  ;;  %v430_v23 = vshll.u32 %v288_v7, 16  ;;  %v419_v26 = vsel %vm7836_vm2, %v414_v15, %v418_v57  ;;  %v2303_v28 = vrot.slane %v2302_v16, 4  ;;  %v5977_v15 = vld [vmem:[%s7775_s11 + $0x3c] sm:$0xf]  ;;  %v7536_v16 = vld [vmem:[%s9743_s1 + $0x160] sm:$0xff]  }
  0x35   : > { %6784 = vmatpush3.bf16.msra.mxu1 %v7529_v42  ;;  %v2288_v42 = vor.u32 %v2287_v31, %v2283_v30  ;;  %v2284_v51 = vsel %vm7836_vm2, %v2279_v41, %v2283_v30  ;;  %v2312_v29 = vor.u32 %v2311_v17, %v2307_v11  ;;  %v426_v30 = vrot.slane %v424_v19, 5  ;;  %v5975_v31 = vld [vmem:[%s7775_s11 + $0x34] sm:$0xf] }
  0x36   : > { %6976 = vmatpush3.bf16.msra.mxu0 %v7530_v52  ;;  %6817 = vmatprep.subr.bf16.mxu1 %v7535_v13  ;;  %v5791_v34 = vcombine.low %v409_v20, %v419_v26  ;;  %v434_v38 = vshrl.u32 %v288_v7, 16  ;;  %v440_v39 = vshll.u32 %v332_v18, 16  ;;  %v2308_v41 = vsel %vm7836_vm2, %v2303_v28, %v2307_v11 }
  0x37   : > { %7009 = vmatprep.subr.bf16.mxu0 %v7868_v12  ;;  %v2289_v52 = vrot.slane %v2288_v42, 4  ;;  %v2313_v42 = vrot.slane %v2312_v29, 4  ;;  %v427_v43 = vor.u32 %v426_v30, %v423_v22  ;;  %v2320_v44 = vshrl.u32 %v5974_v24, 16  ;;  %v5979_v30 = vld [vmem:[%s7775_s11 + $0x44] sm:$0x1] }
  0x38   : > { %6786 = vmatmul.mubr.bf16.vlgmr.msra.gmra.mrb[0].mxu1 %v5790_v40  ;;  %v5976_v40 = vld [vmem:[%s7775_s11 + $0x38] sm:$0x1]  ;;  %v436_v47 = vrot.slane %v434_v38, 4  ;;  %v442_v48 = vrot.slane %v440_v39, 5  ;;  %v2323_v49 = vshll.u32 %v5974_v24, 16  ;;  %v2333_v54 = vshrl.u32 %v5975_v31, 16 }
  0x39   : > { %6818 = vmatpush3.bf16.msra.mxu1 %v7535_v13  ;;  %v2294_v60 = vsel %vm7836_vm2, %v2289_v52, %v2293_v35  ;;  %v2315_v13 = vshll.u32 %v5973_v50, 16  ;;  %v432_v35 = vrot.slane %v430_v23, 5  ;;  %6789 = vmatprep.mubr.bf16.mxu1 %v5791_v34  ;;  %v2329_v50 = vshll.u32 %v5975_v31, 16 }
  0x3a   : > { %6819 = vmatprep.subr.bf16.mxu1 %v7537_v45  ;;  %v6030_v1 = vcombine.low %v2284_v51, %v2294_v60  ;;  %v428_v52 = vrot.slane %v427_v43, 4  ;;  %v2322_v53 = vrot.slane %v2320_v44, 4  ;;  %v2325_v59 = vrot.slane %v2323_v49, 5 }
  0x3b   : > { %v2317_v21 = vrot.slane %v2315_v13, 5  ;;  %v437_v58 = vor.u32 %v436_v47, %v432_v35  ;;  %v2331_v60 = vrot.slane %v2329_v50, 5  ;;  %v2335_v62 = vrot.slane %v2333_v54, 4 }
  0x3c   : > { %6978 = vmatmul.mubr.bf16.vlgmr.msra.gmra.mrb[0].mxu0 %v6030_v1  ;;  %v433_v61 = vsel %vm7836_vm2, %v428_v52, %v432_v35  ;;  %v2339_v63 = vshll.u32 %v5976_v40, 16  ;;  %v2326_v3 = vor.u32 %v2325_v59, %v2322_v53  ;;  %v454_v7 = vshll.u32 %v290_v55, 16  ;;  %v291_v40 = vld [vmem:[%s7775_s11 + $0x3c] sm:$0xf]  ;;  %v334_v53 = vld [vmem:[%s7775_s11 + $0x44] sm:$0x1] }
  0x3d   : > { %6820 = vmatpush3.bf16.msra.mxu1 %v7537_v45  ;;  %7010 = vmatpush3.bf16.msra.mxu0 %v7868_v12  ;;  %v7533_v12 = vld [vmem:[%s9743_s1 + $0x150] sm:$0xff]   ;;  %v2318_v51 = vsel %vm7836_vm2, %v2313_v42, %v2317_v21  ;;  %v438_v1 = vrot.slane %v437_v58, 4  ;;  %v2336_v10 = vor.u32 %v2335_v62, %v2331_v60  ;;  %v458_v14 = vshrl.u32 %v290_v55, 16  ;;  %v5978_v21 = vld [vmem:[%s7775_s11 + $0x40] sm:$0xf] }
  0x3e   : > { %6821 = vmatprep.subr.bf16.mxu1 %v7538_v0  ;;  %7011 = vmatprep.subr.bf16.mxu0 %v7532_v8  ;;  %v289_v45 = vld [vmem:[%s7775_s11 + $0x30] sm:$0xf]  ;;  %v6031_v57 = vcombine.low %v2308_v41, %v2318_v51  ;;  %v2341_v11 = vrot.slane %v2339_v63, 5  ;;  %v2327_v18 = vrot.slane %v2326_v3, 4  ;;  %v456_v20 = vrot.slane %v454_v7, 5 }
  0x3f   : > { %v448_v5 = vshll.u32 %v289_v45, 16  ;;  %v443_v17 = vsel %vm7836_vm2, %v438_v1, %v442_v48  ;;  %v2337_v23 = vrot.slane %v2336_v10, 4  ;;  %v460_v24 = vrot.slane %v458_v14, 4  ;;  %v292_v41 = vld [vmem:[%s7775_s11 + $0x40] sm:$0xf] }
  0x40   : > { %6981 = vmatprep.mubr.bf16.mxu0 %v6031_v57  ;;  %v5792_v22 = vcombine.low %v433_v61, %v443_v17  ;;  %v464_v26 = vshll.u32 %v333_v4, 16  ;;  %v2332_v28 = vsel %vm7836_vm2, %v2327_v18, %v2331_v60  ;;  %v2344_v31 = vshrl.u32 %v5977_v15, 16  ;;  %v5980_v61 = vld [vmem:[%s7775_s11 + $0x48] sm:$0xf]  ;;  %v5981_v3 = vld [vmem:[%s7775_s11 + $0x4c] sm:$0xf] }
  0x41   : > { %6822 = vmatpush3.bf16.msra.mxu1 %v7538_v0  ;;  %7012 = vmatpush3.bf16.msra.mxu0 %v7532_v8  ;;  %v445_v0 = vshrl.u32 %v289_v45, 16  ;;  %v7543_v8 = vld [vmem:[%s9743_s1 + $0x28] sm:$0xff]   ;;  %v450_v19 = vrot.slane %v448_v5, 5  ;;  %v2342_v34 = vsel %vm7836_vm2, %v2337_v23, %v2341_v11  ;;  %v461_v35 = vor.u32 %v460_v24, %v456_v20  ;;  %v7542_v4 = vld [vmem:[%s9743_s1 + $0x170] sm:$0xff]  }
  0x42   : > { %7013 = vmatprep.subr.bf16.mxu0 %v7533_v12  ;;  %6823 = vmatprep.subr.bf16.mxu1 %v7540_v33  ;;  %v466_v38 = vrot.slane %v464_v26, 5  ;;  %v2353_v39 = vshll.u32 %v5978_v21, 16  ;;  %v6032_v42 = vcombine.low %v2332_v28, %v2342_v34  ;;  %v2346_v44 = vrot.slane %v2344_v31, 4  ;;  %v5982_v14 = vld [vmem:[%s7775_s11 + $0x50] sm:$0x1] }
  0x43   : > { %v447_v13 = vrot.slane %v445_v0, 4  ;;  %6790 = vmatmul.mubr.bf16.gmra.mrb[4].mxu1 %v5792_v22  ;;  %v462_v47 = vrot.slane %v461_v35, 4  ;;  %v2357_v49 = vshrl.u32 %v5978_v21, 16  ;;  %v2363_v50 = vshll.u32 %v5979_v30, 16  ;;  %v293_v17 = vld [vmem:[%s7775_s11 + $0x48] sm:$0xf] }
  0x44   : > { %v2355_v48 = vrot.slane %v2353_v39, 5  ;;  %6982 = vmatmul.mubr.bf16.gmra.mrb[4].mxu0 %v6032_v42  ;;  %v469_v54 = vshrl.u32 %v291_v40, 16  ;;  %v472_v55 = vshll.u32 %v291_v40, 16  ;;  %v478_v60 = vshll.u32 %v292_v41, 16  ;;  %v294_v22 = vld [vmem:[%s7775_s11 + $0x4c] sm:$0xf] }
  0x45   : > { %6824 = vmatpush3.bf16.msra.mxu1 %v7540_v33  ;;  %7014 = vmatpush3.bf16.msra.mxu0 %v7533_v12  ;;  %v451_v29 = vor.u32 %v450_v19, %v447_v13  ;;  %v2347_v12 = vshll.u32 %v5977_v15, 16  ;;  %v7544_v33 = vld [vmem:[%s9743_s1 + $0x30] sm:$0xff]   ;;  %v467_v57 = vsel %vm7836_vm2, %v462_v47, %v466_v38  ;;  %v2359_v58 = vrot.slane %v2357_v49, 4  ;;  %v7549_v47 = vld [vmem:[%s9743_s1 + $0x180] sm:$0xff]  }
  0x46   : > { %7015 = vmatprep.subr.bf16.mxu0 %v7534_v46  ;;  %6825 = vmatprep.subr.bf16.mxu1 %v7541_v56  ;;  %v2365_v59 = vrot.slane %v2363_v50, 5  ;;  %v471_v0 = vrot.slane %v469_v54, 4  ;;  %v474_v1 = vrot.slane %v472_v55, 5  ;;  %v480_v7 = vrot.slane %v478_v60, 5  ;;  %v335_v40 = vld [vmem:[%s7775_s11 + $0x50] sm:$0x1] }
  0x47   : > { %v452_v43 = vrot.slane %v451_v29, 4  ;;  %v2349_v45 = vrot.slane %v2347_v12, 5  ;;  %v2360_v5 = vor.u32 %v2359_v58, %v2355_v48  ;;  %v488_v10 = vshll.u32 %v334_v53, 16  ;;  %v7545_v29 = vld [vmem:[%s9743_s1 + $0x178] sm:$0xff]  }
  0x48   : > { %v475_v13 = vor.u32 %v474_v1, %v471_v0  ;;  %v2368_v15 = vshrl.u32 %v5980_v61, 16  ;;  %v2377_v21 = vshll.u32 %v5981_v3, 16  ;;  %v2381_v28 = vshrl.u32 %v5981_v3, 16  ;;  %v5985_v0 = vld [vmem:[%s7775_s11 + $0x5c] sm:$0x1] }
  0x49   : > { %6826 = vmatpush3.bf16.msra.mxu1 %v7541_v56  ;;  %7016 = vmatpush3.bf16.msra.mxu0 %v7534_v46  ;;  %v7539_v46 = vld [vmem:[%s9743_s1 + $0x168] sm:$0xff]   ;;  %v457_v51 = vsel %vm7836_vm2, %v452_v43, %v456_v20  ;;  %v2350_v52 = vor.u32 %v2349_v45, %v2346_v44  ;;  %v7546_v56 = vld [vmem:[%s9743_s1 + $0x38] sm:$0xff]   ;;  %v2361_v18 = vrot.slane %v2360_v5, 4  ;;  %v490_v20 = vrot.slane %v488_v10, 5 }
  0x4a   : > { %6827 = vmatprep.subr.bf16.mxu1 %v7543_v8  ;;  %7017 = vmatprep.subr.bf16.mxu0 %v7536_v16  ;;  %v5793_v62 = vcombine.low %v457_v51, %v467_v57  ;;  %v476_v23 = vrot.slane %v475_v13, 4  ;;  %v2370_v24 = vrot.slane %v2368_v15, 4  ;;  %v2379_v12 = vrot.slane %v2377_v21, 5  ;;  %v296_v15 = vld [vmem:[%s7775_s11 + $0x58] sm:$0xf] }
  0x4b   : > { %v2351_v63 = vrot.slane %v2350_v52, 4  ;;  %v2366_v30 = vsel %vm7836_vm2, %v2361_v18, %v2365_v59  ;;  %v2383_v39 = vrot.slane %v2381_v28, 4  ;;  %v493_v44 = vshrl.u32 %v293_v17, 16  ;;  %v7561_v52 = vld [vmem:[%s9743_s1 + $0x80] sm:$0xff]  }
  0x4c   : > { %6793 = vmatprep.mubr.bf16.mxu1 %v5793_v62  ;;  %v481_v35 = vsel %vm7836_vm2, %v476_v23, %v480_v7  ;;  %v496_v45 = vshll.u32 %v293_v17, 16  ;;  %v502_v50 = vshll.u32 %v294_v22, 16  ;;  %v506_v51 = vshrl.u32 %v294_v22, 16 }
  0x4d   : > { %6828 = vmatpush3.bf16.msra.mxu1 %v7543_v8  ;;  %7018 = vmatpush3.bf16.msra.mxu0 %v7536_v16  ;;  %v482_v8 = vshrl.u32 %v292_v41, 16  ;;  %v2356_v11 = vsel %vm7836_vm2, %v2351_v63, %v2355_v48  ;;  %v2371_v16 = vshll.u32 %v5980_v61, 16  ;;  %v5983_v41 = vld [vmem:[%s7775_s11 + $0x54] sm:$0xf]  ;;  %v2384_v49 = vor.u32 %v2383_v39, %v2379_v12 }
  0x4e   : > { %6829 = vmatprep.subr.bf16.mxu1 %v7544_v33  ;;  %7019 = vmatprep.subr.bf16.mxu0 %v7539_v46  ;;  %v6033_v34 = vcombine.low %v2356_v11, %v2366_v30  ;;  %v495_v54 = vrot.slane %v493_v44, 4  ;;  %v498_v55 = vrot.slane %v496_v45, 5  ;;  %v504_v60 = vrot.slane %v502_v50, 5 }
  0x4f   : > { %v484_v19 = vrot.slane %v482_v8, 4  ;;  %v2373_v26 = vrot.slane %v2371_v16, 5  ;;  %v2385_v59 = vrot.slane %v2384_v49, 4  ;;  %v508_v62 = vrot.slane %v506_v51, 4  ;;  %v295_v8 = vld [vmem:[%s7775_s11 + $0x54] sm:$0xf] }
  0x50   : > { %6985 = vmatprep.mubr.bf16.mxu0 %v6033_v34  ;;  %v499_v61 = vor.u32 %v498_v55, %v495_v54  ;;  %v2392_v1 = vshrl.u32 %v5983_v41, 16  ;;  %v517_v22 = vshrl.u32 %v295_v8, 16  ;;  %v520_v23 = vshll.u32 %v295_v8, 16  ;;  %v5988_v49 = vld [vmem:[%s7775_s11 + $0x68] sm:$0x1] }
  0x51   : > { %6830 = vmatpush3.bf16.msra.mxu1 %v7544_v33  ;;  %7020 = vmatpush3.bf16.msra.mxu0 %v7539_v46  ;;  %v485_v31 = vor.u32 %v484_v19, %v480_v7  ;;  %v2387_v33 = vshll.u32 %v5982_v14, 16  ;;  %v2374_v38 = vor.u32 %v2373_v26, %v2370_v24  ;;  %v5984_v46 = vld [vmem:[%s7775_s11 + $0x58] sm:$0xf]  ;;  %v509_v13 = vor.u32 %v508_v62, %v504_v60  ;;  %v337_v62 = vld [vmem:[%s7775_s11 + $0x68] sm:$0x1] }
  0x52   : > { %6831 = vmatprep.subr.bf16.mxu1 %v7546_v56  ;;  %7021 = vmatprep.subr.bf16.mxu0 %v7542_v4  ;;  %v2401_v5 = vshll.u32 %v5984_v46, 16  ;;  %v2405_v7 = vshrl.u32 %v5984_v46, 16  ;;  %v500_v11 = vrot.slane %v499_v61, 4  ;;  %v2394_v14 = vrot.slane %v2392_v1, 4 }
  0x53   : > { %v486_v42 = vrot.slane %v485_v31, 4  ;;  %v2389_v43 = vrot.slane %v2387_v33, 5  ;;  %v2375_v48 = vrot.slane %v2374_v38, 4  ;;  %v2411_v19 = vshll.u32 %v5985_v0, 16  ;;  %v5986_v31 = vld [vmem:[%s7775_s11 + $0x60] sm:$0xf] }
  0x54   : > { %v2403_v17 = vrot.slane %v2401_v5, 5  ;;  %v2407_v18 = vrot.slane %v2405_v7, 4  ;;  %v510_v21 = vrot.slane %v509_v13, 4  ;;  %v526_v30 = vshll.u32 %v296_v15, 16  ;;  %v5987_v38 = vld [vmem:[%s7775_s11 + $0x64] sm:$0xf] }
  0x55   : > { %6832 = vmatpush3.bf16.msra.mxu1 %v7546_v56  ;;  %7022 = vmatpush3.bf16.msra.mxu0 %v7542_v4  ;;  %v491_v53 = vsel %vm7836_vm2, %v486_v42, %v490_v20  ;;  %v512_v56 = vshll.u32 %v335_v40, 16  ;;  %v2380_v58 = vsel %vm7836_vm2, %v2375_v48, %v2379_v12  ;;  %v2390_v3 = vsel %vm7836_vm2, %v2385_v59, %v2389_v43 }
  0x56   : > { %7023 = vmatprep.subr.bf16.mxu0 %v7545_v29  ;;  %v5794_v57 = vcombine.low %v481_v35, %v491_v53  ;;  %6865 = vmatprep.subr.bf16.mxu1 %v7561_v52  ;;  %v2395_v4 = vshll.u32 %v5983_v41, 16  ;;  %v6034_v10 = vcombine.low %v2380_v58, %v2390_v3  ;;  %v505_v20 = vsel %vm7836_vm2, %v500_v11, %v504_v60  ;;  %v297_v52 = vld [vmem:[%s7775_s11 + $0x60] sm:$0xf] }
  0x57   : > { %v514_v63 = vrot.slane %v512_v56, 5  ;;  %v2408_v26 = vor.u32 %v2407_v18, %v2403_v17  ;;  %v2413_v28 = vrot.slane %v2411_v19, 5  ;;  %v519_v33 = vrot.slane %v517_v22, 4 }
  0x58   : > { %6794 = vmatmul.mubr.bf16.gmra.mrb[8].mxu1 %v5794_v57  ;;  %v2397_v16 = vrot.slane %v2395_v4, 5  ;;  %6986 = vmatmul.mubr.bf16.gmra.mrb[8].mxu0 %v6034_v10  ;;  %v522_v34 = vrot.slane %v520_v23, 5  ;;  %v530_v35 = vshrl.u32 %v296_v15, 16  ;;  %v528_v42 = vrot.slane %v526_v30, 5  ;;  %v298_v57 = vld [vmem:[%s7775_s11 + $0x64] sm:$0xf] }
  0x59   : > { %7024 = vmatpush3.bf16.msra.mxu0 %v7545_v29  ;;  %v336_v29 = vld [vmem:[%s7775_s11 + $0x5c] sm:$0x1]  ;;  %v515_v12 = vsel %vm7836_vm2, %v510_v21, %v514_v63  ;;  %v2409_v41 = vrot.slane %v2408_v26, 4  ;;  %v2416_v46 = vshrl.u32 %v5986_v31, 16  ;;  %v2419_v50 = vshll.u32 %v5986_v31, 16 }
  0x5a   : > { %7057 = vmatprep.subr.bf16.mxu0 %v7549_v47  ;;  %v2398_v24 = vor.u32 %v2397_v16, %v2394_v14  ;;  %v5795_v39 = vcombine.low %v505_v20, %v515_v12  ;;  %v523_v43 = vor.u32 %v522_v34, %v519_v33  ;;  %v532_v44 = vrot.slane %v530_v35, 4  ;;  %v5989_v63 = vld [vmem:[%s7775_s11 + $0x6c] sm:$0xf]  ;;  %v8025_v20 = vld [vmem:[%s7775_s11 + $0x70] sm:$0xf] }
  0x5b   : > { %v536_v45 = vshll.u32 %v336_v29, 16  ;;  %v2414_v48 = vsel %vm7836_vm2, %v2409_v41, %v2413_v28  ;;  %v2425_v51 = vshll.u32 %v5987_v38, 16  ;;  %v2418_v58 = vrot.slane %v2416_v46, 4  ;;  %v5991_v30 = vld [vmem:[%s7775_s11 + $0x74] sm:$0x1] }
  0x5c   : > { %v2399_v40 = vrot.slane %v2398_v24, 4  ;;  %6797 = vmatprep.mubr.bf16.mxu1 %v5795_v39  ;;  %v524_v54 = vrot.slane %v523_v43, 4  ;;  %v533_v55 = vor.u32 %v532_v44, %v528_v42  ;;  %v2421_v59 = vrot.slane %v2419_v50, 5  ;;  %v300_v43 = vld [vmem:[%s7775_s11 + $0x70] sm:$0xf] }
  0x5d   : > { %v538_v56 = vrot.slane %v536_v45, 5  ;;  %v2427_v60 = vrot.slane %v2425_v51, 5  ;;  %v2429_v61 = vshrl.u32 %v5987_v38, 16  ;;  %v2435_v3 = vshll.u32 %v5988_v49, 16  ;;  %v299_v38 = vld [vmem:[%s7775_s11 + $0x6c] sm:$0xf] }
  0x5e   : > { %v2404_v47 = vsel %vm7836_vm2, %v2399_v40, %v2403_v17  ;;  %v529_v0 = vsel %vm7836_vm2, %v524_v54, %v528_v42  ;;  %v534_v1 = vrot.slane %v533_v55, 4  ;;  %v541_v4 = vshrl.u32 %v297_v52, 16 }
  0x5f   : > { %v6035_v53 = vcombine.low %v2404_v47, %v2414_v48  ;;  %v2422_v5 = vor.u32 %v2421_v59, %v2418_v58  ;;  %v2431_v7 = vrot.slane %v2429_v61, 4  ;;  %v544_v8 = vshll.u32 %v297_v52, 16  ;;  %v338_v48 = vld [vmem:[%s7775_s11 + $0x74] sm:$0x1] }
  0x60   : > { %v550_v10 = vshll.u32 %v298_v57, 16  ;;  %v539_v11 = vsel %vm7836_vm2, %v534_v1, %v538_v56  ;;  %v2437_v13 = vrot.slane %v2435_v3, 5  ;;  %v543_v14 = vrot.slane %v541_v4, 4  ;;  %v5994_v4 = vld [vmem:[%s7775_s11 + $0x80] sm:$0x1] }
  0x61   : > { %6989 = vmatprep.mubr.bf16.mxu0 %v6035_v53  ;;  %v554_v15 = vshrl.u32 %v298_v57, 16  ;;  %v5796_v16 = vcombine.low %v529_v0, %v539_v11  ;;  %v2423_v17 = vrot.slane %v2422_v5, 4  ;;  %v2432_v18 = vor.u32 %v2431_v7, %v2427_v60  ;;  %v5992_v57 = vld [vmem:[%s7775_s11 + $0x78] sm:$0xf] }
  0x62   : > { %v546_v19 = vrot.slane %v544_v8, 5  ;;  %v552_v21 = vrot.slane %v550_v10, 5  ;;  %v560_v23 = vshll.u32 %v337_v62, 16  ;;  %v2440_v24 = vshrl.u32 %v5989_v63, 16  ;;  %v5993_v62 = vld [vmem:[%s7775_s11 + $0x7c] sm:$0xf] }
  0x63   : > { %v556_v22 = vrot.slane %v554_v15, 4  ;;  %6798 = vmatmul.mubr.bf16.gmra.mrb[12].mxu1 %v5796_v16  ;;  %v2428_v26 = vsel %vm7836_vm2, %v2423_v17, %v2427_v60  ;;  %v2433_v28 = vrot.slane %v2432_v18, 4  ;;  %v2443_v31 = vshll.u32 %v5989_v63, 16  ;;  %v301_v5 = vld [vmem:[%s7775_s11 + $0x78] sm:$0xf] }
  0x64   : > { %v547_v29 = vor.u32 %v546_v19, %v543_v14  ;;  %v562_v33 = vrot.slane %v560_v23, 5  ;;  %v2442_v34 = vrot.slane %v2440_v24, 4  ;;  %v2449_v35 = vshll.u32 %v8025_v20, 16 }
  0x65   : > { %v557_v12 = vor.u32 %v556_v22, %v552_v21  ;;  %v2438_v39 = vsel %vm7836_vm2, %v2433_v28, %v2437_v13  ;;  %v2445_v41 = vrot.slane %v2443_v31, 5  ;;  %v2453_v42 = vshrl.u32 %v8025_v20, 16  ;;  %v302_v13 = vld [vmem:[%s7775_s11 + $0x7c] sm:$0xf] }
  0x66   : > { %v548_v40 = vrot.slane %v547_v29, 4  ;;  %v6036_v44 = vcombine.low %v2428_v26, %v2438_v39  ;;  %v2451_v46 = vrot.slane %v2449_v35, 5  ;;  %v2459_v47 = vshll.u32 %v5991_v30, 16  ;;  %v339_v35 = vld [vmem:[%s7775_s11 + $0x80] sm:$0x1] }
  0x67   : > { %v558_v45 = vrot.slane %v557_v12, 4  ;;  %v2446_v50 = vor.u32 %v2445_v41, %v2442_v34  ;;  %v2455_v51 = vrot.slane %v2453_v42, 4  ;;  %v565_v52 = vshrl.u32 %v299_v38, 16 }
  0x68   : > { %v553_v49 = vsel %vm7836_vm2, %v548_v40, %v552_v21  ;;  %6990 = vmatmul.mubr.bf16.gmra.mrb[12].mxu0 %v6036_v44  ;;  %v2461_v54 = vrot.slane %v2459_v47, 5  ;;  %v568_v55 = vshll.u32 %v299_v38, 16  ;;  %v574_v56 = vshll.u32 %v300_v43, 16  ;;  %v5995_v44 = vld [vmem:[%s7775_s11 + $0x84] sm:$0xf] }
  0x69   : > { %v563_v53 = vsel %vm7836_vm2, %v558_v45, %v562_v33  ;;  %v2447_v59 = vrot.slane %v2446_v50, 4  ;;  %v2456_v60 = vor.u32 %v2455_v51, %v2451_v46  ;;  %v567_v61 = vrot.slane %v565_v52, 4 }
  0x6a   : > { %v5797_v58 = vcombine.low %v553_v49, %v563_v53  ;;  %v570_v63 = vrot.slane %v568_v55, 5  ;;  %v576_v0 = vrot.slane %v574_v56, 5  ;;  %v578_v1 = vshrl.u32 %v300_v43, 16  ;;  %v8057_v49 = vld [vmem:[%s7775_s11 + $0x88] sm:$0xf] }
  0x6b   : > { %v584_v3 = vshll.u32 %v338_v48, 16  ;;  %v2452_v7 = vsel %vm7836_vm2, %v2447_v59, %v2451_v46  ;;  %v2457_v8 = vrot.slane %v2456_v60, 4  ;;  %v2464_v10 = vshrl.u32 %v5992_v57, 16  ;;  %v303_v59 = vld [vmem:[%s7775_s11 + $0x84] sm:$0xf] }
  0x6c   : > { %6801 = vmatprep.mubr.bf16.mxu1 %v5797_v58  ;;  %v2467_v11 = vshll.u32 %v5992_v57, 16  ;;  %v571_v14 = vor.u32 %v570_v63, %v567_v61  ;;  %v580_v15 = vrot.slane %v578_v1, 4  ;;  %v2473_v17 = vshll.u32 %v5993_v62, 16 }
  0x6d   : > { %v586_v16 = vrot.slane %v584_v3, 5  ;;  %v2462_v18 = vsel %vm7836_vm2, %v2457_v8, %v2461_v54  ;;  %v2466_v19 = vrot.slane %v2464_v10, 4  ;;  %v2477_v22 = vshrl.u32 %v5993_v62, 16  ;;  %v5997_v54 = vld [vmem:[%s7775_s11 + $0x8c] sm:$0x1] }
  0x6e   : > { %v2469_v21 = vrot.slane %v2467_v11, 5  ;;  %v6037_v23 = vcombine.low %v2452_v7, %v2462_v18  ;;  %v572_v24 = vrot.slane %v571_v14, 4  ;;  %v581_v26 = vor.u32 %v580_v15, %v576_v0  ;;  %v5998_v14 = vld [vmem:[%s7775_s11 + $0x90] sm:$0xf] }
  0x6f   : > { %v2475_v28 = vrot.slane %v2473_v17, 5  ;;  %v2479_v30 = vrot.slane %v2477_v22, 4  ;;  %v2483_v31 = vshll.u32 %v5994_v4, 16  ;;  %v589_v12 = vshrl.u32 %v301_v5, 16 }
  0x70   : > { %v2470_v29 = vor.u32 %v2469_v21, %v2466_v19  ;;  %6993 = vmatprep.mubr.bf16.mxu0 %v6037_v23  ;;  %v577_v33 = vsel %vm7836_vm2, %v572_v24, %v576_v0  ;;  %v582_v34 = vrot.slane %v581_v26, 4  ;;  %v592_v38 = vshll.u32 %v301_v5, 16  ;;  %v304_v5 = vld [vmem:[%s7775_s11 + $0x88] sm:$0xf]  ;;  %v8073_v19 = vld [vmem:[%s7775_s11 + $0x94] sm:$0xf] }
  0x71   : > { %v598_v39 = vshll.u32 %v302_v13, 16  ;;  %v2480_v41 = vor.u32 %v2479_v30, %v2475_v28  ;;  %v2485_v42 = vrot.slane %v2483_v31, 5  ;;  %v591_v43 = vrot.slane %v589_v12, 4 }
  0x72   : > { %v2471_v40 = vrot.slane %v2470_v29, 4  ;;  %v587_v45 = vsel %vm7836_vm2, %v582_v34, %v586_v16  ;;  %v594_v46 = vrot.slane %v592_v38, 5  ;;  %v602_v48 = vshrl.u32 %v302_v13, 16  ;;  %v340_v13 = vld [vmem:[%s7775_s11 + $0x8c] sm:$0x1] }
  0x73   : > { %v600_v47 = vrot.slane %v598_v39, 5  ;;  %v5798_v50 = vcombine.low %v577_v33, %v587_v45  ;;  %v2481_v52 = vrot.slane %v2480_v41, 4  ;;  %v608_v53 = vshll.u32 %v339_v35, 16 }
  0x74   : > { %v2476_v51 = vsel %vm7836_vm2, %v2471_v40, %v2475_v28  ;;  %v595_v55 = vor.u32 %v594_v46, %v591_v43  ;;  %v604_v56 = vrot.slane %v602_v48, 4  ;;  %v2488_v57 = vshrl.u32 %v5995_v44, 16  ;;  %v8078_v40 = vld [vmem:[%s7775_s11 + $0x98] sm:$0x1]  ;;  %v8086_v46 = vld [vmem:[%s7775_s11 + $0x90] sm:$0xf] }
  0x75   : > { %v2491_v58 = vshll.u32 %v5995_v44, 16  ;;  %6802 = vmatmul.mubr.bf16.gmra.mrb[16].mxu1 %v5798_v50  ;;  %v2486_v60 = vsel %vm7836_vm2, %v2481_v52, %v2485_v42  ;;  %v610_v61 = vrot.slane %v608_v53, 5  ;;  %v2497_v62 = vshll.u32 %v8057_v49, 16  ;;  %v8089_v52 = vld [vmem:[%s7775_s11 + $0x94] sm:$0xf] }
  0x76   : > { %v2501_v63 = vshrl.u32 %v8057_v49, 16  ;;  %v6038_v0 = vcombine.low %v2476_v51, %v2486_v60  ;;  %v596_v1 = vrot.slane %v595_v55, 4  ;;  %v605_v3 = vor.u32 %v604_v56, %v600_v47 }
  0x77   : > { %v2490_v4 = vrot.slane %v2488_v57, 4  ;;  %v2493_v7 = vrot.slane %v2491_v58, 5  ;;  %v2499_v8 = vrot.slane %v2497_v62, 5  ;;  %v2507_v11 = vshll.u32 %v5997_v54, 16  ;;  %v341_v57 = vld [vmem:[%s7775_s11 + $0x98] sm:$0x1] }
  0x78   : > { %v2503_v10 = vrot.slane %v2501_v63, 4  ;;  %6994 = vmatmul.mubr.bf16.gmra.mrb[16].mxu0 %v6038_v0  ;;  %v601_v15 = vsel %vm7836_vm2, %v596_v1, %v600_v47  ;;  %v606_v16 = vrot.slane %v605_v3, 4  ;;  %v613_v17 = vshrl.u32 %v303_v59, 16  ;;  %v6001_v58 = vld [vmem:[%s7775_s11 + $0x9c] sm:$0xf] }
  0x79   : > { %v616_v18 = vshll.u32 %v303_v59, 16  ;;  %v2494_v21 = vor.u32 %v2493_v7, %v2490_v4  ;;  %v2509_v23 = vrot.slane %v2507_v11, 5  ;;  %v622_v24 = vshll.u32 %v304_v5, 16 }
  0x7a   : > { %v2504_v22 = vor.u32 %v2503_v10, %v2499_v8  ;;  %v611_v26 = vsel %vm7836_vm2, %v606_v16, %v610_v61  ;;  %v615_v28 = vrot.slane %v613_v17, 4  ;;  %v626_v30 = vshrl.u32 %v304_v5, 16  ;;  %v8104_v10 = vld [vmem:[%s7775_s11 + $0xa0] sm:$0xf]  ;;  %v8107_v16 = vld [vmem:[%s7775_s11 + $0xa4] sm:$0x1] }
  0x7b   : > { %v618_v29 = vrot.slane %v616_v18, 5  ;;  %v5799_v31 = vcombine.low %v601_v15, %v611_v26  ;;  %v2495_v12 = vrot.slane %v2494_v21, 4  ;;  %v624_v34 = vrot.slane %v622_v24, 5 }
  0x7c   : > { %v2505_v33 = vrot.slane %v2504_v22, 4  ;;  %v628_v38 = vrot.slane %v626_v30, 4  ;;  %v632_v39 = vshll.u32 %v340_v13, 16  ;;  %v2512_v41 = vshrl.u32 %v5998_v14, 16  ;;  %v8115_v30 = vld [vmem:[%s7775_s11 + $0xa0] sm:$0xf] }
  0x7d   : > { %v619_v35 = vor.u32 %v618_v29, %v615_v28  ;;  %6805 = vmatprep.mubr.bf16.mxu1 %v5799_v31  ;;  %v2500_v42 = vsel %vm7836_vm2, %v2495_v12, %v2499_v8  ;;  %v2515_v44 = vshll.u32 %v5998_v14, 16  ;;  %v2521_v45 = vshll.u32 %v8073_v19, 16  ;;  %v8112_v29 = vld [vmem:[%s7775_s11 + $0x9c] sm:$0xf] }
  0x7e   : > { %v2510_v43 = vsel %vm7836_vm2, %v2505_v33, %v2509_v23  ;;  %v629_v50 = vor.u32 %v628_v38, %v624_v34  ;;  %v634_v51 = vrot.slane %v632_v39, 5  ;;  %v2514_v53 = vrot.slane %v2512_v41, 4 }
  0x7f   : > { %v6039_v47 = vcombine.low %v2500_v42, %v2510_v43  ;;  %v620_v48 = vrot.slane %v619_v35, 4  ;;  %v2517_v54 = vrot.slane %v2515_v44, 5  ;;  %v2523_v55 = vrot.slane %v2521_v45, 5  ;;  %v342_v42 = vld [vmem:[%s7775_s11 + $0xa4] sm:$0x1] }
  0x80   : > { %v2525_v56 = vshrl.u32 %v8073_v19, 16  ;;  %v630_v60 = vrot.slane %v629_v50, 4  ;;  %v2531_v61 = vshll.u32 %v8078_v40, 16  ;;  %v637_v62 = vshrl.u32 %v8086_v46, 16 }
  0x81   : > { %6997 = vmatprep.mubr.bf16.mxu0 %v6039_v47  ;;  %v625_v59 = vsel %vm7836_vm2, %v620_v48, %v624_v34  ;;  %v2518_v63 = vor.u32 %v2517_v54, %v2514_v53  ;;  %v640_v1 = vshll.u32 %v8086_v46, 16  ;;  %v646_v3 = vshll.u32 %v8089_v52, 16  ;;  %v6004_v48 = vld [vmem:[%s7775_s11 + $0xa8] sm:$0xf] }
  0x82   : > { %v2527_v0 = vrot.slane %v2525_v56, 4  ;;  %v635_v4 = vsel %vm7836_vm2, %v630_v60, %v634_v51  ;;  %v2533_v5 = vrot.slane %v2531_v61, 5  ;;  %v639_v7 = vrot.slane %v637_v62, 4 }
  0x83   : > { %v650_v8 = vshrl.u32 %v8089_v52, 16  ;;  %v5800_v11 = vcombine.low %v625_v59, %v635_v4  ;;  %v2519_v13 = vrot.slane %v2518_v63, 4  ;;  %v642_v15 = vrot.slane %v640_v1, 5  ;;  %v8132_v59 = vld [vmem:[%s7775_s11 + $0xac] sm:$0xf] }
  0x84   : > { %v2528_v14 = vor.u32 %v2527_v0, %v2523_v55  ;;  %v648_v17 = vrot.slane %v646_v3, 5  ;;  %v656_v21 = vshll.u32 %v341_v57, 16  ;;  %v2536_v22 = vshrl.u32 %v6001_v58, 16 }
  0x85   : > { %v652_v18 = vrot.slane %v650_v8, 4  ;;  %6806 = vmatmul.mubr.bf16.gmra.mrb[20].mxu1 %v5800_v11  ;;  %v2524_v23 = vsel %vm7836_vm2, %v2519_v13, %v2523_v55  ;;  %v643_v26 = vor.u32 %v642_v15, %v639_v7  ;;  %v2539_v28 = vshll.u32 %v6001_v58, 16  ;;  %v8139_v7 = vld [vmem:[%s7775_s11 + $0xa8] sm:$0xf] }
  0x86   : > { %v2529_v24 = vrot.slane %v2528_v14, 4  ;;  %v658_v12 = vrot.slane %v656_v21, 5  ;;  %v2538_v33 = vrot.slane %v2536_v22, 4  ;;  %v2545_v34 = vshll.u32 %v8104_v10, 16  ;;  %v8145_v22 = vld [vmem:[%s7775_s11 + $0xac] sm:$0xf] }
  0x87   : > { %v653_v31 = vor.u32 %v652_v18, %v648_v17  ;;  %v644_v38 = vrot.slane %v643_v26, 4  ;;  %v2541_v39 = vrot.slane %v2539_v28, 5  ;;  %v2549_v41 = vshrl.u32 %v8104_v10, 16 }
  0x88   : > { %v2534_v35 = vsel %vm7836_vm2, %v2529_v24, %v2533_v5  ;;  %v2547_v45 = vrot.slane %v2545_v34, 5  ;;  %v2555_v47 = vshll.u32 %v8107_v16, 16  ;;  %v661_v54 = vshrl.u32 %v8112_v29, 16  ;;  %v8136_v5 = vld [vmem:[%s7775_s11 + $0xb0] sm:$0x1] }
  0x89   : > { %v6040_v43 = vcombine.low %v2524_v23, %v2534_v35  ;;  %v654_v44 = vrot.slane %v653_v31, 4  ;;  %v649_v50 = vsel %vm7836_vm2, %v644_v38, %v648_v17  ;;  %v2542_v51 = vor.u32 %v2541_v39, %v2538_v33  ;;  %v343_v35 = vld [vmem:[%s7775_s11 + $0xb0] sm:$0x1] }
  0x8a   : > { %v2551_v53 = vrot.slane %v2549_v41, 4  ;;  %v2557_v56 = vrot.slane %v2555_v47, 5  ;;  %v664_v57 = vshll.u32 %v8112_v29, 16  ;;  %v670_v58 = vshll.u32 %v8115_v30, 16 }
  0x8b   : > { %6998 = vmatmul.mubr.bf16.gmra.mrb[20].mxu0 %v6040_v43  ;;  %v659_v55 = vsel %vm7836_vm2, %v654_v44, %v658_v12  ;;  %v2543_v61 = vrot.slane %v2542_v51, 4  ;;  %v663_v63 = vrot.slane %v661_v54, 4  ;;  %v674_v3 = vshrl.u32 %v8115_v30, 16  ;;  %v6007_v43 = vld [vmem:[%s7775_s11 + $0xb4] sm:$0xf] }
  0x8c   : > { %v5801_v60 = vcombine.low %v649_v50, %v659_v55  ;;  %v2552_v62 = vor.u32 %v2551_v53, %v2547_v45  ;;  %v666_v0 = vrot.slane %v664_v57, 5  ;;  %v672_v1 = vrot.slane %v670_v58, 5  ;;  %v8159_v50 = vld [vmem:[%s7775_s11 + $0xb8] sm:$0xf] }
  0x8d   : > { %v680_v4 = vshll.u32 %v342_v42, 16  ;;  %v2548_v8 = vsel %vm7836_vm2, %v2543_v61, %v2547_v45  ;;  %v2560_v13 = vshrl.u32 %v6004_v48, 16  ;;  %v2563_v14 = vshll.u32 %v6004_v48, 16  ;;  %v8165_v61 = vld [vmem:[%s7775_s11 + $0xbc] sm:$0x1] }
  0x8e   : > { %6809 = vmatprep.mubr.bf16.mxu1 %v5801_v60  ;;  %v2553_v11 = vrot.slane %v2552_v62, 4  ;;  %v667_v15 = vor.u32 %v666_v0, %v663_v63  ;;  %v676_v17 = vrot.slane %v674_v3, 4  ;;  %v2569_v21 = vshll.u32 %v8132_v59, 16  ;;  %v8170_v3 = vld [vmem:[%s7775_s11 + $0xb4] sm:$0xf] }
  0x8f   : > { %v682_v18 = vrot.slane %v680_v4, 5  ;;  %v2562_v24 = vrot.slane %v2560_v13, 4  ;;  %v2565_v26 = vrot.slane %v2563_v14, 5  ;;  %v2573_v28 = vshrl.u32 %v8132_v59, 16 }
  0x90   : > { %v2558_v23 = vsel %vm7836_vm2, %v2553_v11, %v2557_v56  ;;  %v668_v12 = vrot.slane %v667_v15, 4  ;;  %v677_v33 = vor.u32 %v676_v17, %v672_v1  ;;  %v2571_v34 = vrot.slane %v2569_v21, 5  ;;  %v8177_v21 = vld [vmem:[%s7775_s11 + $0xb8] sm:$0xf] }
  0x91   : > { %v6041_v31 = vcombine.low %v2548_v8, %v2558_v23  ;;  %v2566_v38 = vor.u32 %v2565_v26, %v2562_v24  ;;  %v2575_v39 = vrot.slane %v2573_v28, 4  ;;  %v2579_v41 = vshll.u32 %v8136_v5, 16 }
  0x92   : > { %v685_v42 = vshrl.u32 %v8139_v7, 16  ;;  %v673_v44 = vsel %vm7836_vm2, %v668_v12, %v672_v1  ;;  %v678_v45 = vrot.slane %v677_v33, 4  ;;  %v688_v47 = vshll.u32 %v8139_v7, 16 }
  0x93   : > { %7001 = vmatprep.mubr.bf16.mxu0 %v6041_v31  ;;  %v694_v48 = vshll.u32 %v8145_v22, 16  ;;  %v2567_v51 = vrot.slane %v2566_v38, 4  ;;  %v2576_v53 = vor.u32 %v2575_v39, %v2571_v34  ;;  %v2581_v54 = vrot.slane %v2579_v41, 5  ;;  %v6010_v38 = vld [vmem:[%s7775_s11 + $0xc0] sm:$0xf] }
  0x94   : > { %v687_v55 = vrot.slane %v685_v42, 4  ;;  %v683_v56 = vsel %vm7836_vm2, %v678_v45, %v682_v18  ;;  %v690_v57 = vrot.slane %v688_v47, 5  ;;  %v698_v60 = vshrl.u32 %v8145_v22, 16 }
  0x95   : > { %v696_v58 = vrot.slane %v694_v48, 5  ;;  %v5802_v62 = vcombine.low %v673_v44, %v683_v56  ;;  %v2572_v63 = vsel %vm7836_vm2, %v2567_v51, %v2571_v34  ;;  %v2577_v0 = vrot.slane %v2576_v53, 4  ;;  %v8188_v51 = vld [vmem:[%s7775_s11 + $0xc4] sm:$0xf] }
  0x96   : > { %v704_v1 = vshll.u32 %v343_v35, 16  ;;  %v691_v4 = vor.u32 %v690_v57, %v687_v55  ;;  %v700_v8 = vrot.slane %v698_v60, 4  ;;  %v2584_v11 = vshrl.u32 %v6007_v43, 16  ;;  %v344_v35 = vld [vmem:[%s7775_s11 + $0xbc] sm:$0x1] }
  0x97   : > { %v2587_v13 = vshll.u32 %v6007_v43, 16  ;;  %6810 = vmatmul.mubr.bf16.gmra.mrb[24].mxu1 %v5802_v62  ;;  %v2582_v14 = vsel %vm7836_vm2, %v2577_v0, %v2581_v54  ;;  %v2593_v17 = vshll.u32 %v8159_v50, 16  ;;  %v2597_v18 = vshrl.u32 %v8159_v50, 16 }
  0x98   : > { %v706_v15 = vrot.slane %v704_v1, 5  ;;  %v6042_v23 = vcombine.low %v2572_v63, %v2582_v14  ;;  %v692_v24 = vrot.slane %v691_v4, 4  ;;  %v701_v26 = vor.u32 %v700_v8, %v696_v58  ;;  %v8194_v63 = vld [vmem:[%s7775_s11 + $0xc8] sm:$0x1] }
  0x99   : > { %v2586_v28 = vrot.slane %v2584_v11, 4  ;;  %v2589_v31 = vrot.slane %v2587_v13, 5  ;;  %v2595_v12 = vrot.slane %v2593_v17, 5  ;;  %v2599_v33 = vrot.slane %v2597_v18, 4 }
  0x9a   : > { %v2603_v34 = vshll.u32 %v8165_v61, 16  ;;  %7002 = vmatmul.mubr.bf16.gmra.mrb[24].mxu0 %v6042_v23  ;;  %v697_v39 = vsel %vm7836_vm2, %v692_v24, %v696_v58  ;;  %v702_v41 = vrot.slane %v701_v26, 4  ;;  %v709_v42 = vshrl.u32 %v8170_v3, 16  ;;  %v6053_v26 = vld [vmem:[%s7775_s11 + $0xc] sm:$0xe] }
  0x9b   : > { %v712_v43 = vshll.u32 %v8170_v3, 16  ;;  %v2590_v44 = vor.u32 %v2589_v31, %v2586_v28  ;;  %v2600_v45 = vor.u32 %v2599_v33, %v2595_v12  ;;  %v718_v48 = vshll.u32 %v8177_v21, 16 }
  0x9c   : > { %v2605_v47 = vrot.slane %v2603_v34, 5  ;;  %v707_v53 = vsel %vm7836_vm2, %v702_v41, %v706_v15  ;;  %v711_v54 = vrot.slane %v709_v42, 4  ;;  %v722_v56 = vshrl.u32 %v8177_v21, 16 }
  0x9d   : > { %v714_v55 = vrot.slane %v712_v43, 5  ;;  %v5803_v57 = vcombine.low %v697_v39, %v707_v53  ;;  %v2591_v58 = vrot.slane %v2590_v44, 4  ;;  %v2601_v60 = vrot.slane %v2600_v45, 4  ;;  %v6054_v39 = vld [vmem:[%s7775_s11 + $0x18] sm:$0xe] }
  0x9e   : > { %v720_v62 = vrot.slane %v718_v48, 5  ;;  %v724_v1 = vrot.slane %v722_v56, 4  ;;  %v728_v4 = vshll.u32 %v344_v35, 16  ;;  %v2608_v8 = vshrl.u32 %v6010_v38, 16  ;;  %v7643_v44 = vld [vmem:[%s7775_s11] sm:$0xf] }
  0x9f   : > { %v715_v0 = vor.u32 %v714_v55, %v711_v54  ;;  %6813 = vmatprep.mubr.bf16.mxu1 %v5803_v57  ;;  %v2596_v11 = vsel %vm7836_vm2, %v2591_v58, %v2595_v12  ;;  %v2606_v13 = vsel %vm7836_vm2, %v2601_v60, %v2605_v47  ;;  %v2611_v14 = vshll.u32 %v6010_v38, 16  ;;  %v8211_v45 = vld [vmem:[%s7775_s11 + $0x4] sm:$0xf]  ;;  %v7645_v54 = vld [vmem:[%s7775_s11 + $0x10] sm:$0xf] }
  0xa0   : > { %v2617_v15 = vshll.u32 %v8188_v51, 16  ;;  %v6043_v17 = vcombine.low %v2596_v11, %v2606_v13  ;;  %v725_v23 = vor.u32 %v724_v1, %v720_v62  ;;  %v730_v24 = vrot.slane %v728_v4, 5 }
  0xa1   : > { %v716_v18 = vrot.slane %v715_v0, 4  ;;  %v2610_v28 = vrot.slane %v2608_v8, 4  ;;  %v2613_v31 = vrot.slane %v2611_v14, 5  ;;  %v2621_v34 = vshrl.u32 %v8188_v51, 16  ;;  %v6055_v8 = vld [vmem:[%s7775_s11 + $0x24] sm:$0xe] }
  0xa2   : > { %v2619_v33 = vrot.slane %v2617_v15, 5  ;;  %7005 = vmatprep.mubr.bf16.mxu0 %v6043_v17  ;;  %v726_v35 = vrot.slane %v725_v23, 4  ;;  %v2627_v38 = vshll.u32 %v8194_v63, 16  ;;  %v5813_v47 = vcombine.low %v7643_v44, %v8211_v45 }
  0xa3   : > { %v721_v12 = vsel %vm7836_vm2, %v716_v18, %v720_v62  ;;  %v2614_v41 = vor.u32 %v2613_v31, %v2610_v28  ;;  %v2623_v42 = vrot.slane %v2621_v34, 4  ;;  %v6069_v53 = vrot.slane %v6053_v26, 9  ;;  %v7648_v26 = vld [vmem:[%s7775_s11 + $0xc] sm:$0xf]  ;;  %v6056_v31 = vld [vmem:[%s7775_s11 + $0x30] sm:$0xe] }
  0xa4   : > { %v731_v43 = vsel %vm7836_vm2, %v726_v35, %v730_v24  ;;  %v3019_v55 = vrot.slane %v7645_v54, 5  ;;  %v2629_v60 = vrot.slane %v2627_v38, 5  ;;  %v6070_v1 = vrot.slane %v6054_v39, 9  ;;  %v7647_v24 = vld [vmem:[%s7775_s11 + $0x2c] sm:$0x1] }
  0xa5   : > { %v5804_v56 = vcombine.low %v721_v12, %v731_v43  ;;  %v2615_v57 = vrot.slane %v2614_v41, 4  ;;  %v2624_v58 = vor.u32 %v2623_v42, %v2619_v33  ;;  %v8226_v4 = vsel %vm8214_vm5, %v7888_v37, %v3029_v32  ;;  %v7646_v37 = vld [vmem:[%s7775_s11 + $0x28] sm:$0xf]  ;;  %v7650_v34 = vld [vmem:[%s7775_s11 + $0x18] sm:$0xf] }
  0xa6   : > { %v3020_v62 = vsel %vm8214_vm5, %v6069_v53, %v3019_v55  ;;  %v3021_v0 = vrot.slane %v3019_v55, 4  ;;  %v3027_v32 = vsel %vm8214_vm5, %v6070_v1, %v3026_v27  ;;  %v3033_v14 = vrot.slane %v7646_v37, 5  ;;  %v8246_v27 = vld [vmem:[%s7775_s11 + $0x10] sm:$0xf]  ;;  %v8255_v12 = vld [vmem:[%s7775_s11 + $0x1c] sm:$0xf] }
  0xa7   : > { %6814 = vmatmul.mubr.bf16.gmra.mrb[28].mxu1 %v5804_v56  ;;  %v2620_v11 = vsel %vm7836_vm2, %v2615_v57, %v2619_v33  ;;  %v2625_v13 = vrot.slane %v2624_v58, 4  ;;  %v6102_v25 = vcombine.low %v3027_v32, %v8226_v4  ;;  %v6071_v18 = vrot.slane %v6055_v8, 9  ;;  %v7563_v33 = vld [vmem:[%s9743_s1 + $0x88] sm:$0xff]   ;;  %v7652_v38 = vld [vmem:[%s7775_s11 + $0x34] sm:$0xf]  ;;  %v7656_v4 = vld [vmem:[%s9743_s1 + $0x80] sm:$0xff]  }
  0xa8   : > { %6833 = vmatprep.mubr.bf16.mxu1 %v5813_v47  ;;  %v3023_v9 = vsel %vm8214_vm5, %v3021_v0, %v3022_v2  ;;  %v3035_v2 = vrot.slane %v3033_v14, 4  ;;  %v3036_v6 = vrot.slane %v7647_v24, 5  ;;  %v5814_v28 = vcombine.low %v7648_v26, %v8246_v27  ;;  %v7653_v41 = vld [vmem:[%s7775_s11 + $0x40] sm:$0xf]  ;;  %v6057_v43 = vld [vmem:[%s7775_s11 + $0x3c] sm:$0xe] }
  0xa9   : > { %v2630_v15 = vsel %vm7836_vm2, %v2625_v13, %v2629_v60  ;;  %v6101_v17 = vcombine.low %v3020_v62, %v3023_v9  ;;  %v5815_v35 = vcombine.low %v7650_v34, %v8255_v12  ;;  %v3040_v39 = vrot.slane %v7652_v38, 5  ;;  %v7654_v54 = vld [vmem:[%s7775_s11 + $0x38] sm:$0x1]  ;;  %v6058_v56 = vld [vmem:[%s7775_s11 + $0x48] sm:$0xe]  ;;  %v7555_v38 = vld [vmem:[%s9743_s1 + $0x190] sm:$0xff]  }
  0xaa   : > { %v6044_v23 = vcombine.low %v2620_v11, %v2630_v15  ;;  %v3047_v42 = vrot.slane %v7653_v41, 5  ;;  %v3034_v44 = vsel %vm8214_vm5, %v6071_v18, %v3033_v14  ;;  %v3037_v47 = vsel %vm8214_vm5, %v3035_v2, %v3036_v6  ;;  %v7552_v58 = vld [vmem:[%s9743_s1 + $0x188] sm:$0xff]   ;;  %v7655_v0 = vld [vmem:[%s7775_s11 + $0x44] sm:$0x1]  ;;  %v7658_v9 = vld [vmem:[%s7775_s11 + $0x58] sm:$0xf] }
  0xab   : > { %v6072_v53 = vrot.slane %v6056_v31, 9  ;;  %v3043_v55 = vrot.slane %v7654_v54, 5  ;;  %v3042_v57 = vrot.slane %v3040_v39, 4  ;;  %v6073_v60 = vrot.slane %v6057_v43, 9  ;;  %v7657_v11 = vld [vmem:[%s7775_s11 + $0x4c] sm:$0xf] }
  0xac   : > { %7006 = vmatmul.mubr.bf16.gmra.mrb[28].mxu0 %v6044_v23  ;;  %v3049_v62 = vrot.slane %v3047_v42, 4  ;;  %v3050_v1 = vrot.slane %v7655_v0, 5  ;;  %v6103_v8 = vcombine.low %v3034_v44, %v3037_v47  ;;  %v3054_v13 = vrot.slane %v7657_v11, 5  ;;  %v6059_v37 = vld [vmem:[%s7775_s11 + $0x54] sm:$0xe]  ;;  %v7664_v41 = vld [vmem:[%s9743_s1 + $0x180] sm:$0xff]  }
  0xad   : > { %7025 = vmatprep.mubr.bf16.mxu0 %v6101_v17  ;;  %v3061_v32 = vrot.slane %v7658_v9, 5  ;;  %v7566_v14 = vld [vmem:[%s9743_s1 + $0x90] sm:$0xff]   ;;  %v7659_v15 = vld [vmem:[%s7775_s11 + $0x24] sm:$0xf]  ;;  %v8282_v17 = vld [vmem:[%s7775_s11 + $0x28] sm:$0xf]  ;;  %v3041_v23 = vsel %vm8214_vm5, %v6072_v53, %v3040_v39  ;;  %v3044_v26 = vsel %vm8214_vm5, %v3042_v57, %v3043_v55 }
  0xae   : > { %v5816_v18 = vcombine.low %v7659_v15, %v8282_v17  ;;  %v7661_v2 = vld [vmem:[%s7775_s11 + $0x30] sm:$0xf]  ;;  %v8289_v24 = vld [vmem:[%s7775_s11 + $0x34] sm:$0xf]  ;;  %v6074_v31 = vrot.slane %v6058_v56, 9  ;;  %v3056_v43 = vrot.slane %v3054_v13, 4  ;;  %v6104_v0 = vcombine.low %v3041_v23, %v3044_v26 }
  0xaf   : > { %6834 = vmatmul.mubr.bf16.vlgmr.msra.gmra.mrb[0].mxu1 %v5814_v28  ;;  %v5817_v6 = vcombine.low %v7661_v2, %v8289_v24  ;;  %v8296_v28 = vsel %vm8214_vm5, %v6073_v60, %v3047_v42  ;;  %v7663_v34 = vld [vmem:[%s7775_s11 + $0x50] sm:$0x1]  ;;  %v8303_v39 = vld [vmem:[%s7775_s11 + $0x60] sm:$0xe]  ;;  %v3051_v42 = vsel %vm8214_vm5, %v3049_v62, %v3050_v1  ;;  %v6075_v44 = vrot.slane %v6059_v37, 9  ;;  %v7568_v53 = vld [vmem:[%s9743_s1 + $0x98] sm:$0xff]  }
  0xb0   : > { %6837 = vmatprep.mubr.bf16.mxu1 %v5815_v35  ;;  %6866 = vmatpush3.bf16.msra.mxu1 %v7656_v4  ;;  %v3057_v35 = vrot.slane %v7663_v34, 5  ;;  %v3063_v47 = vrot.slane %v3061_v32, 4  ;;  %v8316_v55 = vld [vmem:[%s7775_s11 + $0x64] sm:$0xf]  ;;  %v7667_v57 = vld [vmem:[%s7775_s11 + $0x3c] sm:$0xf]  ;;  %v6105_v1 = vcombine.low %v8296_v28, %v3051_v42  ;;  %v8327_v4 = vsel %vm8214_vm5, %v6074_v31, %v3054_v13 }
  0xb1   : > { %6867 = vmatprep.subr.bf16.mxu1 %v7563_v33  ;;  %v3068_v56 = vrot.slane %v8316_v55, 5  ;;  %v8321_v60 = vld [vmem:[%s7775_s11 + $0x40] sm:$0xf]  ;;  %v8333_v11 = vld [vmem:[%s7775_s11 + $0x6c] sm:$0xe]  ;;  %v6076_v15 = vrot.slane %v8303_v39, 9 }
  0xb2   : > { %v5818_v62 = vcombine.low %v7667_v57, %v8321_v60  ;;  %v6065_v9 = vld [vmem:[%s7775_s11 + $0x9c] sm:$0xe]  ;;  %v8338_v37 = vsel %vm8214_vm5, %v3056_v43, %v3057_v35  ;;  %v3096_v13 = vrot.slane %v8073_v19, 5  ;;  %v7571_v23 = vld [vmem:[%s9743_s1 + $0xa0] sm:$0xff]   ;;  %v6066_v2 = vld [vmem:[%s7775_s11 + $0xa8] sm:$0xe] }
  0xb3   : > { %v8356_v19 = vrot.slane %v3068_v56, 4  ;;  %v6067_v28 = vld [vmem:[%s7775_s11 + $0xb4] sm:$0xe]  ;;  %v3075_v31 = vrot.slane %v8025_v20, 5  ;;  %v3099_v35 = vrot.slane %v8078_v40, 5  ;;  %v3103_v40 = vrot.slane %v8104_v10, 5 }
  0xb4   : > { %7026 = vmatmul.mubr.bf16.vlgmr.msra.gmra.mrb[0].mxu0 %v6102_v25  ;;  %6868 = vmatpush3.bf16.msra.mxu1 %v7563_v33  ;;  %v6064_v25 = vld [vmem:[%s7775_s11 + $0x90] sm:$0xe]  ;;  %v7665_v33 = vld [vmem:[%s7775_s11 + $0x5c] sm:$0x1]  ;;  %v3098_v34 = vrot.slane %v3096_v13, 4 }
  0xb5   : > { %7058 = vmatpush3.bf16.msra.mxu0 %v7664_v41  ;;  %7029 = vmatprep.mubr.bf16.mxu0 %v6103_v8  ;;  %v3064_v54 = vrot.slane %v7665_v33, 5  ;;  %v7558_v8 = vld [vmem:[%s9743_s1 + $0x198] sm:$0xff]   ;;  %v6106_v41 = vcombine.low %v8327_v4, %v8338_v37  ;;  %v7670_v42 = vld [vmem:[%s7775_s11 + $0x48] sm:$0xf]  ;;  %v8376_v43 = vld [vmem:[%s7775_s11 + $0x4c] sm:$0xf] }
  0xb6   : > { %7059 = vmatprep.subr.bf16.mxu0 %v7552_v58  ;;  %6869 = vmatprep.subr.bf16.mxu1 %v7566_v14  ;;  %v6081_v33 = vrot.slane %v6065_v9, 9  ;;  %v8389_v4 = vsel %vm8214_vm5, %v3098_v34, %v3099_v35  ;;  %v3106_v37 = vrot.slane %v8107_v16, 5  ;;  %v7672_v9 = vld [vmem:[%s7775_s11 + $0x74] sm:$0x1]  ;;  %v3077_v16 = vrot.slane %v3075_v31, 4  ;;  %v7578_v55 = vld [vmem:[%s9743_s1 + $0xb8] sm:$0xff]  }
  0xb7   : > { %6838 = vmatmul.mubr.bf16.gmra.mrb[4].mxu1 %v5816_v18  ;;  %v6080_v18 = vrot.slane %v6064_v25, 9  ;;  %v7573_v25 = vld [vmem:[%s9743_s1 + $0xa8] sm:$0xff]   ;;  %v7576_v34 = vld [vmem:[%s9743_s1 + $0xb0] sm:$0xff]   ;;  %v3124_v35 = vrot.slane %v8188_v51, 5 }
  0xb8   : > { %6841 = vmatprep.mubr.bf16.mxu1 %v5817_v6  ;;  %6870 = vmatpush3.bf16.msra.mxu1 %v7566_v14  ;;  %v8352_v14 = vsel %vm8214_vm5, %v3063_v47, %v3064_v54  ;;  %v8359_v6 = vld [vmem:[%s7775_s11 + $0x68] sm:$0x1]  ;;  %v7562_v47 = vld [vmem:[%s9743_s1 + $0x1a0] sm:$0xff]   ;;  %v8396_v10 = vsel %vm8214_vm5, %v6081_v33, %v3103_v40  ;;  %v8429_v33 = vld [vmem:[%s7775_s11 + $0x58] sm:$0xf] }
  0xb9   : > { %7060 = vmatpush3.bf16.msra.mxu0 %v7552_v58  ;;  %6871 = vmatprep.subr.bf16.mxu1 %v7568_v53  ;;  %v8348_v58 = vsel %vm8214_vm5, %v6075_v44, %v3061_v32  ;;  %v3071_v26 = vrot.slane %v8359_v6, 5  ;;  %v8366_v32 = vsel %vm8214_vm5, %v6080_v18, %v3096_v13  ;;  %v5819_v44 = vcombine.low %v7670_v42, %v8376_v43  ;;  %v6068_v54 = vld [vmem:[%s7775_s11 + $0xc0] sm:$0xe]  ;;  %v7572_v6 = vld [vmem:[%s9743_s1 + $0x1b0] sm:$0xff]  }
  0xba   : > { %7061 = vmatprep.subr.bf16.mxu0 %v7555_v38  ;;  %v6107_v57 = vcombine.low %v8348_v58, %v8352_v14  ;;  %v3110_v18 = vrot.slane %v8132_v59, 5  ;;  %v3113_v13 = vrot.slane %v8136_v5, 5  ;;  %v6083_v58 = vrot.slane %v6067_v28, 9  ;;  %v7567_v59 = vld [vmem:[%s9743_s1 + $0x1a8] sm:$0xff]  }
  0xbb   : > { %v3127_v42 = vrot.slane %v8194_v63, 5 }
  0xbc   : > { %7030 = vmatmul.mubr.bf16.gmra.mrb[4].mxu0 %v6104_v0  ;;  %6872 = vmatpush3.bf16.msra.mxu1 %v7568_v53  ;;  %v6077_v0 = vrot.slane %v8333_v11, 9  ;;  %v6112_v53 = vcombine.low %v8366_v32, %v8389_v4  ;;  %v3078_v11 = vrot.slane %v7672_v9, 5  ;;  %v1329_v32 = vld [vmem:[%s7775_s11 + $0x18] sm:$0xe]  ;;  %v7687_v4 = vld [vmem:[%s7775_s11 + $0x14] sm:$0x1] }
  0xbd   : > { %7033 = vmatprep.mubr.bf16.mxu0 %v6105_v1  ;;  %7062 = vmatpush3.bf16.msra.mxu0 %v7555_v38  ;;  %v3105_v38 = vrot.slane %v3103_v40, 4  ;;  %v6082_v1 = vrot.slane %v6066_v2, 9  ;;  %v3117_v2 = vrot.slane %v8159_v50, 5  ;;  %v6084_v50 = vrot.slane %v6068_v54, 9  ;;  %v7675_v54 = vld [vmem:[%s7775_s11 + $0x60] sm:$0xf] }
  0xbe   : > { %7063 = vmatprep.subr.bf16.mxu0 %v7558_v8  ;;  %6873 = vmatprep.subr.bf16.mxu1 %v7571_v23  ;;  %v3076_v39 = vsel %vm8214_vm5, %v6077_v0, %v3075_v31  ;;  %v7678_v0 = vld [vmem:[%s7775_s11 + $0x80] sm:$0x1] }
  0xbf   : > { %6842 = vmatmul.mubr.bf16.gmra.mrb[8].mxu1 %v5818_v62  ;;  %v8405_v14 = vsel %vm8214_vm5, %v3105_v38, %v3106_v37  ;;  %v3120_v62 = vrot.slane %v8165_v61, 5  ;;  %v8416_v28 = vsel %vm8214_vm5, %v6082_v1, %v3110_v18  ;;  %v8420_v61 = vsel %vm8214_vm5, %v6083_v58, %v3117_v2  ;;  %v8434_v37 = vld [vmem:[%s7775_s11 + $0x64] sm:$0xf]  ;;  %v6062_v1 = vld [vmem:[%s7775_s11 + $0x78] sm:$0xe] }
  0xc0   : > { %6845 = vmatprep.mubr.bf16.mxu1 %v5819_v44  ;;  %6874 = vmatpush3.bf16.msra.mxu1 %v7571_v23  ;;  %v6113_v5 = vcombine.low %v8396_v10, %v8405_v14  ;;  %v3112_v23 = vrot.slane %v3110_v18, 4  ;;  %v7673_v44 = vld [vmem:[%s7775_s11 + $0x54] sm:$0xf]  ;;  %v5821_v38 = vcombine.low %v7675_v54, %v8434_v37  ;;  %v8450_v18 = vsel %vm8214_vm5, %v6084_v50, %v3124_v35  ;;  %v8493_v50 = vld [vmem:[%s9743_s1 + $0xc0] sm:$0xff]   ;;  %v8503_v54 = vld [vmem:[%s7775_s11 + $0x7c] sm:$0xf] }
  0xc1   : > { %7064 = vmatpush3.bf16.msra.mxu0 %v7558_v8  ;;  %6875 = vmatprep.subr.bf16.mxu1 %v7573_v25  ;;  %v3119_v8 = vrot.slane %v3117_v2, 4  ;;  %v5820_v40 = vcombine.low %v7673_v44, %v8429_v33  ;;  %v3126_v58 = vrot.slane %v3124_v35, 4  ;;  %v8498_v44 = vld [vmem:[%s7775_s11 + $0x70] sm:$0xf] }
  0xc2   : > { %7065 = vmatprep.subr.bf16.mxu0 %v7562_v47  ;;  %v8440_v9 = vsel %vm8214_vm5, %v3112_v23, %v3113_v13  ;;  %v7677_v13 = vld [vmem:[%s7775_s11 + $0x7c] sm:$0xf] }
  0xc3   : > { %v6114_v51 = vcombine.low %v8416_v28, %v8440_v9  ;;  %v8446_v63 = vsel %vm8214_vm5, %v3119_v8, %v3120_v62  ;;  %v3082_v2 = vrot.slane %v7677_v13, 5  ;;  %v7577_v23 = vld [vmem:[%s9743_s1 + $0x1b8] sm:$0xff]   ;;  %v8517_v13 = vld [vmem:[%s9743_s1 + $0x1c0] sm:$0xff]  }
  0xc4   : > { %7034 = vmatmul.mubr.bf16.gmra.mrb[8].mxu0 %v6106_v41  ;;  %6876 = vmatpush3.bf16.msra.mxu1 %v7573_v25  ;;  %v3069_v41 = vsel %vm8214_vm5, %v6076_v15, %v3068_v56  ;;  %v3072_v25 = vsel %vm8214_vm5, %v8356_v19, %v3071_v26  ;;  %v6115_v62 = vcombine.low %v8420_v61, %v8446_v63  ;;  %v6063_v15 = vld [vmem:[%s7775_s11 + $0x84] sm:$0xe]  ;;  %v3089_v19 = vrot.slane %v8057_v49, 5  ;;  %v1332_v63 = vld [vmem:[%s7775_s11 + $0x3c] sm:$0xe] }
  0xc5   : > { %7037 = vmatprep.mubr.bf16.mxu0 %v6107_v57  ;;  %7066 = vmatpush3.bf16.msra.mxu0 %v7562_v47  ;;  %v3079_v56 = vsel %vm8214_vm5, %v3077_v16, %v3078_v11  ;;  %v8482_v26 = vsel %vm8214_vm5, %v3126_v58, %v3127_v42  ;;  %v6108_v31 = vcombine.low %v3069_v41, %v3072_v25  ;;  %v6078_v47 = vrot.slane %v6062_v1, 9  ;;  %v7680_v42 = vld [vmem:[%s7775_s11 + $0x6c] sm:$0xf] }
  0xc6   : > { %7067 = vmatprep.subr.bf16.mxu0 %v7567_v59  ;;  %6877 = vmatprep.subr.bf16.mxu1 %v7576_v34  ;;  %v6116_v20 = vcombine.low %v8450_v18, %v8482_v26  ;;  %v6109_v49 = vcombine.low %v3076_v39, %v3079_v56  ;;  %v3084_v57 = vrot.slane %v3082_v2, 4  ;;  %v3085_v11 = vrot.slane %v7678_v0, 5  ;;  %v7684_v39 = vld [vmem:[%s7775_s11 + $0x84] sm:$0xf]  ;;  %v8523_v56 = vld [vmem:[%s7775_s11 + $0x88] sm:$0xf] }
  0xc7   : > { %6846 = vmatmul.mubr.bf16.gmra.mrb[12].mxu1 %v5820_v40  ;;  %v6079_v16 = vrot.slane %v6063_v15, 9  ;;  %v3091_v8 = vrot.slane %v3089_v19, 4  ;;  %v5822_v40 = vcombine.low %v7680_v42, %v8498_v44  ;;  %v3083_v1 = vsel %vm8214_vm5, %v6078_v47, %v3082_v2  ;;  %v7689_v42 = vld [vmem:[%s7775_s11 + $0x2c] sm:$0x1] }
  0xc8   : > { %6849 = vmatprep.mubr.bf16.mxu1 %v5821_v38  ;;  %6878 = vmatpush3.bf16.msra.mxu1 %v7576_v34  ;;  %v7679_v34 = vld [vmem:[%s7775_s11 + $0x8c] sm:$0x1]  ;;  %v3086_v58 = vsel %vm8214_vm5, %v3084_v57, %v3085_v11  ;;  %v5824_v15 = vcombine.low %v7684_v39, %v8523_v56  ;;  %v5826_v47 = vcombine.low %v8112_v29, %v8115_v30  ;;  %v1387_v0 = vrot.slane %v8246_v27, 5  ;;  %v1328_v29 = vld [vmem:[%s7775_s11 + $0xc] sm:$0xe] }
  0xc9   : > { %7068 = vmatpush3.bf16.msra.mxu0 %v7567_v59  ;;  %6879 = vmatprep.subr.bf16.mxu1 %v7578_v55  ;;  %v3092_v35 = vrot.slane %v7679_v34, 5  ;;  %v7682_v59 = vld [vmem:[%s7775_s11 + $0x78] sm:$0xf]  ;;  %v3090_v41 = vsel %vm8214_vm5, %v6079_v16, %v3089_v19  ;;  %v6110_v2 = vcombine.low %v3083_v1, %v3086_v58  ;;  %v5825_v19 = vcombine.low %v8086_v46, %v8089_v52  ;;  %v7688_v16 = vld [vmem:[%s7775_s11 + $0x20] sm:$0x1]  ;;  %v7595_v26 = vld [vmem:[%s9743_s1 + $0xc8] sm:$0xff]  }
  0xca   : > { %7069 = vmatprep.subr.bf16.mxu0 %v7572_v6  ;;  %v5823_v38 = vcombine.low %v7682_v59, %v8503_v54  ;;  %v5827_v46 = vcombine.low %v8139_v7, %v8145_v22  ;;  %v1394_v30 = vrot.slane %v8255_v12, 5  ;;  %v5838_v10 = vrot.slane %v1328_v29, 9  ;;  %v1333_v59 = vld [vmem:[%s7775_s11 + $0x48] sm:$0xe]  ;;  %v7690_v58 = vld [vmem:[%s7775_s11 + $0x38] sm:$0x1] }
  0xcb   : > { %v3093_v25 = vsel %vm8214_vm5, %v3091_v8, %v3092_v35  ;;  %v1389_v14 = vrot.slane %v1387_v0, 4  ;;  %v5828_v27 = vcombine.low %v8170_v3, %v8177_v21  ;;  %v1397_v12 = vrot.slane %v7688_v16, 5  ;;  %v1331_v35 = vld [vmem:[%s7775_s11 + $0x30] sm:$0xe]  ;;  %v7580_v16 = vld [vmem:[%s7775_s11 + $0x24] sm:$0xff]  }
  0xcc   : > { %7038 = vmatmul.mubr.bf16.gmra.mrb[12].mxu0 %v6108_v31  ;;  %6880 = vmatpush3.bf16.msra.mxu1 %v7578_v55  ;;  %v6111_v55 = vcombine.low %v3090_v41, %v3093_v25  ;;  %v1327_v31 = vld [vmem:[%s7775_s11] sm:$0xe]  ;;  %v1396_v11 = vrot.slane %v1394_v30, 4  ;;  %v1401_v34 = vrot.slane %v8282_v17, 5  ;;  %v1388_v3 = vsel %vm8214_vm5, %v5838_v10, %v1387_v0 }
  0xcd   : > { %7041 = vmatprep.mubr.bf16.mxu0 %v6109_v49  ;;  %7070 = vmatpush3.bf16.msra.mxu0 %v7572_v6  ;;  %v1380_v6 = vrot.slane %v8211_v45, 5  ;;  %v7686_v49 = vld [vmem:[%s7775_s11 + $0x8] sm:$0x1]  ;;  %v5837_v52 = vrot.slane %v1327_v31, 9  ;;  %v1408_v61 = vrot.slane %v8289_v24, 5  ;;  %v1411_v41 = vrot.slane %v7690_v58, 5 }
  0xce   : > { %7071 = vmatprep.subr.bf16.mxu0 %v7577_v23  ;;  %6913 = vmatprep.subr.bf16.mxu1 %v8493_v50  ;;  %v1383_v57 = vrot.slane %v7686_v49, 5  ;;  %v1398_v17 = vsel %vm8214_vm5, %v1396_v11, %v1397_v12  ;;  %v1415_v25 = vrot.slane %v8321_v60, 5  ;;  %v1336_v31 = vld [vmem:[%s7775_s11 + $0x6c] sm:$0xe]  ;;  %v1443_v49 = vrot.slane %v8498_v44, 5 }
  0xcf   : > { %6850 = vmatmul.mubr.bf16.gmra.mrb[16].mxu1 %v5822_v40  ;;  %v1382_v45 = vrot.slane %v1380_v6, 4  ;;  %v1381_v7 = vsel %vm8214_vm5, %v5837_v52, %v1380_v6  ;;  %v1404_v40 = vrot.slane %v7689_v42, 5  ;;  %v1436_v6 = vrot.slane %v8434_v37, 5  ;;  %v7691_v37 = vld [vmem:[%s7775_s11 + $0x44] sm:$0x1] }
  0xd0   : > { %6853 = vmatprep.mubr.bf16.mxu1 %v5823_v38  ;;  %v7579_v38 = vld [vmem:[%s7775_s11 + $0x18] sm:$0xff]   ;;  %v1410_v60 = vrot.slane %v1408_v61, 4  ;;  %v7692_v52 = vld [vmem:[%s7775_s11 + $0x50] sm:$0x1]  ;;  %v1417_v0 = vrot.slane %v1415_v25, 4 }
  0xd1   : > { %7072 = vmatpush3.bf16.msra.mxu0 %v7577_v23  ;;  %v1384_v22 = vsel %vm8214_vm5, %v1382_v45, %v1383_v57  ;;  %v1330_v23 = vld [vmem:[%s7775_s11 + $0x24] sm:$0xe]  ;;  %v1418_v57 = vrot.slane %v7691_v37, 5  ;;  %v1425_v45 = vrot.slane %v7692_v52, 5  ;;  %v8667_v58 = vld [vmem:[%s7775_s11 + $0x9c] sm:$0xe] }
  0xd2   : > { %7105 = vmatprep.subr.bf16.mxu0 %v8517_v13  ;;  %v5869_v8 = vcombine.low %v1381_v7, %v1384_v22  ;;  %v5840_v28 = vrot.slane %v1330_v23, 9  ;;  %v1438_v7 = vrot.slane %v1436_v6, 4  ;;  %v7694_v22 = vld [vmem:[%s7775_s11 + $0x68] sm:$0x1]  ;;  %v1412_v12 = vsel %vm8214_vm5, %v1410_v60, %v1411_v41  ;;  %v6198_v60 = vld [vmem:[%s7775_s11 + $0x1c] sm:$0xf] }
  0xd3   : > { %v6200_v52 = vld [vmem:[%s7775_s11 + $0x24] sm:$0xf] }
  0xd4   : > { %7042 = vmatmul.mubr.bf16.gmra.mrb[16].mxu0 %v6110_v2  ;;  %v1422_v2 = vrot.slane %v8376_v43, 5  ;;  %v8581_v39 = vsel %vm8214_vm5, %v5840_v28, %v1401_v34  ;;  %v5842_v43 = vrot.slane %v1332_v63, 9  ;;  %v1338_v63 = vld [vmem:[%s7775_s11 + $0x84] sm:$0xe] }
  0xd5   : > { %7045 = vmatprep.mubr.bf16.mxu0 %v6111_v55  ;;  %v1334_v55 = vld [vmem:[%s7775_s11 + $0x54] sm:$0xe] }
  0xd6   : > { %v1424_v29 = vrot.slane %v1422_v2, 4  ;;  %v5844_v44 = vrot.slane %v1334_v55, 9  ;;  %v8615_v23 = vsel %vm8214_vm5, %v5842_v43, %v1415_v25  ;;  %v7697_v55 = vld [vmem:[%s7775_s11 + $0x80] sm:$0x1] }
  0xd7   : > { %6854 = vmatmul.mubr.bf16.gmra.mrb[20].mxu1 %v5824_v15  ;;  %v1429_v15 = vrot.slane %v8429_v33, 5  ;;  %v7583_v43 = vld [vmem:[%s7775_s11 + $0x3c] sm:$0xff]  }
  0xd8   : > { %6857 = vmatprep.mubr.bf16.mxu1 %v5825_v19  ;;  %v1335_v19 = vld [vmem:[%s7775_s11 + $0x60] sm:$0xe] }
  0xd9   : > { %v8636_v28 = vsel %vm8214_vm5, %v5844_v44, %v1429_v15  ;;  %v7699_v44 = vld [vmem:[%s7775_s11 + $0x98] sm:$0x1] }
  0xdc   : > { %7046 = vmatmul.mubr.bf16.gmra.mrb[20].mxu0 %v6112_v53  ;;  %v1390_v53 = vrot.slane %v7687_v4, 5  ;;  %v1439_v4 = vrot.slane %v7694_v22, 5  ;;  %v3896_v22 = vshll.u32 %v6198_v60, 16 }
  0xdd   : > { %7049 = vmatprep.mubr.bf16.mxu0 %v6113_v5  ;;  %v5839_v5 = vrot.slane %v1329_v32, 9  ;;  %v5845_v32 = vrot.slane %v1335_v19, 9 }
  0xde   : > { %v1391_v21 = vsel %vm8214_vm5, %v1389_v14, %v1390_v53  ;;  %v1337_v53 = vld [vmem:[%s7775_s11 + $0x78] sm:$0xe]  ;;  %v5846_v14 = vrot.slane %v1336_v31, 9 }
  0xdf   : > { %6858 = vmatmul.mubr.bf16.gmra.mrb[24].mxu1 %v5826_v47  ;;  %v1395_v9 = vsel %vm8214_vm5, %v5839_v5, %v1394_v30  ;;  %v5870_v1 = vcombine.low %v1388_v3, %v1391_v21  ;;  %v7693_v30 = vld [vmem:[%s7775_s11 + $0x5c] sm:$0x1]  ;;  %v7695_v5 = vld [vmem:[%s7775_s11 + $0x74] sm:$0x1]  ;;  %v8628_v3 = vsel %vm8214_vm5, %v1417_v0, %v1418_v57  ;;  %v8632_v21 = vsel %vm8214_vm5, %v1424_v29, %v1425_v45  ;;  %v7585_v45 = vld [vmem:[%s7775_s11 + $0x48] sm:$0xff]  }
  0xe0   : > { %6861 = vmatprep.mubr.bf16.mxu1 %v5827_v46  ;;  %v5871_v24 = vcombine.low %v1395_v9, %v1398_v17  ;;  %v5843_v46 = vrot.slane %v1333_v59, 9  ;;  %v1432_v18 = vrot.slane %v7693_v30, 5  ;;  %v1446_v11 = vrot.slane %v7695_v5, 5  ;;  %v1339_v59 = vld [vmem:[%s7775_s11 + $0x90] sm:$0xe] }
  0xe1   : > { %v8645_v17 = vsel %vm8214_vm5, %v5845_v32, %v1436_v6  ;;  %v5874_v25 = vcombine.low %v8615_v23, %v8628_v3  ;;  %v5849_v57 = vrot.slane %v1339_v59, 9  ;;  %v1467_v30 = vrot.slane %v7699_v44, 5  ;;  %v7586_v44 = vld [vmem:[%s7775_s11 + $0x54] sm:$0xff]  }
  0xe2   : > { %v7704_v23 = vld [vmem:[%s7775_s11 + $0xb8] sm:$0xf] }
  0xe3   : > { %v1485_v3 = vrot.slane %v7704_v23, 5 }
  0xe4   : > { %7050 = vmatmul.mubr.bf16.gmra.mrb[24].mxu0 %v6114_v51  ;;  %v5841_v51 = vrot.slane %v1331_v35, 9  ;;  %v7584_v35 = vld [vmem:[%s9743_s1 + $0x1c8] sm:$0xff]  }
  0xe5   : > { %7053 = vmatprep.mubr.bf16.mxu0 %v6115_v62  ;;  %v1403_v62 = vrot.slane %v1401_v34, 4  ;;  %v7582_v34 = vld [vmem:[%s7775_s11 + $0x30] sm:$0xff]  }
  0xe6   : > { %v8589_v47 = vsel %vm8214_vm5, %v5841_v51, %v1408_v61  ;;  %v8649_v51 = vsel %vm8214_vm5, %v1438_v7, %v1439_v4  ;;  %v5847_v61 = vrot.slane %v1337_v53, 9  ;;  %v3900_v4 = vshrl.u32 %v6198_v60, 16 }
  0xe7   : > { %6862 = vmatmul.mubr.bf16.gmra.mrb[28].mxu1 %v5828_v27  ;;  %v8597_v33 = vsel %vm8214_vm5, %v1403_v62, %v1404_v40  ;;  %v1445_v27 = vrot.slane %v1443_v49, 4  ;;  %v7597_v62 = vld [vmem:[%s9743_s1 + $0xd0] sm:$0xff]   ;;  %v1457_v40 = vrot.slane %v8523_v56, 5  ;;  %v5873_v41 = vcombine.low %v8589_v47, %v1412_v12  ;;  %v7602_v12 = vld [vmem:[%s9743_s1 + $0xe0] sm:$0xff]  }
  0xe8   : > { %6881 = vmatprep.mubr.bf16.mxu1 %v5869_v8  ;;  %v5872_v10 = vcombine.low %v8581_v39, %v8597_v33  ;;  %v8619_v8 = vsel %vm8214_vm5, %v5843_v46, %v1422_v2  ;;  %v8675_v2 = vld [vmem:[%s9743_s1 + $0x1d0] sm:$0xff]   ;;  %v7600_v39 = vld [vmem:[%s9743_s1 + $0xd8] sm:$0xff]   ;;  %v5877_v6 = vcombine.low %v8645_v17, %v8649_v51  ;;  %v5848_v47 = vrot.slane %v1338_v63, 9  ;;  %v7698_v33 = vld [vmem:[%s7775_s11 + $0x8c] sm:$0x1] }
  0xe9   : > { %v8661_v42 = vsel %vm8214_vm5, %v1445_v27, %v1446_v11  ;;  %v5875_v56 = vcombine.low %v8619_v8, %v8632_v21  ;;  %v1460_v37 = vrot.slane %v7698_v33, 5  ;;  %v8699_v46 = vld [vmem:[%s7775_s11 + $0xa8] sm:$0xe]  ;;  %v1459_v0 = vrot.slane %v1457_v40, 4  ;;  %v7700_v11 = vld [vmem:[%s7775_s11 + $0xa0] sm:$0xf] }
  0xea   : > { %v3914_v27 = vshll.u32 %v6200_v52, 16  ;;  %v8765_v60 = vrot.slane %v3896_v22, 5  ;;  %v8768_v33 = vld [vmem:[%s7775_s11 + $0x2c] sm:$0x1]  ;;  %v6206_v22 = vld [vmem:[%s7775_s11 + $0x3c] sm:$0xf] }
  0xeb   : > { %v7599_v8 = vld [vmem:[%s9743_s1 + $0x1e8] sm:$0xff]  }
  0xec   : > { %7054 = vmatmul.mubr.bf16.gmra.mrb[28].mxu0 %v6116_v20  ;;  %v1431_v20 = vrot.slane %v1429_v15, 4  ;;  %v6197_v15 = vld [vmem:[%s7775_s11 + $0x18] sm:$0xf] }
  0xed   : > { %7073 = vmatprep.mubr.bf16.mxu0 %v7579_v38  ;;  %v7696_v38 = vld [vmem:[%s7775_s11 + $0x94] sm:$0xf]  ;;  %v3887_v32 = vshrl.u32 %v6197_v15, 16  ;;  %v3890_v7 = vshll.u32 %v6197_v15, 16  ;;  %v8761_v15 = vld [vmem:[%s7775_s11 + $0x20] sm:$0x1] }
  0xee   : > { %v8641_v9 = vsel %vm8214_vm5, %v1431_v20, %v1432_v18  ;;  %v5850_v18 = vrot.slane %v8667_v58, 9  ;;  %v8709_v20 = vld [vmem:[%s9743_s1 + $0x1d8] sm:$0xff]   ;;  %v7605_v58 = vld [vmem:[%s9743_s1 + $0xe8] sm:$0xff]  }
  0xef   : > { %6882 = vmatmul.mubr.bf16.vlgmr.msra.gmra.mrb[0].mxu1 %v5870_v1  ;;  %v1464_v1 = vrot.slane %v7696_v38, 5  ;;  %v5876_v19 = vcombine.low %v8636_v28, %v8641_v9  ;;  %v8744_v38 = vld [vmem:[%s9743_s1 + $0x1e0] sm:$0xff]  }
  0xf0   : > { %6885 = vmatprep.mubr.bf16.mxu1 %v5871_v24  ;;  %6914 = vmatpush3.bf16.msra.mxu1 %v8493_v50  ;;  %v1450_v50 = vrot.slane %v8503_v54, 5  ;;  %v8657_v54 = vsel %vm8214_vm5, %v5846_v14, %v1443_v49  ;;  %v1453_v24 = vrot.slane %v7697_v55, 5  ;;  %v3911_v14 = vshrl.u32 %v6200_v52, 16  ;;  %v8771_v52 = vld [vmem:[%s7775_s11 + $0x34] sm:$0xf] }
  0xf1   : > { %6915 = vmatprep.subr.bf16.mxu1 %v7595_v26  ;;  %v5878_v49 = vcombine.low %v8657_v54, %v8661_v42  ;;  %v1466_v29 = vrot.slane %v1464_v1, 4  ;;  %v8722_v5 = vsel %vm8214_vm5, %v5849_v57, %v1464_v1  ;;  %v3916_v57 = vrot.slane %v3914_v27, 5  ;;  %v8799_v27 = vld [vmem:[%s7775_s11 + $0x40] sm:$0xf]  ;;  %v7596_v54 = vld [vmem:[%s7775_s11 + $0x90] sm:$0xff]  }
  0xf2   : > { %v1452_v31 = vrot.slane %v1450_v50, 4 }
  0xf3   : > { %v8748_v1 = vsel %vm8214_vm5, %v1466_v29, %v1467_v30 }
  0xf4   : > { %7074 = vmatmul.mubr.bf16.vlgmr.msra.gmra.mrb[0].mxu0 %v7580_v16  ;;  %6916 = vmatpush3.bf16.msra.mxu1 %v7595_v26  ;;  %v6201_v26 = vld [vmem:[%s7775_s11 + $0x28] sm:$0xf]  ;;  %v8713_v53 = vsel %vm8214_vm5, %v1452_v31, %v1453_v24  ;;  %v1471_v16 = vrot.slane %v7700_v11, 5  ;;  %v8758_v24 = vld [vmem:[%s7775_s11 + $0xb4] sm:$0xe]  ;;  %v3889_v31 = vrot.slane %v3887_v32, 4 }
  0xf5   : > { %7106 = vmatpush3.bf16.msra.mxu0 %v8517_v13  ;;  %7077 = vmatprep.mubr.bf16.mxu0 %v7582_v34  ;;  %v8695_v13 = vsel %vm8214_vm5, %v5847_v61, %v1450_v50  ;;  %v3920_v34 = vshll.u32 %v6201_v26, 16  ;;  %v8730_v50 = vsel %vm8214_vm5, %v1459_v0, %v1460_v37  ;;  %v8733_v61 = vld [vmem:[%s7775_s11 + $0xa4] sm:$0x1]  ;;  %v3913_v37 = vrot.slane %v3911_v14, 4 }
  0xf6   : > { %7107 = vmatprep.subr.bf16.mxu0 %v7584_v35  ;;  %6917 = vmatprep.subr.bf16.mxu1 %v7597_v62  ;;  %v1474_v63 = vrot.slane %v8733_v61, 5  ;;  %v8786_v30 = vsel %vm8214_vm5, %v5850_v18, %v1471_v16  ;;  %v3948_v18 = vshrl.u32 %v8771_v52, 16 }
  0xf7   : > { %6886 = vmatmul.mubr.bf16.gmra.mrb[4].mxu1 %v5872_v10  ;;  %v8717_v10 = vsel %vm8214_vm5, %v5848_v47, %v1457_v40  ;;  %v8738_v40 = vld [vmem:[%s7775_s11 + $0xac] sm:$0xf]  ;;  %v3892_v47 = vrot.slane %v3890_v7, 5 }
  0xf8   : > { %6889 = vmatprep.mubr.bf16.mxu1 %v5873_v41  ;;  %6918 = vmatpush3.bf16.msra.mxu1 %v7597_v62  ;;  %v5851_v62 = vrot.slane %v8699_v46, 9  ;;  %v1478_v59 = vrot.slane %v8738_v40, 5  ;;  %v8754_v41 = vld [vmem:[%s7775_s11 + $0xb0] sm:$0x1] }
  0xf9   : > { %7108 = vmatpush3.bf16.msra.mxu0 %v7584_v35  ;;  %6919 = vmatprep.subr.bf16.mxu1 %v7600_v39  ;;  %v3924_v35 = vshrl.u32 %v6201_v26, 16  ;;  %v1481_v55 = vrot.slane %v8754_v41, 5  ;;  %v1473_v26 = vrot.slane %v1471_v16, 4  ;;  %v3893_v11 = vor.u32 %v3892_v47, %v3889_v31 }
  0xfa   : > { %7109 = vmatprep.subr.bf16.mxu0 %v8675_v2  ;;  %v1480_v21 = vrot.slane %v1478_v59, 4  ;;  %v3906_v16 = vshll.u32 %v8761_v15, 16  ;;  %v3962_v31 = vshll.u32 %v6206_v22, 16  ;;  %v7604_v15 = vld [vmem:[%s9743_s1 + $0x1f0] sm:$0xff]   ;;  %v1487_v47 = vrot.slane %v1485_v3, 4 }
  0xfb   : > { %v3926_v29 = vrot.slane %v3924_v35, 4  ;;  %v8851_v28 = vsel %vm8214_vm5, %v1473_v26, %v1474_v63  ;;  %v8874_v63 = vld [vmem:[%s7775_s11 + $0x44] sm:$0x1]  ;;  %v8889_v26 = vld [vmem:[%s7775_s11 + $0x4c] sm:$0xf] }
  0xfc   : > { %7078 = vmatmul.mubr.bf16.gmra.mrb[4].mxu0 %v7583_v43  ;;  %6920 = vmatpush3.bf16.msra.mxu1 %v7600_v39  ;;  %v6203_v39 = vld [vmem:[%s7775_s11 + $0x30] sm:$0xf]  ;;  %v3902_v43 = vrot.slane %v3900_v4, 4  ;;  %v7588_v4 = vld [vmem:[%s7775_s11 + $0x60] sm:$0xff]   ;;  %v8857_v9 = vsel %vm8214_vm5, %v1480_v21, %v1481_v55 }
  0xfd   : > { %7081 = vmatprep.mubr.bf16.mxu0 %v7585_v45  ;;  %7110 = vmatpush3.bf16.msra.mxu0 %v8675_v2  ;;  %v8778_v45 = vrot.slane %v3920_v34, 5  ;;  %v3935_v32 = vshrl.u32 %v6203_v39, 16  ;;  %v3938_v7 = vshll.u32 %v6203_v39, 16  ;;  %v3917_v34 = vor.u32 %v3916_v57, %v3913_v37  ;;  %v7705_v2 = vld [vmem:[%s7775_s11 + $0xbc] sm:$0x1] }
  0xfe   : > { %7111 = vmatprep.subr.bf16.mxu0 %v8709_v20  ;;  %6921 = vmatprep.subr.bf16.mxu1 %v7602_v12  ;;  %v3930_v39 = vshll.u32 %v8768_v33, 16  ;;  %v1488_v0 = vrot.slane %v7705_v2, 5  ;;  %v3950_v33 = vrot.slane %v3948_v18, 4  ;;  %v3894_v57 = vrot.slane %v3893_v11, 4 }
  0xff   : > { %6890 = vmatmul.mubr.bf16.gmra.mrb[8].mxu1 %v5874_v25  ;;  %v3944_v25 = vshll.u32 %v8771_v52, 16  ;;  %v3927_v35 = vor.u32 %v3926_v29, %v8778_v45  ;;  %v3937_v23 = vrot.slane %v3935_v32, 4  ;;  %v3940_v14 = vrot.slane %v3938_v7, 5 }
 0x100   : > { %6893 = vmatprep.mubr.bf16.mxu1 %v5875_v56  ;;  %6922 = vmatpush3.bf16.msra.mxu1 %v7602_v12  ;;  %v5852_v56 = vrot.slane %v8758_v24, 9  ;;  %v3903_v12 = vor.u32 %v3902_v43, %v8765_v60  ;;  %v3959_v24 = vshrl.u32 %v6206_v22, 16  ;;  %v7610_v43 = vld [vmem:[%s9743_s1 + $0xf8] sm:$0xff]   ;;  %v3908_v29 = vrot.slane %v3906_v16, 5 }
 0x101   : > { %7112 = vmatpush3.bf16.msra.mxu0 %v8709_v20  ;;  %6923 = vmatprep.subr.bf16.mxu1 %v7605_v58  ;;  %v7607_v20 = vld [vmem:[%s9743_s1 + $0xf0] sm:$0xff]   ;;  %v8823_v37 = vrot.slane %v3944_v25, 5  ;;  %v3972_v2 = vshrl.u32 %v8799_v27, 16  ;;  %v3918_v7 = vrot.slane %v3917_v34, 4  ;;  %v3928_v22 = vrot.slane %v3927_v35, 4  ;;  %v8906_v35 = vld [vmem:[%s9743_s1 + $0x200] sm:$0xff]  }
 0x102   : > { %7113 = vmatprep.subr.bf16.mxu0 %v8744_v38  ;;  %v3904_v32 = vrot.slane %v3903_v12, 4  ;;  %v3932_v25 = vrot.slane %v3930_v39, 5  ;;  %v3941_v18 = vor.u32 %v3940_v14, %v3937_v23  ;;  %v3961_v11 = vrot.slane %v3959_v24, 4  ;;  %v7591_v12 = vld [vmem:[%s7775_s11 + $0x78] sm:$0xff]   ;;  %v8892_v14 = vld [vmem:[%s7775_s11 + $0x50] sm:$0x1] }
 0x103   : > { %v3964_v16 = vrot.slane %v3962_v31, 5  ;;  %v3951_v17 = vor.u32 %v3950_v33, %v8823_v37  ;;  %v8867_v46 = vsel %vm8214_vm5, %v5852_v56, %v1485_v3  ;;  %v8871_v61 = vsel %vm8214_vm5, %v1487_v47, %v1488_v0  ;;  %9769 = vst [vmem:[#allocation2_spill] sm:$0xff] %v8906_v35  ;;  %v6212_v47 = vld [vmem:[%s7775_s11 + $0x54] sm:$0xf] }
 0x104   : > { %7082 = vmatmul.mubr.bf16.gmra.mrb[8].mxu0 %v7586_v44  ;;  %6924 = vmatpush3.bf16.msra.mxu1 %v7605_v58  ;;  %v8827_v44 = vld [vmem:[%s7775_s11 + $0x38] sm:$0x1]  ;;  %v3968_v58 = vshll.u32 %v8799_v27, 16  ;;  %v3974_v40 = vrot.slane %v3972_v2, 4  ;;  %v3909_v41 = vsel %vm7836_vm2, %v3904_v32, %v3908_v29  ;;  %v3923_v55 = vsel %vm7836_vm2, %v3918_v7, %v8778_v45  ;;  %v8926_v2 = vld [vmem:[%s7775_s11 + $0x64] sm:$0xf] }
 0x105   : > { %7085 = vmatprep.mubr.bf16.mxu0 %v7588_v4  ;;  %7114 = vmatpush3.bf16.msra.mxu0 %v8744_v38  ;;  %v7589_v38 = vld [vmem:[%s7775_s11 + $0x6c] sm:$0xff]   ;;  %v8841_v4 = vsel %vm8214_vm5, %v5851_v62, %v1478_v59  ;;  %v3954_v51 = vshll.u32 %v8827_v44, 16  ;;  %v3899_v59 = vsel %vm7836_vm2, %v3894_v57, %v8765_v60  ;;  %v3933_v0 = vsel %vm7836_vm2, %v3928_v22, %v3932_v25  ;;  %v8922_v29 = vld [vmem:[%s7775_s11 + $0x58] sm:$0xf]  ;;  %v7593_v32 = vld [vmem:[%s7775_s11 + $0x84] sm:$0xff]  }
 0x106   : > { %7115 = vmatprep.subr.bf16.mxu0 %v7599_v8  ;;  %6925 = vmatprep.subr.bf16.mxu1 %v7607_v20  ;;  %v8876_v62 = vrot.slane %v3968_v58, 5  ;;  %v8894_v3 = vrot.slane %v3941_v18, 4  ;;  %v3978_v34 = vshll.u32 %v8874_v63, 16  ;;  %v3992_v23 = vshll.u32 %v8889_v26, 16  ;;  %v6215_v58 = vld [vmem:[%s7775_s11 + $0x60] sm:$0xf] }
 0x107   : > { %6894 = vmatmul.mubr.bf16.gmra.mrb[12].mxu1 %v5876_v19  ;;  %v7609_v19 = vld [vmem:[%s9743_s1 + $0x1f8] sm:$0xff]   ;;  %v8900_v45 = vrot.slane %v3954_v51, 5  ;;  %v3996_v24 = vshrl.u32 %v8889_v26, 16  ;;  %v4002_v31 = vshll.u32 %v8892_v14, 16  ;;  %v8917_v33 = vcombine.low %v3899_v59, %v3909_v41  ;;  %v6218_v18 = vld [vmem:[%s7775_s11 + $0x6c] sm:$0xf] }
 0x108   : > { %6897 = vmatprep.mubr.bf16.mxu1 %v5877_v6  ;;  %6926 = vmatpush3.bf16.msra.mxu1 %v7607_v20  ;;  %v6209_v6 = vld [vmem:[%s7775_s11 + $0x48] sm:$0xf]  ;;  %v8898_v20 = vrot.slane %v3951_v17, 4  ;;  %v3975_v39 = vor.u32 %v3974_v40, %v8876_v62  ;;  %v8919_v57 = vcombine.low %v3923_v55, %v3933_v0  ;;  %v8955_v51 = vrot.slane %v3992_v23, 5 }
 0x109   : > { %7116 = vmatpush3.bf16.msra.mxu0 %v7599_v8  ;;  %6927 = vmatprep.subr.bf16.mxu1 %v7610_v43  ;;  %v3965_v8 = vor.u32 %v3964_v16, %v3961_v11  ;;  %v3983_v21 = vshrl.u32 %v6209_v6, 16  ;;  %v3986_v60 = vshll.u32 %v6209_v6, 16  ;;  %v9771_v11 = vcombine.low %v8695_v13, %v8713_v53  ;;  %v8960_v53 = vld [vmem:[%s7775_s11 + $0x70] sm:$0xf] }
 0x10a   : > { %7117 = vmatprep.subr.bf16.mxu0 %v7604_v15  ;;  %9770 = vst [vmem:[#allocation3_spill] sm:$0xff] %v8919_v57  ;;  %v4007_v16 = vshrl.u32 %v6212_v47, 16  ;;  %v8953_v17 = vrot.slane %v3975_v39, 4  ;;  %v3998_v6 = vrot.slane %v3996_v24, 4  ;;  %v8957_v13 = vrot.slane %v4002_v31, 5  ;;  %9772 = vst [vmem:[#allocation4_spill] sm:$0xff] %v8960_v53 }
 0x10b   : > { %v8936_v22 = vrot.slane %v3965_v8, 4  ;;  %v8938_v25 = vrot.slane %v3983_v21, 4  ;;  %v4016_v40 = vshll.u32 %v8922_v29, 16  ;;  %v4020_v59 = vshrl.u32 %v8922_v29, 16 }
 0x10c   : > { %7086 = vmatmul.mubr.bf16.gmra.mrb[12].mxu0 %v7589_v38  ;;  %6928 = vmatpush3.bf16.msra.mxu1 %v7610_v43  ;;  %v8940_v38 = vrot.slane %v3986_v60, 5  ;;  %v4031_v41 = vshrl.u32 %v6215_v58, 16  ;;  %v4034_v55 = vshll.u32 %v6215_v58, 16  ;;  %v4040_v21 = vshll.u32 %v8926_v2, 16 }
 0x10d   : > { %7089 = vmatprep.mubr.bf16.mxu0 %v7591_v12  ;;  %7118 = vmatpush3.bf16.msra.mxu0 %v7604_v15  ;;  %v4010_v12 = vshll.u32 %v6212_v47, 16  ;;  %v4044_v60 = vshrl.u32 %v8926_v2, 16  ;;  %v4009_v39 = vrot.slane %v4007_v16, 4  ;;  %v4055_v24 = vshrl.u32 %v6218_v18, 16  ;;  %v8978_v47 = vld [vmem:[%s7775_s11 + $0x5c] sm:$0x1] }
 0x10e   : > { %7119 = vmatprep.subr.bf16.mxu0 %v7609_v19  ;;  %v3989_v8 = vor.u32 %v8940_v38, %v8938_v25  ;;  %v4058_v31 = vshll.u32 %v6218_v18, 16  ;;  %v4064_v58 = vshll.u32 %v8960_v53, 16  ;;  %v4068_v25 = vshrl.u32 %v8960_v53, 16 }
 0x10f   : > { %6898 = vmatmul.mubr.bf16.gmra.mrb[16].mxu1 %v5878_v49  ;;  %v8951_v49 = vrot.slane %v3978_v34, 5  ;;  %v8975_v34 = vld [vmem:[%s7775_s11 + $0x7c] sm:$0xf]  ;;  %v4012_v23 = vrot.slane %v4010_v12, 5  ;;  %v8982_v15 = vrot.slane %v4016_v40, 5  ;;  %v4022_v0 = vrot.slane %v4020_v59, 4 }
 0x110   : > { %6901 = vmatprep.mubr.bf16.mxu1 %v9771_v11  ;;  %9773 = vst [vmem:[#allocation5_spill] sm:$0xff] %v8975_v34  ;;  %v4036_v16 = vrot.slane %v4034_v55, 5  ;;  %v9774_v18 = vcombine.low %v8717_v10, %v8730_v50  ;;  %v8990_v12 = vrot.slane %v4040_v21, 5  ;;  %v4046_v7 = vrot.slane %v4044_v60, 4  ;;  %v7601_v59 = vld [vmem:[%s7775_s11 + $0xa8] sm:$0xff]  }
 0x111   : > { %7120 = vmatpush3.bf16.msra.mxu0 %v7609_v19  ;;  %v6221_v19 = vld [vmem:[%s7775_s11 + $0x78] sm:$0xf]  ;;  %v4088_v42 = vshll.u32 %v8975_v34, 16  ;;  %v4092_v43 = vshrl.u32 %v8975_v34, 16  ;;  %v9775_v40 = vcombine.low %v8722_v5, %v8748_v1  ;;  %v3999_v10 = vor.u32 %v3998_v6, %v8955_v51  ;;  %v9002_v21 = vld [vmem:[%s7775_s11 + $0x74] sm:$0x1] }
 0x112   : > { %7153 = vmatprep.subr.bf16.mxu0 %v8906_v35  ;;  %v4079_v38 = vshrl.u32 %v6221_v19, 16  ;;  %v4082_v11 = vshll.u32 %v6221_v19, 16  ;;  %v7598_v19 = vld [vmem:[%s7775_s11 + $0x9c] sm:$0xff]   ;;  %v4026_v50 = vshll.u32 %v8978_v47, 16  ;;  %v4060_v55 = vrot.slane %v4058_v31, 5 }
 0x113   : > { %v9004_v60 = vrot.slane %v4064_v58, 5  ;;  %v4013_v57 = vor.u32 %v4012_v23, %v4009_v39  ;;  %v4023_v5 = vor.u32 %v4022_v0, %v8982_v15  ;;  %v9009_v34 = vld [vmem:[%s7775_s11 + $0x80] sm:$0x1]  ;;  %v6224_v6 = vld [vmem:[%s7775_s11 + $0x84] sm:$0xf]  ;;  %v4047_v31 = vor.u32 %v4046_v7, %v8990_v12 }
 0x114   : > { %7090 = vmatmul.mubr.bf16.gmra.mrb[16].mxu0 %v7593_v32  ;;  %v4033_v32 = vrot.slane %v4031_v41, 4  ;;  %v4057_v41 = vrot.slane %v4055_v24, 4  ;;  %v4081_v56 = vrot.slane %v4079_v38, 4  ;;  %v4084_v35 = vrot.slane %v4082_v11, 5 }
 0x115   : > { %7093 = vmatprep.mubr.bf16.mxu0 %v7596_v54  ;;  %v8988_v54 = vld [vmem:[%s7775_s11 + $0x68] sm:$0x1]  ;;  %v3990_v24 = vrot.slane %v3989_v8, 4  ;;  %v9013_v53 = vrot.slane %v4088_v42, 5  ;;  %v4094_v58 = vrot.slane %v4092_v43, 4  ;;  %v4028_v39 = vrot.slane %v4026_v50, 5 }
 0x116   : > { %v4037_v1 = vor.u32 %v4036_v16, %v4033_v32  ;;  %v4061_v23 = vor.u32 %v4060_v55, %v4057_v41  ;;  %v4074_v0 = vshll.u32 %v9002_v21, 16  ;;  %v4085_v11 = vor.u32 %v4084_v35, %v4081_v56  ;;  %v9019_v16 = vld [vmem:[%s7775_s11 + $0x88] sm:$0xf]  ;;  %v7603_v42 = vld [vmem:[%s7775_s11 + $0xb4] sm:$0xff]  }
 0x117   : > { %6902 = vmatmul.mubr.bf16.gmra.mrb[20].mxu1 %v9774_v18  ;;  %v4070_v18 = vrot.slane %v4068_v25, 4  ;;  %v4000_v25 = vrot.slane %v3999_v10, 4  ;;  %v4098_v32 = vshll.u32 %v9009_v34, 16  ;;  %v4103_v7 = vshrl.u32 %v6224_v6, 16 }
 0x118   : > { %6905 = vmatprep.mubr.bf16.mxu1 %v9775_v40  ;;  %v4050_v40 = vshll.u32 %v8988_v54, 16  ;;  %v4014_v8 = vrot.slane %v4013_v57, 4  ;;  %v4024_v43 = vrot.slane %v4023_v5, 4  ;;  %v9776_v50 = vcombine.low %v8786_v30, %v8851_v28  ;;  %v9039_v28 = vld [vmem:[%s7775_s11 + $0x8c] sm:$0x1] }
 0x119   : > { %v4071_v38 = vor.u32 %v4070_v18, %v9004_v60  ;;  %v3981_v56 = vsel %vm7836_vm2, %v8953_v17, %v8951_v49  ;;  %v4048_v35 = vrot.slane %v4047_v31, 4  ;;  %v4095_v41 = vor.u32 %v4094_v58, %v9013_v53  ;;  %v9044_v17 = vld [vmem:[%s7775_s11 + $0x90] sm:$0xf] }
 0x11a   : > { %v4052_v10 = vrot.slane %v4050_v40, 5  ;;  %v4106_v57 = vshll.u32 %v6224_v6, 16  ;;  %v9777_v55 = vcombine.low %v8841_v4, %v8857_v9  ;;  %v9034_v18 = vrot.slane %v4061_v23, 4  ;;  %v9055_v9 = vld [vmem:[%s7775_s11 + $0x94] sm:$0xf]  ;;  %v7611_v31 = vld [vmem:[%s7775_s11 + $0xc] sm:$0xff]  }
 0x11b   : > { %v9036_v30 = vrot.slane %v4074_v0, 5  ;;  %v4112_v5 = vshll.u32 %v9019_v16, 16  ;;  %v4116_v49 = vshrl.u32 %v9019_v16, 16  ;;  %v9048_v40 = vrot.slane %v4085_v11, 4 }
 0x11c   : > { %7094 = vmatmul.mubr.bf16.gmra.mrb[20].mxu0 %v7598_v19  ;;  %v4038_v19 = vrot.slane %v4037_v1, 4  ;;  %v9046_v1 = vrot.slane %v4071_v38, 4  ;;  %v9050_v6 = vrot.slane %v4098_v32, 5  ;;  %v9052_v4 = vrot.slane %v4103_v7, 4  ;;  %v9309_v7 = vld [vmem:[%s7775_s11 + $0xc8] sm:$0x1] }
 0x11d   : > { %7097 = vmatprep.mubr.bf16.mxu0 %v7601_v59  ;;  %v7606_v59 = vld [vmem:[%s7775_s11 + $0xc0] sm:$0xff]   ;;  %v9778_v58 = vsel %vm7836_vm2, %v8898_v20, %v8900_v45  ;;  %v9779_v23 = vsel %vm7836_vm2, %v8894_v3, %v8823_v37  ;;  %v9780_v38 = vsel %vm7836_vm2, %v8936_v22, %v8876_v62  ;;  %v3995_v32 = vsel %vm7836_vm2, %v3990_v24, %v8955_v51  ;;  %v6287_v45 = vld [vmem:[%s7775_s11 + $0x30] sm:$0xe] }
 0x11e   : > { %v9068_v0 = vcombine.low %v9779_v23, %v9778_v58  ;;  %v9075_v11 = vcombine.low %v9780_v38, %v3981_v56  ;;  %v4005_v20 = vsel %vm7836_vm2, %v4000_v25, %v8957_v13  ;;  %v4019_v37 = vsel %vm7836_vm2, %v4014_v8, %v8982_v15  ;;  %v6288_v25 = vld [vmem:[%s7775_s11 + $0x3c] sm:$0xe] }
 0x11f   : > { %6906 = vmatmul.mubr.bf16.gmra.mrb[24].mxu1 %v9776_v50  ;;  %v4029_v62 = vsel %vm7836_vm2, %v4024_v43, %v4028_v39  ;;  %v9089_v3 = vrot.slane %v4095_v41, 4  ;;  %v9091_v22 = vrot.slane %v4106_v57, 5  ;;  %v4043_v51 = vsel %vm7836_vm2, %v4038_v19, %v8990_v12  ;;  %v6289_v43 = vld [vmem:[%s7775_s11 + $0x48] sm:$0xe]  ;;  %v7608_v12 = vld [vmem:[%s7775_s11 + $0xcc] sm:$0xff]  }
 0x120   : > { %6909 = vmatprep.mubr.bf16.mxu1 %v9777_v55  ;;  %v4053_v13 = vsel %vm7836_vm2, %v4048_v35, %v4052_v10  ;;  %v9098_v24 = vrot.slane %v4112_v5, 5  ;;  %v9100_v15 = vrot.slane %v4116_v49, 4  ;;  %v6303_v8 = vrot.slane %v6287_v45, 9  ;;  %v6290_v35 = vld [vmem:[%s7775_s11 + $0x54] sm:$0xe] }
 0x121   : > { %v9108_v19 = vcombine.low %v3995_v32, %v4005_v20  ;;  %v9110_v50 = vcombine.low %v4019_v37, %v4029_v62  ;;  %v4672_v56 = vrot.slane %v8771_v52, 5  ;;  %v9118_v41 = vcombine.low %v4043_v51, %v4053_v13  ;;  %v6291_v49 = vld [vmem:[%s7775_s11 + $0x60] sm:$0xe]  ;;  %v7612_v37 = vld [vmem:[%s7775_s11 + $0x18] sm:$0xff]   ;;  %v6298_v52 = vld [vmem:[%s7775_s11 + $0xb4] sm:$0xe] }
 0x122   : > { %v4675_v55 = vrot.slane %v8827_v44, 5  ;;  %v6304_v5 = vrot.slane %v6288_v25, 9  ;;  %v4679_v58 = vrot.slane %v8799_v27, 5  ;;  %v4682_v23 = vrot.slane %v8874_v63, 5  ;;  %v6292_v25 = vld [vmem:[%s7775_s11 + $0x6c] sm:$0xe] }
 0x123   : > { %v6305_v38 = vrot.slane %v6289_v43, 9  ;;  %v4686_v51 = vrot.slane %v8889_v26, 5  ;;  %v4689_v63 = vrot.slane %v8892_v14, 5  ;;  %v6306_v13 = vrot.slane %v6290_v35, 9  ;;  %v9784_v26 = vld [vmem:[#allocation3_spill] sm:$0xff] }
 0x124   : > { %7098 = vmatmul.mubr.bf16.gmra.mrb[24].mxu0 %v7603_v42  ;;  %v9149_v27 = vsel %vm8214_vm5, %v6304_v5, %v4679_v58  ;;  %v4681_v45 = vrot.slane %v4679_v58, 4  ;;  %v4700_v35 = vrot.slane %v8926_v2, 5  ;;  %v6293_v5 = vld [vmem:[%s7775_s11 + $0x78] sm:$0xe]  ;;  %v9264_v39 = vld [vmem:[%s7775_s11 + $0xb0] sm:$0x1] }
 0x125   : > { %7101 = vmatprep.mubr.bf16.mxu0 %v7606_v59  ;;  %v9781_v59 = vcombine.low %v8867_v46, %v8871_v61  ;;  %v9132_v46 = vsel %vm8214_vm5, %v6303_v8, %v4672_v56  ;;  %v4674_v61 = vrot.slane %v4672_v56, 4  ;;  %v7614_v8 = vld [vmem:[%s7775_s11 + $0x24] sm:$0xff]   ;;  %v4693_v56 = vrot.slane %v8922_v29, 5  ;;  %v9278_v32 = vld [vmem:[%s7775_s11 + $0xbc] sm:$0x1] }
 0x126   : > { %v9160_v43 = vsel %vm8214_vm5, %v4681_v45, %v4682_v23  ;;  %v9169_v14 = vsel %vm8214_vm5, %v6305_v38, %v4686_v51  ;;  %v4702_v2 = vrot.slane %v4700_v35, 4  ;;  %v9782_v23 = vld [vmem:[#allocation4_spill] sm:$0xff]  ;;  %v6294_v45 = vld [vmem:[%s7775_s11 + $0x84] sm:$0xe]  ;;  %v4745_v10 = vrot.slane %v9264_v39, 5 }
 0x127   : > { %6910 = vmatmul.mubr.bf16.gmra.mrb[28].mxu1 %v9781_v59  ;;  %v9145_v20 = vsel %vm8214_vm5, %v4674_v61, %v4675_v55  ;;  %v4696_v59 = vrot.slane %v8978_v47, 5  ;;  %v6307_v55 = vrot.slane %v6291_v49, 9  ;;  %v9175_v29 = vsel %vm8214_vm5, %v6306_v13, %v4693_v56  ;;  %v6295_v13 = vld [vmem:[%s7775_s11 + $0x90] sm:$0xe]  ;;  %v6300_v42 = vld [vmem:[%s7775_s11 + $0xcc] sm:$0xe] }
 0x128   : > { %6929 = vmatprep.mubr.bf16.mxu1 %v7611_v31  ;;  %v4695_v47 = vrot.slane %v4693_v56, 4  ;;  %v6308_v49 = vrot.slane %v6292_v25, 9  ;;  %v4707_v38 = vrot.slane %v9782_v23, 5  ;;  %v7615_v25 = vld [vmem:[%s7775_s11 + $0x30] sm:$0xff]   ;;  %v7617_v23 = vld [vmem:[%s7775_s11 + $0x3c] sm:$0xff]  }
 0x129   : > { %v9184_v58 = vsel %vm8214_vm5, %v6307_v55, %v4700_v35  ;;  %v9783_v35 = vld [vmem:[#allocation5_spill] sm:$0xff] }
 0x12a   : > { %v9205_v55 = vsel %vm8214_vm5, %v6308_v49, %v4707_v38  ;;  %v9217_v56 = vld [vmem:[%s7775_s11 + $0x98] sm:$0x1] }
 0x12c   : > { %7102 = vmatmul.mubr.bf16.gmra.mrb[28].mxu0 %v7608_v12  ;;  %v4688_v12 = vrot.slane %v4686_v51, 4  ;;  %v4724_v51 = vrot.slane %v9039_v28, 5 }
 0x12d   : > { %7121 = vmatprep.mubr.bf16.mxu0 %v8917_v33  ;;  %v4703_v33 = vrot.slane %v8988_v54, 5  ;;  %v9192_v54 = vsel %vm8214_vm5, %v4695_v47, %v4696_v59  ;;  %v4709_v59 = vrot.slane %v4707_v38, 4  ;;  %v4717_v47 = vrot.slane %v9009_v34, 5 }
 0x12e   : > { %v9180_v61 = vsel %vm8214_vm5, %v4688_v12, %v4689_v63  ;;  %v6309_v63 = vrot.slane %v6293_v5, 9  ;;  %v4714_v5 = vrot.slane %v9783_v35, 5  ;;  %v4721_v38 = vrot.slane %v9019_v16, 5  ;;  %v9227_v35 = vld [vmem:[%s7775_s11 + $0xa0] sm:$0xf] }
 0x12f   : > { %6930 = vmatmul.mubr.bf16.vlgmr.msra.gmra.mrb[0].mxu1 %v7612_v37  ;;  %v4710_v37 = vrot.slane %v9002_v21, 5  ;;  %v7616_v21 = vld [vmem:[%s9743_s1 + $0x208] sm:$0xff]   ;;  %v6311_v12 = vrot.slane %v6295_v13, 9  ;;  %v9243_v13 = vld [vmem:[%s7775_s11 + $0xa4] sm:$0x1]  ;;  %v4731_v34 = vrot.slane %v9217_v56, 5 }
 0x130   : > { %6933 = vmatprep.mubr.bf16.mxu1 %v7614_v8  ;;  %v9201_v8 = vsel %vm8214_vm5, %v4702_v2, %v4703_v33  ;;  %v6310_v33 = vrot.slane %v6294_v45, 9  ;;  %v6296_v2 = vld [vmem:[%s7775_s11 + $0x9c] sm:$0xe]  ;;  %v9233_v45 = vsel %vm8214_vm5, %v6309_v63, %v4714_v5  ;;  %v4716_v62 = vrot.slane %v4714_v5, 4  ;;  %v6297_v16 = vld [vmem:[%s7775_s11 + $0xa8] sm:$0xe] }
 0x131   : > { %v9221_v49 = vsel %vm8214_vm5, %v4709_v59, %v4710_v37  ;;  %9785 = vst [vmem:[#allocation4_spill] sm:$0xff] %v9233_v45  ;;  %v4728_v37 = vrot.slane %v9055_v9, 5  ;;  %v9786_v59 = vld [vmem:[#allocation2_spill] sm:$0xff]  ;;  %v4723_v5 = vrot.slane %v4721_v38, 4  ;;  %v6312_v44 = vrot.slane %v6296_v2, 9 }
 0x132   : > { %v9247_v63 = vsel %vm8214_vm5, %v6310_v33, %v4721_v38  ;;  %v4735_v38 = vrot.slane %v9227_v35, 5  ;;  %v9811_v48 = vcombine.low %v9184_v58, %v9201_v8 }
 0x133   : > { %9787 = vst [vmem:[#allocation5_spill] sm:$0xff] %v9247_v63  ;;  %v9259_v57 = vsel %vm8214_vm5, %v6311_v12, %v4728_v37  ;;  %v4730_v33 = vrot.slane %v4728_v37, 4  ;;  %v9270_v31 = vsel %vm8214_vm5, %v4723_v5, %v4724_v51  ;;  %v6299_v12 = vld [vmem:[%s7775_s11 + $0xc0] sm:$0xe]  ;;  %v9275_v37 = vld [vmem:[%s7775_s11 + $0xb8] sm:$0xf] }
 0x134   : > { %7122 = vmatmul.mubr.bf16.vlgmr.msra.gmra.mrb[0].mxu0 %v9784_v26  ;;  %v7619_v26 = vld [vmem:[%s9743_s1 + $0x210] sm:$0xff]   ;;  %9789 = vst [vmem:[#allocation2_spill] sm:$0xff] %v9259_v57  ;;  %9790 = vst [vmem:[#allocation6_spill] sm:$0xff] %v9270_v31  ;;  %v9288_v51 = vsel %vm8214_vm5, %v6312_v44, %v4735_v38  ;;  %v7622_v44 = vld [vmem:[%s9743_s1 + $0x218] sm:$0xff]  }
 0x135   : > { %7154 = vmatpush3.bf16.msra.mxu0 %v9786_v59  ;;  %7125 = vmatprep.mubr.bf16.mxu0 %v9068_v0  ;;  %v9251_v59 = vld [vmem:[%s7775_s11 + $0xac] sm:$0xf]  ;;  %v9255_v0 = vsel %vm8214_vm5, %v4716_v62, %v4717_v47  ;;  %v4738_v62 = vrot.slane %v9243_v13, 5  ;;  %v6313_v47 = vrot.slane %v6297_v16, 9  ;;  %v9284_v2 = vsel %vm8214_vm5, %v4730_v33, %v4731_v34  ;;  %9792 = vst [vmem:[#allocation8_spill] sm:$0xff] %v9288_v51 }
 0x136   : > { %7155 = vmatprep.subr.bf16.mxu0 %v7616_v21  ;;  %9788 = vst [vmem:[#allocation3_spill] sm:$0xff] %v9255_v0  ;;  %9791 = vst [vmem:[#allocation7_spill] sm:$0xff] %v9284_v2  ;;  %v4737_v16 = vrot.slane %v4735_v38, 4  ;;  %v4742_v5 = vrot.slane %v9251_v59, 5  ;;  %v9299_v34 = vld [vmem:[%s7775_s11 + $0xc4] sm:$0xf] }
 0x137   : > { %6934 = vmatmul.mubr.bf16.gmra.mrb[4].mxu1 %v7615_v25  ;;  %v6314_v25 = vrot.slane %v6298_v52, 9  ;;  %v4749_v33 = vrot.slane %v9275_v37, 5  ;;  %v4752_v38 = vrot.slane %v9278_v32, 5  ;;  %v7618_v52 = vld [vmem:[%s7775_s11 + $0x48] sm:$0xff]   ;;  %v9321_v63 = vld [vmem:[%s7775_s11 + $0xd0] sm:$0xf] }
 0x138   : > { %6937 = vmatprep.mubr.bf16.mxu1 %v7617_v23  ;;  %v6315_v23 = vrot.slane %v6299_v12, 9  ;;  %v9315_v57 = vsel %vm8214_vm5, %v6313_v47, %v4742_v5  ;;  %v4744_v31 = vrot.slane %v4742_v5, 4  ;;  %v4759_v2 = vrot.slane %v9309_v7, 5  ;;  %v9330_v47 = vld [vmem:[%s7775_s11 + $0xd4] sm:$0x1] }
 0x139   : > { %7156 = vmatpush3.bf16.msra.mxu0 %v7616_v21  ;;  %v9303_v21 = vsel %vm8214_vm5, %v4737_v16, %v4738_v62  ;;  %9794 = vst [vmem:[#allocation10_spill] sm:$0xff] %v9315_v57  ;;  %v4756_v62 = vrot.slane %v9299_v34, 5  ;;  %v7620_v16 = vld [vmem:[%s7775_s11 + $0x54] sm:$0xff]   ;;  %v9325_v12 = vsel %vm8214_vm5, %v6314_v25, %v4749_v33  ;;  %v4751_v0 = vrot.slane %v4749_v33, 4 }
 0x13a   : > { %7157 = vmatprep.subr.bf16.mxu0 %v7619_v26  ;;  %9793 = vst [vmem:[#allocation9_spill] sm:$0xff] %v9303_v21  ;;  %9795 = vst [vmem:[#allocation11_spill] sm:$0xff] %v9325_v12  ;;  %v6316_v21 = vrot.slane %v6300_v42, 9  ;;  %v4763_v25 = vrot.slane %v9321_v63, 5  ;;  %v4119_v42 = vor.u32 %v9100_v15, %v9098_v24  ;;  %v9803_v12 = vshll.u32 %v9039_v28, 16 }
 0x13b   : > { %v9338_v5 = vsel %vm8214_vm5, %v6315_v23, %v4756_v62  ;;  %v4758_v51 = vrot.slane %v4756_v62, 4  ;;  %v4766_v23 = vrot.slane %v9330_v47, 5  ;;  %v4101_v28 = vsel %vm7836_vm2, %v9089_v3, %v9050_v6  ;;  %v9819_v58 = vld [vmem:[#allocation2_spill] sm:$0xff] }
 0x13c   : > { %7126 = vmatmul.mubr.bf16.gmra.mrb[4].mxu0 %v9075_v11  ;;  %v9334_v11 = vsel %vm8214_vm5, %v4744_v31, %v4745_v10  ;;  %v9351_v31 = vsel %vm8214_vm5, %v4751_v0, %v4752_v38  ;;  %v9362_v62 = vsel %vm8214_vm5, %v6316_v21, %v4763_v25  ;;  %v4765_v45 = vrot.slane %v4763_v25, 4 }
 0x13d   : > { %7129 = vmatprep.mubr.bf16.mxu0 %v9108_v19  ;;  %7158 = vmatpush3.bf16.msra.mxu0 %v7619_v26  ;;  %9796 = vst [vmem:[#allocation12_spill] sm:$0xff] %v9334_v11  ;;  %v7625_v19 = vld [vmem:[%s9743_s1 + $0x220] sm:$0xff]   ;;  %v6230_v26 = vld [vmem:[%s7775_s11 + $0x9c] sm:$0xf]  ;;  %9797 = vst [vmem:[#allocation13_spill] sm:$0xff] %v9351_v31  ;;  %v9358_v15 = vsel %vm8214_vm5, %v4758_v51, %v4759_v2  ;;  %v9798_v10 = vshrl.u32 %v9044_v17, 16  ;;  %v9804_v2 = vsel %vm7836_vm2, %v9046_v1, %v9036_v30 }
 0x13e   : > { %7159 = vmatprep.subr.bf16.mxu0 %v7622_v44  ;;  %v9799_v38 = vshll.u32 %v9044_v17, 16  ;;  %v9800_v11 = vshll.u32 %v9055_v9, 16  ;;  %v6233_v31 = vld [vmem:[%s7775_s11 + $0xa8] sm:$0xf]  ;;  %v9801_v51 = vshrl.u32 %v9055_v9, 16  ;;  %v4154_v25 = vshll.u32 %v6230_v26, 16 }
 0x13f   : > { %6938 = vmatmul.mubr.bf16.gmra.mrb[8].mxu1 %v7618_v52  ;;  %v4129_v0 = vrot.slane %v9798_v10, 4  ;;  %v9379_v17 = vsel %vm8214_vm5, %v4765_v45, %v4766_v23  ;;  %v9802_v10 = vor.u32 %v9091_v22, %v9052_v4  ;;  %v4124_v57 = vrot.slane %v9803_v12, 5  ;;  %v7628_v9 = vld [vmem:[%s9743_s1 + $0x228] sm:$0xff]  }
 0x140   : > { %6941 = vmatprep.mubr.bf16.mxu1 %v7620_v16  ;;  %v4132_v52 = vrot.slane %v9799_v38, 5  ;;  %v9370_v33 = vrot.slane %v9800_v11, 5  ;;  %v4142_v21 = vrot.slane %v9801_v51, 4  ;;  %v4151_v16 = vshrl.u32 %v6230_v26, 16  ;;  %v7621_v26 = vld [vmem:[%s7775_s11 + $0x60] sm:$0xff]   ;;  %v7623_v22 = vld [vmem:[%s7775_s11 + $0x6c] sm:$0xff]  }
 0x141   : > { %7160 = vmatpush3.bf16.msra.mxu0 %v7622_v44  ;;  %v4110_v11 = vrot.slane %v9802_v10, 4  ;;  %v4120_v38 = vrot.slane %v4119_v42, 4  ;;  %v4160_v45 = vshll.u32 %v9227_v35, 16  ;;  %v4164_v23 = vshrl.u32 %v9227_v35, 16 }
 0x142   : > { %7161 = vmatprep.subr.bf16.mxu0 %v7625_v19  ;;  %v4175_v51 = vshrl.u32 %v6233_v31, 16  ;;  %v4178_v4 = vshll.u32 %v6233_v31, 16  ;;  %v4146_v12 = vshll.u32 %v9217_v56, 16  ;;  %v4184_v42 = vshll.u32 %v9251_v59, 16 }
 0x143   : > { %v4188_v10 = vshrl.u32 %v9251_v59, 16  ;;  %v4133_v35 = vor.u32 %v4132_v52, %v4129_v0  ;;  %v4143_v31 = vor.u32 %v4142_v21, %v9370_v33  ;;  %v4153_v44 = vrot.slane %v4151_v16, 4  ;;  %v7631_v59 = vld [vmem:[%s9743_s1 + $0x230] sm:$0xff]  }
 0x144   : > { %7130 = vmatmul.mubr.bf16.gmra.mrb[8].mxu0 %v9110_v50  ;;  %v4156_v50 = vrot.slane %v4154_v25, 5  ;;  %v9805_v6 = vsel %vm7836_vm2, %v9034_v18, %v9004_v60  ;;  %v4125_v56 = vsel %vm7836_vm2, %v4120_v38, %v4124_v57  ;;  %v9423_v30 = vrot.slane %v4160_v45, 5 }
 0x145   : > { %7133 = vmatprep.mubr.bf16.mxu0 %v9118_v41  ;;  %7162 = vmatpush3.bf16.msra.mxu0 %v7625_v19  ;;  %v6268_v3 = vcombine.low %v9805_v6, %v9804_v2  ;;  %v4115_v41 = vsel %vm7836_vm2, %v4110_v11, %v9098_v24  ;;  %v4166_v1 = vrot.slane %v4164_v23, 4  ;;  %v4177_v19 = vrot.slane %v4175_v51, 4  ;;  %v6236_v2 = vld [vmem:[%s7775_s11 + $0xb4] sm:$0xf] }
 0x146   : > { %7163 = vmatprep.subr.bf16.mxu0 %v7628_v9  ;;  %v4180_v60 = vrot.slane %v4178_v4, 5  ;;  %v9806_v18 = vsel %vm7836_vm2, %v9048_v40, %v9013_v53  ;;  %v4148_v57 = vrot.slane %v4146_v12, 5  ;;  %v9430_v0 = vrot.slane %v4184_v42, 5  ;;  %v7634_v53 = vld [vmem:[%s9743_s1 + $0x238] sm:$0xff]   ;;  %v6239_v4 = vld [vmem:[%s7775_s11 + $0xc0] sm:$0xf] }
 0x147   : > { %6942 = vmatmul.mubr.bf16.gmra.mrb[12].mxu1 %v7621_v26  ;;  %v6269_v24 = vcombine.low %v9806_v18, %v4101_v28  ;;  %v4190_v52 = vrot.slane %v4188_v10, 4  ;;  %v4134_v21 = vrot.slane %v4133_v35, 4  ;;  %v4144_v16 = vrot.slane %v4143_v31, 4  ;;  %v7624_v40 = vld [vmem:[%s7775_s11 + $0x78] sm:$0xff]  }
 0x148   : > { %6945 = vmatprep.mubr.bf16.mxu1 %v7623_v22  ;;  %v4157_v25 = vor.u32 %v4156_v50, %v4153_v44  ;;  %v4170_v11 = vshll.u32 %v9243_v13, 16  ;;  %v6270_v38 = vcombine.low %v4115_v41, %v4125_v56  ;;  %v4167_v26 = vor.u32 %v4166_v1, %v9423_v30  ;;  %v7626_v22 = vld [vmem:[%s7775_s11 + $0x84] sm:$0xff]  }
 0x149   : > { %7164 = vmatpush3.bf16.msra.mxu0 %v7628_v9  ;;  %v4181_v45 = vor.u32 %v4180_v60, %v4177_v19  ;;  %v4194_v23 = vshll.u32 %v9264_v39, 16  ;;  %v4199_v51 = vshrl.u32 %v6236_v2, 16  ;;  %v4191_v44 = vor.u32 %v4190_v52, %v9430_v0  ;;  %v6242_v52 = vld [vmem:[%s7775_s11 + $0xcc] sm:$0xf] }
 0x14a   : > { %7165 = vmatprep.subr.bf16.mxu0 %v7631_v59  ;;  %v4202_v13 = vshll.u32 %v6236_v2, 16  ;;  %v4208_v9 = vshll.u32 %v9275_v37, 16  ;;  %v4212_v28 = vshrl.u32 %v9275_v37, 16  ;;  %v4139_v12 = vsel %vm7836_vm2, %v4134_v21, %v9370_v33  ;;  %v7627_v2 = vld [vmem:[%s7775_s11 + $0x90] sm:$0xff]  }
 0x14b   : > { %v4149_v42 = vsel %vm7836_vm2, %v4144_v16, %v4148_v57  ;;  %v4158_v39 = vrot.slane %v4157_v25, 4  ;;  %v4172_v10 = vrot.slane %v4170_v11, 5  ;;  %v4223_v35 = vshrl.u32 %v6239_v4, 16  ;;  %v7629_v11 = vld [vmem:[%s7775_s11 + $0x9c] sm:$0xff]  }
 0x14c   : > { %7134 = vmatmul.mubr.bf16.gmra.mrb[12].mxu0 %v6268_v3  ;;  %v4226_v31 = vshll.u32 %v6239_v4, 16  ;;  %v4232_v50 = vshll.u32 %v9299_v34, 16  ;;  %v4236_v6 = vshrl.u32 %v9299_v34, 16  ;;  %v4168_v37 = vrot.slane %v4167_v26, 4 }
 0x14d   : > { %7137 = vmatprep.mubr.bf16.mxu0 %v6269_v24  ;;  %7166 = vmatpush3.bf16.msra.mxu0 %v7631_v59  ;;  %v4182_v3 = vrot.slane %v4181_v45, 4  ;;  %v4196_v41 = vrot.slane %v4194_v23, 5  ;;  %v4201_v33 = vrot.slane %v4199_v51, 4  ;;  %v4192_v56 = vrot.slane %v4191_v44, 4 }
 0x14e   : > { %7167 = vmatprep.subr.bf16.mxu0 %v7634_v53  ;;  %v4204_v1 = vrot.slane %v4202_v13, 5  ;;  %v4210_v19 = vrot.slane %v4208_v9, 5  ;;  %v4214_v59 = vrot.slane %v4212_v28, 4  ;;  %v6271_v60 = vcombine.low %v4139_v12, %v4149_v42 }
 0x14f   : > { %6946 = vmatmul.mubr.bf16.gmra.mrb[16].mxu1 %v7624_v40  ;;  %v4225_v18 = vrot.slane %v4223_v35, 4  ;;  %v4228_v24 = vrot.slane %v4226_v31, 5  ;;  %v4234_v57 = vrot.slane %v4232_v50, 5  ;;  %v4238_v34 = vrot.slane %v4236_v6, 4  ;;  %v7630_v50 = vld [vmem:[%s7775_s11 + $0xa8] sm:$0xff]   ;;  %v7632_v6 = vld [vmem:[%s7775_s11 + $0xb4] sm:$0xff]  }
 0x150   : > { %6949 = vmatprep.mubr.bf16.mxu1 %v7626_v22  ;;  %v4163_v21 = vsel %vm7836_vm2, %v4158_v39, %v9423_v30  ;;  %v4173_v16 = vsel %vm7836_vm2, %v4168_v37, %v4172_v10  ;;  %v4187_v25 = vsel %vm7836_vm2, %v4182_v3, %v9430_v0  ;;  %v4205_v40 = vor.u32 %v4204_v1, %v4201_v33 }
 0x151   : > { %7168 = vmatpush3.bf16.msra.mxu0 %v7634_v53  ;;  %v4197_v53 = vsel %vm7836_vm2, %v4192_v56, %v4196_v41  ;;  %v4215_v26 = vor.u32 %v4214_v59, %v4210_v19  ;;  %v4218_v45 = vshll.u32 %v9278_v32, 16  ;;  %v4247_v23 = vshrl.u32 %v6242_v52, 16  ;;  %v7706_v59 = vld [vmem:[%s7775_s11 + $0x1c] sm:$0xf] }
 0x152   : > { %v4250_v51 = vshll.u32 %v6242_v52, 16  ;;  %v4256_v30 = vshll.u32 %v9321_v63, 16  ;;  %v4260_v4 = vshrl.u32 %v9321_v63, 16  ;;  %v4229_v22 = vor.u32 %v4228_v24, %v4225_v18 }
 0x153   : > { %v4239_v44 = vor.u32 %v4238_v34, %v4234_v57  ;;  %v4242_v0 = vshll.u32 %v9309_v7, 16  ;;  %v6273_v13 = vcombine.low %v4187_v25, %v4197_v53  ;;  %v4206_v9 = vrot.slane %v4205_v40, 4  ;;  %v7633_v25 = vld [vmem:[%s7775_s11 + $0xc0] sm:$0xff]   ;;  %v7708_v40 = vld [vmem:[%s7775_s11 + $0x28] sm:$0xf] }
 0x154   : > { %7138 = vmatmul.mubr.bf16.gmra.mrb[16].mxu0 %v6270_v38  ;;  %v6272_v38 = vcombine.low %v4163_v21, %v4173_v16  ;;  %v4216_v28 = vrot.slane %v4215_v26, 4  ;;  %v4220_v32 = vrot.slane %v4218_v45, 5  ;;  %v4249_v12 = vrot.slane %v4247_v23, 4  ;;  %v7707_v16 = vld [vmem:[%s7775_s11 + $0x20] sm:$0x1] }
 0x155   : > { %7141 = vmatprep.mubr.bf16.mxu0 %v6271_v60  ;;  %v4252_v42 = vrot.slane %v4250_v51, 5  ;;  %v4258_v39 = vrot.slane %v4256_v30, 5  ;;  %v4262_v10 = vrot.slane %v4260_v4, 4  ;;  %v4230_v35 = vrot.slane %v4229_v22, 4  ;;  %v6286_v51 = vld [vmem:[%s7775_s11 + $0x24] sm:$0xe] }
 0x156   : > { %v4240_v63 = vrot.slane %v4239_v44, 4  ;;  %v4244_v31 = vrot.slane %v4242_v0, 5  ;;  %v4211_v7 = vsel %vm7836_vm2, %v4206_v9, %v4210_v19  ;;  %v4221_v37 = vsel %vm7836_vm2, %v4216_v28, %v4220_v32  ;;  %v6285_v19 = vld [vmem:[%s7775_s11 + $0x18] sm:$0xe]  ;;  %v7709_v0 = vld [vmem:[%s7775_s11 + $0x2c] sm:$0x1] }
 0x157   : > { %6950 = vmatmul.mubr.bf16.gmra.mrb[20].mxu1 %v7627_v2  ;;  %v4253_v3 = vor.u32 %v4252_v42, %v4249_v12  ;;  %v4263_v41 = vor.u32 %v4262_v10, %v4258_v39  ;;  %v4266_v33 = vshll.u32 %v9330_v47, 16  ;;  %v4235_v56 = vsel %vm7836_vm2, %v4230_v35, %v4234_v57  ;;  %v9823_v10 = vld [vmem:[#allocation9_spill] sm:$0xff] }
 0x158   : > { %6953 = vmatprep.mubr.bf16.mxu1 %v7629_v11  ;;  %v4245_v1 = vsel %vm7836_vm2, %v4240_v63, %v4244_v31  ;;  %v4658_v60 = vrot.slane %v7706_v59, 5  ;;  %v6274_v18 = vcombine.low %v4211_v7, %v4221_v37  ;;  %v6301_v47 = vrot.slane %v6285_v19, 9  ;;  %v9825_v63 = vld [vmem:[#allocation10_spill] sm:$0xff]  ;;  %v9826_v31 = vld [vmem:[#allocation12_spill] sm:$0xff]  ;;  %v9829_v37 = vld [vmem:[#allocation13_spill] sm:$0xff] }
 0x159   : > { %v6275_v24 = vcombine.low %v4235_v56, %v4245_v1  ;;  %v4254_v34 = vrot.slane %v4253_v3, 4  ;;  %v4264_v52 = vrot.slane %v4263_v41, 4  ;;  %v4268_v2 = vrot.slane %v4266_v33, 5  ;;  %v7637_v7 = vld [vmem:[%s9746_s4 + $0x10] sm:$0xff]   ;;  %v7638_v33 = vld [vmem:[%s9746_s4 + $0x18] sm:$0xff]   ;;  %v7639_v1 = vld [vmem:[%s9746_s4 + $0x20] sm:$0xff]  }
 0x15a   : > { %v4660_v21 = vrot.slane %v4658_v60, 4  ;;  %v4661_v57 = vrot.slane %v7707_v16, 5  ;;  %v4665_v26 = vrot.slane %v7708_v40, 5  ;;  %v4659_v45 = vsel %vm8214_vm5, %v6301_v47, %v4658_v60 }
 0x15b   : > { %v4259_v11 = vsel %vm7836_vm2, %v4254_v34, %v4258_v39  ;;  %v4269_v53 = vsel %vm7836_vm2, %v4264_v52, %v4268_v2  ;;  %v6302_v22 = vrot.slane %v6286_v51, 9  ;;  %v9807_v28 = vcombine.low %v9132_v46, %v9145_v20  ;;  %v9813_v20 = vld [vmem:[#allocation4_spill] sm:$0xff]  ;;  %v9814_v39 = vld [vmem:[#allocation3_spill] sm:$0xff] }
 0x15c   : > { %7142 = vmatmul.mubr.bf16.gmra.mrb[20].mxu0 %v6272_v38  ;;  %v4662_v23 = vsel %vm8214_vm5, %v4660_v21, %v4661_v57  ;;  %v6276_v30 = vcombine.low %v4259_v11, %v4269_v53  ;;  %v4667_v44 = vrot.slane %v4665_v26, 4  ;;  %v4668_v38 = vrot.slane %v7709_v0, 5 }
 0x15d   : > { %7145 = vmatprep.mubr.bf16.mxu0 %v6273_v13  ;;  %v6333_v4 = vcombine.low %v4659_v45, %v4662_v23  ;;  %v4666_v36 = vsel %vm8214_vm5, %v6302_v22, %v4665_v26  ;;  %v9808_v32 = vcombine.low %v9149_v27, %v9160_v43  ;;  %v9809_v12 = vcombine.low %v9169_v14, %v9180_v61  ;;  %v7635_v43 = vld [vmem:[%s9746_s4] sm:$0xff]   ;;  %v9816_v14 = vld [vmem:[#allocation5_spill] sm:$0xff] }
 0x15e   : > { %v4669_v13 = vsel %vm8214_vm5, %v4667_v44, %v4668_v38  ;;  %v9810_v42 = vcombine.low %v9175_v29, %v9192_v54  ;;  %v9812_v46 = vcombine.low %v9205_v55, %v9221_v49  ;;  %v9815_v27 = vcombine.low %v9813_v20, %v9814_v39  ;;  %7201 = vmatprep.subr.bf16.mxu1 %v7635_v43  ;;  %v9817_v29 = vld [vmem:[#allocation6_spill] sm:$0xff]  ;;  %v9820_v54 = vld [vmem:[#allocation7_spill] sm:$0xff]  ;;  %v9822_v49 = vld [vmem:[#allocation8_spill] sm:$0xff] }
 0x15f   : > { %6954 = vmatmul.mubr.bf16.gmra.mrb[24].mxu1 %v7630_v50  ;;  %v6334_v9 = vcombine.low %v4666_v36, %v4669_v13  ;;  %v9818_v61 = vcombine.low %v9816_v14, %v9817_v29  ;;  %v9821_v8 = vcombine.low %v9819_v58, %v9820_v54  ;;  %v7636_v55 = vld [vmem:[%s9746_s4 + $0x8] sm:$0xff]   ;;  %v9824_v35 = vcombine.low %v9822_v49, %v9823_v10  ;;  %v9621_v20 = vld [vmem:[%s9745_s3] ss:$0 sm:$0xff] }
 0x160   : > { %6957 = vmatprep.mubr.bf16.mxu1 %v7632_v6  ;;  %7202 = vmatpush3.bf16.msra.mxu1 %v7635_v43  ;;  %v9827_v50 = vcombine.low %v9825_v63, %v9826_v31  ;;  %v9828_v6 = vld [vmem:[#allocation11_spill] sm:$0xff]  ;;  %v9831_v41 = vcombine.low %v9338_v5, %v9358_v15  ;;  %v9832_v56 = vcombine.low %v9362_v62, %v9379_v17  ;;  %v7641_v15 = vld [vmem:[%s9746_s4 + $0x30] sm:$0xff]   ;;  %v7642_v62 = vld [vmem:[%s9746_s4 + $0x38] sm:$0xff]  }
 0x161   : > { %7203 = vmatprep.subr.bf16.mxu1 %v7636_v55  ;;  %v9830_v3 = vcombine.low %v9828_v6, %v9829_v37  ;;  %v7640_v5 = vld [vmem:[%s9746_s4 + $0x28] sm:$0xff]  }
 0x164   : > { %7146 = vmatmul.mubr.bf16.gmra.mrb[24].mxu0 %v6274_v18  ;;  %7204 = vmatpush3.bf16.msra.mxu1 %v7636_v55 }
 0x165   : > { %7149 = vmatprep.mubr.bf16.mxu0 %v6275_v24  ;;  %7205 = vmatprep.subr.bf16.mxu1 %v7637_v7 }
 0x167   : > { %6958 = vmatmul.mubr.bf16.gmra.mrb[28].mxu1 %v7633_v25 }
 0x168   : > { %7206 = vmatpush3.bf16.msra.mxu1 %v7637_v7 }
 0x169   : > { %7207 = vmatprep.subr.bf16.mxu1 %v7638_v33 }
 0x16c   : > { %7150 = vmatmul.mubr.bf16.gmra.mrb[28].mxu0 %v6276_v30  ;;  %7208 = vmatpush3.bf16.msra.mxu1 %v7638_v33 }
 0x16d   : > { %7169 = vmatprep.mubr.bf16.mxu0 %v6333_v4  ;;  %7209 = vmatprep.subr.bf16.mxu1 %v7639_v1 }
 0x170   : > { %7210 = vmatpush3.bf16.msra.mxu1 %v7639_v1 }
 0x171   : > { %7211 = vmatprep.subr.bf16.mxu1 %v7640_v5 }
 0x174   : > { %7170 = vmatmul.mubr.bf16.vlgmr.msra.gmra.mrb[0].mxu0 %v6334_v9  ;;  %7212 = vmatpush3.bf16.msra.mxu1 %v7640_v5 }
 0x175   : > { %7173 = vmatprep.mubr.bf16.mxu0 %v9807_v28  ;;  %7213 = vmatprep.subr.bf16.mxu1 %v7641_v15 }
 0x178   : > { %7214 = vmatpush3.bf16.msra.mxu1 %v7641_v15 }
 0x179   : > { %7215 = vmatprep.subr.bf16.mxu1 %v7642_v62 }
 0x17c   : > { %7174 = vmatmul.mubr.bf16.gmra.mrb[4].mxu0 %v9808_v32  ;;  %7216 = vmatpush3.bf16.msra.mxu1 %v7642_v62 }
 0x17d   : > { %7177 = vmatprep.mubr.bf16.mxu0 %v9809_v12 }
 0x184   : > { %7178 = vmatmul.mubr.bf16.gmra.mrb[8].mxu0 %v9810_v42  ;;  %v9616_v42 = vld [vmem:[%s9744_s2] ss:$0 sm:$0xff] }
 0x185   : > { %7181 = vmatprep.mubr.bf16.mxu0 %v9811_v48 }
 0x18c   : > { %7182 = vmatmul.mubr.bf16.gmra.mrb[12].mxu0 %v9812_v46 }
 0x18d   : > { %7185 = vmatprep.mubr.bf16.mxu0 %v9815_v27 }
 0x194   : > { %7186 = vmatmul.mubr.bf16.gmra.mrb[16].mxu0 %v9818_v61 }
 0x195   : > { %7189 = vmatprep.mubr.bf16.mxu0 %v9821_v8 }
 0x19c   : > { %7190 = vmatmul.mubr.bf16.gmra.mrb[20].mxu0 %v9824_v35 }
 0x19d   : > { %7193 = vmatprep.mubr.bf16.mxu0 %v9827_v50 }
 0x1a4   : > { %7194 = vmatmul.mubr.bf16.gmra.mrb[24].mxu0 %v9830_v3 }
 0x1a5   : > { %7197 = vmatprep.mubr.bf16.mxu0 %v9831_v41 }
 0x1ac   : > { %7198 = vmatmul.mubr.bf16.gmra.mrb[28].mxu0 %v9832_v56 }
 0x202   : > { %v6931_v17 = vpop.f32.mrb[0].mxu1 }
 0x203   : > { %v2040_v59 = vpop.f32.mrb[1].mxu1 }
 0x204   : > { %v6932_v60 = vpop.f32.mrb[2].mxu1 }
 0x205   : > { %v2043_v19 = vpop.f32.mrb[3].mxu1 }
 0x20a   : > { %v6935_v18 = vpop.f32.mrb[4].mxu1 }
 0x20b   : > { %v2056_v24 = vpop.f32.mrb[5].mxu1 }
 0x20c   : > { %v6936_v34 = vpop.f32.mrb[6].mxu1 }
 0x20d   : > { %v2059_v52 = vpop.f32.mrb[7].mxu1 }
 0x212   : > { %v9565_v2 = vpop.f32.mrb[8].mxu1 }
 0x213   : > { %v9567_v47 = vpop.f32.mrb[9].mxu1 }
 0x214   : > { %v9569_v21 = vpop.f32.mrb[10].mxu1 }
 0x215   : > { %v9571_v16 = vpop.f32.mrb[11].mxu1 }
 0x21a   : > { %v9573_v57 = vpop.f32.mrb[12].mxu1 }
 0x21b   : > { %v9575_v25 = vpop.f32.mrb[13].mxu1 }
 0x21c   : > { %v9577_v11 = vpop.f32.mrb[14].mxu1 }
 0x21d   : > { %v9579_v53 = vpop.f32.mrb[15].mxu1 }
 0x222   : > { %v9581_v40 = vpop.f32.mrb[16].mxu1 }
 0x223   : > { %v9583_v26 = vpop.f32.mrb[17].mxu1 }
 0x224   : > { %v9585_v45 = vpop.f32.mrb[18].mxu1 }
 0x225   : > { %v9587_v23 = vpop.f32.mrb[19].mxu1 }
 0x22a   : > { %v9589_v51 = vpop.f32.mrb[20].mxu1 }
 0x22b   : > { %v9591_v30 = vpop.f32.mrb[21].mxu1 }
 0x22c   : > { %v9593_v4 = vpop.f32.mrb[22].mxu1 }
 0x22d   : > { %v9595_v22 = vpop.f32.mrb[23].mxu1 }
 0x232   : > { %v9597_v44 = vpop.f32.mrb[24].mxu1 }
 0x233   : > { %v9599_v0 = vpop.f32.mrb[25].mxu1 }
 0x234   : > { %v9601_v38 = vpop.f32.mrb[26].mxu1 }
 0x235   : > { %v9603_v36 = vpop.f32.mrb[27].mxu1 }
 0x23a   : > { %v9605_v13 = vpop.f32.mrb[28].mxu1 }
 0x23b   : > { %v9607_v9 = vpop.f32.mrb[29].mxu1 }
 0x23c   : > { %v9609_v28 = vpop.f32.mrb[30].mxu1 }
 0x23d   : > { %v9611_v32 = vpop.f32.mrb[31].mxu1 }
 0x247   : > { %v7171_v12 = vpop.f32.mrb[0].mxu0 }
 0x248   : > { %v7249_v48 = vadd.f32 %v7171_v12, %v6931_v17  ;;  %v4931_v46 = vpop.f32.mrb[1].mxu0 }
 0x249   : > { %v7250_v39 = vadd.f32 %v4931_v46, %v2040_v59  ;;  %v7172_v27 = vpop.f32.mrb[2].mxu0 }
 0x24a   : > { %v5099_v43 = vmul.f32 %v7249_v48, %v9616_v42  ;;  %v7251_v14 = vadd.f32 %v7172_v27, %v6932_v60  ;;  %v4934_v29 = vpop.f32.mrb[3].mxu0 }
 0x24b   : > { %v5097_v61 = vmul.f32 %v7250_v39, %v9616_v42  ;;  %v7252_v58 = vadd.f32 %v4934_v29, %v2043_v19 }
 0x24c   : > { %v5138_v54 = vadd.f32 %v9621_v20, %v5099_v43  ;;  %v5100_v8 = vmul.f32 %v7251_v14, %v9616_v42 }
 0x24d   : > { %v5136_v55 = vadd.f32 %v9621_v20, %v5097_v61  ;;  %v5098_v49 = vmul.f32 %v7252_v58, %v9616_v42 }
 0x24e   : > { %v5139_v10 = vadd.f32 %v9621_v20, %v5100_v8  ;;  %v5170_v31 = vmax.f32 %v5138_v54, 0.0 }
 0x24f   : > { %v5137_v35 = vadd.f32 %v9621_v20, %v5098_v49  ;;  %v7175_v63 = vpop.f32.mrb[4].mxu0  ;;  %v5168_v37 = vmax.f32 %v5136_v55, 0.0 }
 0x250   : > { %v5171_v50 = vmax.f32 %v5139_v10, 0.0  ;;  %v7253_v7 = vadd.f32 %v7175_v63, %v6935_v18  ;;  %v4947_v6 = vpop.f32.mrb[5].mxu0 }
 0x251   : > { %v5169_v3 = vmax.f32 %v5137_v35, 0.0  ;;  %v7254_v41 = vadd.f32 %v4947_v6, %v2056_v24  ;;  %v7176_v33 = vpop.f32.mrb[6].mxu0 }
 0x252   : > { %v5201_v56 = vpack.c.bf16 %v5171_v50, %v5170_v31  ;;  %v5103_v1 = vmul.f32 %v7253_v7, %v9616_v42  ;;  %v7255_v5 = vadd.f32 %v7176_v33, %v6936_v34  ;;  %v4950_v15 = vpop.f32.mrb[7].mxu0 }
 0x253   : > { %v5101_v62 = vmul.f32 %v7254_v41, %v9616_v42  ;;  %v7256_v17 = vadd.f32 %v4950_v15, %v2059_v52  ;;  %v5200_v59 = vpack.c.bf16 %v5169_v3, %v5168_v37 }
 0x254   : > { %6514 = vst [vmem:[%s7770_s8 + $0x8] sm:$0xff] %v5201_v56   ;;  %v5142_v60 = vadd.f32 %v9621_v20, %v5103_v1  ;;  %v5104_v19 = vmul.f32 %v7255_v5, %v9616_v42 }
 0x255   : > { %v5140_v18 = vadd.f32 %v9621_v20, %v5101_v62  ;;  %v5102_v12 = vmul.f32 %v7256_v17, %v9616_v42  ;;  %6438 = vst [vmem:[%s7770_s8] sm:$0xff] %v5200_v59   ;;  %7217 = vmatprep.mubr.bf16.mxu1 %v5200_v59 }
 0x256   : > { %v5143_v24 = vadd.f32 %v9621_v20, %v5104_v19  ;;  %7218 = vmatmul.mubr.bf16.vlgmr.msra.gmra.mrb[32].mxu1 %v5201_v56  ;;  %v5174_v46 = vmax.f32 %v5142_v60, 0.0 }
 0x257   : > { %v5141_v34 = vadd.f32 %v9621_v20, %v5102_v12  ;;  %v7179_v48 = vpop.f32.mrb[8].mxu0  ;;  %v5172_v43 = vmax.f32 %v5140_v18, 0.0 }
 0x258   : > { %v5175_v52 = vmax.f32 %v5143_v24, 0.0  ;;  %v7257_v39 = vadd.f32 %v7179_v48, %v9565_v2  ;;  %v4963_v27 = vpop.f32.mrb[9].mxu0 }
 0x259   : > { %v5173_v14 = vmax.f32 %v5141_v34, 0.0  ;;  %v7258_v29 = vadd.f32 %v4963_v27, %v9567_v47  ;;  %v7180_v61 = vpop.f32.mrb[10].mxu0 }
 0x25a   : > { %v5107_v58 = vmul.f32 %v7257_v39, %v9616_v42  ;;  %v7259_v54 = vadd.f32 %v7180_v61, %v9569_v21  ;;  %v4966_v8 = vpop.f32.mrb[11].mxu0  ;;  %v5203_v55 = vpack.c.bf16 %v5175_v52, %v5174_v46 }
 0x25b   : > { %v5105_v49 = vmul.f32 %v7258_v29, %v9616_v42  ;;  %v7260_v10 = vadd.f32 %v4966_v8, %v9571_v16  ;;  %v5202_v35 = vpack.c.bf16 %v5173_v14, %v5172_v43 }
 0x25c   : > { %v5146_v2 = vadd.f32 %v9621_v20, %v5107_v58  ;;  %v5108_v63 = vmul.f32 %v7259_v54, %v9616_v42  ;;  %6516 = vst [vmem:[%s7770_s8 + $0x18] sm:$0xff] %v5203_v55  }
 0x25d   : > { %v5144_v31 = vadd.f32 %v9621_v20, %v5105_v49  ;;  %v5106_v47 = vmul.f32 %v7260_v10, %v9616_v42  ;;  %6515 = vst [vmem:[%s7770_s8 + $0x10] sm:$0xff] %v5202_v35   ;;  %7221 = vmatprep.mubr.bf16.mxu1 %v5202_v35 }
 0x25e   : > { %v5147_v21 = vadd.f32 %v9621_v20, %v5108_v63  ;;  %7222 = vmatmul.mubr.bf16.gmra.mrb[36].mxu1 %v5203_v55  ;;  %v5178_v6 = vmax.f32 %v5146_v2, 0.0 }
 0x25f   : > { %v5145_v50 = vadd.f32 %v9621_v20, %v5106_v47  ;;  %v7183_v7 = vpop.f32.mrb[12].mxu0  ;;  %v5176_v41 = vmax.f32 %v5144_v31, 0.0 }
 0x260   : > { %v5179_v16 = vmax.f32 %v5147_v21, 0.0  ;;  %v7261_v37 = vadd.f32 %v7183_v7, %v9573_v57  ;;  %v4979_v3 = vpop.f32.mrb[13].mxu0 }
 0x261   : > { %v5177_v33 = vmax.f32 %v5145_v50, 0.0  ;;  %v7262_v56 = vadd.f32 %v4979_v3, %v9575_v25  ;;  %v7184_v1 = vpop.f32.mrb[14].mxu0 }
 0x262   : > { %v5111_v5 = vmul.f32 %v7261_v37, %v9616_v42  ;;  %v7263_v15 = vadd.f32 %v7184_v1, %v9577_v11  ;;  %v4982_v62 = vpop.f32.mrb[15].mxu0  ;;  %v5205_v17 = vpack.c.bf16 %v5179_v16, %v5178_v6 }
 0x263   : > { %v5109_v59 = vmul.f32 %v7262_v56, %v9616_v42  ;;  %v7264_v60 = vadd.f32 %v4982_v62, %v9579_v53  ;;  %v5204_v19 = vpack.c.bf16 %v5177_v33, %v5176_v41 }
 0x264   : > { %v5150_v57 = vadd.f32 %v9621_v20, %v5111_v5  ;;  %v5112_v18 = vmul.f32 %v7263_v15, %v9616_v42  ;;  %6518 = vst [vmem:[%s7770_s8 + $0x28] sm:$0xff] %v5205_v17  }
 0x265   : > { %v5148_v12 = vadd.f32 %v9621_v20, %v5109_v59  ;;  %v5110_v25 = vmul.f32 %v7264_v60, %v9616_v42  ;;  %6517 = vst [vmem:[%s7770_s8 + $0x20] sm:$0xff] %v5204_v19   ;;  %7225 = vmatprep.mubr.bf16.mxu1 %v5204_v19 }
 0x266   : > { %v5151_v11 = vadd.f32 %v9621_v20, %v5112_v18  ;;  %7226 = vmatmul.mubr.bf16.gmra.mrb[40].mxu1 %v5205_v17  ;;  %v5182_v48 = vmax.f32 %v5150_v57, 0.0 }
 0x267   : > { %v5149_v24 = vadd.f32 %v9621_v20, %v5110_v25  ;;  %v7187_v34 = vpop.f32.mrb[16].mxu0  ;;  %v5180_v39 = vmax.f32 %v5148_v12, 0.0 }
 0x268   : > { %v5183_v53 = vmax.f32 %v5151_v11, 0.0  ;;  %v7265_v46 = vadd.f32 %v7187_v34, %v9581_v40  ;;  %v4995_v52 = vpop.f32.mrb[17].mxu0 }
 0x269   : > { %v5181_v27 = vmax.f32 %v5149_v24, 0.0  ;;  %v7266_v43 = vadd.f32 %v4995_v52, %v9583_v26  ;;  %v7188_v14 = vpop.f32.mrb[18].mxu0 }
 0x26a   : > { %v5115_v29 = vmul.f32 %v7265_v46, %v9616_v42  ;;  %v7267_v61 = vadd.f32 %v7188_v14, %v9585_v45  ;;  %v4998_v58 = vpop.f32.mrb[19].mxu0  ;;  %v5207_v54 = vpack.c.bf16 %v5183_v53, %v5182_v48 }
 0x26b   : > { %v5113_v8 = vmul.f32 %v7266_v43, %v9616_v42  ;;  %v7268_v55 = vadd.f32 %v4998_v58, %v9587_v23  ;;  %v5206_v49 = vpack.c.bf16 %v5181_v27, %v5180_v39 }
 0x26c   : > { %v5154_v40 = vadd.f32 %v9621_v20, %v5115_v29  ;;  %v5116_v10 = vmul.f32 %v7267_v61, %v9616_v42  ;;  %6520 = vst [vmem:[%s7770_s8 + $0x38] sm:$0xff] %v5207_v54  }
 0x26d   : > { %v5152_v35 = vadd.f32 %v9621_v20, %v5113_v8  ;;  %v5114_v26 = vmul.f32 %v7268_v55, %v9616_v42  ;;  %6519 = vst [vmem:[%s7770_s8 + $0x30] sm:$0xff] %v5206_v49   ;;  %7229 = vmatprep.mubr.bf16.mxu1 %v5206_v49 }
 0x26e   : > { %v5155_v45 = vadd.f32 %v9621_v20, %v5116_v10  ;;  %7230 = vmatmul.mubr.bf16.gmra.mrb[44].mxu1 %v5207_v54  ;;  %v5186_v31 = vmax.f32 %v5154_v40, 0.0 }
 0x26f   : > { %v5153_v2 = vadd.f32 %v9621_v20, %v5114_v26  ;;  %v7191_v63 = vpop.f32.mrb[20].mxu0  ;;  %v5184_v50 = vmax.f32 %v5152_v35, 0.0 }
 0x270   : > { %v5187_v23 = vmax.f32 %v5155_v45, 0.0  ;;  %v7269_v47 = vadd.f32 %v7191_v63, %v9589_v51  ;;  %v5011_v21 = vpop.f32.mrb[21].mxu0 }
 0x271   : > { %v5185_v7 = vmax.f32 %v5153_v2, 0.0  ;;  %v7270_v6 = vadd.f32 %v5011_v21, %v9591_v30  ;;  %v7192_v16 = vpop.f32.mrb[22].mxu0 }
 0x272   : > { %v5119_v37 = vmul.f32 %v7269_v47, %v9616_v42  ;;  %v7271_v3 = vadd.f32 %v7192_v16, %v9593_v4  ;;  %v5014_v41 = vpop.f32.mrb[23].mxu0  ;;  %v5209_v33 = vpack.c.bf16 %v5187_v23, %v5186_v31 }
 0x273   : > { %v5117_v56 = vmul.f32 %v7270_v6, %v9616_v42  ;;  %v7272_v1 = vadd.f32 %v5014_v41, %v9595_v22  ;;  %v5208_v5 = vpack.c.bf16 %v5185_v7, %v5184_v50 }
 0x274   : > { %v5158_v51 = vadd.f32 %v9621_v20, %v5119_v37  ;;  %v5120_v15 = vmul.f32 %v7271_v3, %v9616_v42  ;;  %6522 = vst [vmem:[%s7770_s8 + $0x48] sm:$0xff] %v5209_v33  }
 0x275   : > { %v5156_v62 = vadd.f32 %v9621_v20, %v5117_v56  ;;  %v5118_v30 = vmul.f32 %v7272_v1, %v9616_v42  ;;  %6521 = vst [vmem:[%s7770_s8 + $0x40] sm:$0xff] %v5208_v5   ;;  %7233 = vmatprep.mubr.bf16.mxu1 %v5208_v5 }
 0x276   : > { %v5159_v4 = vadd.f32 %v9621_v20, %v5120_v15  ;;  %7234 = vmatmul.mubr.bf16.gmra.mrb[48].mxu1 %v5209_v33  ;;  %v5190_v60 = vmax.f32 %v5158_v51, 0.0 }
 0x277   : > { %v5157_v17 = vadd.f32 %v9621_v20, %v5118_v30  ;;  %v7195_v59 = vpop.f32.mrb[24].mxu0  ;;  %v5188_v18 = vmax.f32 %v5156_v62, 0.0 }
 0x278   : > { %v5191_v22 = vmax.f32 %v5159_v4, 0.0  ;;  %v7273_v19 = vadd.f32 %v7195_v59, %v9597_v44  ;;  %v5027_v57 = vpop.f32.mrb[25].mxu0 }
 0x279   : > { %v5189_v12 = vmax.f32 %v5157_v17, 0.0  ;;  %v7274_v25 = vadd.f32 %v5027_v57, %v9599_v0  ;;  %v7196_v11 = vpop.f32.mrb[26].mxu0 }
 0x27a   : > { %v5123_v24 = vmul.f32 %v7273_v19, %v9616_v42  ;;  %v7275_v34 = vadd.f32 %v7196_v11, %v9601_v38  ;;  %v5030_v48 = vpop.f32.mrb[27].mxu0  ;;  %v5211_v53 = vpack.c.bf16 %v5191_v22, %v5190_v60 }
 0x27b   : > { %v5121_v46 = vmul.f32 %v7274_v25, %v9616_v42  ;;  %v7276_v52 = vadd.f32 %v5030_v48, %v9603_v36  ;;  %v5210_v39 = vpack.c.bf16 %v5189_v12, %v5188_v18 }
 0x27c   : > { %v5162_v44 = vadd.f32 %v9621_v20, %v5123_v24  ;;  %v5124_v27 = vmul.f32 %v7275_v34, %v9616_v42  ;;  %6524 = vst [vmem:[%s7770_s8 + $0x58] sm:$0xff] %v5211_v53  }
 0x27d   : > { %v5160_v43 = vadd.f32 %v9621_v20, %v5121_v46  ;;  %v5122_v0 = vmul.f32 %v7276_v52, %v9616_v42  ;;  %6523 = vst [vmem:[%s7770_s8 + $0x50] sm:$0xff] %v5210_v39   ;;  %7237 = vmatprep.mubr.bf16.mxu1 %v5210_v39 }
 0x27e   : > { %v5163_v38 = vadd.f32 %v9621_v20, %v5124_v27  ;;  %7238 = vmatmul.mubr.bf16.gmra.mrb[52].mxu1 %v5211_v53  ;;  %v5194_v61 = vmax.f32 %v5162_v44, 0.0 }
 0x27f   : > { %v5161_v14 = vadd.f32 %v9621_v20, %v5122_v0  ;;  %v7199_v29 = vpop.f32.mrb[28].mxu0  ;;  %v5192_v8 = vmax.f32 %v5160_v43, 0.0 }
 0x280   : > { %v5195_v36 = vmax.f32 %v5163_v38, 0.0  ;;  %v7277_v58 = vadd.f32 %v7199_v29, %v9605_v13  ;;  %v5043_v54 = vpop.f32.mrb[29].mxu0 }
 0x281   : > { %v5193_v55 = vmax.f32 %v5161_v14, 0.0  ;;  %v7278_v49 = vadd.f32 %v5043_v54, %v9607_v9  ;;  %v7200_v40 = vpop.f32.mrb[30].mxu0 }
 0x282   : > { %v5127_v10 = vmul.f32 %v7277_v58, %v9616_v42  ;;  %v7279_v35 = vadd.f32 %v7200_v40, %v9609_v28  ;;  %v5046_v26 = vpop.f32.mrb[31].mxu0  ;;  %v5213_v45 = vpack.c.bf16 %v5195_v36, %v5194_v61 }
 0x283   : > { %v5125_v2 = vmul.f32 %v7278_v49, %v9616_v42  ;;  %v7280_v63 = vadd.f32 %v5046_v26, %v9611_v32  ;;  %v5212_v31 = vpack.c.bf16 %v5193_v55, %v5192_v8 }
 0x284   : > { %v5166_v13 = vadd.f32 %v9621_v20, %v5127_v10  ;;  %v5128_v23 = vmul.f32 %v7279_v35, %v9616_v42  ;;  %6526 = vst [vmem:[%s7770_s8 + $0x68] sm:$0xff] %v5213_v45  }
 0x285   : > { %v5164_v9 = vadd.f32 %v9621_v20, %v5125_v2  ;;  %v5126_v47 = vmul.f32 %v7280_v63, %v9616_v42  ;;  %6525 = vst [vmem:[%s7770_s8 + $0x60] sm:$0xff] %v5212_v31   ;;  %7241 = vmatprep.mubr.bf16.mxu1 %v5212_v31 }
 0x286   : > { %v5167_v28 = vadd.f32 %v9621_v20, %v5128_v23  ;;  %7242 = vmatmul.mubr.bf16.gmra.mrb[56].mxu1 %v5213_v45  ;;  %v5198_v32 = vmax.f32 %v5166_v13, 0.0 }
 0x287   : > { %v5165_v21 = vadd.f32 %v9621_v20, %v5126_v47  ;;  %v5196_v7 = vmax.f32 %v5164_v9, 0.0 }
 0x288   : > { %v5199_v50 = vmax.f32 %v5167_v28, 0.0 }
 0x289   : > { %v5197_v6 = vmax.f32 %v5165_v21, 0.0 }
 0x28a   : > { %v5215_v16 = vpack.c.bf16 %v5199_v50, %v5198_v32 }
 0x28b   : > { %v5214_v37 = vpack.c.bf16 %v5197_v6, %v5196_v7 }
 0x28c   : > { %6528 = vst [vmem:[%s7770_s8 + $0x78] sm:$0xff] %v5215_v16  }
 0x28d   : > { %6527 = vst [vmem:[%s7770_s8 + $0x70] sm:$0xff] %v5214_v37   ;;  %7245 = vmatprep.mubr.bf16.mxu1 %v5214_v37 }
 0x28e   : > { %7246 = vmatmul.mubr.bf16.gmra.mrb[60].mxu1 %v5215_v16 }
 0x329   : > { %v7219_v3 = vpop.f32.mrb[32].mxu1 }
 0x32a   : > { %v5458_v41 = vpop.f32.mrb[33].mxu1  ;;  %v5628_v51 = vmul.f32 %v7219_v3, %v7219_v3 }
 0x32b   : > { %v7220_v42 = vpop.f32.mrb[34].mxu1  ;;  %v5626_v56 = vmul.f32 %v5458_v41, %v5458_v41 }
 0x32c   : > { %v5461_v33 = vpop.f32.mrb[35].mxu1  ;;  %v5629_v62 = vmul.f32 %v7220_v42, %v7220_v42 }
 0x32d   : > { %v5586_v1 = vadd.f32 %v5461_v33, %v5458_v41  ;;  %v5627_v5 = vmul.f32 %v5461_v33, %v5461_v33 }
 0x32f   : > { %v5587_v15 = vadd.f32 %v7219_v3, %v5586_v1  ;;  %v5658_v20 = vadd.f32 %v5627_v5, %v5626_v56 }
 0x331   : > { %v5659_v30 = vadd.f32 %v5658_v20, %v5628_v51  ;;  %v7223_v4 = vpop.f32.mrb[36].mxu1  ;;  %v5588_v17 = vadd.f32 %v7220_v42, %v5587_v15 }
 0x332   : > { %v5474_v59 = vpop.f32.mrb[37].mxu1  ;;  %v5632_v24 = vmul.f32 %v7223_v4, %v7223_v4 }
 0x333   : > { %v5589_v60 = vadd.f32 %v5588_v17, %v5474_v59  ;;  %v5630_v22 = vmul.f32 %v5474_v59, %v5474_v59  ;;  %v5660_v19 = vadd.f32 %v5659_v30, %v5629_v62  ;;  %v7224_v57 = vpop.f32.mrb[38].mxu1 }
 0x334   : > { %v5477_v18 = vpop.f32.mrb[39].mxu1  ;;  %v5633_v53 = vmul.f32 %v7224_v57, %v7224_v57 }
 0x335   : > { %v5661_v12 = vadd.f32 %v5660_v19, %v5630_v22  ;;  %v5590_v25 = vadd.f32 %v5589_v60, %v5477_v18  ;;  %v5631_v11 = vmul.f32 %v5477_v18, %v5477_v18 }
 0x337   : > { %v5591_v34 = vadd.f32 %v7223_v4, %v5590_v25  ;;  %v5662_v48 = vadd.f32 %v5661_v12, %v5631_v11 }
 0x339   : > { %v5663_v46 = vadd.f32 %v5662_v48, %v5632_v24  ;;  %v7227_v52 = vpop.f32.mrb[40].mxu1  ;;  %v5592_v39 = vadd.f32 %v7224_v57, %v5591_v34 }
 0x33a   : > { %v5490_v44 = vpop.f32.mrb[41].mxu1  ;;  %v5636_v58 = vmul.f32 %v7227_v52, %v7227_v52 }
 0x33b   : > { %v5593_v27 = vadd.f32 %v5592_v39, %v5490_v44  ;;  %v5634_v43 = vmul.f32 %v5490_v44, %v5490_v44  ;;  %v5664_v0 = vadd.f32 %v5663_v46, %v5633_v53  ;;  %v7228_v38 = vpop.f32.mrb[42].mxu1 }
 0x33c   : > { %v5493_v14 = vpop.f32.mrb[43].mxu1  ;;  %v5637_v55 = vmul.f32 %v7228_v38, %v7228_v38 }
 0x33d   : > { %v5665_v29 = vadd.f32 %v5664_v0, %v5634_v43  ;;  %v5594_v61 = vadd.f32 %v5593_v27, %v5493_v14  ;;  %v5635_v36 = vmul.f32 %v5493_v14, %v5493_v14 }
 0x33f   : > { %v5595_v54 = vadd.f32 %v7227_v52, %v5594_v61  ;;  %v5666_v8 = vadd.f32 %v5665_v29, %v5635_v36 }
 0x341   : > { %v5667_v49 = vadd.f32 %v5666_v8, %v5636_v58  ;;  %v7231_v40 = vpop.f32.mrb[44].mxu1  ;;  %v5596_v10 = vadd.f32 %v7228_v38, %v5595_v54 }
 0x342   : > { %v5506_v35 = vpop.f32.mrb[45].mxu1  ;;  %v5640_v47 = vmul.f32 %v7231_v40, %v7231_v40 }
 0x343   : > { %v5597_v26 = vadd.f32 %v5596_v10, %v5506_v35  ;;  %v5638_v45 = vmul.f32 %v5506_v35, %v5506_v35  ;;  %v5668_v2 = vadd.f32 %v5667_v49, %v5637_v55  ;;  %v7232_v63 = vpop.f32.mrb[46].mxu1 }
 0x344   : > { %v5509_v31 = vpop.f32.mrb[47].mxu1  ;;  %v5641_v32 = vmul.f32 %v7232_v63, %v7232_v63 }
 0x345   : > { %v5669_v13 = vadd.f32 %v5668_v2, %v5638_v45  ;;  %v5598_v23 = vadd.f32 %v5597_v26, %v5509_v31  ;;  %v5639_v9 = vmul.f32 %v5509_v31, %v5509_v31 }
 0x347   : > { %v5599_v28 = vadd.f32 %v7231_v40, %v5598_v23  ;;  %v5670_v21 = vadd.f32 %v5669_v13, %v5639_v9 }
 0x349   : > { %v5671_v50 = vadd.f32 %v5670_v21, %v5640_v47  ;;  %v7235_v7 = vpop.f32.mrb[48].mxu1  ;;  %v5600_v6 = vadd.f32 %v7232_v63, %v5599_v28 }
 0x34a   : > { %v5522_v16 = vpop.f32.mrb[49].mxu1  ;;  %v5644_v51 = vmul.f32 %v7235_v7, %v7235_v7 }
 0x34b   : > { %v5601_v37 = vadd.f32 %v5600_v6, %v5522_v16  ;;  %v5642_v3 = vmul.f32 %v5522_v16, %v5522_v16  ;;  %v5672_v41 = vadd.f32 %v5671_v50, %v5641_v32  ;;  %v7236_v42 = vpop.f32.mrb[50].mxu1 }
 0x34c   : > { %v5525_v33 = vpop.f32.mrb[51].mxu1  ;;  %v5645_v62 = vmul.f32 %v7236_v42, %v7236_v42 }
 0x34d   : > { %v5673_v56 = vadd.f32 %v5672_v41, %v5642_v3  ;;  %v5602_v1 = vadd.f32 %v5601_v37, %v5525_v33  ;;  %v5643_v5 = vmul.f32 %v5525_v33, %v5525_v33 }
 0x34f   : > { %v5603_v15 = vadd.f32 %v7235_v7, %v5602_v1  ;;  %v5674_v20 = vadd.f32 %v5673_v56, %v5643_v5 }
 0x351   : > { %v5675_v30 = vadd.f32 %v5674_v20, %v5644_v51  ;;  %v7239_v4 = vpop.f32.mrb[52].mxu1  ;;  %v5604_v17 = vadd.f32 %v7236_v42, %v5603_v15  ;;  %v5585_v51 = vld [vmem:[%s9748_s6] sm:$0x1] }
 0x352   : > { %v5538_v59 = vpop.f32.mrb[53].mxu1  ;;  %v5648_v24 = vmul.f32 %v7239_v4, %v7239_v4 }
 0x353   : > { %v5605_v60 = vadd.f32 %v5604_v17, %v5538_v59  ;;  %v5646_v22 = vmul.f32 %v5538_v59, %v5538_v59  ;;  %v5676_v19 = vadd.f32 %v5675_v30, %v5645_v62  ;;  %v7240_v57 = vpop.f32.mrb[54].mxu1  ;;  %v5625_v62 = vld [vmem:[%s9749_s7] sm:$0x1] }
 0x354   : > { %v5541_v18 = vpop.f32.mrb[55].mxu1  ;;  %v5649_v53 = vmul.f32 %v7240_v57, %v7240_v57 }
 0x355   : > { %v5677_v12 = vadd.f32 %v5676_v19, %v5646_v22  ;;  %v5606_v25 = vadd.f32 %v5605_v60, %v5541_v18  ;;  %v5647_v11 = vmul.f32 %v5541_v18, %v5541_v18 }
 0x357   : > { %v5607_v34 = vadd.f32 %v7239_v4, %v5606_v25  ;;  %v5678_v48 = vadd.f32 %v5677_v12, %v5647_v11 }
 0x359   : > { %v5679_v46 = vadd.f32 %v5678_v48, %v5648_v24  ;;  %v7243_v52 = vpop.f32.mrb[56].mxu1  ;;  %v5608_v39 = vadd.f32 %v7240_v57, %v5607_v34 }
 0x35a   : > { %v5554_v44 = vpop.f32.mrb[57].mxu1  ;;  %v5652_v58 = vmul.f32 %v7243_v52, %v7243_v52 }
 0x35b   : > { %v5609_v27 = vadd.f32 %v5608_v39, %v5554_v44  ;;  %v5650_v43 = vmul.f32 %v5554_v44, %v5554_v44  ;;  %v5680_v0 = vadd.f32 %v5679_v46, %v5649_v53  ;;  %v7244_v38 = vpop.f32.mrb[58].mxu1 }
 0x35c   : > { %v5557_v14 = vpop.f32.mrb[59].mxu1  ;;  %v5653_v55 = vmul.f32 %v7244_v38, %v7244_v38 }
 0x35d   : > { %v5681_v29 = vadd.f32 %v5680_v0, %v5650_v43  ;;  %v5610_v61 = vadd.f32 %v5609_v27, %v5557_v14  ;;  %v5651_v36 = vmul.f32 %v5557_v14, %v5557_v14 }
 0x35f   : > { %v5611_v54 = vadd.f32 %v7243_v52, %v5610_v61  ;;  %v5682_v8 = vadd.f32 %v5681_v29, %v5651_v36 }
 0x361   : > { %v5683_v49 = vadd.f32 %v5682_v8, %v5652_v58  ;;  %v7247_v40 = vpop.f32.mrb[60].mxu1  ;;  %v5612_v10 = vadd.f32 %v7244_v38, %v5611_v54 }
 0x362   : > { %v5570_v35 = vpop.f32.mrb[61].mxu1  ;;  %v5656_v47 = vmul.f32 %v7247_v40, %v7247_v40 }
 0x363   : > { %v5613_v26 = vadd.f32 %v5612_v10, %v5570_v35  ;;  %v5654_v45 = vmul.f32 %v5570_v35, %v5570_v35  ;;  %v5684_v2 = vadd.f32 %v5683_v49, %v5653_v55  ;;  %v7248_v63 = vpop.f32.mrb[62].mxu1 }
 0x364   : > { %v5573_v31 = vpop.f32.mrb[63].mxu1  ;;  %v5657_v32 = vmul.f32 %v7248_v63, %v7248_v63 }
 0x365   : > { %v5685_v13 = vadd.f32 %v5684_v2, %v5654_v45  ;;  %v5614_v23 = vadd.f32 %v5613_v26, %v5573_v31  ;;  %v5655_v9 = vmul.f32 %v5573_v31, %v5573_v31 }
 0x367   : > { %v5615_v28 = vadd.f32 %v7247_v40, %v5614_v23  ;;  %v5686_v21 = vadd.f32 %v5685_v13, %v5655_v9 }
 0x369   : > { %v5616_v50 = vadd.f32 %v7248_v63, %v5615_v28  ;;  %v5687_v7 = vadd.f32 %v5686_v21, %v5656_v47 }
 0x36b   : > { %v5617_v6 = vrot.slane %v5616_v50, 4  ;;  %v5688_v16 = vadd.f32 %v5687_v7, %v5657_v32 }
 0x36d   : > { %v5618_v37 = vadd.f32 %v5617_v6, %v5616_v50  ;;  %v5689_v3 = vrot.slane %v5688_v16, 4 }
 0x36f   : > { %v5619_v41 = vrot.slane %v5618_v37, 2  ;;  %v5690_v42 = vadd.f32 %v5689_v3, %v5688_v16 }
 0x371   : > { %v5620_v33 = vadd.f32 %v5619_v41, %v5618_v37  ;;  %v5691_v56 = vrot.slane %v5690_v42, 2 }
 0x373   : > { %v5621_v1 = vrot.slane %v5620_v33, 1  ;;  %v5692_v5 = vadd.f32 %v5691_v56, %v5690_v42 }
 0x375   : > { %v5622_v15 = vadd.f32 %v5621_v1, %v5620_v33  ;;  %v5693_v20 = vrot.slane %v5692_v5, 1 }
 0x377   : > { %v5623_v30 = vadd.f32 %v5622_v15, %v5585_v51  ;;  %v5694_v4 = vadd.f32 %v5693_v20, %v5692_v5 }
 0x379   : > { %5624 = vst [vmem:[%s9748_s6] sm:$0x1] %v5623_v30  ;;  %v5695_v17 = vadd.f32 %v5694_v4, %v5625_v62 }
 0x37b   : > { %5696 = vst [vmem:[%s9749_s7] sm:$0x1] %v5695_v17 }
 0x37c PF: > { %s18_s24 = sadd.s32 1, %s7716_s24  }
 0x37d   : > { %p15_p5 = scmp.ge.s32.totalorder %s18_s24, 4  }
 0x37f   :  { %17 = sbr.rel (!%p15_p5) target bundleno = 1 (0x1), region = 100 }

</bundles_post_ra>
